<compile_context>
chip_gen: v6e
topology: v6e:2x2x1
jax: 0.10.0
libtpu: 0.0.40
codegen_flags: <defaults>
</compile_context>

<pallas_src>
import functools
import math

import jax
import jax.numpy as jnp
from jax.experimental import pallas as pl
from jax.experimental.pallas import tpu as pltpu


# ----------------------------------------------------------------------------
# Kernel: whole Transformer block (both residual branches) in one pallas_call.
# ----------------------------------------------------------------------------
def _transformer_kernel(x_ref, ln1_g_ref, ln1_b_ref, wq_ref, wk_ref, wv_ref,
                        wo_ref, bo_ref, bias_ref, ln2_g_ref, ln2_b_ref,
                        w1_ref, b1_ref, w2_ref, b2_ref, o_ref, *, eps):
    """o = FFBranch(AttnBranch(x)) with x, o in (B, C, L) layout.

    x_ref : (B, C, L)
    wq/wk/wv : (H, C, D) per-head projections (scale folded into wq)
    wo : (H, D, OUP)     per-head rows of the output projection
    bias_ref : (H, L, L) pre-gathered relative position bias
    w1 : (C, HID), w2 : (HID, C) MLP weights; biases/LN params are (1, dim) rows
    """
    heads = wq_ref.shape[0]
    B = x_ref.shape[0]

    # Weights are read once; they are already f32 (no blanket upcasts).
    ln1_g = ln1_g_ref[...]
    ln1_b = ln1_b_ref[...]
    wq = wq_ref[...]
    wk = wk_ref[...]
    wv = wv_ref[...]
    wo = wo_ref[...]
    bo = bo_ref[...]
    rb = bias_ref[...]
    ln2_g = ln2_g_ref[...]
    ln2_b = ln2_b_ref[...]
    w1 = w1_ref[...]
    b1 = b1_ref[...]
    w2 = w2_ref[...]
    b2 = b2_ref[...]

    def layernorm(t, g, b):
        mu = jnp.mean(t, axis=-1, keepdims=True)
        var = jnp.mean(jnp.square(t - mu), axis=-1, keepdims=True)
        return (t - mu) * jax.lax.rsqrt(var + eps) * g + b

    gelu_c = math.sqrt(2.0 / math.pi)

    # Batch folded into the block: tiny static unroll, no grid / pipeline steps.
    for b in range(B):
        # In-kernel layout change (XLU transpose of a small VMEM tile) replaces
        # the former wrapper-side full-HBM-pass transposes.
        xb = jnp.transpose(x_ref[b].astype(jnp.float32), (1, 0))     # (L, C)
        L, C = xb.shape

        # ---------------- attention branch (PreNorm + residual) ----------------
        xn = layernorm(xb, ln1_g, ln1_b)                              # (L, C)
        xn_h = jnp.broadcast_to(xn[None], (heads, L, C))              # (H, L, C)
        # Head-batched projections straight into (H, L, D): no lane slicing.
        q = jnp.einsum('hlc,hcd->hld', xn_h, wq,
                       preferred_element_type=jnp.float32)            # scale folded
        k = jnp.einsum('hlc,hcd->hld', xn_h, wk,
                       preferred_element_type=jnp.float32)
        v = jnp.einsum('hlc,hcd->hld', xn_h, wv,
                       preferred_element_type=jnp.float32)

        dots = jnp.einsum('hld,hmd->hlm', q, k,
                          preferred_element_type=jnp.float32) + rb    # (H, L, L)
        m = jnp.max(dots, axis=-1, keepdims=True)
        p = jnp.exp(dots - m)                                         # unnormalized
        s = jnp.sum(p, axis=-1, keepdims=True)                        # (H, L, 1)
        pv = jnp.einsum('hlm,hmd->hld', p, v,
                        preferred_element_type=jnp.float32)           # (H, L, D)
        # Deferred softmax normalization: scale the small (H, L, D) result with an
        # EUP reciprocal instead of dividing the (H, L, L) probabilities.
        pv = pv * pl.reciprocal(s, approx=True)

        # Output projection: one batched contraction + head-sum (no K=8 loop).
        proj = jnp.einsum('hld,hdo->hlo', pv, wo,
                          preferred_element_type=jnp.float32)         # (H, L, OUP)
        attn_out = jnp.sum(proj, axis=0) + bo                         # (L, OUP)
        x1 = xb + attn_out                                            # residual 1

        # ---------------- feed-forward branch (PreNorm + residual) -------------
        xn2 = layernorm(x1, ln2_g, ln2_b)
        h = jnp.dot(xn2, w1, preferred_element_type=jnp.float32) + b1  # (L, HID)
        # GELU fused into the matmul epilogue (stays in vregs).
        # TODO(synk): PyTorch nn.GELU() default is the exact erf form; the tanh
        # approximation is used for guaranteed Mosaic lowering (|diff| < 1e-3).
        h = 0.5 * h * (1.0 + jnp.tanh(gelu_c * (h + 0.044715 * h * h * h)))
        y = jnp.dot(h, w2, preferred_element_type=jnp.float32) + b2    # (L, C)
        x2 = x1 + y                                                    # residual 2

        # Back to the caller's (C, L) layout and store.
        o_ref[b] = jnp.transpose(x2, (1, 0)).astype(o_ref.dtype)


# ----------------------------------------------------------------------------
# One-time parameter preparation (hoisted out of the per-call path).
# ----------------------------------------------------------------------------
def _make_relative_index(ih, iw):
    """Replicates the PyTorch buffer `relative_index` (flattened, shape (n*n,))."""
    ci, cj = jnp.meshgrid(jnp.arange(ih), jnp.arange(iw), indexing="ij")
    coords = jnp.stack([ci, cj]).reshape(2, -1)            # (2, n)
    rel = coords[:, :, None] - coords[:, None, :]          # (2, n, n)
    rel = rel.at[0].add(ih - 1)
    rel = rel.at[1].add(iw - 1)
    rel = rel.at[0].multiply(2 * iw - 1)
    rel = jnp.transpose(rel, (1, 2, 0))                    # (n, n, 2)
    return jnp.sum(rel, axis=-1).reshape(-1)               # (n*n,)


def prepare_transformer_params(params, *, heads, dim_head, image_size):
    """Host-side, one-time: per-head weight layout, folded scale, bias gather."""
    ih, iw = image_size
    n = ih * iw
    C = params["wqkv"].shape[0]
    oup = params["wo"].shape[1]
    assert oup == C, "residual path requires inp == oup when downsample=False"
    scale = dim_head ** (-0.5)

    wq, wk, wv = jnp.split(params["wqkv"], 3, axis=1)       # each (C, H*D)
    to_heads = lambda w: jnp.transpose(w.reshape(C, heads, dim_head), (1, 0, 2))
    rel_idx = _make_relative_index(ih, iw)
    rel_bias = jnp.take(params["rel_table"], rel_idx, axis=0)      # (n*n, H)
    rel_bias = rel_bias.reshape(n, n, heads).transpose(2, 0, 1)    # (H, n, n)

    row = lambda p: p.reshape(1, -1)
    return dict(
        ln1_g=row(params["ln1_g"]), ln1_b=row(params["ln1_b"]),
        wq=to_heads(wq) * scale,                 # 1/sqrt(d) folded into Q weights
        wk=to_heads(wk),
        wv=to_heads(wv),
        wo=params["wo"].reshape(heads, dim_head, oup),
        bo=row(params["bo"]),
        rel_bias=rel_bias,
        ln2_g=row(params["ln2_g"]), ln2_b=row(params["ln2_b"]),
        w1=params["w1"], b1=row(params["b1"]),
        w2=params["w2"], b2=row(params["b2"]),
    )


# ----------------------------------------------------------------------------
# Wrapper: single fused pallas_call, no grid, no wrapper-side layout ops.
# ----------------------------------------------------------------------------
def transformer_forward(x, kp, *, eps=1e-5):
    """CTA Transformer block forward (downsample=False, dropout=0.0).

    x: (B, C, L) channels-first, kp: output of prepare_transformer_params.
    """
    B, C, L = x.shape
    assert kp["rel_bias"].shape[-1] == L, "sequence length must equal ih * iw"

    args = (x, kp["ln1_g"], kp["ln1_b"], kp["wq"], kp["wk"], kp["wv"],
            kp["wo"], kp["bo"], kp["rel_bias"], kp["ln2_g"], kp["ln2_b"],
            kp["w1"], kp["b1"], kp["w2"], kp["b2"])
    vmem = lambda: pl.BlockSpec(memory_space=pltpu.MemorySpace.VMEM)

    return pl.pallas_call(
        functools.partial(_transformer_kernel, eps=eps),
        out_shape=jax.ShapeDtypeStruct((B, C, L), x.dtype),
        in_specs=[vmem() for _ in args],
        out_specs=vmem(),
    )(*args)


# ----------------------------------------------------------------------------
# Pure-JAX reference (mirrors the PyTorch forward)
# ----------------------------------------------------------------------------
def transformer_ref(x, params, *, heads, dim_head, image_size, eps=1e-5):
    ih, iw = image_size
    B, C, L = x.shape
    n = ih * iw
    inner = heads * dim_head
    scale = dim_head ** (-0.5)

    def layernorm(t, g, b):
        mu = t.mean(-1, keepdims=True)
        var = ((t - mu) ** 2).mean(-1, keepdims=True)
        return (t - mu) / jnp.sqrt(var + eps) * g + b

    # attention branch
    xt = jnp.transpose(x, (0, 2, 1))
    xn = layernorm(xt, params["ln1_g"], params["ln1_b"])
    qkv = xn @ params["wqkv"]
    q, k, v = jnp.split(qkv, 3, axis=-1)
    split_heads = lambda t: t.reshape(B, L, heads, dim_head).transpose(0, 2, 1, 3)
    q, k, v = split_heads(q), split_heads(k), split_heads(v)
    dots = jnp.einsum("bhld,bhmd->bhlm", q, k) * scale
    rel_idx = _make_relative_index(ih, iw)
    rb = jnp.take(params["rel_table"], rel_idx, axis=0)
    rb = rb.reshape(n, n, heads).transpose(2, 0, 1)[None]
    attn = jax.nn.softmax(dots + rb, axis=-1)
    out = jnp.einsum("bhlm,bhmd->bhld", attn, v)
    out = out.transpose(0, 2, 1, 3).reshape(B, L, inner)
    out = out @ params["wo"] + params["bo"]
    x = x + jnp.transpose(out, (0, 2, 1))

    # feed-forward branch (tanh-GELU, matching the kernel)
    xt = jnp.transpose(x, (0, 2, 1))
    xn = layernorm(xt, params["ln2_g"], params["ln2_b"])
    h = xn @ params["w1"] + params["b1"]
    c = math.sqrt(2.0 / math.pi)
    h = 0.5 * h * (1.0 + jnp.tanh(c * (h + 0.044715 * h ** 3)))
    y = h @ params["w2"] + params["b2"]
    return x + jnp.transpose(y, (0, 2, 1))


if __name__ == "__main__":
    # Full-precision f32 matmuls on both paths so the comparison is tight.
    jax.config.update("jax_default_matmul_precision", "highest")

    key = jax.random.PRNGKey(0)
    B = 2
    inp = oup = 32                 # residual path needs inp == oup (no downsample)
    ih, iw = 8, 1                  # sequence length L = ih * iw = 8
    L = ih * iw
    heads, dim_head = 4, 8
    inner = heads * dim_head
    hidden = inp * 4

    ks = jax.random.split(key, 13)
    w = lambda k, shape, s=0.1: jax.random.normal(k, shape, jnp.float32) * s

    x = jax.random.normal(ks[0], (B, inp, L), jnp.float32)
    params = {
        "ln1_g": 1.0 + w(ks[1], (inp,)),
        "ln1_b": w(ks[2], (inp,)),
        "wqkv": w(ks[3], (inp, 3 * inner)),
        "wo": w(ks[4], (inner, oup)),
        "bo": w(ks[5], (oup,)),
        "rel_table": w(ks[6], ((2 * ih - 1) * (2 * iw - 1), heads)),
        "ln2_g": 1.0 + w(ks[7], (oup,)),
        "ln2_b": w(ks[8], (oup,)),
        "w1": w(ks[9], (oup, hidden)),
        "b1": w(ks[10], (hidden,)),
        "w2": w(ks[11], (hidden, oup)),
        "b2": w(ks[12], (oup,)),
    }

    # One-time parameter preparation (hoisted out of the forward path).
    kparams = prepare_transformer_params(params, heads=heads, dim_head=dim_head,
                                         image_size=(ih, iw))

    y = transformer_forward(x, kparams)
    y = jax.block_until_ready(y)

    y_ref = transformer_ref(x, params, heads=heads, dim_head=dim_head,
                            image_size=(ih, iw))
    assert y.shape == x.shape and y.dtype == x.dtype
    max_err = float(jnp.max(jnp.abs(y - y_ref)))
    # f32 everywhere; only the approx EUP reciprocal (~1e-3 rel) separates the
    # kernel from the exact-softmax reference, so 1e-2 is comfortably tight.
    assert jnp.allclose(y, y_ref, atol=1e-2, rtol=1e-2), f"mismatch: {max_err}"
    print("KERNEL_OK")
</pallas_src>

<mosaic_0001>
module attributes {stable_mosaic.version = 11 : i64} {
  func.func @_transformer_kernel(%arg0: memref<2x32x8xf32, #tpu.memory_space<vmem>>, %arg1: memref<1x32xf32, #tpu.memory_space<vmem>>, %arg2: memref<1x32xf32, #tpu.memory_space<vmem>>, %arg3: memref<4x32x8xf32, #tpu.memory_space<vmem>>, %arg4: memref<4x32x8xf32, #tpu.memory_space<vmem>>, %arg5: memref<4x32x8xf32, #tpu.memory_space<vmem>>, %arg6: memref<4x8x32xf32, #tpu.memory_space<vmem>>, %arg7: memref<1x32xf32, #tpu.memory_space<vmem>>, %arg8: memref<4x8x8xf32, #tpu.memory_space<vmem>>, %arg9: memref<1x32xf32, #tpu.memory_space<vmem>>, %arg10: memref<1x32xf32, #tpu.memory_space<vmem>>, %arg11: memref<32x128xf32, #tpu.memory_space<vmem>>, %arg12: memref<1x128xf32, #tpu.memory_space<vmem>>, %arg13: memref<128x32xf32, #tpu.memory_space<vmem>>, %arg14: memref<1x32xf32, #tpu.memory_space<vmem>>, %arg15: memref<2x32x8xf32, #tpu.memory_space<vmem>>) attributes {dimension_semantics = [], scalar_prefetch = 0 : i64, scratch_operands = 0 : i64, tpu.core_type = #tpu.core_type<tc>} {
    %c0 = arith.constant 0 : index
    %c0_0 = arith.constant 0 : index
    %0 = vector.load %arg1[%c0, %c0_0] : memref<1x32xf32, #tpu.memory_space<vmem>>, vector<1x32xf32>
    %c0_1 = arith.constant 0 : index
    %c0_2 = arith.constant 0 : index
    %1 = vector.load %arg2[%c0_1, %c0_2] : memref<1x32xf32, #tpu.memory_space<vmem>>, vector<1x32xf32>
    %c0_3 = arith.constant 0 : index
    %c0_4 = arith.constant 0 : index
    %c0_5 = arith.constant 0 : index
    %2 = vector.load %arg3[%c0_3, %c0_4, %c0_5] : memref<4x32x8xf32, #tpu.memory_space<vmem>>, vector<4x32x8xf32>
    %c0_6 = arith.constant 0 : index
    %c0_7 = arith.constant 0 : index
    %c0_8 = arith.constant 0 : index
    %3 = vector.load %arg4[%c0_6, %c0_7, %c0_8] : memref<4x32x8xf32, #tpu.memory_space<vmem>>, vector<4x32x8xf32>
    %c0_9 = arith.constant 0 : index
    %c0_10 = arith.constant 0 : index
    %c0_11 = arith.constant 0 : index
    %4 = vector.load %arg5[%c0_9, %c0_10, %c0_11] : memref<4x32x8xf32, #tpu.memory_space<vmem>>, vector<4x32x8xf32>
    %c0_12 = arith.constant 0 : index
    %c0_13 = arith.constant 0 : index
    %c0_14 = arith.constant 0 : index
    %5 = vector.load %arg6[%c0_12, %c0_13, %c0_14] : memref<4x8x32xf32, #tpu.memory_space<vmem>>, vector<4x8x32xf32>
    %c0_15 = arith.constant 0 : index
    %c0_16 = arith.constant 0 : index
    %6 = vector.load %arg7[%c0_15, %c0_16] : memref<1x32xf32, #tpu.memory_space<vmem>>, vector<1x32xf32>
    %c0_17 = arith.constant 0 : index
    %c0_18 = arith.constant 0 : index
    %c0_19 = arith.constant 0 : index
    %7 = vector.load %arg8[%c0_17, %c0_18, %c0_19] : memref<4x8x8xf32, #tpu.memory_space<vmem>>, vector<4x8x8xf32>
    %c0_20 = arith.constant 0 : index
    %c0_21 = arith.constant 0 : index
    %8 = vector.load %arg9[%c0_20, %c0_21] : memref<1x32xf32, #tpu.memory_space<vmem>>, vector<1x32xf32>
    %c0_22 = arith.constant 0 : index
    %c0_23 = arith.constant 0 : index
    %9 = vector.load %arg10[%c0_22, %c0_23] : memref<1x32xf32, #tpu.memory_space<vmem>>, vector<1x32xf32>
    %c0_24 = arith.constant 0 : index
    %c0_25 = arith.constant 0 : index
    %10 = vector.load %arg11[%c0_24, %c0_25] : memref<32x128xf32, #tpu.memory_space<vmem>>, vector<32x128xf32>
    %c0_26 = arith.constant 0 : index
    %c0_27 = arith.constant 0 : index
    %11 = vector.load %arg12[%c0_26, %c0_27] : memref<1x128xf32, #tpu.memory_space<vmem>>, vector<1x128xf32>
    %c0_28 = arith.constant 0 : index
    %c0_29 = arith.constant 0 : index
    %12 = vector.load %arg13[%c0_28, %c0_29] : memref<128x32xf32, #tpu.memory_space<vmem>>, vector<128x32xf32>
    %c0_30 = arith.constant 0 : index
    %c0_31 = arith.constant 0 : index
    %13 = vector.load %arg14[%c0_30, %c0_31] : memref<1x32xf32, #tpu.memory_space<vmem>>, vector<1x32xf32>
    %c0_32 = arith.constant 0 : index
    %c0_33 = arith.constant 0 : index
    %c0_34 = arith.constant 0 : index
    %14 = vector.load %arg0[%c0_32, %c0_33, %c0_34] : memref<2x32x8xf32, #tpu.memory_space<vmem>>, vector<1x32x8xf32>
    %15 = vector.shape_cast %14 : vector<1x32x8xf32> to vector<32x8xf32>
    %16 = tpu.transpose %15, [1, 0] : vector<32x8xf32> -> vector<8x32xf32>
    %cst = arith.constant dense<0.000000e+00> : vector<8xf32>
    %17 = vector.multi_reduction <add>, %16, %cst [1] : vector<8x32xf32> to vector<8xf32>
    %18 = vector.shape_cast %17 : vector<8xf32> to vector<8x1xf32>
    %cst_35 = arith.constant 3.200000e+01 : f32
    %19 = vector.broadcast %cst_35 : f32 to vector<8x1xf32>
    %20 = arith.divf %18, %19 : vector<8x1xf32>
    %21 = vector.broadcast %20 : vector<8x1xf32> to vector<8x32xf32>
    %22 = arith.subf %16, %21 : vector<8x32xf32>
    %23 = arith.mulf %22, %22 : vector<8x32xf32>
    %cst_36 = arith.constant dense<0.000000e+00> : vector<8xf32>
    %24 = vector.multi_reduction <add>, %23, %cst_36 [1] : vector<8x32xf32> to vector<8xf32>
    %25 = vector.shape_cast %24 : vector<8xf32> to vector<8x1xf32>
    %cst_37 = arith.constant 3.200000e+01 : f32
    %26 = vector.broadcast %cst_37 : f32 to vector<8x1xf32>
    %27 = arith.divf %25, %26 : vector<8x1xf32>
    %28 = vector.broadcast %20 : vector<8x1xf32> to vector<8x32xf32>
    %29 = arith.subf %16, %28 : vector<8x32xf32>
    %cst_38 = arith.constant 9.99999974E-6 : f32
    %30 = vector.broadcast %cst_38 : f32 to vector<8x1xf32>
    %31 = arith.addf %27, %30 : vector<8x1xf32>
    %32 = math.rsqrt %31 : vector<8x1xf32>
    %33 = vector.broadcast %32 : vector<8x1xf32> to vector<8x32xf32>
    %34 = arith.mulf %29, %33 : vector<8x32xf32>
    %35 = vector.broadcast %0 : vector<1x32xf32> to vector<8x32xf32>
    %36 = arith.mulf %34, %35 : vector<8x32xf32>
    %37 = vector.broadcast %1 : vector<1x32xf32> to vector<8x32xf32>
    %38 = arith.addf %36, %37 : vector<8x32xf32>
    %39 = vector.shape_cast %38 : vector<8x32xf32> to vector<1x8x32xf32>
    %40 = vector.shape_cast %39 : vector<1x8x32xf32> to vector<1x8x32xf32>
    %41 = vector.broadcast %40 : vector<1x8x32xf32> to vector<4x8x32xf32>
    "tpu.trace_start"() <{level = 10 : i32, message = "hlc,hcd->hld"}> : () -> ()
    %cst_39 = arith.constant dense<0.000000e+00> : vector<4x8x8xf32>
    %42 = tpu.matmul %41, %2, %cst_39 {dimension_numbers = #tpu.dot_dimension_numbers<[2], [1], [1], [2], [0, 0, 0, 1, 1, 2], [0], [0]>, precision = #tpu.contract_precision<fp32>} : vector<4x8x32xf32>, vector<4x32x8xf32>, vector<4x8x8xf32> -> vector<4x8x8xf32>
    %cst_40 = arith.constant dense<0.000000e+00> : vector<4x8x8xf32>
    %43 = tpu.matmul %41, %3, %cst_40 {dimension_numbers = #tpu.dot_dimension_numbers<[2], [1], [1], [2], [0, 0, 0, 1, 1, 2], [0], [0]>, precision = #tpu.contract_precision<fp32>} : vector<4x8x32xf32>, vector<4x32x8xf32>, vector<4x8x8xf32> -> vector<4x8x8xf32>
    %cst_41 = arith.constant dense<0.000000e+00> : vector<4x8x8xf32>
    %44 = tpu.matmul %41, %4, %cst_41 {dimension_numbers = #tpu.dot_dimension_numbers<[2], [1], [1], [2], [0, 0, 0, 1, 1, 2], [0], [0]>, precision = #tpu.contract_precision<fp32>} : vector<4x8x32xf32>, vector<4x32x8xf32>, vector<4x8x8xf32> -> vector<4x8x8xf32>
    "tpu.trace_stop"() : () -> ()
    "tpu.trace_start"() <{level = 10 : i32, message = "hld,hmd->hlm"}> : () -> ()
    %cst_42 = arith.constant dense<0.000000e+00> : vector<4x8x8xf32>
    %45 = tpu.matmul %42, %43, %cst_42 {dimension_numbers = #tpu.dot_dimension_numbers<[2], [2], [1], [1], [0, 0, 0, 1, 1, 1], [0], [0]>, precision = #tpu.contract_precision<fp32>} : vector<4x8x8xf32>, vector<4x8x8xf32>, vector<4x8x8xf32> -> vector<4x8x8xf32>
    "tpu.trace_stop"() : () -> ()
    %46 = arith.addf %45, %7 : vector<4x8x8xf32>
    %cst_43 = arith.constant dense<0xFF800000> : vector<4x8xf32>
    %47 = vector.multi_reduction <maximumf>, %46, %cst_43 [2] : vector<4x8x8xf32> to vector<4x8xf32>
    %48 = vector.shape_cast %47 : vector<4x8xf32> to vector<4x8x1xf32>
    %49 = vector.broadcast %48 : vector<4x8x1xf32> to vector<4x8x8xf32>
    %50 = arith.subf %46, %49 : vector<4x8x8xf32>
    %51 = math.exp %50 : vector<4x8x8xf32>
    %cst_44 = arith.constant dense<0.000000e+00> : vector<4x8xf32>
    %52 = vector.multi_reduction <add>, %51, %cst_44 [2] : vector<4x8x8xf32> to vector<4x8xf32>
    %53 = vector.shape_cast %52 : vector<4x8xf32> to vector<4x8x1xf32>
    "tpu.trace_start"() <{level = 10 : i32, message = "hlm,hmd->hld"}> : () -> ()
    %cst_45 = arith.constant dense<0.000000e+00> : vector<4x8x8xf32>
    %54 = tpu.matmul %51, %44, %cst_45 {dimension_numbers = #tpu.dot_dimension_numbers<[2], [1], [1], [2], [0, 0, 0, 1, 1, 2], [0], [0]>, precision = #tpu.contract_precision<fp32>} : vector<4x8x8xf32>, vector<4x8x8xf32>, vector<4x8x8xf32> -> vector<4x8x8xf32>
    "tpu.trace_stop"() : () -> ()
    %55 = tpu.reciprocal %53 {approx = true} : vector<4x8x1xf32> -> vector<4x8x1xf32>
    %56 = vector.broadcast %55 : vector<4x8x1xf32> to vector<4x8x8xf32>
    %57 = arith.mulf %54, %56 : vector<4x8x8xf32>
    "tpu.trace_start"() <{level = 10 : i32, message = "hld,hdo->hlo"}> : () -> ()
    %cst_46 = arith.constant dense<0.000000e+00> : vector<4x8x32xf32>
    %58 = tpu.matmul %57, %5, %cst_46 {dimension_numbers = #tpu.dot_dimension_numbers<[2], [1], [1], [2], [0, 0, 0, 1, 1, 2], [0], [0]>, precision = #tpu.contract_precision<fp32>} : vector<4x8x8xf32>, vector<4x8x32xf32>, vector<4x8x32xf32> -> vector<4x8x32xf32>
    "tpu.trace_stop"() : () -> ()
    %cst_47 = arith.constant dense<0.000000e+00> : vector<8x32xf32>
    %59 = vector.multi_reduction <add>, %58, %cst_47 [0] : vector<4x8x32xf32> to vector<8x32xf32>
    %60 = vector.broadcast %6 : vector<1x32xf32> to vector<8x32xf32>
    %61 = arith.addf %59, %60 : vector<8x32xf32>
    %62 = arith.addf %16, %61 : vector<8x32xf32>
    %cst_48 = arith.constant dense<0.000000e+00> : vector<8xf32>
    %63 = vector.multi_reduction <add>, %62, %cst_48 [1] : vector<8x32xf32> to vector<8xf32>
    %64 = vector.shape_cast %63 : vector<8xf32> to vector<8x1xf32>
    %cst_49 = arith.constant 3.200000e+01 : f32
    %65 = vector.broadcast %cst_49 : f32 to vector<8x1xf32>
    %66 = arith.divf %64, %65 : vector<8x1xf32>
    %67 = vector.broadcast %66 : vector<8x1xf32> to vector<8x32xf32>
    %68 = arith.subf %62, %67 : vector<8x32xf32>
    %69 = arith.mulf %68, %68 : vector<8x32xf32>
    %cst_50 = arith.constant dense<0.000000e+00> : vector<8xf32>
    %70 = vector.multi_reduction <add>, %69, %cst_50 [1] : vector<8x32xf32> to vector<8xf32>
    %71 = vector.shape_cast %70 : vector<8xf32> to vector<8x1xf32>
    %cst_51 = arith.constant 3.200000e+01 : f32
    %72 = vector.broadcast %cst_51 : f32 to vector<8x1xf32>
    %73 = arith.divf %71, %72 : vector<8x1xf32>
    %74 = vector.broadcast %66 : vector<8x1xf32> to vector<8x32xf32>
    %75 = arith.subf %62, %74 : vector<8x32xf32>
    %cst_52 = arith.constant 9.99999974E-6 : f32
    %76 = vector.broadcast %cst_52 : f32 to vector<8x1xf32>
    %77 = arith.addf %73, %76 : vector<8x1xf32>
    %78 = math.rsqrt %77 : vector<8x1xf32>
    %79 = vector.broadcast %78 : vector<8x1xf32> to vector<8x32xf32>
    %80 = arith.mulf %75, %79 : vector<8x32xf32>
    %81 = vector.broadcast %8 : vector<1x32xf32> to vector<8x32xf32>
    %82 = arith.mulf %80, %81 : vector<8x32xf32>
    %83 = vector.broadcast %9 : vector<1x32xf32> to vector<8x32xf32>
    %84 = arith.addf %82, %83 : vector<8x32xf32>
    %cst_53 = arith.constant dense<0.000000e+00> : vector<8x128xf32>
    %85 = tpu.matmul %84, %10, %cst_53 {dimension_numbers = #tpu.dot_dimension_numbers<[1], [0], [0], [1], [0, 0, 1, 1], [], []>, precision = #tpu.contract_precision<fp32>} : vector<8x32xf32>, vector<32x128xf32>, vector<8x128xf32> -> vector<8x128xf32>
    %86 = vector.broadcast %11 : vector<1x128xf32> to vector<8x128xf32>
    %87 = arith.addf %85, %86 : vector<8x128xf32>
    %cst_54 = arith.constant 5.000000e-01 : f32
    %88 = vector.broadcast %cst_54 : f32 to vector<8x128xf32>
    %89 = arith.mulf %88, %87 : vector<8x128xf32>
    %cst_55 = arith.constant 4.471500e-02 : f32
    %90 = vector.broadcast %cst_55 : f32 to vector<8x128xf32>
    %91 = arith.mulf %90, %87 : vector<8x128xf32>
    %92 = arith.mulf %91, %87 : vector<8x128xf32>
    %93 = arith.mulf %92, %87 : vector<8x128xf32>
    %94 = arith.addf %87, %93 : vector<8x128xf32>
    %cst_56 = arith.constant 0.797884583 : f32
    %95 = vector.broadcast %cst_56 : f32 to vector<8x128xf32>
    %96 = arith.mulf %95, %94 : vector<8x128xf32>
    %97 = math.tanh %96 : vector<8x128xf32>
    %cst_57 = arith.constant 1.000000e+00 : f32
    %98 = vector.broadcast %cst_57 : f32 to vector<8x128xf32>
    %99 = arith.addf %98, %97 : vector<8x128xf32>
    %100 = arith.mulf %89, %99 : vector<8x128xf32>
    %cst_58 = arith.constant dense<0.000000e+00> : vector<8x32xf32>
    %101 = tpu.matmul %100, %12, %cst_58 {dimension_numbers = #tpu.dot_dimension_numbers<[1], [0], [0], [1], [0, 0, 1, 1], [], []>, precision = #tpu.contract_precision<fp32>} : vector<8x128xf32>, vector<128x32xf32>, vector<8x32xf32> -> vector<8x32xf32>
    %102 = vector.broadcast %13 : vector<1x32xf32> to vector<8x32xf32>
    %103 = arith.addf %101, %102 : vector<8x32xf32>
    %104 = arith.addf %62, %103 : vector<8x32xf32>
    %105 = tpu.transpose %104, [1, 0] : vector<8x32xf32> -> vector<32x8xf32>
    %c0_59 = arith.constant 0 : index
    %c0_60 = arith.constant 0 : index
    %c0_61 = arith.constant 0 : index
    %106 = vector.load %arg15[%c0_59, %c0_60, %c0_61] : memref<2x32x8xf32, #tpu.memory_space<vmem>>, vector<1x32x8xf32>
    %107 = vector.shape_cast %106 : vector<1x32x8xf32> to vector<32x8xf32>
    %108 = vector.shape_cast %105 : vector<32x8xf32> to vector<1x32x8xf32>
    tpu.vector_store %arg15[%c0_59, %c0_60, %c0_61], %108 {strides = array<i32>} : memref<2x32x8xf32, #tpu.memory_space<vmem>>, vector<1x32x8xf32>,
    %c1 = arith.constant 1 : index
    %c0_62 = arith.constant 0 : index
    %c0_63 = arith.constant 0 : index
    %109 = vector.load %arg0[%c1, %c0_62, %c0_63] : memref<2x32x8xf32, #tpu.memory_space<vmem>>, vector<1x32x8xf32>
    %110 = vector.shape_cast %109 : vector<1x32x8xf32> to vector<32x8xf32>
    %111 = tpu.transpose %110, [1, 0] : vector<32x8xf32> -> vector<8x32xf32>
    %cst_64 = arith.constant dense<0.000000e+00> : vector<8xf32>
    %112 = vector.multi_reduction <add>, %111, %cst_64 [1] : vector<8x32xf32> to vector<8xf32>
    %113 = vector.shape_cast %112 : vector<8xf32> to vector<8x1xf32>
    %cst_65 = arith.constant 3.200000e+01 : f32
    %114 = vector.broadcast %cst_65 : f32 to vector<8x1xf32>
    %115 = arith.divf %113, %114 : vector<8x1xf32>
    %116 = vector.broadcast %115 : vector<8x1xf32> to vector<8x32xf32>
    %117 = arith.subf %111, %116 : vector<8x32xf32>
    %118 = arith.mulf %117, %117 : vector<8x32xf32>
    %cst_66 = arith.constant dense<0.000000e+00> : vector<8xf32>
    %119 = vector.multi_reduction <add>, %118, %cst_66 [1] : vector<8x32xf32> to vector<8xf32>
    %120 = vector.shape_cast %119 : vector<8xf32> to vector<8x1xf32>
    %cst_67 = arith.constant 3.200000e+01 : f32
    %121 = vector.broadcast %cst_67 : f32 to vector<8x1xf32>
    %122 = arith.divf %120, %121 : vector<8x1xf32>
    %123 = vector.broadcast %115 : vector<8x1xf32> to vector<8x32xf32>
    %124 = arith.subf %111, %123 : vector<8x32xf32>
    %cst_68 = arith.constant 9.99999974E-6 : f32
    %125 = vector.broadcast %cst_68 : f32 to vector<8x1xf32>
    %126 = arith.addf %122, %125 : vector<8x1xf32>
    %127 = math.rsqrt %126 : vector<8x1xf32>
    %128 = vector.broadcast %127 : vector<8x1xf32> to vector<8x32xf32>
    %129 = arith.mulf %124, %128 : vector<8x32xf32>
    %130 = vector.broadcast %0 : vector<1x32xf32> to vector<8x32xf32>
    %131 = arith.mulf %129, %130 : vector<8x32xf32>
    %132 = vector.broadcast %1 : vector<1x32xf32> to vector<8x32xf32>
    %133 = arith.addf %131, %132 : vector<8x32xf32>
    %134 = vector.shape_cast %133 : vector<8x32xf32> to vector<1x8x32xf32>
    %135 = vector.shape_cast %134 : vector<1x8x32xf32> to vector<1x8x32xf32>
    %136 = vector.broadcast %135 : vector<1x8x32xf32> to vector<4x8x32xf32>
    "tpu.trace_start"() <{level = 10 : i32, message = "hlc,hcd->hld"}> : () -> ()
    %cst_69 = arith.constant dense<0.000000e+00> : vector<4x8x8xf32>
    %137 = tpu.matmul %136, %2, %cst_69 {dimension_numbers = #tpu.dot_dimension_numbers<[2], [1], [1], [2], [0, 0, 0, 1, 1, 2], [0], [0]>, precision = #tpu.contract_precision<fp32>} : vector<4x8x32xf32>, vector<4x32x8xf32>, vector<4x8x8xf32> -> vector<4x8x8xf32>
    %cst_70 = arith.constant dense<0.000000e+00> : vector<4x8x8xf32>
    %138 = tpu.matmul %136, %3, %cst_70 {dimension_numbers = #tpu.dot_dimension_numbers<[2], [1], [1], [2], [0, 0, 0, 1, 1, 2], [0], [0]>, precision = #tpu.contract_precision<fp32>} : vector<4x8x32xf32>, vector<4x32x8xf32>, vector<4x8x8xf32> -> vector<4x8x8xf32>
    %cst_71 = arith.constant dense<0.000000e+00> : vector<4x8x8xf32>
    %139 = tpu.matmul %136, %4, %cst_71 {dimension_numbers = #tpu.dot_dimension_numbers<[2], [1], [1], [2], [0, 0, 0, 1, 1, 2], [0], [0]>, precision = #tpu.contract_precision<fp32>} : vector<4x8x32xf32>, vector<4x32x8xf32>, vector<4x8x8xf32> -> vector<4x8x8xf32>
    "tpu.trace_stop"() : () -> ()
    "tpu.trace_start"() <{level = 10 : i32, message = "hld,hmd->hlm"}> : () -> ()
    %cst_72 = arith.constant dense<0.000000e+00> : vector<4x8x8xf32>
    %140 = tpu.matmul %137, %138, %cst_72 {dimension_numbers = #tpu.dot_dimension_numbers<[2], [2], [1], [1], [0, 0, 0, 1, 1, 1], [0], [0]>, precision = #tpu.contract_precision<fp32>} : vector<4x8x8xf32>, vector<4x8x8xf32>, vector<4x8x8xf32> -> vector<4x8x8xf32>
    "tpu.trace_stop"() : () -> ()
    %141 = arith.addf %140, %7 : vector<4x8x8xf32>
    %cst_73 = arith.constant dense<0xFF800000> : vector<4x8xf32>
    %142 = vector.multi_reduction <maximumf>, %141, %cst_73 [2] : vector<4x8x8xf32> to vector<4x8xf32>
    %143 = vector.shape_cast %142 : vector<4x8xf32> to vector<4x8x1xf32>
    %144 = vector.broadcast %143 : vector<4x8x1xf32> to vector<4x8x8xf32>
    %145 = arith.subf %141, %144 : vector<4x8x8xf32>
    %146 = math.exp %145 : vector<4x8x8xf32>
    %cst_74 = arith.constant dense<0.000000e+00> : vector<4x8xf32>
    %147 = vector.multi_reduction <add>, %146, %cst_74 [2] : vector<4x8x8xf32> to vector<4x8xf32>
    %148 = vector.shape_cast %147 : vector<4x8xf32> to vector<4x8x1xf32>
    "tpu.trace_start"() <{level = 10 : i32, message = "hlm,hmd->hld"}> : () -> ()
    %cst_75 = arith.constant dense<0.000000e+00> : vector<4x8x8xf32>
    %149 = tpu.matmul %146, %139, %cst_75 {dimension_numbers = #tpu.dot_dimension_numbers<[2], [1], [1], [2], [0, 0, 0, 1, 1, 2], [0], [0]>, precision = #tpu.contract_precision<fp32>} : vector<4x8x8xf32>, vector<4x8x8xf32>, vector<4x8x8xf32> -> vector<4x8x8xf32>
    "tpu.trace_stop"() : () -> ()
    %150 = tpu.reciprocal %148 {approx = true} : vector<4x8x1xf32> -> vector<4x8x1xf32>
    %151 = vector.broadcast %150 : vector<4x8x1xf32> to vector<4x8x8xf32>
    %152 = arith.mulf %149, %151 : vector<4x8x8xf32>
    "tpu.trace_start"() <{level = 10 : i32, message = "hld,hdo->hlo"}> : () -> ()
    %cst_76 = arith.constant dense<0.000000e+00> : vector<4x8x32xf32>
    %153 = tpu.matmul %152, %5, %cst_76 {dimension_numbers = #tpu.dot_dimension_numbers<[2], [1], [1], [2], [0, 0, 0, 1, 1, 2], [0], [0]>, precision = #tpu.contract_precision<fp32>} : vector<4x8x8xf32>, vector<4x8x32xf32>, vector<4x8x32xf32> -> vector<4x8x32xf32>
    "tpu.trace_stop"() : () -> ()
    %cst_77 = arith.constant dense<0.000000e+00> : vector<8x32xf32>
    %154 = vector.multi_reduction <add>, %153, %cst_77 [0] : vector<4x8x32xf32> to vector<8x32xf32>
    %155 = vector.broadcast %6 : vector<1x32xf32> to vector<8x32xf32>
    %156 = arith.addf %154, %155 : vector<8x32xf32>
    %157 = arith.addf %111, %156 : vector<8x32xf32>
    %cst_78 = arith.constant dense<0.000000e+00> : vector<8xf32>
    %158 = vector.multi_reduction <add>, %157, %cst_78 [1] : vector<8x32xf32> to vector<8xf32>
    %159 = vector.shape_cast %158 : vector<8xf32> to vector<8x1xf32>
    %cst_79 = arith.constant 3.200000e+01 : f32
    %160 = vector.broadcast %cst_79 : f32 to vector<8x1xf32>
    %161 = arith.divf %159, %160 : vector<8x1xf32>
    %162 = vector.broadcast %161 : vector<8x1xf32> to vector<8x32xf32>
    %163 = arith.subf %157, %162 : vector<8x32xf32>
    %164 = arith.mulf %163, %163 : vector<8x32xf32>
    %cst_80 = arith.constant dense<0.000000e+00> : vector<8xf32>
    %165 = vector.multi_reduction <add>, %164, %cst_80 [1] : vector<8x32xf32> to vector<8xf32>
    %166 = vector.shape_cast %165 : vector<8xf32> to vector<8x1xf32>
    %cst_81 = arith.constant 3.200000e+01 : f32
    %167 = vector.broadcast %cst_81 : f32 to vector<8x1xf32>
    %168 = arith.divf %166, %167 : vector<8x1xf32>
    %169 = vector.broadcast %161 : vector<8x1xf32> to vector<8x32xf32>
    %170 = arith.subf %157, %169 : vector<8x32xf32>
    %cst_82 = arith.constant 9.99999974E-6 : f32
    %171 = vector.broadcast %cst_82 : f32 to vector<8x1xf32>
    %172 = arith.addf %168, %171 : vector<8x1xf32>
    %173 = math.rsqrt %172 : vector<8x1xf32>
    %174 = vector.broadcast %173 : vector<8x1xf32> to vector<8x32xf32>
    %175 = arith.mulf %170, %174 : vector<8x32xf32>
    %176 = vector.broadcast %8 : vector<1x32xf32> to vector<8x32xf32>
    %177 = arith.mulf %175, %176 : vector<8x32xf32>
    %178 = vector.broadcast %9 : vector<1x32xf32> to vector<8x32xf32>
    %179 = arith.addf %177, %178 : vector<8x32xf32>
    %cst_83 = arith.constant dense<0.000000e+00> : vector<8x128xf32>
    %180 = tpu.matmul %179, %10, %cst_83 {dimension_numbers = #tpu.dot_dimension_numbers<[1], [0], [0], [1], [0, 0, 1, 1], [], []>, precision = #tpu.contract_precision<fp32>} : vector<8x32xf32>, vector<32x128xf32>, vector<8x128xf32> -> vector<8x128xf32>
    %181 = vector.broadcast %11 : vector<1x128xf32> to vector<8x128xf32>
    %182 = arith.addf %180, %181 : vector<8x128xf32>
    %cst_84 = arith.constant 5.000000e-01 : f32
    %183 = vector.broadcast %cst_84 : f32 to vector<8x128xf32>
    %184 = arith.mulf %183, %182 : vector<8x128xf32>
    %cst_85 = arith.constant 4.471500e-02 : f32
    %185 = vector.broadcast %cst_85 : f32 to vector<8x128xf32>
    %186 = arith.mulf %185, %182 : vector<8x128xf32>
    %187 = arith.mulf %186, %182 : vector<8x128xf32>
    %188 = arith.mulf %187, %182 : vector<8x128xf32>
    %189 = arith.addf %182, %188 : vector<8x128xf32>
    %cst_86 = arith.constant 0.797884583 : f32
    %190 = vector.broadcast %cst_86 : f32 to vector<8x128xf32>
    %191 = arith.mulf %190, %189 : vector<8x128xf32>
    %192 = math.tanh %191 : vector<8x128xf32>
    %cst_87 = arith.constant 1.000000e+00 : f32
    %193 = vector.broadcast %cst_87 : f32 to vector<8x128xf32>
    %194 = arith.addf %193, %192 : vector<8x128xf32>
    %195 = arith.mulf %184, %194 : vector<8x128xf32>
    %cst_88 = arith.constant dense<0.000000e+00> : vector<8x32xf32>
    %196 = tpu.matmul %195, %12, %cst_88 {dimension_numbers = #tpu.dot_dimension_numbers<[1], [0], [0], [1], [0, 0, 1, 1], [], []>, precision = #tpu.contract_precision<fp32>} : vector<8x128xf32>, vector<128x32xf32>, vector<8x32xf32> -> vector<8x32xf32>
    %197 = vector.broadcast %13 : vector<1x32xf32> to vector<8x32xf32>
    %198 = arith.addf %196, %197 : vector<8x32xf32>
    %199 = arith.addf %157, %198 : vector<8x32xf32>
    %200 = tpu.transpose %199, [1, 0] : vector<8x32xf32> -> vector<32x8xf32>
    %c1_89 = arith.constant 1 : index
    %c0_90 = arith.constant 0 : index
    %c0_91 = arith.constant 0 : index
    %201 = vector.load %arg15[%c1_89, %c0_90, %c0_91] : memref<2x32x8xf32, #tpu.memory_space<vmem>>, vector<1x32x8xf32>
    %202 = vector.shape_cast %201 : vector<1x32x8xf32> to vector<32x8xf32>
    %203 = vector.shape_cast %200 : vector<32x8xf32> to vector<1x32x8xf32>
    tpu.vector_store %arg15[%c1_89, %c0_90, %c0_91], %203 {strides = array<i32>} : memref<2x32x8xf32, #tpu.memory_space<vmem>>, vector<1x32x8xf32>,
    return
  }
}

</mosaic_0001>

<bundles_post_ra>
// kernel: tpu_custom_call.1
= control target key start
LH: loop header
LB: loop body
LE: loop exit
PB: predicated region body
PF: predicated region fallthrough
CT: control target
= control target key end

     0   :  { %vm169_vm0 = vcmask 261120   ;;  %v33841_v28 = vmov 0.0   ;;  %vm29419_vm1 = vmmov 0   ;;  %vm6021_vm2 = vcmask 64512   ;;  %s33638_s0 = inlined_call_operand.vmem [shape: f32[2,32,8], index: 0, kind: input, shape index: {}]   ;;  %s33639_s3 = inlined_call_operand.vmem [shape: f32[4,32,8], index: 3, kind: input, shape index: {}]   ;;  %s33640_s1 = inlined_call_operand.vmem [shape: f32[1,32], index: 1, kind: input, shape index: {}]   ;;  %s33641_s2 = inlined_call_operand.vmem [shape: f32[1,32], index: 2, kind: input, shape index: {}]   ;;  %s33642_s4 = inlined_call_operand.vmem [shape: f32[4,32,8], index: 4, kind: input, shape index: {}]   ;;  %s33643_s5 = inlined_call_operand.vmem [shape: f32[4,32,8], index: 5, kind: input, shape index: {}]   ;;  %s33644_s8 = inlined_call_operand.vmem [shape: f32[4,8,8], index: 8, kind: input, shape index: {}]   ;;  %s33645_s6 = inlined_call_operand.vmem [shape: f32[4,8,32], index: 6, kind: input, shape index: {}]   ;;  %s33646_s7 = inlined_call_operand.vmem [shape: f32[1,32], index: 7, kind: input, shape index: {}]   ;;  %s33647_s11 = inlined_call_operand.vmem [shape: f32[32,128], index: 11, kind: input, shape index: {}]   ;;  %s33648_s9 = inlined_call_operand.vmem [shape: f32[1,32], index: 9, kind: input, shape index: {}]   ;;  %s33649_s10 = inlined_call_operand.vmem [shape: f32[1,32], index: 10, kind: input, shape index: {}]   ;;  %s33650_s13 = inlined_call_operand.vmem [shape: f32[128,32], index: 13, kind: input, shape index: {}]   ;;  %s33651_s12 = inlined_call_operand.vmem [shape: f32[1,128], index: 12, kind: input, shape index: {}]   ;;  %s33652_s14 = inlined_call_operand.vmem [shape: f32[1,32], index: 14, kind: input, shape index: {}]   ;;  %s33653_s15 = inlined_call_operand.vmem [shape: f32[2,32,8], index: 15, kind: output, shape index: {}]  }
   0x1   :  { %v133_v0 = vld [vmem:[%s33638_s0] sm:$0xff]  ;;  %v134_v1 = vld [vmem:[%s33638_s0 + $0x8] sm:$0xff]  ;;  %v135_v2 = vld [vmem:[%s33638_s0 + $0x10] sm:$0xff]  ;;  %26516 = vmatprep.subr.mxu1 %v33841_v28  ;;  %26505 = vmatprep.subr.mxu0 %v33841_v28 }
   0x2   :  { %137 = vxpose.xlu0.b32.start [1/4] (short) (narrow) %v133_v0, 8  ;;  %v136_v3 = vld [vmem:[%s33638_s0 + $0x18] sm:$0xff]  ;;  %v54_v13 = vld [vmem:[%s33639_s3 + $0x10] sm:$0xff]  ;;  %v53_v16 = vld [vmem:[%s33639_s3 + $0x8] sm:$0xff]  ;;  %26524 = vmatprep.mubr.msk.f32.mxu1 %vm29419_vm1, %v33841_v28 }
   0x3   :  { %v55_v11 = vld [vmem:[%s33639_s3 + $0x18] sm:$0xff]  ;;  %v29529_v15 = vand.u32 4294901760, %v54_v13  ;;  %v29540_v19 = vand.u32 4294901760, %v53_v16  ;;  %v52_v20 = vld [vmem:[%s33639_s3] sm:$0xff]  ;;  %26513 = vmatprep.mubr.msk.f32.mxu0 %vm29419_vm1, %v33841_v28  ;;  %v58_v48 = vld [vmem:[%s33639_s3 + $0x30] sm:$0xff] }
   0x4   :  { %v29521_v12 = vand.u32 4294901760, %v55_v11  ;;  %v29553_v24 = vand.u32 4294901760, %v52_v20  ;;  %v25218_v40 = vld [vmem:[%s33640_s1] ss:$0 sm:$0xff]  ;;  %v59_v46 = vld [vmem:[%s33639_s3 + $0x38] sm:$0xff]  ;;  %v57_v51 = vld [vmem:[%s33639_s3 + $0x28] sm:$0xff] }
   0x5   :  { %33983 = vst [vmem:[#allocation4_spill] sm:$0xff] %v29529_v15  ;;  %v29538_v18 = vsub.f32 %v54_v13, %v29529_v15  ;;  %33986 = vst [vmem:[#allocation7_spill] sm:$0xff] %v29540_v19  ;;  %v29551_v23 = vsub.f32 %v53_v16, %v29540_v19  ;;  %v25219_v42 = vld [vmem:[%s33641_s2] ss:$0 sm:$0xff]  ;;  %v29619_v50 = vand.u32 4294901760, %v59_v46  ;;  %v29631_v53 = vand.u32 4294901760, %v58_v48 }
   0x6   :  { %138 = vxpose.xlu0.b32.cont [2/4] (short) (narrow) %v134_v1, 8  ;;  %33981 = vst [vmem:[#allocation2_spill] sm:$0xff] %v29521_v12  ;;  %v29527_v14 = vsub.f32 %v55_v11, %v29521_v12  ;;  %33989 = vst [vmem:[#allocation10_spill] sm:$0xff] %v29553_v24  ;;  %v29564_v29 = vsub.f32 %v52_v20, %v29553_v24  ;;  %26506 = vmatpush3.msra.mxu0 %v29521_v12  ;;  %v56_v54 = vld [vmem:[%s33639_s3 + $0x20] sm:$0xff]  ;;  %v29643_v57 = vand.u32 4294901760, %v57_v51  ;;  %v63_v13 = vld [vmem:[%s33639_s3 + $0x58] sm:$0xff] }
   0x7   :  { %33985 = vst [vmem:[#allocation6_spill] sm:$0xff] %v29538_v18  ;;  %v29548_v22 = vand.u32 4294901760, %v29538_v18  ;;  %33988 = vst [vmem:[#allocation9_spill] sm:$0xff] %v29551_v23  ;;  %v29560_v27 = vand.u32 4294901760, %v29551_v23  ;;  %26507 = vmatprep.subr.mxu0 %v33841_v28  ;;  %v29641_v56 = vsub.f32 %v59_v46, %v29619_v50  ;;  %v29650_v59 = vsub.f32 %v58_v48, %v29631_v53  ;;  %v62_v16 = vld [vmem:[%s33639_s3 + $0x50] sm:$0xff] }
   0x8   :  { %33982 = vst [vmem:[#allocation3_spill] sm:$0xff] %v29527_v14  ;;  %v29535_v17 = vand.u32 4294901760, %v29527_v14  ;;  %33992 = vst [vmem:[#allocation13_spill] sm:$0xff] %v29564_v29  ;;  %v29575_v32 = vand.u32 4294901760, %v29564_v29  ;;  %26508 = vmatpush3.msra.mxu0 %v29529_v15  ;;  %v29652_v60 = vand.u32 4294901760, %v56_v54  ;;  %v29661_v62 = vsub.f32 %v57_v51, %v29643_v57 }
   0x9   :  { %33987 = vst [vmem:[#allocation8_spill] sm:$0xff] %v29548_v22  ;;  %v315_v26 = vsub.f32 %v29538_v18, %v29548_v22  ;;  %33991 = vst [vmem:[#allocation12_spill] sm:$0xff] %v29560_v27  ;;  %v322_v31 = vsub.f32 %v29551_v23, %v29560_v27  ;;  %26509 = vmatprep.subr.mxu0 %v33841_v28  ;;  %v29658_v61 = vand.u32 4294901760, %v29641_v56  ;;  %v29668_v63 = vand.u32 4294901760, %v29650_v59 }
   0xa   :  { %139 = vxpose.xlu0.b32.cont [3/4] (short) (narrow) %v135_v2, 8  ;;  %33984 = vst [vmem:[#allocation5_spill] sm:$0xff] %v29535_v17  ;;  %v308_v21 = vsub.f32 %v29527_v14, %v29535_v17  ;;  %33994 = vst [vmem:[#allocation15_spill] sm:$0xff] %v29575_v32  ;;  %v329_v34 = vsub.f32 %v29564_v29, %v29575_v32  ;;  %26510 = vmatpush3.msra.mxu0 %v29540_v19  ;;  %v29680_v2 = vand.u32 4294901760, %v29661_v62 }
   0xb   :  { %v29568_v30 = vand.u32 4294901760, %v315_v26  ;;  %v29579_v33 = vand.u32 4294901760, %v322_v31  ;;  %26511 = vmatprep.subr.mxu0 %v33841_v28  ;;  %33997 = vst [vmem:[#allocation18_spill] sm:$0xff] %v29619_v50  ;;  %33998 = vst [vmem:[#allocation19_spill] sm:$0xff] %v29631_v53  ;;  %v29671_v0 = vsub.f32 %v56_v54, %v29652_v60  ;;  %v793_v1 = vsub.f32 %v29641_v56, %v29658_v61  ;;  %v60_v31 = vld [vmem:[%s33639_s3 + $0x40] sm:$0xff] }
   0xc   :  { %v29555_v25 = vand.u32 4294901760, %v308_v21  ;;  %v29589_v35 = vand.u32 4294901760, %v329_v34  ;;  %26512 = vmatpush3.msra.mxu0 %v29553_v24  ;;  %33999 = vst [vmem:[#allocation20_spill] sm:$0xff] %v29641_v56  ;;  %34000 = vst [vmem:[#allocation21_spill] sm:$0xff] %v29643_v57  ;;  %v29745_v20 = vand.u32 4294901760, %v63_v13  ;;  %v61_v21 = vld [vmem:[%s33639_s3 + $0x48] sm:$0xff] }
   0xd   :  { %33993 = vst [vmem:[#allocation14_spill] sm:$0xff] %v29568_v30  ;;  %33995 = vst [vmem:[#allocation16_spill] sm:$0xff] %v29579_v33  ;;  %26527 = vmatprep.subr.mxu0 %v33841_v28  ;;  %v29754_v26 = vand.u32 4294901760, %v62_v16 }
   0xe   :  { %140 = vxpose.xlu0.b32.end [4/4] (short) (narrow) %v136_v3, 8  ;;  %33990 = vst [vmem:[#allocation11_spill] sm:$0xff] %v29555_v25  ;;  %26517 = vmatpush3.msra.mxu1 %v29555_v25  ;;  %33996 = vst [vmem:[#allocation17_spill] sm:$0xff] %v29589_v35  ;;  %v800_v3 = vsub.f32 %v29650_v59, %v29668_v63  ;;  %v29764_v34 = vsub.f32 %v63_v13, %v29745_v20 }
   0xf   :  { %26518 = vmatprep.subr.mxu1 %v33841_v28  ;;  %34001 = vst [vmem:[#allocation22_spill] sm:$0xff] %v29650_v59  ;;  %34002 = vst [vmem:[#allocation23_spill] sm:$0xff] %v29652_v60 }
  0x10   :  { %26519 = vmatpush3.msra.mxu1 %v29568_v30  ;;  %34003 = vst [vmem:[#allocation24_spill] sm:$0xff] %v29658_v61  ;;  %34004 = vst [vmem:[#allocation25_spill] sm:$0xff] %v29661_v62 }
  0x11   :  { %26520 = vmatprep.subr.mxu1 %v33841_v28  ;;  %34005 = vst [vmem:[#allocation26_spill] sm:$0xff] %v29668_v63  ;;  %34006 = vst [vmem:[#allocation27_spill] sm:$0xff] %v29671_v0 }
  0x12   :  { %26521 = vmatpush3.msra.mxu1 %v29579_v33  ;;  %34007 = vst [vmem:[#allocation28_spill] sm:$0xff] %v29680_v2  ;;  %34013 = vst [vmem:[#allocation34_spill] sm:$0xff] %v29745_v20 }
  0x13   :  { %26522 = vmatprep.subr.mxu1 %v33841_v28  ;;  %34014 = vst [vmem:[#allocation35_spill] sm:$0xff] %v29754_v26  ;;  %34015 = vst [vmem:[#allocation36_spill] sm:$0xff] %v29764_v34 }
  0x14   :  { %26523 = vmatpush3.msra.mxu1 %v29589_v35 }
  0x15   :  { %26538 = vmatprep.subr.mxu1 %v33841_v28 }
  0x7e   :  { %v29512_v4 = vpop.trf.xlu0 }
  0x7f   :  { %v170_v5 = vsel %vm169_vm0, %v29512_v4, 0.0 }
  0x80   :  { %171 = vadd.xlane.f32.xlu1 %v170_v5  ;;  %v29689_v5 = vand.u32 4294901760, %v29671_v0 }
  0x82   :  { %34008 = vst [vmem:[#allocation29_spill] sm:$0xff] %v29689_v5 }
 0x109   :  { %v172_v6 = vpop.xlane.xlu1 %171 }
 0x10a   :  { %v174_v7 = vmul.f32 0.03125, %v172_v6  ;;  %v29696_v6 = vand.u32 4294901760, %v793_v1 }
 0x10c   :  { %v175_v8 = vsub.f32 %v29512_v4, %v174_v7  ;;  %34009 = vst [vmem:[#allocation30_spill] sm:$0xff] %v29696_v6  ;;  %v807_v7 = vsub.f32 %v29661_v62, %v29680_v2 }
 0x10e   :  { %v176_v9 = vmul.f32 %v175_v8, %v175_v8 }
 0x110   :  { %v177_v10 = vsel %vm169_vm0, %v176_v9, 0.0  ;;  %v814_v9 = vsub.f32 %v29671_v0, %v29689_v5 }
 0x111   :  { %178 = vadd.xlane.f32.xlu1 %v177_v10  ;;  %v29713_v10 = vand.u32 4294901760, %v807_v7  ;;  %v67_v7 = vld [vmem:[%s33639_s3 + $0x78] sm:$0xff] }
 0x112   :  { %v29719_v11 = vand.u32 4294901760, %v814_v9  ;;  %v66_v9 = vld [vmem:[%s33639_s3 + $0x70] sm:$0xff]  ;;  %v29871_v13 = vand.u32 4294901760, %v67_v7 }
 0x113   :  { %34011 = vst [vmem:[#allocation32_spill] sm:$0xff] %v29713_v10 }
 0x114   :  { %34012 = vst [vmem:[#allocation33_spill] sm:$0xff] %v29719_v11  ;;  %34029 = vst [vmem:[#allocation50_spill] sm:$0xff] %v29871_v13 }
 0x19a   :  { %v179_v36 = vpop.xlane.xlu1 %178 }
 0x19b   :  { %v180_v37 = vmul.f32 0.03125, %v179_v36  ;;  %v29766_v36 = vand.u32 4294901760, %v61_v21 }
 0x19d   :  { %v181_v38 = vadd.f32 1e-05, %v180_v37  ;;  %34016 = vst [vmem:[#allocation37_spill] sm:$0xff] %v29766_v36  ;;  %v29774_v37 = vsub.f32 %v62_v16, %v29754_v26  ;;  %v65_v16 = vld [vmem:[%s33639_s3 + $0x68] sm:$0xff] }
 0x19f   :  { %29363 = vrsqrt.f32 %v181_v38  ;;  %34017 = vst [vmem:[#allocation38_spill] sm:$0xff] %v29774_v37  ;;  %v29776_v38 = vand.u32 4294901760, %v60_v31 }
 0x1a1   :  { %34018 = vst [vmem:[#allocation39_spill] sm:$0xff] %v29776_v38 }
 0x1ac   :  { %v29364_v39 = vpop.eup %29363 }
 0x1ad   :  { %v183_v41 = vmul.f32 %v29364_v39, %v175_v8  ;;  %v29705_v8 = vand.u32 4294901760, %v800_v3  ;;  %v29784_v39 = vand.u32 4294901760, %v29764_v34 }
 0x1af   :  { %v190_v43 = vmul.f32 %v25218_v40, %v183_v41  ;;  %34010 = vst [vmem:[#allocation31_spill] sm:$0xff] %v29705_v8  ;;  %34019 = vst [vmem:[#allocation40_spill] sm:$0xff] %v29784_v39  ;;  %v29787_v40 = vsub.f32 %v61_v21, %v29766_v36  ;;  %v29794_v41 = vand.u32 4294901760, %v29774_v37  ;;  %v29880_v21 = vand.u32 4294901760, %v66_v9 }
 0x1b1   :  { %v197_v44 = vadd.f32 %v25219_v42, %v190_v43  ;;  %34020 = vst [vmem:[#allocation41_spill] sm:$0xff] %v29787_v40  ;;  %34021 = vst [vmem:[#allocation42_spill] sm:$0xff] %v29794_v41  ;;  %v29797_v42 = vsub.f32 %v60_v31, %v29776_v38  ;;  %v1278_v43 = vsub.f32 %v29764_v34, %v29784_v39  ;;  %v64_v31 = vld [vmem:[%s33639_s3 + $0x60] sm:$0xff] }
 0x1b2   :  { %34030 = vst [vmem:[#allocation51_spill] sm:$0xff] %v29880_v21 }
 0x1b3   :  { %v199_v45 = vsel %vm169_vm0, %v197_v44, 0  ;;  %34022 = vst [vmem:[#allocation43_spill] sm:$0xff] %v29797_v42  ;;  %v29806_v44 = vand.u32 4294901760, %v29787_v40  ;;  %v29815_v46 = vand.u32 4294901760, %v29797_v42  ;;  %v29822_v48 = vand.u32 4294901760, %v1278_v43 }
 0x1b4   :  { %v29610_v47 = vand.u32 4294901760, %v199_v45  ;;  %v29890_v43 = vsub.f32 %v67_v7, %v29871_v13 }
 0x1b5   :  { %34023 = vst [vmem:[#allocation44_spill] sm:$0xff] %v29806_v44  ;;  %34024 = vst [vmem:[#allocation45_spill] sm:$0xff] %v29815_v46  ;;  %v1292_v51 = vsub.f32 %v29787_v40, %v29806_v44 }
 0x1b6   :  { %v29616_v49 = vsub.f32 %v199_v45, %v29610_v47  ;;  %26525 = vmatmul.mubr.f32.vlgmr.msra.gmra.mxu1 %v29610_v47  ;;  %v1285_v45 = vsub.f32 %v29774_v37, %v29794_v41  ;;  %34025 = vst [vmem:[#allocation46_spill] sm:$0xff] %v29822_v48  ;;  %34031 = vst [vmem:[#allocation52_spill] sm:$0xff] %v29890_v43  ;;  %v29910_v7 = vand.u32 4294901760, %v29890_v43 }
 0x1b7   :  { %26539 = vmatpush3.msra.mxu1 %v29521_v12  ;;  %26546 = vmatprep.mubr.msk.f32.mxu1 %vm29419_vm1, %v33841_v28  ;;  %v29839_v1 = vand.u32 4294901760, %v1292_v51  ;;  %v29900_v51 = vsub.f32 %v66_v9, %v29880_v21 }
 0x1b8   :  { %26540 = vmatprep.subr.mxu1 %v33841_v28  ;;  %v29629_v52 = vand.u32 4294901760, %v29616_v49  ;;  %v29831_v54 = vand.u32 4294901760, %v1285_v45  ;;  %v29892_v45 = vand.u32 4294901760, %v65_v16  ;;  %34035 = vst [vmem:[#allocation56_spill] sm:$0xff] %v29910_v7 }
 0x1b9   :  { %26541 = vmatpush3.msra.mxu1 %v29529_v15  ;;  %34027 = vst [vmem:[#allocation48_spill] sm:$0xff] %v29839_v1  ;;  %34033 = vst [vmem:[#allocation54_spill] sm:$0xff] %v29900_v51  ;;  %v29920_v9 = vand.u32 4294901760, %v29900_v51 }
 0x1ba   :  { %26542 = vmatprep.subr.mxu1 %v33841_v28  ;;  %v273_v55 = vsub.f32 %v29616_v49, %v29629_v52  ;;  %34026 = vst [vmem:[#allocation47_spill] sm:$0xff] %v29831_v54  ;;  %34032 = vst [vmem:[#allocation53_spill] sm:$0xff] %v29892_v45 }
 0x1bb   :  { %26543 = vmatpush3.msra.mxu1 %v29540_v19  ;;  %34037 = vst [vmem:[#allocation58_spill] sm:$0xff] %v29920_v9 }
 0x1bc   :  { %26544 = vmatprep.subr.mxu1 %v33841_v28  ;;  %v29647_v58 = vand.u32 4294901760, %v273_v55  ;;  %v1299_v55 = vsub.f32 %v29797_v42, %v29815_v46 }
 0x1bd   :  { %26545 = vmatpush3.msra.mxu1 %v29553_v24 }
 0x1be   :  { %26547 = vmatmul.mubr.f32.vlgmr.msra.gmra.mxu1 %v29629_v52  ;;  %26560 = vmatprep.subr.mxu1 %v33841_v28  ;;  %v29845_v3 = vand.u32 4294901760, %v1299_v55  ;;  %v29902_v55 = vand.u32 4294901760, %v64_v31 }
 0x1bf   :  { %26514 = vmatmul.mubr.f32.vlgmr.msra.gmra.mxu0 %v29647_v58  ;;  %26561 = vmatpush3.msra.mxu1 %v29521_v12 }
 0x1c0   :  { %26528 = vmatpush3.msra.mxu0 %v29527_v14  ;;  %26562 = vmatprep.subr.mxu1 %v33841_v28  ;;  %34028 = vst [vmem:[#allocation49_spill] sm:$0xff] %v29845_v3  ;;  %34034 = vst [vmem:[#allocation55_spill] sm:$0xff] %v29902_v55 }
 0x1c1   :  { %26529 = vmatprep.subr.mxu0 %v33841_v28  ;;  %26563 = vmatpush3.msra.mxu1 %v29529_v15 }
 0x1c2   :  { %26530 = vmatpush3.msra.mxu0 %v29538_v18  ;;  %26564 = vmatprep.subr.mxu1 %v33841_v28 }
 0x1c3   :  { %26531 = vmatprep.subr.mxu0 %v33841_v28  ;;  %26565 = vmatpush3.msra.mxu1 %v29540_v19 }
 0x1c4   :  { %26532 = vmatpush3.msra.mxu0 %v29551_v23  ;;  %26566 = vmatprep.subr.mxu1 %v33841_v28 }
 0x1c5   :  { %26533 = vmatprep.subr.mxu0 %v33841_v28  ;;  %26535 = vmatprep.mubr.msk.f32.mxu0 %vm29419_vm1, %v33841_v28 }
 0x1c6   :  { %26534 = vmatpush3.msra.mxu0 %v29564_v29  ;;  %26567 = vmatpush3.msra.mxu1 %v29553_v24 }
 0x1c7   :  { %26568 = vmatprep.mubr.msk.f32.mxu1 %vm29419_vm1, %v33841_v28  ;;  %26536 = vmatmul.mubr.f32.vlgmr.msra.gmra.mxu0 %v29616_v49 }
 0x1c8   :  { %26549 = vmatprep.subr.mxu0 %v33841_v28  ;;  %26569 = vmatmul.mubr.f32.vlgmr.msra.gmra.mxu1 %v29610_v47 }
 0x1c9   :  { %26582 = vmatprep.subr.mxu1 %v33841_v28  ;;  %26550 = vmatpush3.msra.mxu0 %v29535_v17 }
 0x1ca   :  { %26583 = vmatpush3.msra.mxu1 %v29696_v6  ;;  %26551 = vmatprep.subr.mxu0 %v33841_v28 }
 0x1cb   :  { %26584 = vmatprep.subr.mxu1 %v33841_v28  ;;  %26552 = vmatpush3.msra.mxu0 %v29548_v22 }
 0x1cc   :  { %26585 = vmatpush3.msra.mxu1 %v29705_v8  ;;  %26553 = vmatprep.subr.mxu0 %v33841_v28 }
 0x1cd   :  { %26586 = vmatprep.subr.mxu1 %v33841_v28  ;;  %26554 = vmatpush3.msra.mxu0 %v29560_v27 }
 0x1ce   :  { %26587 = vmatpush3.msra.mxu1 %v29713_v10  ;;  %26555 = vmatprep.subr.mxu0 %v33841_v28 }
 0x1cf   :  { %26588 = vmatprep.subr.mxu1 %v33841_v28  ;;  %26556 = vmatpush3.msra.mxu0 %v29575_v32 }
 0x1d0   :  { %26557 = vmatprep.mubr.msk.f32.mxu0 %vm29419_vm1, %v33841_v28  ;;  %26589 = vmatpush3.msra.mxu1 %v29719_v11 }
 0x1d1   :  { %26590 = vmatprep.mubr.msk.f32.mxu1 %vm29419_vm1, %v33841_v28  ;;  %26558 = vmatmul.mubr.f32.vlgmr.msra.gmra.mxu0 %v29610_v47 }
 0x1d2   :  { %26571 = vmatprep.subr.mxu0 %v33841_v28  ;;  %26591 = vmatmul.mubr.f32.vlgmr.msra.gmra.mxu1 %v29610_v47 }
 0x1d3   :  { %26604 = vmatprep.subr.mxu1 %v33841_v28  ;;  %26572 = vmatpush3.msra.mxu0 %v29619_v50 }
 0x1d4   :  { %26605 = vmatpush3.msra.mxu1 %v29619_v50  ;;  %26573 = vmatprep.subr.mxu0 %v33841_v28 }
 0x1d5   :  { %26606 = vmatprep.subr.mxu1 %v33841_v28  ;;  %26574 = vmatpush3.msra.mxu0 %v29631_v53 }
 0x1d6   :  { %26607 = vmatpush3.msra.mxu1 %v29631_v53  ;;  %26575 = vmatprep.subr.mxu0 %v33841_v28 }
 0x1d7   :  { %26608 = vmatprep.subr.mxu1 %v33841_v28  ;;  %26576 = vmatpush3.msra.mxu0 %v29643_v57 }
 0x1d8   :  { %26609 = vmatpush3.msra.mxu1 %v29643_v57  ;;  %26577 = vmatprep.subr.mxu0 %v33841_v28 }
 0x1d9   :  { %26610 = vmatprep.subr.mxu1 %v33841_v28  ;;  %26578 = vmatpush3.msra.mxu0 %v29652_v60 }
 0x1da   :  { %26579 = vmatprep.mubr.msk.f32.mxu0 %vm29419_vm1, %v33841_v28  ;;  %26611 = vmatpush3.msra.mxu1 %v29652_v60 }
 0x1db   :  { %26612 = vmatprep.mubr.msk.f32.mxu1 %vm29419_vm1, %v33841_v28  ;;  %26580 = vmatmul.mubr.f32.vlgmr.msra.gmra.mxu0 %v29647_v58 }
 0x1dc   :  { %26593 = vmatprep.subr.mxu0 %v33841_v28  ;;  %26613 = vmatmul.mubr.f32.vlgmr.msra.gmra.mxu1 %v29629_v52 }
 0x1dd   :  { %26626 = vmatprep.subr.mxu1 %v33841_v28  ;;  %26594 = vmatpush3.msra.mxu0 %v29641_v56 }
 0x1de   :  { %26627 = vmatpush3.msra.mxu1 %v29619_v50  ;;  %26595 = vmatprep.subr.mxu0 %v33841_v28 }
 0x1df   :  { %26628 = vmatprep.subr.mxu1 %v33841_v28  ;;  %26596 = vmatpush3.msra.mxu0 %v29650_v59 }
 0x1e0   :  { %26629 = vmatpush3.msra.mxu1 %v29631_v53  ;;  %26597 = vmatprep.subr.mxu0 %v33841_v28 }
 0x1e1   :  { %26630 = vmatprep.subr.mxu1 %v33841_v28  ;;  %26598 = vmatpush3.msra.mxu0 %v29661_v62 }
 0x1e2   :  { %26631 = vmatpush3.msra.mxu1 %v29643_v57  ;;  %26599 = vmatprep.subr.mxu0 %v33841_v28 }
 0x1e3   :  { %26632 = vmatprep.subr.mxu1 %v33841_v28  ;;  %26600 = vmatpush3.msra.mxu0 %v29671_v0 }
 0x1e4   :  { %26601 = vmatprep.mubr.msk.f32.mxu0 %vm29419_vm1, %v33841_v28  ;;  %26633 = vmatpush3.msra.mxu1 %v29652_v60 }
 0x1e5   :  { %26634 = vmatprep.mubr.msk.f32.mxu1 %vm29419_vm1, %v33841_v28  ;;  %26602 = vmatmul.mubr.f32.vlgmr.msra.gmra.mxu0 %v29616_v49 }
 0x1e6   :  { %26615 = vmatprep.subr.mxu0 %v33841_v28  ;;  %26635 = vmatmul.mubr.f32.vlgmr.msra.gmra.mxu1 %v29610_v47 }
 0x1e7   :  { %26648 = vmatprep.subr.mxu1 %v33841_v28  ;;  %26616 = vmatpush3.msra.mxu0 %v29658_v61 }
 0x1e8   :  { %26649 = vmatpush3.msra.mxu1 %v29822_v48  ;;  %26617 = vmatprep.subr.mxu0 %v33841_v28 }
 0x1e9   :  { %26650 = vmatprep.subr.mxu1 %v33841_v28  ;;  %26618 = vmatpush3.msra.mxu0 %v29668_v63 }
 0x1ea   :  { %26651 = vmatpush3.msra.mxu1 %v29831_v54  ;;  %26619 = vmatprep.subr.mxu0 %v33841_v28 }
 0x1eb   :  { %26652 = vmatprep.subr.mxu1 %v33841_v28  ;;  %26620 = vmatpush3.msra.mxu0 %v29680_v2 }
 0x1ec   :  { %26653 = vmatpush3.msra.mxu1 %v29839_v1  ;;  %26621 = vmatprep.subr.mxu0 %v33841_v28 }
 0x1ed   :  { %26654 = vmatprep.subr.mxu1 %v33841_v28  ;;  %26622 = vmatpush3.msra.mxu0 %v29689_v5  ;;  %v29923_v5 = vsub.f32 %v64_v31, %v29902_v55  ;;  %v1770_v31 = vsub.f32 %v29900_v51, %v29920_v9 }
 0x1ee   :  { %26623 = vmatprep.mubr.msk.f32.mxu0 %vm29419_vm1, %v33841_v28  ;;  %26655 = vmatpush3.msra.mxu1 %v29845_v3  ;;  %v29913_v3 = vsub.f32 %v65_v16, %v29892_v45  ;;  %v1763_v16 = vsub.f32 %v29890_v43, %v29910_v7 }
 0x1ef   :  { %26656 = vmatprep.mubr.msk.f32.mxu1 %vm29419_vm1, %v33841_v28  ;;  %26624 = vmatmul.mubr.f32.vlgmr.msra.gmra.mxu0 %v29610_v47  ;;  %34038 = vst [vmem:[#allocation59_spill] sm:$0xff] %v29923_v5 }
 0x1f0   :  { %26637 = vmatprep.subr.mxu0 %v33841_v28  ;;  %26657 = vmatmul.mubr.f32.vlgmr.msra.gmra.mxu1 %v29610_v47  ;;  %34036 = vst [vmem:[#allocation57_spill] sm:$0xff] %v29913_v3 }
 0x1f1   :  { %26670 = vmatprep.subr.mxu1 %v33841_v28  ;;  %26638 = vmatpush3.msra.mxu0 %v29745_v20 }
 0x1f2   :  { %26671 = vmatpush3.msra.mxu1 %v29745_v20  ;;  %26639 = vmatprep.subr.mxu0 %v33841_v28 }
 0x1f3   :  { %26672 = vmatprep.subr.mxu1 %v33841_v28  ;;  %26640 = vmatpush3.msra.mxu0 %v29754_v26 }
 0x1f4   :  { %26673 = vmatpush3.msra.mxu1 %v29754_v26  ;;  %26641 = vmatprep.subr.mxu0 %v33841_v28 }
 0x1f5   :  { %26674 = vmatprep.subr.mxu1 %v33841_v28  ;;  %26642 = vmatpush3.msra.mxu0 %v29766_v36 }
 0x1f6   :  { %26675 = vmatpush3.msra.mxu1 %v29766_v36  ;;  %26643 = vmatprep.subr.mxu0 %v33841_v28 }
 0x1f7   :  { %26676 = vmatprep.subr.mxu1 %v33841_v28  ;;  %26644 = vmatpush3.msra.mxu0 %v29776_v38 }
 0x1f8   :  { %26645 = vmatprep.mubr.msk.f32.mxu0 %vm29419_vm1, %v33841_v28  ;;  %26677 = vmatpush3.msra.mxu1 %v29776_v38 }
 0x1f9   :  { %26678 = vmatprep.mubr.msk.f32.mxu1 %vm29419_vm1, %v33841_v28  ;;  %26646 = vmatmul.mubr.f32.vlgmr.msra.gmra.mxu0 %v29647_v58 }
 0x1fa   :  { %26659 = vmatprep.subr.mxu0 %v33841_v28  ;;  %26679 = vmatmul.mubr.f32.vlgmr.msra.gmra.mxu1 %v29629_v52 }
 0x1fb   :  { %26692 = vmatprep.subr.mxu1 %v33841_v28  ;;  %26660 = vmatpush3.msra.mxu0 %v29764_v34  ;;  %v29932_v34 = vand.u32 4294901760, %v29913_v3 }
 0x1fc   :  { %26693 = vmatpush3.msra.mxu1 %v29745_v20  ;;  %26661 = vmatprep.subr.mxu0 %v33841_v28 }
 0x1fd   :  { %26694 = vmatprep.subr.mxu1 %v33841_v28  ;;  %26662 = vmatpush3.msra.mxu0 %v29774_v37  ;;  %34039 = vst [vmem:[#allocation60_spill] sm:$0xff] %v29932_v34  ;;  %v29941_v37 = vand.u32 4294901760, %v29923_v5 }
 0x1fe   :  { %26695 = vmatpush3.msra.mxu1 %v29754_v26  ;;  %26663 = vmatprep.subr.mxu0 %v33841_v28 }
 0x1ff   :  { %26696 = vmatprep.subr.mxu1 %v33841_v28  ;;  %26664 = vmatpush3.msra.mxu0 %v29787_v40  ;;  %34040 = vst [vmem:[#allocation61_spill] sm:$0xff] %v29941_v37  ;;  %v29948_v40 = vand.u32 4294901760, %v1763_v16  ;;  %v1784_v26 = vsub.f32 %v29923_v5, %v29941_v37 }
 0x200   :  { %26697 = vmatpush3.msra.mxu1 %v29766_v36  ;;  %26665 = vmatprep.subr.mxu0 %v33841_v28  ;;  %v1777_v36 = vsub.f32 %v29913_v3, %v29932_v34 }
 0x201   :  { %26698 = vmatprep.subr.mxu1 %v33841_v28  ;;  %26666 = vmatpush3.msra.mxu0 %v29797_v42  ;;  %34041 = vst [vmem:[#allocation62_spill] sm:$0xff] %v29948_v40  ;;  %v29957_v42 = vand.u32 4294901760, %v1770_v31  ;;  %v29971_v31 = vand.u32 4294901760, %v1784_v26  ;;  %v71_v26 = vld [vmem:[%s33642_s4 + $0x18] sm:$0xff] }
 0x202   :  { %26667 = vmatprep.mubr.msk.f32.mxu0 %vm29419_vm1, %v33841_v28  ;;  %26699 = vmatpush3.msra.mxu1 %v29776_v38  ;;  %v29965_v16 = vand.u32 4294901760, %v1777_v36  ;;  %v70_v36 = vld [vmem:[%s33642_s4 + $0x10] sm:$0xff] }
 0x203   :  { %26700 = vmatprep.mubr.msk.f32.mxu1 %vm29419_vm1, %v33841_v28  ;;  %26668 = vmatmul.mubr.f32.vlgmr.msra.gmra.mxu0 %v29616_v49  ;;  %34042 = vst [vmem:[#allocation63_spill] sm:$0xff] %v29957_v42  ;;  %34044 = vst [vmem:[#allocation65_spill] sm:$0xff] %v29971_v31 }
 0x204   :  { %26681 = vmatprep.subr.mxu0 %v33841_v28  ;;  %26701 = vmatmul.mubr.f32.vlgmr.msra.gmra.mxu1 %v29610_v47  ;;  %34043 = vst [vmem:[#allocation64_spill] sm:$0xff] %v29965_v16 }
 0x205   :  { %26714 = vmatprep.subr.mxu1 %v33841_v28  ;;  %26682 = vmatpush3.msra.mxu0 %v29784_v39 }
 0x206   :  { %26715 = vmatpush3.msra.mxu1 %v29948_v40  ;;  %26683 = vmatprep.subr.mxu0 %v33841_v28 }
 0x207   :  { %26716 = vmatprep.subr.mxu1 %v33841_v28  ;;  %26684 = vmatpush3.msra.mxu0 %v29794_v41 }
 0x208   :  { %26717 = vmatpush3.msra.mxu1 %v29957_v42  ;;  %26685 = vmatprep.subr.mxu0 %v33841_v28 }
 0x209   :  { %26718 = vmatprep.subr.mxu1 %v33841_v28  ;;  %26686 = vmatpush3.msra.mxu0 %v29806_v44  ;;  %v68_v44 = vld [vmem:[%s33642_s4] sm:$0xff] }
 0x20a   :  { %26719 = vmatpush3.msra.mxu1 %v29965_v16  ;;  %26687 = vmatprep.subr.mxu0 %v33841_v28  ;;  %v30006_v16 = vand.u32 4294901760, %v70_v36  ;;  %v30028_v39 = vand.u32 4294901760, %v68_v44 }
 0x20b   :  { %26720 = vmatprep.subr.mxu1 %v33841_v28  ;;  %26688 = vmatpush3.msra.mxu0 %v29815_v46  ;;  %v69_v46 = vld [vmem:[%s33642_s4 + $0x8] sm:$0xff] }
 0x20c   :  { %26689 = vmatprep.mubr.msk.f32.mxu0 %vm29419_vm1, %v33841_v28  ;;  %26721 = vmatpush3.msra.mxu1 %v29971_v31  ;;  %v29997_v31 = vand.u32 4294901760, %v71_v26  ;;  %34046 = vst [vmem:[#allocation67_spill] sm:$0xff] %v30006_v16  ;;  %v30018_v41 = vand.u32 4294901760, %v69_v46  ;;  %v30026_v40 = vsub.f32 %v70_v36, %v30006_v16  ;;  %34050 = vst [vmem:[#allocation71_spill] sm:$0xff] %v30028_v39 }
 0x20d   :  { %26722 = vmatprep.mubr.msk.f32.mxu1 %vm29419_vm1, %v33841_v28  ;;  %26690 = vmatmul.mubr.f32.vlgmr.msra.gmra.mxu0 %v29610_v47  ;;  %v30049_v20 = vsub.f32 %v68_v44, %v30028_v39 }
 0x20e   :  { %26703 = vmatprep.subr.mxu0 %v33841_v28  ;;  %26723 = vmatmul.mubr.f32.vlgmr.msra.gmra.mxu1 %v29610_v47  ;;  %34045 = vst [vmem:[#allocation66_spill] sm:$0xff] %v29997_v31  ;;  %v30016_v42 = vsub.f32 %v71_v26, %v29997_v31  ;;  %34048 = vst [vmem:[#allocation69_spill] sm:$0xff] %v30018_v41  ;;  %v30039_v38 = vsub.f32 %v69_v46, %v30018_v41  ;;  %v30046_v36 = vand.u32 4294901760, %v30026_v40 }
 0x20f   :  { %26736 = vmatprep.subr.mxu1 %v33841_v28  ;;  %26704 = vmatpush3.msra.mxu0 %v29871_v13  ;;  %34049 = vst [vmem:[#allocation70_spill] sm:$0xff] %v30026_v40  ;;  %34054 = vst [vmem:[#allocation75_spill] sm:$0xff] %v30049_v20 }
 0x210   :  { %26737 = vmatpush3.msra.mxu1 %v29871_v13  ;;  %26705 = vmatprep.subr.mxu0 %v33841_v28  ;;  %34047 = vst [vmem:[#allocation68_spill] sm:$0xff] %v30016_v42  ;;  %v30036_v26 = vand.u32 4294901760, %v30016_v42  ;;  %34052 = vst [vmem:[#allocation73_spill] sm:$0xff] %v30039_v38  ;;  %v2255_v44 = vsub.f32 %v30026_v40, %v30046_v36 }
 0x211   :  { %26738 = vmatprep.subr.mxu1 %v33841_v28  ;;  %26706 = vmatpush3.msra.mxu0 %v29880_v21  ;;  %34053 = vst [vmem:[#allocation74_spill] sm:$0xff] %v30046_v36 }
 0x212   :  { %26739 = vmatpush3.msra.mxu1 %v29880_v21  ;;  %26707 = vmatprep.subr.mxu0 %v33841_v28  ;;  %34051 = vst [vmem:[#allocation72_spill] sm:$0xff] %v30036_v26  ;;  %v2248_v46 = vsub.f32 %v30016_v42, %v30036_v26 }
 0x213   :  { %26740 = vmatprep.subr.mxu1 %v33841_v28  ;;  %26708 = vmatpush3.msra.mxu0 %v29892_v45 }
 0x214   :  { %26741 = vmatpush3.msra.mxu1 %v29892_v45  ;;  %26709 = vmatprep.subr.mxu0 %v33841_v28 }
 0x215   :  { %26742 = vmatprep.subr.mxu1 %v33841_v28  ;;  %26710 = vmatpush3.msra.mxu0 %v29902_v55 }
 0x216   :  { %26711 = vmatprep.mubr.msk.f32.mxu0 %vm29419_vm1, %v33841_v28  ;;  %26743 = vmatpush3.msra.mxu1 %v29902_v55 }
 0x217   :  { %26744 = vmatprep.mubr.msk.f32.mxu1 %vm29419_vm1, %v33841_v28  ;;  %26712 = vmatmul.mubr.f32.vlgmr.msra.gmra.mxu0 %v29647_v58 }
 0x218   :  { %26725 = vmatprep.subr.mxu0 %v33841_v28  ;;  %26745 = vmatmul.mubr.f32.vlgmr.msra.gmra.mxu1 %v29629_v52 }
 0x219   :  { %26758 = vmatprep.subr.mxu1 %v33841_v28  ;;  %26726 = vmatpush3.msra.mxu0 %v29890_v43  ;;  %v30058_v43 = vand.u32 4294901760, %v30039_v38 }
 0x21a   :  { %26759 = vmatpush3.msra.mxu1 %v29871_v13  ;;  %26727 = vmatprep.subr.mxu0 %v33841_v28 }
 0x21b   :  { %26760 = vmatprep.subr.mxu1 %v33841_v28  ;;  %26728 = vmatpush3.msra.mxu0 %v29900_v51  ;;  %34055 = vst [vmem:[#allocation76_spill] sm:$0xff] %v30058_v43  ;;  %v30067_v51 = vand.u32 4294901760, %v30049_v20 }
 0x21c   :  { %26761 = vmatpush3.msra.mxu1 %v29880_v21  ;;  %26729 = vmatprep.subr.mxu0 %v33841_v28 }
 0x21d   :  { %26762 = vmatprep.subr.mxu1 %v33841_v28  ;;  %26730 = vmatpush3.msra.mxu0 %v29913_v3  ;;  %34056 = vst [vmem:[#allocation77_spill] sm:$0xff] %v30067_v51  ;;  %v30074_v3 = vand.u32 4294901760, %v2248_v46  ;;  %v2269_v21 = vsub.f32 %v30049_v20, %v30067_v51 }
 0x21e   :  { %26763 = vmatpush3.msra.mxu1 %v29892_v45  ;;  %26731 = vmatprep.subr.mxu0 %v33841_v28  ;;  %v2262_v45 = vsub.f32 %v30039_v38, %v30058_v43 }
 0x21f   :  { %26764 = vmatprep.subr.mxu1 %v33841_v28  ;;  %26732 = vmatpush3.msra.mxu0 %v29923_v5  ;;  %34057 = vst [vmem:[#allocation78_spill] sm:$0xff] %v30074_v3  ;;  %v30083_v5 = vand.u32 4294901760, %v2255_v44  ;;  %v30097_v44 = vand.u32 4294901760, %v2269_v21  ;;  %v75_v21 = vld [vmem:[%s33642_s4 + $0x38] sm:$0xff] }
 0x220   :  { %26733 = vmatprep.mubr.msk.f32.mxu0 %vm29419_vm1, %v33841_v28  ;;  %26765 = vmatpush3.msra.mxu1 %v29902_v55  ;;  %v30091_v46 = vand.u32 4294901760, %v2262_v45  ;;  %v74_v45 = vld [vmem:[%s33642_s4 + $0x30] sm:$0xff] }
 0x221   :  { %26766 = vmatprep.mubr.msk.f32.mxu1 %vm29419_vm1, %v33841_v28  ;;  %26734 = vmatmul.mubr.f32.vlgmr.msra.gmra.mxu0 %v29616_v49  ;;  %34058 = vst [vmem:[#allocation79_spill] sm:$0xff] %v30083_v5  ;;  %34060 = vst [vmem:[#allocation81_spill] sm:$0xff] %v30097_v44 }
 0x222   :  { %26747 = vmatprep.subr.mxu0 %v33841_v28  ;;  %26767 = vmatmul.mubr.f32.vlgmr.msra.gmra.mxu1 %v29610_v47  ;;  %34059 = vst [vmem:[#allocation80_spill] sm:$0xff] %v30091_v46 }
 0x223   :  { %26780 = vmatprep.subr.mxu1 %v33841_v28  ;;  %26748 = vmatpush3.msra.mxu0 %v29910_v7 }
 0x224   :  { %26781 = vmatpush3.msra.mxu1 %v30074_v3  ;;  %26749 = vmatprep.subr.mxu0 %v33841_v28 }
 0x225   :  { %26782 = vmatprep.subr.mxu1 %v33841_v28  ;;  %26750 = vmatpush3.msra.mxu0 %v29920_v9 }
 0x226   :  { %26783 = vmatpush3.msra.mxu1 %v30083_v5  ;;  %26751 = vmatprep.subr.mxu0 %v33841_v28 }
 0x227   :  { %26784 = vmatprep.subr.mxu1 %v33841_v28  ;;  %26752 = vmatpush3.msra.mxu0 %v29932_v34  ;;  %v72_v34 = vld [vmem:[%s33642_s4 + $0x20] sm:$0xff] }
 0x228   :  { %26785 = vmatpush3.msra.mxu1 %v30091_v46  ;;  %26753 = vmatprep.subr.mxu0 %v33841_v28  ;;  %v30132_v46 = vand.u32 4294901760, %v74_v45  ;;  %v30154_v7 = vand.u32 4294901760, %v72_v34 }
 0x229   :  { %26786 = vmatprep.subr.mxu1 %v33841_v28  ;;  %26754 = vmatpush3.msra.mxu0 %v29941_v37  ;;  %v73_v37 = vld [vmem:[%s33642_s4 + $0x28] sm:$0xff] }
 0x22a   :  { %26755 = vmatprep.mubr.msk.f32.mxu0 %vm29419_vm1, %v33841_v28  ;;  %26787 = vmatpush3.msra.mxu1 %v30097_v44  ;;  %v30123_v44 = vand.u32 4294901760, %v75_v21  ;;  %34062 = vst [vmem:[#allocation83_spill] sm:$0xff] %v30132_v46  ;;  %v30144_v9 = vand.u32 4294901760, %v73_v37  ;;  %v30152_v3 = vsub.f32 %v74_v45, %v30132_v46  ;;  %34066 = vst [vmem:[#allocation87_spill] sm:$0xff] %v30154_v7 }
 0x22b   :  { %26788 = vmatprep.mubr.msk.f32.mxu1 %vm29419_vm1, %v33841_v28  ;;  %26756 = vmatmul.mubr.f32.vlgmr.msra.gmra.mxu0 %v29610_v47  ;;  %v30175_v13 = vsub.f32 %v72_v34, %v30154_v7 }
 0x22c   :  { %26769 = vmatprep.subr.mxu0 %v33841_v28  ;;  %26789 = vmatmul.mubr.f32.vlgmr.msra.gmra.mxu1 %v29610_v47  ;;  %34061 = vst [vmem:[#allocation82_spill] sm:$0xff] %v30123_v44  ;;  %v30142_v5 = vsub.f32 %v75_v21, %v30123_v44  ;;  %34064 = vst [vmem:[#allocation85_spill] sm:$0xff] %v30144_v9  ;;  %v30165_v55 = vsub.f32 %v73_v37, %v30144_v9  ;;  %v30172_v45 = vand.u32 4294901760, %v30152_v3 }
 0x22d   :  { %26802 = vmatprep.subr.mxu1 %v33841_v28  ;;  %26770 = vmatpush3.msra.mxu0 %v29997_v31  ;;  %34065 = vst [vmem:[#allocation86_spill] sm:$0xff] %v30152_v3  ;;  %34070 = vst [vmem:[#allocation91_spill] sm:$0xff] %v30175_v13 }
 0x22e   :  { %26803 = vmatpush3.msra.mxu1 %v29997_v31  ;;  %26771 = vmatprep.subr.mxu0 %v33841_v28  ;;  %34063 = vst [vmem:[#allocation84_spill] sm:$0xff] %v30142_v5  ;;  %v30162_v21 = vand.u32 4294901760, %v30142_v5  ;;  %34068 = vst [vmem:[#allocation89_spill] sm:$0xff] %v30165_v55  ;;  %v2740_v34 = vsub.f32 %v30152_v3, %v30172_v45 }
 0x22f   :  { %26804 = vmatprep.subr.mxu1 %v33841_v28  ;;  %26772 = vmatpush3.msra.mxu0 %v30006_v16  ;;  %34069 = vst [vmem:[#allocation90_spill] sm:$0xff] %v30172_v45 }
 0x230   :  { %26805 = vmatpush3.msra.mxu1 %v30006_v16  ;;  %26773 = vmatprep.subr.mxu0 %v33841_v28  ;;  %34067 = vst [vmem:[#allocation88_spill] sm:$0xff] %v30162_v21  ;;  %v2733_v37 = vsub.f32 %v30142_v5, %v30162_v21 }
 0x231   :  { %26806 = vmatprep.subr.mxu1 %v33841_v28  ;;  %26774 = vmatpush3.msra.mxu0 %v30018_v41 }
 0x232   :  { %26807 = vmatpush3.msra.mxu1 %v30018_v41  ;;  %26775 = vmatprep.subr.mxu0 %v33841_v28 }
 0x233   :  { %26808 = vmatprep.subr.mxu1 %v33841_v28  ;;  %26776 = vmatpush3.msra.mxu0 %v30028_v39 }
 0x234   :  { %26777 = vmatprep.mubr.msk.f32.mxu0 %vm29419_vm1, %v33841_v28  ;;  %26809 = vmatpush3.msra.mxu1 %v30028_v39 }
 0x235   :  { %26810 = vmatprep.mubr.msk.f32.mxu1 %vm29419_vm1, %v33841_v28  ;;  %26778 = vmatmul.mubr.f32.vlgmr.msra.gmra.mxu0 %v29647_v58 }
 0x236   :  { %26791 = vmatprep.subr.mxu0 %v33841_v28  ;;  %26811 = vmatmul.mubr.f32.vlgmr.msra.gmra.mxu1 %v29629_v52 }
 0x237   :  { %26824 = vmatprep.subr.mxu1 %v33841_v28  ;;  %26792 = vmatpush3.msra.mxu0 %v30016_v42  ;;  %v30184_v42 = vand.u32 4294901760, %v30165_v55 }
 0x238   :  { %26825 = vmatpush3.msra.mxu1 %v29997_v31  ;;  %26793 = vmatprep.subr.mxu0 %v33841_v28 }
 0x239   :  { %26826 = vmatprep.subr.mxu1 %v33841_v28  ;;  %26794 = vmatpush3.msra.mxu0 %v30026_v40  ;;  %34071 = vst [vmem:[#allocation92_spill] sm:$0xff] %v30184_v42  ;;  %v30193_v40 = vand.u32 4294901760, %v30175_v13 }
 0x23a   :  { %26827 = vmatpush3.msra.mxu1 %v30006_v16  ;;  %26795 = vmatprep.subr.mxu0 %v33841_v28 }
 0x23b   :  { %26828 = vmatprep.subr.mxu1 %v33841_v28  ;;  %26796 = vmatpush3.msra.mxu0 %v30039_v38  ;;  %34072 = vst [vmem:[#allocation93_spill] sm:$0xff] %v30193_v40  ;;  %v30200_v38 = vand.u32 4294901760, %v2733_v37  ;;  %v2754_v16 = vsub.f32 %v30175_v13, %v30193_v40 }
 0x23c   :  { %26829 = vmatpush3.msra.mxu1 %v30018_v41  ;;  %26797 = vmatprep.subr.mxu0 %v33841_v28  ;;  %v2747_v41 = vsub.f32 %v30165_v55, %v30184_v42 }
 0x23d   :  { %26830 = vmatprep.subr.mxu1 %v33841_v28  ;;  %26798 = vmatpush3.msra.mxu0 %v30049_v20  ;;  %34073 = vst [vmem:[#allocation94_spill] sm:$0xff] %v30200_v38  ;;  %v30209_v20 = vand.u32 4294901760, %v2740_v34  ;;  %v30223_v34 = vand.u32 4294901760, %v2754_v16  ;;  %v78_v16 = vld [vmem:[%s33642_s4 + $0x50] sm:$0xff] }
 0x23e   :  { %26799 = vmatprep.mubr.msk.f32.mxu0 %vm29419_vm1, %v33841_v28  ;;  %26831 = vmatpush3.msra.mxu1 %v30028_v39  ;;  %v30217_v37 = vand.u32 4294901760, %v2747_v41  ;;  %v79_v41 = vld [vmem:[%s33642_s4 + $0x58] sm:$0xff] }
 0x23f   :  { %26832 = vmatprep.mubr.msk.f32.mxu1 %vm29419_vm1, %v33841_v28  ;;  %26800 = vmatmul.mubr.f32.vlgmr.msra.gmra.mxu0 %v29616_v49  ;;  %34074 = vst [vmem:[#allocation95_spill] sm:$0xff] %v30209_v20  ;;  %34076 = vst [vmem:[#allocation97_spill] sm:$0xff] %v30223_v34 }
 0x240   :  { %26813 = vmatprep.subr.mxu0 %v33841_v28  ;;  %26833 = vmatmul.mubr.f32.vlgmr.msra.gmra.mxu1 %v29610_v47  ;;  %34075 = vst [vmem:[#allocation96_spill] sm:$0xff] %v30217_v37 }
 0x241   :  { %26846 = vmatprep.subr.mxu1 %v33841_v28  ;;  %26814 = vmatpush3.msra.mxu0 %v30036_v26 }
 0x242   :  { %26847 = vmatpush3.msra.mxu1 %v30200_v38  ;;  %26815 = vmatprep.subr.mxu0 %v33841_v28 }
 0x243   :  { %26848 = vmatprep.subr.mxu1 %v33841_v28  ;;  %26816 = vmatpush3.msra.mxu0 %v30046_v36 }
 0x244   :  { %26849 = vmatpush3.msra.mxu1 %v30209_v20  ;;  %26817 = vmatprep.subr.mxu0 %v33841_v28 }
 0x245   :  { %26850 = vmatprep.subr.mxu1 %v33841_v28  ;;  %26818 = vmatpush3.msra.mxu0 %v30058_v43  ;;  %v76_v43 = vld [vmem:[%s33642_s4 + $0x40] sm:$0xff] }
 0x246   :  { %26851 = vmatpush3.msra.mxu1 %v30217_v37  ;;  %26819 = vmatprep.subr.mxu0 %v33841_v28  ;;  %v30258_v37 = vand.u32 4294901760, %v78_v16  ;;  %v30280_v26 = vand.u32 4294901760, %v76_v43 }
 0x247   :  { %26852 = vmatprep.subr.mxu1 %v33841_v28  ;;  %26820 = vmatpush3.msra.mxu0 %v30067_v51  ;;  %v77_v51 = vld [vmem:[%s33642_s4 + $0x48] sm:$0xff] }
 0x248   :  { %26821 = vmatprep.mubr.msk.f32.mxu0 %vm29419_vm1, %v33841_v28  ;;  %26853 = vmatpush3.msra.mxu1 %v30223_v34  ;;  %v30249_v34 = vand.u32 4294901760, %v79_v41  ;;  %34078 = vst [vmem:[#allocation99_spill] sm:$0xff] %v30258_v37  ;;  %v30270_v36 = vand.u32 4294901760, %v77_v51  ;;  %v30278_v38 = vsub.f32 %v78_v16, %v30258_v37  ;;  %34082 = vst [vmem:[#allocation103_spill] sm:$0xff] %v30280_v26 }
 0x249   :  { %26854 = vmatprep.mubr.msk.f32.mxu1 %vm29419_vm1, %v33841_v28  ;;  %26822 = vmatmul.mubr.f32.vlgmr.msra.gmra.mxu0 %v29610_v47  ;;  %v30301_v31 = vsub.f32 %v76_v43, %v30280_v26 }
 0x24a   :  { %26835 = vmatprep.subr.mxu0 %v33841_v28  ;;  %26855 = vmatmul.mubr.f32.vlgmr.msra.gmra.mxu1 %v29610_v47  ;;  %34077 = vst [vmem:[#allocation98_spill] sm:$0xff] %v30249_v34  ;;  %v30268_v20 = vsub.f32 %v79_v41, %v30249_v34  ;;  %34080 = vst [vmem:[#allocation101_spill] sm:$0xff] %v30270_v36  ;;  %v30291_v39 = vsub.f32 %v77_v51, %v30270_v36  ;;  %v30298_v16 = vand.u32 4294901760, %v30278_v38 }
 0x24b   :  { %26868 = vmatprep.subr.mxu1 %v33841_v28  ;;  %26836 = vmatpush3.msra.mxu0 %v30123_v44  ;;  %34081 = vst [vmem:[#allocation102_spill] sm:$0xff] %v30278_v38  ;;  %34086 = vst [vmem:[#allocation107_spill] sm:$0xff] %v30301_v31 }
 0x24c   :  { %26869 = vmatpush3.msra.mxu1 %v30123_v44  ;;  %26837 = vmatprep.subr.mxu0 %v33841_v28  ;;  %34079 = vst [vmem:[#allocation100_spill] sm:$0xff] %v30268_v20  ;;  %v30288_v41 = vand.u32 4294901760, %v30268_v20  ;;  %34084 = vst [vmem:[#allocation105_spill] sm:$0xff] %v30291_v39  ;;  %v3225_v43 = vsub.f32 %v30278_v38, %v30298_v16 }
 0x24d   :  { %26870 = vmatprep.subr.mxu1 %v33841_v28  ;;  %26838 = vmatpush3.msra.mxu0 %v30132_v46  ;;  %34085 = vst [vmem:[#allocation106_spill] sm:$0xff] %v30298_v16 }
 0x24e   :  { %26871 = vmatpush3.msra.mxu1 %v30132_v46  ;;  %26839 = vmatprep.subr.mxu0 %v33841_v28  ;;  %34083 = vst [vmem:[#allocation104_spill] sm:$0xff] %v30288_v41  ;;  %v3218_v51 = vsub.f32 %v30268_v20, %v30288_v41 }
 0x24f   :  { %26872 = vmatprep.subr.mxu1 %v33841_v28  ;;  %26840 = vmatpush3.msra.mxu0 %v30144_v9 }
 0x250   :  { %26873 = vmatpush3.msra.mxu1 %v30144_v9  ;;  %26841 = vmatprep.subr.mxu0 %v33841_v28 }
 0x251   :  { %26874 = vmatprep.subr.mxu1 %v33841_v28  ;;  %26842 = vmatpush3.msra.mxu0 %v30154_v7 }
 0x252   :  { %26843 = vmatprep.mubr.msk.f32.mxu0 %vm29419_vm1, %v33841_v28  ;;  %26875 = vmatpush3.msra.mxu1 %v30154_v7 }
 0x253   :  { %26876 = vmatprep.mubr.msk.f32.mxu1 %vm29419_vm1, %v33841_v28  ;;  %26844 = vmatmul.mubr.f32.vlgmr.msra.gmra.mxu0 %v29647_v58 }
 0x254   :  { %26857 = vmatprep.subr.mxu0 %v33841_v28  ;;  %26877 = vmatmul.mubr.f32.vlgmr.msra.gmra.mxu1 %v29629_v52 }
 0x255   :  { %26890 = vmatprep.subr.mxu1 %v33841_v28  ;;  %26858 = vmatpush3.msra.mxu0 %v30142_v5  ;;  %v30310_v5 = vand.u32 4294901760, %v30291_v39 }
 0x256   :  { %26891 = vmatpush3.msra.mxu1 %v30123_v44  ;;  %26859 = vmatprep.subr.mxu0 %v33841_v28 }
 0x257   :  { %26892 = vmatprep.subr.mxu1 %v33841_v28  ;;  %26860 = vmatpush3.msra.mxu0 %v30152_v3  ;;  %34087 = vst [vmem:[#allocation108_spill] sm:$0xff] %v30310_v5  ;;  %v30319_v3 = vand.u32 4294901760, %v30301_v31 }
 0x258   :  { %26893 = vmatpush3.msra.mxu1 %v30132_v46  ;;  %26861 = vmatprep.subr.mxu0 %v33841_v28 }
 0x259   :  { %26894 = vmatprep.subr.mxu1 %v33841_v28  ;;  %26862 = vmatpush3.msra.mxu0 %v30165_v55  ;;  %34088 = vst [vmem:[#allocation109_spill] sm:$0xff] %v30319_v3  ;;  %v30326_v55 = vand.u32 4294901760, %v3218_v51  ;;  %v3239_v46 = vsub.f32 %v30301_v31, %v30319_v3 }
 0x25a   :  { %26895 = vmatpush3.msra.mxu1 %v30144_v9  ;;  %26863 = vmatprep.subr.mxu0 %v33841_v28  ;;  %v3232_v9 = vsub.f32 %v30291_v39, %v30310_v5 }
 0x25b   :  { %26896 = vmatprep.subr.mxu1 %v33841_v28  ;;  %26864 = vmatpush3.msra.mxu0 %v30175_v13  ;;  %34089 = vst [vmem:[#allocation110_spill] sm:$0xff] %v30326_v55  ;;  %v30335_v13 = vand.u32 4294901760, %v3225_v43  ;;  %v30349_v43 = vand.u32 4294901760, %v3239_v46  ;;  %v82_v46 = vld [vmem:[%s33642_s4 + $0x70] sm:$0xff] }
 0x25c   :  { %26865 = vmatprep.mubr.msk.f32.mxu0 %vm29419_vm1, %v33841_v28  ;;  %26897 = vmatpush3.msra.mxu1 %v30154_v7  ;;  %v30343_v51 = vand.u32 4294901760, %v3232_v9  ;;  %v83_v9 = vld [vmem:[%s33642_s4 + $0x78] sm:$0xff] }
 0x25d   :  { %26898 = vmatprep.mubr.msk.f32.mxu1 %vm29419_vm1, %v33841_v28  ;;  %26866 = vmatmul.mubr.f32.vlgmr.msra.gmra.mxu0 %v29616_v49  ;;  %34090 = vst [vmem:[#allocation111_spill] sm:$0xff] %v30335_v13  ;;  %34092 = vst [vmem:[#allocation113_spill] sm:$0xff] %v30349_v43 }
 0x25e   :  { %26879 = vmatprep.subr.mxu0 %v33841_v28  ;;  %26899 = vmatmul.mubr.f32.vlgmr.msra.gmra.mxu1 %v29610_v47  ;;  %34091 = vst [vmem:[#allocation112_spill] sm:$0xff] %v30343_v51 }
 0x25f   :  { %26912 = vmatprep.subr.mxu1 %v33841_v28  ;;  %26880 = vmatpush3.msra.mxu0 %v30162_v21 }
 0x260   :  { %26913 = vmatpush3.msra.mxu1 %v30326_v55  ;;  %26881 = vmatprep.subr.mxu0 %v33841_v28 }
 0x261   :  { %26914 = vmatprep.subr.mxu1 %v33841_v28  ;;  %26882 = vmatpush3.msra.mxu0 %v30172_v45 }
 0x262   :  { %26915 = vmatpush3.msra.mxu1 %v30335_v13  ;;  %26883 = vmatprep.subr.mxu0 %v33841_v28 }
 0x263   :  { %26916 = vmatprep.subr.mxu1 %v33841_v28  ;;  %26884 = vmatpush3.msra.mxu0 %v30184_v42  ;;  %v80_v42 = vld [vmem:[%s33642_s4 + $0x60] sm:$0xff] }
 0x264   :  { %26917 = vmatpush3.msra.mxu1 %v30343_v51  ;;  %26885 = vmatprep.subr.mxu0 %v33841_v28  ;;  %v30384_v51 = vand.u32 4294901760, %v82_v46  ;;  %v30406_v21 = vand.u32 4294901760, %v80_v42 }
 0x265   :  { %26918 = vmatprep.subr.mxu1 %v33841_v28  ;;  %26886 = vmatpush3.msra.mxu0 %v30193_v40  ;;  %v81_v40 = vld [vmem:[%s33642_s4 + $0x68] sm:$0xff] }
 0x266   :  { %26887 = vmatprep.mubr.msk.f32.mxu0 %vm29419_vm1, %v33841_v28  ;;  %26919 = vmatpush3.msra.mxu1 %v30349_v43  ;;  %v30375_v43 = vand.u32 4294901760, %v83_v9  ;;  %34094 = vst [vmem:[#allocation115_spill] sm:$0xff] %v30384_v51  ;;  %v30396_v45 = vand.u32 4294901760, %v81_v40  ;;  %v30404_v55 = vsub.f32 %v82_v46, %v30384_v51  ;;  %34098 = vst [vmem:[#allocation119_spill] sm:$0xff] %v30406_v21 }
 0x267   :  { %26920 = vmatprep.mubr.msk.f32.mxu1 %vm29419_vm1, %v33841_v28  ;;  %26888 = vmatmul.mubr.f32.vlgmr.msra.gmra.mxu0 %v29610_v47  ;;  %v30427_v44 = vsub.f32 %v80_v42, %v30406_v21 }
 0x268   :  { %26901 = vmatprep.subr.mxu0 %v33841_v28  ;;  %26921 = vmatmul.mubr.f32.vlgmr.msra.gmra.mxu1 %v29610_v47  ;;  %34093 = vst [vmem:[#allocation114_spill] sm:$0xff] %v30375_v43  ;;  %v30394_v13 = vsub.f32 %v83_v9, %v30375_v43  ;;  %34096 = vst [vmem:[#allocation117_spill] sm:$0xff] %v30396_v45  ;;  %v30417_v7 = vsub.f32 %v81_v40, %v30396_v45  ;;  %v30424_v46 = vand.u32 4294901760, %v30404_v55 }
 0x269   :  { %26934 = vmatprep.subr.mxu1 %v33841_v28  ;;  %26902 = vmatpush3.msra.mxu0 %v30249_v34  ;;  %34097 = vst [vmem:[#allocation118_spill] sm:$0xff] %v30404_v55  ;;  %34102 = vst [vmem:[#allocation123_spill] sm:$0xff] %v30427_v44 }
 0x26a   :  { %26935 = vmatpush3.msra.mxu1 %v30249_v34  ;;  %26903 = vmatprep.subr.mxu0 %v33841_v28  ;;  %34095 = vst [vmem:[#allocation116_spill] sm:$0xff] %v30394_v13  ;;  %v30414_v9 = vand.u32 4294901760, %v30394_v13  ;;  %34100 = vst [vmem:[#allocation121_spill] sm:$0xff] %v30417_v7  ;;  %v3710_v42 = vsub.f32 %v30404_v55, %v30424_v46 }
 0x26b   :  { %26936 = vmatprep.subr.mxu1 %v33841_v28  ;;  %26904 = vmatpush3.msra.mxu0 %v30258_v37  ;;  %34101 = vst [vmem:[#allocation122_spill] sm:$0xff] %v30424_v46 }
 0x26c   :  { %26937 = vmatpush3.msra.mxu1 %v30258_v37  ;;  %26905 = vmatprep.subr.mxu0 %v33841_v28  ;;  %34099 = vst [vmem:[#allocation120_spill] sm:$0xff] %v30414_v9  ;;  %v3703_v40 = vsub.f32 %v30394_v13, %v30414_v9 }
 0x26d   :  { %26938 = vmatprep.subr.mxu1 %v33841_v28  ;;  %26906 = vmatpush3.msra.mxu0 %v30270_v36 }
 0x26e   :  { %26939 = vmatpush3.msra.mxu1 %v30270_v36  ;;  %26907 = vmatprep.subr.mxu0 %v33841_v28 }
 0x26f   :  { %26940 = vmatprep.subr.mxu1 %v33841_v28  ;;  %26908 = vmatpush3.msra.mxu0 %v30280_v26 }
 0x270   :  { %26909 = vmatprep.mubr.msk.f32.mxu0 %vm29419_vm1, %v33841_v28  ;;  %26941 = vmatpush3.msra.mxu1 %v30280_v26 }
 0x271   :  { %26942 = vmatprep.mubr.msk.f32.mxu1 %vm29419_vm1, %v33841_v28  ;;  %26910 = vmatmul.mubr.f32.vlgmr.msra.gmra.mxu0 %v29647_v58 }
 0x272   :  { %26923 = vmatprep.subr.mxu0 %v33841_v28  ;;  %26943 = vmatmul.mubr.f32.vlgmr.msra.gmra.mxu1 %v29629_v52 }
 0x273   :  { %26956 = vmatprep.subr.mxu1 %v33841_v28  ;;  %26924 = vmatpush3.msra.mxu0 %v30268_v20  ;;  %v30436_v20 = vand.u32 4294901760, %v30417_v7 }
 0x274   :  { %26957 = vmatpush3.msra.mxu1 %v30249_v34  ;;  %26925 = vmatprep.subr.mxu0 %v33841_v28 }
 0x275   :  { %26958 = vmatprep.subr.mxu1 %v33841_v28  ;;  %26926 = vmatpush3.msra.mxu0 %v30278_v38  ;;  %34103 = vst [vmem:[#allocation124_spill] sm:$0xff] %v30436_v20  ;;  %v30445_v38 = vand.u32 4294901760, %v30427_v44 }
 0x276   :  { %26959 = vmatpush3.msra.mxu1 %v30258_v37  ;;  %26927 = vmatprep.subr.mxu0 %v33841_v28  ;;  %v367_v34 = vpop.f32.mrf.mxu1 }
 0x277   :  { %26960 = vmatprep.subr.mxu1 %v33841_v28  ;;  %26928 = vmatpush3.msra.mxu0 %v30291_v39  ;;  %34104 = vst [vmem:[#allocation125_spill] sm:$0xff] %v30445_v38  ;;  %v30452_v39 = vand.u32 4294901760, %v3703_v40 }
 0x278   :  { %26961 = vmatpush3.msra.mxu1 %v30270_v36  ;;  %26929 = vmatprep.subr.mxu0 %v33841_v28  ;;  %v26526_v37 = vpop.f32.mrf.mxu1  ;;  %v3717_v36 = vsub.f32 %v30417_v7, %v30436_v20 }
 0x279   :  { %26962 = vmatprep.subr.mxu1 %v33841_v28  ;;  %26930 = vmatpush3.msra.mxu0 %v30301_v31  ;;  %34105 = vst [vmem:[#allocation126_spill] sm:$0xff] %v30452_v39  ;;  %v30461_v37 = vand.u32 4294901760, %v3710_v42  ;;  %v3724_v31 = vsub.f32 %v30427_v44, %v30445_v38 }
 0x27a   :  { %26931 = vmatprep.mubr.msk.f32.mxu0 %vm29419_vm1, %v33841_v28  ;;  %26963 = vmatpush3.msra.mxu1 %v30280_v26  ;;  %v30469_v40 = vand.u32 4294901760, %v3717_v36 }
 0x27b   :  { %26964 = vmatprep.mubr.msk.f32.mxu1 %vm29419_vm1, %v33841_v28  ;;  %26932 = vmatmul.mubr.f32.vlgmr.msra.gmra.mxu0 %v29616_v49  ;;  %34106 = vst [vmem:[#allocation127_spill] sm:$0xff] %v30461_v37  ;;  %v30475_v1 = vand.u32 4294901760, %v3724_v31  ;;  %v87_v31 = vld [vmem:[%s33643_s5 + $0x18] sm:$0xff] }
 0x27c   :  { %26945 = vmatprep.subr.mxu0 %v33841_v28  ;;  %26965 = vmatmul.mubr.f32.vlgmr.msra.gmra.mxu1 %v29610_v47  ;;  %34107 = vst [vmem:[#allocation128_spill] sm:$0xff] %v30469_v40 }
 0x27d   :  { %26978 = vmatprep.subr.mxu1 %v33841_v28  ;;  %26946 = vmatpush3.msra.mxu0 %v30288_v41  ;;  %34108 = vst [vmem:[#allocation129_spill] sm:$0xff] %v30475_v1 }
 0x27e   :  { %26979 = vmatpush3.msra.mxu1 %v30452_v39  ;;  %26947 = vmatprep.subr.mxu0 %v33841_v28  ;;  %v524_v26 = vpop.f32.mrf.mxu1 }
 0x27f   :  { %26980 = vmatprep.subr.mxu1 %v33841_v28  ;;  %26948 = vmatpush3.msra.mxu0 %v30298_v16  ;;  %v276_v42 = vpop.f32.mrf.mxu0 }
 0x280   :  { %26981 = vmatpush3.msra.mxu1 %v30461_v37  ;;  %26949 = vmatprep.subr.mxu0 %v33841_v28  ;;  %v368_v2 = vadd.f32 %v367_v34, %v276_v42  ;;  %v26548_v41 = vpop.f32.mrf.mxu1  ;;  %v86_v34 = vld [vmem:[%s33643_s5 + $0x10] sm:$0xff]  ;;  %v30501_v42 = vand.u32 4294901760, %v87_v31 }
 0x281   :  { %26982 = vmatprep.subr.mxu1 %v33841_v28  ;;  %26950 = vmatpush3.msra.mxu0 %v30310_v5  ;;  %v26515_v36 = vpop.f32.mrf.mxu0  ;;  %v30510_v5 = vand.u32 4294901760, %v86_v34 }
 0x282   :  { %26983 = vmatpush3.msra.mxu1 %v30469_v40  ;;  %26951 = vmatprep.subr.mxu0 %v33841_v28  ;;  %34109 = vst [vmem:[#allocation130_spill] sm:$0xff] %v30501_v42 }
 0x283   :  { %26984 = vmatprep.subr.mxu1 %v33841_v28  ;;  %26952 = vmatpush3.msra.mxu0 %v30319_v3  ;;  %v85_v3 = vld [vmem:[%s33643_s5 + $0x8] sm:$0xff]  ;;  %34110 = vst [vmem:[#allocation131_spill] sm:$0xff] %v30510_v5 }
 0x284   :  { %26953 = vmatprep.mubr.msk.f32.mxu0 %vm29419_vm1, %v33841_v28  ;;  %26985 = vmatpush3.msra.mxu1 %v30475_v1 }
 0x285   :  { %26986 = vmatprep.mubr.msk.f32.mxu1 %vm29419_vm1, %v33841_v28  ;;  %26954 = vmatmul.mubr.f32.vlgmr.msra.gmra.mxu0 %v29610_v47 }
 0x286   :  { %26967 = vmatprep.subr.mxu0 %v33841_v28  ;;  %26987 = vmatmul.mubr.f32.vlgmr.msra.gmra.mxu1 %v29610_v47 }
 0x287   :  { %27000 = vmatprep.subr.mxu1 %v33841_v28  ;;  %26968 = vmatpush3.msra.mxu0 %v30375_v43  ;;  %v447_v41 = vpop.f32.mrf.mxu0 }
 0x288   :  { %27001 = vmatpush3.msra.mxu1 %v30375_v43  ;;  %26969 = vmatprep.subr.mxu0 %v33841_v28  ;;  %v448_v36 = vadd.f32 %v447_v41, %v368_v2  ;;  %v682_v1 = vpop.f32.mrf.mxu1  ;;  %v84_v2 = vld [vmem:[%s33643_s5] sm:$0xff]  ;;  %v30522_v41 = vand.u32 4294901760, %v85_v3 }
 0x289   :  { %27002 = vmatprep.subr.mxu1 %v33841_v28  ;;  %26970 = vmatpush3.msra.mxu0 %v30384_v51  ;;  %v26537_v40 = vpop.f32.mrf.mxu0 }
 0x28a   :  { %27003 = vmatpush3.msra.mxu1 %v30384_v51  ;;  %26971 = vmatprep.subr.mxu0 %v33841_v28  ;;  %v26570_v37 = vpop.f32.mrf.mxu1  ;;  %v525_v16 = vadd.f32 %v524_v26, %v448_v36  ;;  %v30520_v40 = vsub.f32 %v87_v31, %v30501_v42  ;;  %34112 = vst [vmem:[#allocation133_spill] sm:$0xff] %v30522_v41 }
 0x28b   :  { %27004 = vmatprep.subr.mxu1 %v33841_v28  ;;  %26972 = vmatpush3.msra.mxu0 %v30396_v45  ;;  %v30530_v26 = vsub.f32 %v86_v34, %v30510_v5  ;;  %v30532_v37 = vand.u32 4294901760, %v84_v2  ;;  %v30543_v36 = vsub.f32 %v85_v3, %v30522_v41 }
 0x28c   :  { %27005 = vmatpush3.msra.mxu1 %v30396_v45  ;;  %26973 = vmatprep.subr.mxu0 %v33841_v28  ;;  %34111 = vst [vmem:[#allocation132_spill] sm:$0xff] %v30520_v40  ;;  %v30540_v31 = vand.u32 4294901760, %v30520_v40 }
 0x28d   :  { %27006 = vmatprep.subr.mxu1 %v33841_v28  ;;  %26974 = vmatpush3.msra.mxu0 %v30406_v21  ;;  %34113 = vst [vmem:[#allocation134_spill] sm:$0xff] %v30530_v26  ;;  %34114 = vst [vmem:[#allocation135_spill] sm:$0xff] %v30532_v37  ;;  %v30550_v39 = vand.u32 4294901760, %v30530_v26  ;;  %v30553_v54 = vsub.f32 %v84_v2, %v30532_v37 }
 0x28e   :  { %26975 = vmatprep.mubr.msk.f32.mxu0 %vm29419_vm1, %v33841_v28  ;;  %27007 = vmatpush3.msra.mxu1 %v30406_v21  ;;  %34115 = vst [vmem:[#allocation136_spill] sm:$0xff] %v30540_v31  ;;  %34116 = vst [vmem:[#allocation137_spill] sm:$0xff] %v30543_v36 }
 0x28f   :  { %27008 = vmatprep.mubr.msk.f32.mxu1 %vm29419_vm1, %v33841_v28  ;;  %26976 = vmatmul.mubr.f32.vlgmr.msra.gmra.mxu0 %v29647_v58  ;;  %34117 = vst [vmem:[#allocation138_spill] sm:$0xff] %v30550_v39  ;;  %34118 = vst [vmem:[#allocation139_spill] sm:$0xff] %v30553_v54 }
 0x290   :  { %26989 = vmatprep.subr.mxu0 %v33841_v28  ;;  %27009 = vmatmul.mubr.f32.vlgmr.msra.gmra.mxu1 %v29629_v52 }
 0x291   :  { %27022 = vmatprep.subr.mxu1 %v33841_v28  ;;  %26990 = vmatpush3.msra.mxu0 %v30394_v13  ;;  %v607_v34 = vpop.f32.mrf.mxu0  ;;  %v4188_v13 = vsub.f32 %v30520_v40, %v30540_v31 }
 0x292   :  { %27023 = vmatpush3.msra.mxu1 %v30375_v43  ;;  %26991 = vmatprep.subr.mxu0 %v33841_v28  ;;  %v608_v63 = vadd.f32 %v607_v34, %v525_v16  ;;  %v852_v48 = vpop.f32.mrf.mxu1  ;;  %v30562_v43 = vand.u32 4294901760, %v30543_v36  ;;  %v4195_v16 = vsub.f32 %v30530_v26, %v30550_v39  ;;  %v30573_v34 = vand.u32 4294901760, %v30553_v54 }
 0x293   :  { %27024 = vmatprep.subr.mxu1 %v33841_v28  ;;  %26992 = vmatpush3.msra.mxu0 %v30404_v55  ;;  %v26559_v3 = vpop.f32.mrf.mxu0 }
 0x294   :  { %27025 = vmatpush3.msra.mxu1 %v30384_v51  ;;  %26993 = vmatprep.subr.mxu0 %v33841_v28  ;;  %34119 = vst [vmem:[#allocation140_spill] sm:$0xff] %v30562_v43  ;;  %v30564_v61 = vadd.f32 %v682_v1, %v608_v63  ;;  %v26592_v2 = vpop.f32.mrf.mxu1  ;;  %34120 = vst [vmem:[#allocation141_spill] sm:$0xff] %v30573_v34  ;;  %v30580_v63 = vand.u32 4294901760, %v4188_v13  ;;  %v4202_v1 = vsub.f32 %v30543_v36, %v30562_v43 }
 0x295   :  { %27026 = vmatprep.subr.mxu1 %v33841_v28  ;;  %26994 = vmatpush3.msra.mxu0 %v30417_v7  ;;  %v30589_v3 = vand.u32 4294901760, %v4195_v16  ;;  %v4209_v2 = vsub.f32 %v30553_v54, %v30573_v34 }
 0x296   :  { %27027 = vmatpush3.msra.mxu1 %v30396_v45  ;;  %26995 = vmatprep.subr.mxu0 %v33841_v28  ;;  %34121 = vst [vmem:[#allocation142_spill] sm:$0xff] %v30580_v63 }
 0x297   :  { %27028 = vmatprep.subr.mxu1 %v33841_v28  ;;  %26996 = vmatpush3.msra.mxu0 %v30427_v44  ;;  %34122 = vst [vmem:[#allocation143_spill] sm:$0xff] %v30589_v3  ;;  %v30597_v44 = vand.u32 4294901760, %v4202_v1 }
 0x298   :  { %26997 = vmatprep.mubr.msk.f32.mxu0 %vm29419_vm1, %v33841_v28  ;;  %27029 = vmatpush3.msra.mxu1 %v30406_v21  ;;  %v30603_v21 = vand.u32 4294901760, %v4209_v2 }
 0x299   :  { %27030 = vmatprep.mubr.msk.f32.mxu1 %vm29419_vm1, %v33841_v28  ;;  %26998 = vmatmul.mubr.f32.vlgmr.msra.gmra.mxu0 %v29616_v49  ;;  %34123 = vst [vmem:[#allocation144_spill] sm:$0xff] %v30597_v44 }
 0x29a   :  { %27011 = vmatprep.subr.mxu0 %v33841_v28  ;;  %27031 = vmatmul.mubr.f32.vlgmr.msra.gmra.mxu1 %v29610_v47  ;;  %34124 = vst [vmem:[#allocation145_spill] sm:$0xff] %v30603_v21 }
 0x29b   :  { %27044 = vmatprep.subr.mxu1 %v33841_v28  ;;  %27012 = vmatpush3.msra.mxu0 %v30414_v9  ;;  %v761_v13 = vpop.f32.mrf.mxu0 }
 0x29c   :  { %27045 = vmatpush3.msra.mxu1 %v30580_v63  ;;  %27013 = vmatprep.subr.mxu0 %v33841_v28  ;;  %v853_v7 = vadd.f32 %v852_v48, %v761_v13  ;;  %v1009_v55 = vpop.f32.mrf.mxu1  ;;  %v91_v48 = vld [vmem:[%s33643_s5 + $0x38] sm:$0xff] }
 0x29d   :  { %27046 = vmatprep.subr.mxu1 %v33841_v28  ;;  %27014 = vmatpush3.msra.mxu0 %v30424_v46  ;;  %v26581_v16 = vpop.f32.mrf.mxu0  ;;  %v30629_v2 = vand.u32 4294901760, %v91_v48 }
 0x29e   :  { %27047 = vmatpush3.msra.mxu1 %v30589_v3  ;;  %27015 = vmatprep.subr.mxu0 %v33841_v28  ;;  %v26614_v9 = vpop.f32.mrf.mxu1 }
 0x29f   :  { %27048 = vmatprep.subr.mxu1 %v33841_v28  ;;  %27016 = vmatpush3.msra.mxu0 %v30436_v20  ;;  %v90_v9 = vld [vmem:[%s33643_s5 + $0x30] sm:$0xff]  ;;  %34125 = vst [vmem:[#allocation146_spill] sm:$0xff] %v30629_v2 }
 0x2a0   :  { %27049 = vmatpush3.msra.mxu1 %v30597_v44  ;;  %27017 = vmatprep.subr.mxu0 %v33841_v28  ;;  %v30638_v44 = vand.u32 4294901760, %v90_v9 }
 0x2a1   :  { %27050 = vmatprep.subr.mxu1 %v33841_v28  ;;  %27018 = vmatpush3.msra.mxu0 %v30445_v38 }
 0x2a2   :  { %27019 = vmatprep.mubr.msk.f32.mxu0 %vm29419_vm1, %v33841_v28  ;;  %27051 = vmatpush3.msra.mxu1 %v30603_v21  ;;  %v89_v21 = vld [vmem:[%s33643_s5 + $0x28] sm:$0xff]  ;;  %34126 = vst [vmem:[#allocation147_spill] sm:$0xff] %v30638_v44 }
 0x2a3   :  { %27052 = vmatprep.mubr.msk.f32.mxu1 %vm29419_vm1, %v33841_v28  ;;  %27020 = vmatmul.mubr.f32.vlgmr.msra.gmra.mxu0 %v29610_v47 }
 0x2a4   :  { %27033 = vmatprep.subr.mxu0 %v33841_v28  ;;  %27053 = vmatmul.mubr.f32.vlgmr.msra.gmra.mxu1 %v29610_v47 }
 0x2a5   :  { %27066 = vmatprep.subr.mxu1 %v33841_v28  ;;  %27034 = vmatpush3.msra.mxu0 %v30501_v42  ;;  %v932_v1 = vpop.f32.mrf.mxu0 }
 0x2a6   :  { %27067 = vmatpush3.msra.mxu1 %v30501_v42  ;;  %27035 = vmatprep.subr.mxu0 %v33841_v28  ;;  %v933_v13 = vadd.f32 %v932_v1, %v853_v7  ;;  %v1167_v16 = vpop.f32.mrf.mxu1  ;;  %v88_v7 = vld [vmem:[%s33643_s5 + $0x20] sm:$0xff]  ;;  %v30650_v1 = vand.u32 4294901760, %v89_v21 }
 0x2a7   :  { %27068 = vmatprep.subr.mxu1 %v33841_v28  ;;  %27036 = vmatpush3.msra.mxu0 %v30510_v5  ;;  %v26603_v38 = vpop.f32.mrf.mxu0 }
 0x2a8   :  { %27069 = vmatpush3.msra.mxu1 %v30510_v5  ;;  %27037 = vmatprep.subr.mxu0 %v33841_v28  ;;  %v26636_v20 = vpop.f32.mrf.mxu1  ;;  %v1010_v3 = vadd.f32 %v1009_v55, %v933_v13  ;;  %v30648_v38 = vsub.f32 %v91_v48, %v30629_v2  ;;  %34128 = vst [vmem:[#allocation149_spill] sm:$0xff] %v30650_v1  ;;  %v30660_v55 = vand.u32 4294901760, %v88_v7 }
 0x2a9   :  { %27070 = vmatprep.subr.mxu1 %v33841_v28  ;;  %27038 = vmatpush3.msra.mxu0 %v30522_v41  ;;  %v30658_v20 = vsub.f32 %v90_v9, %v30638_v44  ;;  %v30671_v13 = vsub.f32 %v89_v21, %v30650_v1 }
 0x2aa   :  { %27071 = vmatpush3.msra.mxu1 %v30522_v41  ;;  %27039 = vmatprep.subr.mxu0 %v33841_v28  ;;  %34127 = vst [vmem:[#allocation148_spill] sm:$0xff] %v30648_v38  ;;  %34130 = vst [vmem:[#allocation151_spill] sm:$0xff] %v30660_v55  ;;  %v30668_v48 = vand.u32 4294901760, %v30648_v38  ;;  %v30681_v63 = vsub.f32 %v88_v7, %v30660_v55 }
 0x2ab   :  { %27072 = vmatprep.subr.mxu1 %v33841_v28  ;;  %27040 = vmatpush3.msra.mxu0 %v30532_v37  ;;  %34129 = vst [vmem:[#allocation150_spill] sm:$0xff] %v30658_v20  ;;  %34132 = vst [vmem:[#allocation153_spill] sm:$0xff] %v30671_v13  ;;  %v30678_v46 = vand.u32 4294901760, %v30658_v20 }
 0x2ac   :  { %27041 = vmatprep.mubr.msk.f32.mxu0 %vm29419_vm1, %v33841_v28  ;;  %27073 = vmatpush3.msra.mxu1 %v30532_v37  ;;  %34131 = vst [vmem:[#allocation152_spill] sm:$0xff] %v30668_v48  ;;  %34134 = vst [vmem:[#allocation155_spill] sm:$0xff] %v30681_v63 }
 0x2ad   :  { %27074 = vmatprep.mubr.msk.f32.mxu1 %vm29419_vm1, %v33841_v28  ;;  %27042 = vmatmul.mubr.f32.vlgmr.msra.gmra.mxu0 %v29647_v58  ;;  %34133 = vst [vmem:[#allocation154_spill] sm:$0xff] %v30678_v46 }
 0x2ae   :  { %27055 = vmatprep.subr.mxu0 %v33841_v28  ;;  %27075 = vmatmul.mubr.f32.vlgmr.msra.gmra.mxu1 %v29629_v52 }
 0x2af   :  { %27088 = vmatprep.subr.mxu1 %v33841_v28  ;;  %27056 = vmatpush3.msra.mxu0 %v30520_v40  ;;  %v1092_v9 = vpop.f32.mrf.mxu0  ;;  %v4673_v40 = vsub.f32 %v30648_v38, %v30668_v48 }
 0x2b0   :  { %27089 = vmatpush3.msra.mxu1 %v30501_v42  ;;  %27057 = vmatprep.subr.mxu0 %v33841_v28  ;;  %v1093_v45 = vadd.f32 %v1092_v9, %v1010_v3  ;;  %v1337_v51 = vpop.f32.mrf.mxu1  ;;  %v30690_v42 = vand.u32 4294901760, %v30671_v13  ;;  %v4680_v3 = vsub.f32 %v30658_v20, %v30678_v46  ;;  %v30701_v9 = vand.u32 4294901760, %v30681_v63 }
 0x2b1   :  { %27090 = vmatprep.subr.mxu1 %v33841_v28  ;;  %27058 = vmatpush3.msra.mxu0 %v30530_v26  ;;  %v26625_v21 = vpop.f32.mrf.mxu0 }
 0x2b2   :  { %27091 = vmatpush3.msra.mxu1 %v30510_v5  ;;  %27059 = vmatprep.subr.mxu0 %v33841_v28  ;;  %34135 = vst [vmem:[#allocation156_spill] sm:$0xff] %v30690_v42  ;;  %v30692_v0 = vadd.f32 %v1167_v16, %v1093_v45  ;;  %v26658_v7 = vpop.f32.mrf.mxu1  ;;  %34136 = vst [vmem:[#allocation157_spill] sm:$0xff] %v30701_v9  ;;  %v30708_v45 = vand.u32 4294901760, %v4673_v40  ;;  %v4687_v16 = vsub.f32 %v30671_v13, %v30690_v42 }
 0x2b3   :  { %27092 = vmatprep.subr.mxu1 %v33841_v28  ;;  %27060 = vmatpush3.msra.mxu0 %v30543_v36  ;;  %v30717_v21 = vand.u32 4294901760, %v4680_v3  ;;  %v4694_v7 = vsub.f32 %v30681_v63, %v30701_v9 }
 0x2b4   :  { %27093 = vmatpush3.msra.mxu1 %v30522_v41  ;;  %27061 = vmatprep.subr.mxu0 %v33841_v28  ;;  %34137 = vst [vmem:[#allocation158_spill] sm:$0xff] %v30708_v45 }
 0x2b5   :  { %27094 = vmatprep.subr.mxu1 %v33841_v28  ;;  %27062 = vmatpush3.msra.mxu0 %v30553_v54  ;;  %34138 = vst [vmem:[#allocation159_spill] sm:$0xff] %v30717_v21  ;;  %v30725_v54 = vand.u32 4294901760, %v4687_v16 }
 0x2b6   :  { %27063 = vmatprep.mubr.msk.f32.mxu0 %vm29419_vm1, %v33841_v28  ;;  %27095 = vmatpush3.msra.mxu1 %v30532_v37  ;;  %v30731_v37 = vand.u32 4294901760, %v4694_v7 }
 0x2b7   :  { %27096 = vmatprep.mubr.msk.f32.mxu1 %vm29419_vm1, %v33841_v28  ;;  %27064 = vmatmul.mubr.f32.vlgmr.msra.gmra.mxu0 %v29616_v49  ;;  %34139 = vst [vmem:[#allocation160_spill] sm:$0xff] %v30725_v54 }
 0x2b8   :  { %27077 = vmatprep.subr.mxu0 %v33841_v28  ;;  %27097 = vmatmul.mubr.f32.vlgmr.msra.gmra.mxu1 %v29610_v47  ;;  %34140 = vst [vmem:[#allocation161_spill] sm:$0xff] %v30731_v37 }
 0x2b9   :  { %27110 = vmatprep.subr.mxu1 %v33841_v28  ;;  %27078 = vmatpush3.msra.mxu0 %v30540_v31  ;;  %v1246_v40 = vpop.f32.mrf.mxu0 }
 0x2ba   :  { %27111 = vmatpush3.msra.mxu1 %v30708_v45  ;;  %27079 = vmatprep.subr.mxu0 %v33841_v28  ;;  %v1338_v36 = vadd.f32 %v1337_v51, %v1246_v40  ;;  %v1494_v26 = vpop.f32.mrf.mxu1  ;;  %v95_v51 = vld [vmem:[%s33643_s5 + $0x58] sm:$0xff] }
 0x2bb   :  { %27112 = vmatprep.subr.mxu1 %v33841_v28  ;;  %27080 = vmatpush3.msra.mxu0 %v30550_v39  ;;  %v26647_v3 = vpop.f32.mrf.mxu0  ;;  %v30757_v7 = vand.u32 4294901760, %v95_v51 }
 0x2bc   :  { %27113 = vmatpush3.msra.mxu1 %v30717_v21  ;;  %27081 = vmatprep.subr.mxu0 %v33841_v28  ;;  %v26680_v31 = vpop.f32.mrf.mxu1 }
 0x2bd   :  { %27114 = vmatprep.subr.mxu1 %v33841_v28  ;;  %27082 = vmatpush3.msra.mxu0 %v30562_v43  ;;  %v94_v31 = vld [vmem:[%s33643_s5 + $0x50] sm:$0xff]  ;;  %34141 = vst [vmem:[#allocation162_spill] sm:$0xff] %v30757_v7 }
 0x2be   :  { %27115 = vmatpush3.msra.mxu1 %v30725_v54  ;;  %27083 = vmatprep.subr.mxu0 %v33841_v28  ;;  %v30766_v54 = vand.u32 4294901760, %v94_v31 }
 0x2bf   :  { %27116 = vmatprep.subr.mxu1 %v33841_v28  ;;  %27084 = vmatpush3.msra.mxu0 %v30573_v34 }
 0x2c0   :  { %27085 = vmatprep.mubr.msk.f32.mxu0 %vm29419_vm1, %v33841_v28  ;;  %27117 = vmatpush3.msra.mxu1 %v30731_v37  ;;  %v93_v37 = vld [vmem:[%s33643_s5 + $0x48] sm:$0xff]  ;;  %34142 = vst [vmem:[#allocation163_spill] sm:$0xff] %v30766_v54 }
 0x2c1   :  { %27118 = vmatprep.mubr.msk.f32.mxu1 %vm29419_vm1, %v33841_v28  ;;  %27086 = vmatmul.mubr.f32.vlgmr.msra.gmra.mxu0 %v29610_v47 }
 0x2c2   :  { %27099 = vmatprep.subr.mxu0 %v33841_v28  ;;  %27119 = vmatmul.mubr.f32.vlgmr.msra.gmra.mxu1 %v29610_v47 }
 0x2c3   :  { %27132 = vmatprep.subr.mxu1 %v33841_v28  ;;  %27100 = vmatpush3.msra.mxu0 %v30629_v2  ;;  %v1417_v16 = vpop.f32.mrf.mxu0 }
 0x2c4   :  { %27133 = vmatpush3.msra.mxu1 %v30629_v2  ;;  %27101 = vmatprep.subr.mxu0 %v33841_v28  ;;  %v1418_v40 = vadd.f32 %v1417_v16, %v1338_v36  ;;  %v1652_v3 = vpop.f32.mrf.mxu1  ;;  %v92_v36 = vld [vmem:[%s33643_s5 + $0x40] sm:$0xff]  ;;  %v30778_v16 = vand.u32 4294901760, %v93_v37 }
 0x2c5   :  { %27134 = vmatprep.subr.mxu1 %v33841_v28  ;;  %27102 = vmatpush3.msra.mxu0 %v30638_v44  ;;  %v26669_v34 = vpop.f32.mrf.mxu0 }
 0x2c6   :  { %27135 = vmatpush3.msra.mxu1 %v30638_v44  ;;  %27103 = vmatprep.subr.mxu0 %v33841_v28  ;;  %v26702_v43 = vpop.f32.mrf.mxu1  ;;  %v1495_v21 = vadd.f32 %v1494_v26, %v1418_v40  ;;  %v30776_v34 = vsub.f32 %v95_v51, %v30757_v7  ;;  %34144 = vst [vmem:[#allocation165_spill] sm:$0xff] %v30778_v16  ;;  %v30788_v26 = vand.u32 4294901760, %v92_v36 }
 0x2c7   :  { %27136 = vmatprep.subr.mxu1 %v33841_v28  ;;  %27104 = vmatpush3.msra.mxu0 %v30650_v1  ;;  %v30786_v43 = vsub.f32 %v94_v31, %v30766_v54  ;;  %v30799_v40 = vsub.f32 %v93_v37, %v30778_v16 }
 0x2c8   :  { %27137 = vmatpush3.msra.mxu1 %v30650_v1  ;;  %27105 = vmatprep.subr.mxu0 %v33841_v28  ;;  %34143 = vst [vmem:[#allocation164_spill] sm:$0xff] %v30776_v34  ;;  %34146 = vst [vmem:[#allocation167_spill] sm:$0xff] %v30788_v26  ;;  %v30796_v51 = vand.u32 4294901760, %v30776_v34  ;;  %v30809_v45 = vsub.f32 %v92_v36, %v30788_v26 }
 0x2c9   :  { %27138 = vmatprep.subr.mxu1 %v33841_v28  ;;  %27106 = vmatpush3.msra.mxu0 %v30660_v55  ;;  %34145 = vst [vmem:[#allocation166_spill] sm:$0xff] %v30786_v43  ;;  %34148 = vst [vmem:[#allocation169_spill] sm:$0xff] %v30799_v40  ;;  %v30806_v39 = vand.u32 4294901760, %v30786_v43 }
 0x2ca   :  { %27107 = vmatprep.mubr.msk.f32.mxu0 %vm29419_vm1, %v33841_v28  ;;  %27139 = vmatpush3.msra.mxu1 %v30660_v55  ;;  %34147 = vst [vmem:[#allocation168_spill] sm:$0xff] %v30796_v51  ;;  %34150 = vst [vmem:[#allocation171_spill] sm:$0xff] %v30809_v45 }
 0x2cb   :  { %27140 = vmatprep.mubr.msk.f32.mxu1 %vm29419_vm1, %v33841_v28  ;;  %27108 = vmatmul.mubr.f32.vlgmr.msra.gmra.mxu0 %v29647_v58  ;;  %34149 = vst [vmem:[#allocation170_spill] sm:$0xff] %v30806_v39 }
 0x2cc   :  { %27121 = vmatprep.subr.mxu0 %v33841_v28  ;;  %27141 = vmatmul.mubr.f32.vlgmr.msra.gmra.mxu1 %v29629_v52 }
 0x2cd   :  { %27154 = vmatprep.subr.mxu1 %v33841_v28  ;;  %27122 = vmatpush3.msra.mxu0 %v30648_v38  ;;  %v1577_v31 = vpop.f32.mrf.mxu0  ;;  %v5158_v38 = vsub.f32 %v30776_v34, %v30796_v51 }
 0x2ce   :  { %27155 = vmatpush3.msra.mxu1 %v30629_v2  ;;  %27123 = vmatprep.subr.mxu0 %v33841_v28  ;;  %v1578_v41 = vadd.f32 %v1577_v31, %v1495_v21  ;;  %v1822_v5 = vpop.f32.mrf.mxu1  ;;  %v30818_v2 = vand.u32 4294901760, %v30799_v40  ;;  %v5165_v21 = vsub.f32 %v30786_v43, %v30806_v39  ;;  %v30829_v31 = vand.u32 4294901760, %v30809_v45 }
 0x2cf   :  { %27156 = vmatprep.subr.mxu1 %v33841_v28  ;;  %27124 = vmatpush3.msra.mxu0 %v30658_v20  ;;  %v26691_v37 = vpop.f32.mrf.mxu0 }
 0x2d0   :  { %27157 = vmatpush3.msra.mxu1 %v30638_v44  ;;  %27125 = vmatprep.subr.mxu0 %v33841_v28  ;;  %34151 = vst [vmem:[#allocation172_spill] sm:$0xff] %v30818_v2  ;;  %v30820_v62 = vadd.f32 %v1652_v3, %v1578_v41  ;;  %v26724_v36 = vpop.f32.mrf.mxu1  ;;  %34152 = vst [vmem:[#allocation173_spill] sm:$0xff] %v30829_v31  ;;  %v30836_v41 = vand.u32 4294901760, %v5158_v38  ;;  %v5172_v3 = vsub.f32 %v30799_v40, %v30818_v2 }
 0x2d1   :  { %27158 = vmatprep.subr.mxu1 %v33841_v28  ;;  %27126 = vmatpush3.msra.mxu0 %v30671_v13  ;;  %v30845_v37 = vand.u32 4294901760, %v5165_v21  ;;  %v5179_v36 = vsub.f32 %v30809_v45, %v30829_v31 }
 0x2d2   :  { %27159 = vmatpush3.msra.mxu1 %v30650_v1  ;;  %27127 = vmatprep.subr.mxu0 %v33841_v28  ;;  %34153 = vst [vmem:[#allocation174_spill] sm:$0xff] %v30836_v41 }
 0x2d3   :  { %27160 = vmatprep.subr.mxu1 %v33841_v28  ;;  %27128 = vmatpush3.msra.mxu0 %v30681_v63  ;;  %34154 = vst [vmem:[#allocation175_spill] sm:$0xff] %v30845_v37  ;;  %v30853_v63 = vand.u32 4294901760, %v5172_v3 }
 0x2d4   :  { %27129 = vmatprep.mubr.msk.f32.mxu0 %vm29419_vm1, %v33841_v28  ;;  %27161 = vmatpush3.msra.mxu1 %v30660_v55  ;;  %v30859_v55 = vand.u32 4294901760, %v5179_v36 }
 0x2d5   :  { %27162 = vmatprep.mubr.msk.f32.mxu1 %vm29419_vm1, %v33841_v28  ;;  %27130 = vmatmul.mubr.f32.vlgmr.msra.gmra.mxu0 %v29616_v49  ;;  %34155 = vst [vmem:[#allocation176_spill] sm:$0xff] %v30853_v63 }
 0x2d6   :  { %27143 = vmatprep.subr.mxu0 %v33841_v28  ;;  %27163 = vmatmul.mubr.f32.vlgmr.msra.gmra.mxu1 %v29610_v47  ;;  %34156 = vst [vmem:[#allocation177_spill] sm:$0xff] %v30859_v55 }
 0x2d7   :  { %27176 = vmatprep.subr.mxu1 %v33841_v28  ;;  %27144 = vmatpush3.msra.mxu0 %v30668_v48  ;;  %v1731_v38 = vpop.f32.mrf.mxu0 }
 0x2d8   :  { %27177 = vmatpush3.msra.mxu1 %v30836_v41  ;;  %27145 = vmatprep.subr.mxu0 %v33841_v28  ;;  %v1823_v13 = vadd.f32 %v1822_v5, %v1731_v38  ;;  %v1979_v20 = vpop.f32.mrf.mxu1  ;;  %v99_v5 = vld [vmem:[%s33643_s5 + $0x78] sm:$0xff] }
 0x2d9   :  { %27178 = vmatprep.subr.mxu1 %v33841_v28  ;;  %27146 = vmatpush3.msra.mxu0 %v30678_v46  ;;  %v26713_v21 = vpop.f32.mrf.mxu0  ;;  %v30885_v36 = vand.u32 4294901760, %v99_v5 }
 0x2da   :  { %27179 = vmatpush3.msra.mxu1 %v30845_v37  ;;  %27147 = vmatprep.subr.mxu0 %v33841_v28  ;;  %v26746_v48 = vpop.f32.mrf.mxu1 }
 0x2db   :  { %27180 = vmatprep.subr.mxu1 %v33841_v28  ;;  %27148 = vmatpush3.msra.mxu0 %v30690_v42  ;;  %v98_v48 = vld [vmem:[%s33643_s5 + $0x70] sm:$0xff]  ;;  %34157 = vst [vmem:[#allocation178_spill] sm:$0xff] %v30885_v36 }
 0x2dc   :  { %27181 = vmatpush3.msra.mxu1 %v30853_v63  ;;  %27149 = vmatprep.subr.mxu0 %v33841_v28  ;;  %v30894_v63 = vand.u32 4294901760, %v98_v48 }
 0x2dd   :  { %27182 = vmatprep.subr.mxu1 %v33841_v28  ;;  %27150 = vmatpush3.msra.mxu0 %v30701_v9 }
 0x2de   :  { %27151 = vmatprep.mubr.msk.f32.mxu0 %vm29419_vm1, %v33841_v28  ;;  %27183 = vmatpush3.msra.mxu1 %v30859_v55  ;;  %v97_v55 = vld [vmem:[%s33643_s5 + $0x68] sm:$0xff]  ;;  %34158 = vst [vmem:[#allocation179_spill] sm:$0xff] %v30894_v63 }
 0x2df   :  { %27184 = vmatprep.mubr.msk.f32.mxu1 %vm29419_vm1, %v33841_v28  ;;  %27152 = vmatmul.mubr.f32.vlgmr.msra.gmra.mxu0 %v29610_v47 }
 0x2e0   :  { %27165 = vmatprep.subr.mxu0 %v33841_v28  ;;  %27185 = vmatmul.mubr.f32.vlgmr.msra.gmra.mxu1 %v29610_v47 }
 0x2e1   :  { %27198 = vmatprep.subr.mxu1 %v33841_v28  ;;  %27166 = vmatpush3.msra.mxu0 %v30757_v7  ;;  %v1902_v3 = vpop.f32.mrf.mxu0 }
 0x2e2   :  { %27199 = vmatpush3.msra.mxu1 %v30757_v7  ;;  %27167 = vmatprep.subr.mxu0 %v33841_v28  ;;  %v1903_v38 = vadd.f32 %v1902_v3, %v1823_v13  ;;  %v2137_v21 = vpop.f32.mrf.mxu1  ;;  %v96_v13 = vld [vmem:[%s33643_s5 + $0x60] sm:$0xff]  ;;  %v30906_v3 = vand.u32 4294901760, %v97_v55 }
 0x2e3   :  { %27200 = vmatprep.subr.mxu1 %v33841_v28  ;;  %27168 = vmatpush3.msra.mxu0 %v30766_v54  ;;  %v26735_v9 = vpop.f32.mrf.mxu0 }
 0x2e4   :  { %27201 = vmatpush3.msra.mxu1 %v30766_v54  ;;  %27169 = vmatprep.subr.mxu0 %v33841_v28  ;;  %v26768_v42 = vpop.f32.mrf.mxu1  ;;  %v1980_v37 = vadd.f32 %v1979_v20, %v1903_v38  ;;  %v30904_v9 = vsub.f32 %v99_v5, %v30885_v36  ;;  %34160 = vst [vmem:[#allocation181_spill] sm:$0xff] %v30906_v3  ;;  %v30916_v20 = vand.u32 4294901760, %v96_v13 }
 0x2e5   :  { %27202 = vmatprep.subr.mxu1 %v33841_v28  ;;  %27170 = vmatpush3.msra.mxu0 %v30778_v16  ;;  %v30914_v42 = vsub.f32 %v98_v48, %v30894_v63  ;;  %v30927_v38 = vsub.f32 %v97_v55, %v30906_v3 }
 0x2e6   :  { %27203 = vmatpush3.msra.mxu1 %v30778_v16  ;;  %27171 = vmatprep.subr.mxu0 %v33841_v28  ;;  %34159 = vst [vmem:[#allocation180_spill] sm:$0xff] %v30904_v9  ;;  %34162 = vst [vmem:[#allocation183_spill] sm:$0xff] %v30916_v20  ;;  %v30924_v5 = vand.u32 4294901760, %v30904_v9  ;;  %v30937_v41 = vsub.f32 %v96_v13, %v30916_v20 }
 0x2e7   :  { %27204 = vmatprep.subr.mxu1 %v33841_v28  ;;  %27172 = vmatpush3.msra.mxu0 %v30788_v26  ;;  %34161 = vst [vmem:[#allocation182_spill] sm:$0xff] %v30914_v42  ;;  %34164 = vst [vmem:[#allocation185_spill] sm:$0xff] %v30927_v38  ;;  %v30934_v46 = vand.u32 4294901760, %v30914_v42 }
 0x2e8   :  { %27173 = vmatprep.mubr.msk.f32.mxu0 %vm29419_vm1, %v33841_v28  ;;  %27205 = vmatpush3.msra.mxu1 %v30788_v26  ;;  %34163 = vst [vmem:[#allocation184_spill] sm:$0xff] %v30924_v5  ;;  %34166 = vst [vmem:[#allocation187_spill] sm:$0xff] %v30937_v41 }
 0x2e9   :  { %27206 = vmatprep.mubr.msk.f32.mxu1 %vm29419_vm1, %v33841_v28  ;;  %27174 = vmatmul.mubr.f32.vlgmr.msra.gmra.mxu0 %v29647_v58  ;;  %34165 = vst [vmem:[#allocation186_spill] sm:$0xff] %v30934_v46 }
 0x2ea   :  { %27187 = vmatprep.subr.mxu0 %v33841_v28  ;;  %27207 = vmatmul.mubr.f32.vlgmr.msra.gmra.mxu1 %v29629_v52 }
 0x2eb   :  { %27220 = vmatprep.subr.mxu1 %v33841_v28  ;;  %27188 = vmatpush3.msra.mxu0 %v30776_v34  ;;  %v2062_v48 = vpop.f32.mrf.mxu0  ;;  %v5643_v34 = vsub.f32 %v30904_v9, %v30924_v5 }
 0x2ec   :  { %27221 = vmatpush3.msra.mxu1 %v30757_v7  ;;  %27189 = vmatprep.subr.mxu0 %v33841_v28  ;;  %v2063_v1 = vadd.f32 %v2062_v48, %v1980_v37  ;;  %v30939_v44 = vpop.f32.mrf.mxu1  ;;  %v30948_v7 = vand.u32 4294901760, %v30927_v38  ;;  %v5650_v48 = vsub.f32 %v30914_v42, %v30934_v46 }
 0x2ed   :  { %27222 = vmatprep.subr.mxu1 %v33841_v28  ;;  %27190 = vmatpush3.msra.mxu0 %v30786_v43  ;;  %v26757_v55 = vpop.f32.mrf.mxu0 }
 0x2ee   :  { %27223 = vmatpush3.msra.mxu1 %v30766_v54  ;;  %27191 = vmatprep.subr.mxu0 %v33841_v28  ;;  %34167 = vst [vmem:[#allocation188_spill] sm:$0xff] %v30948_v7  ;;  %v30950_v13 = vadd.f32 %v2137_v21, %v2063_v1  ;;  %v26790_v37 = vpop.f32.mrf.mxu1  ;;  %v30959_v55 = vand.u32 4294901760, %v30937_v41  ;;  %v30966_v1 = vand.u32 4294901760, %v5643_v34  ;;  %v5657_v21 = vsub.f32 %v30927_v38, %v30948_v7  ;;  %v119_v54 = vld [vmem:[%s33650_s13 + $0x18] sm:$0xff] }
 0x2ef   :  { %27224 = vmatprep.subr.mxu1 %v33841_v28  ;;  %27192 = vmatpush3.msra.mxu0 %v30799_v40  ;;  %v30975_v37 = vand.u32 4294901760, %v5650_v48  ;;  %v31813_v11 = vand.u32 4294901760, %v119_v54 }
 0x2f0   :  { %27225 = vmatpush3.msra.mxu1 %v30778_v16  ;;  %27193 = vmatprep.subr.mxu0 %v33841_v28  ;;  %34168 = vst [vmem:[#allocation189_spill] sm:$0xff] %v30959_v55  ;;  %34169 = vst [vmem:[#allocation190_spill] sm:$0xff] %v30966_v1  ;;  %v30983_v40 = vand.u32 4294901760, %v5657_v21  ;;  %v120_v16 = vld [vmem:[%s33650_s13 + $0x20] sm:$0xff] }
 0x2f1   :  { %27226 = vmatprep.subr.mxu1 %v33841_v28  ;;  %27194 = vmatpush3.msra.mxu0 %v30809_v45  ;;  %34170 = vst [vmem:[#allocation191_spill] sm:$0xff] %v30975_v37  ;;  %v5664_v45 = vsub.f32 %v30937_v41, %v30959_v55  ;;  %v31852_v22 = vsub.f32 %v119_v54, %v31813_v11 }
 0x2f2   :  { %27195 = vmatprep.mubr.msk.f32.mxu0 %vm29419_vm1, %v33841_v28  ;;  %27227 = vmatpush3.msra.mxu1 %v30788_v26  ;;  %34171 = vst [vmem:[#allocation192_spill] sm:$0xff] %v30983_v40 }
 0x2f3   :  { %27228 = vmatprep.mubr.msk.f32.mxu1 %vm29419_vm1, %v33841_v28  ;;  %27196 = vmatmul.mubr.f32.vlgmr.msra.gmra.mxu0 %v29616_v49  ;;  %v30989_v26 = vand.u32 4294901760, %v5664_v45  ;;  %v31880_v23 = vand.u32 4294901760, %v31852_v22 }
 0x2f4   :  { %27209 = vmatprep.subr.mxu0 %v33841_v28  ;;  %27229 = vmatmul.mubr.f32.vlgmr.msra.gmra.mxu1 %v29610_v47 }
 0x2f5   :  { %27242 = vmatprep.subr.mxu1 %v33841_v28  ;;  %27210 = vmatpush3.msra.mxu0 %v30796_v51  ;;  %v2216_v34 = vpop.f32.mrf.mxu0  ;;  %34172 = vst [vmem:[#allocation193_spill] sm:$0xff] %v30989_v26  ;;  %34230 = vst [vmem:[#allocation249_spill] sm:$0xff] %v31880_v23 }
 0x2f6   :  { %27243 = vmatpush3.msra.mxu1 %v30966_v1  ;;  %27211 = vmatprep.subr.mxu0 %v33841_v28  ;;  %v2464_v43 = vpop.f32.mrf.mxu1  ;;  %v121_v1 = vld [vmem:[%s33650_s13 + $0x28] sm:$0xff] }
 0x2f7   :  { %27244 = vmatprep.subr.mxu1 %v33841_v28  ;;  %27212 = vmatpush3.msra.mxu0 %v30806_v39  ;;  %v26779_v48 = vpop.f32.mrf.mxu0 }
 0x2f8   :  { %27245 = vmatpush3.msra.mxu1 %v30975_v37  ;;  %27213 = vmatprep.subr.mxu0 %v33841_v28  ;;  %v26812_v51 = vpop.f32.mrf.mxu1  ;;  %v2308_v48 = vadd.f32 %v30939_v44, %v2216_v34 }
 0x2f9   :  { %27246 = vmatprep.subr.mxu1 %v33841_v28  ;;  %27214 = vmatpush3.msra.mxu0 %v30818_v2 }
 0x2fa   :  { %27247 = vmatpush3.msra.mxu1 %v30983_v40  ;;  %27215 = vmatprep.subr.mxu0 %v33841_v28 }
 0x2fb   :  { %27248 = vmatprep.subr.mxu1 %v33841_v28  ;;  %27216 = vmatpush3.msra.mxu0 %v30829_v31 }
 0x2fc   :  { %27217 = vmatprep.mubr.msk.f32.mxu0 %vm29419_vm1, %v33841_v28  ;;  %27249 = vmatpush3.msra.mxu1 %v30989_v26 }
 0x2fd   :  { %27250 = vmatprep.mubr.msk.f32.mxu1 %vm29419_vm1, %v33841_v28  ;;  %27218 = vmatmul.mubr.f32.vlgmr.msra.gmra.mxu0 %v29610_v47 }
 0x2fe   :  { %27231 = vmatprep.subr.mxu0 %v33841_v28  ;;  %27251 = vmatmul.mubr.f32.vlgmr.msra.gmra.mxu1 %v29610_v47 }
 0x2ff   :  { %27264 = vmatprep.subr.mxu1 %v33841_v28  ;;  %27232 = vmatpush3.msra.mxu0 %v30885_v36  ;;  %v2387_v45 = vpop.f32.mrf.mxu0 }
 0x300   :  { %27265 = vmatpush3.msra.mxu1 %v30885_v36  ;;  %27233 = vmatprep.subr.mxu0 %v33841_v28  ;;  %v2622_v51 = vpop.f32.mrf.mxu1  ;;  %v2388_v31 = vadd.f32 %v2387_v45, %v2308_v48 }
 0x301   :  { %27266 = vmatprep.subr.mxu1 %v33841_v28  ;;  %27234 = vmatpush3.msra.mxu0 %v30894_v63  ;;  %v26801_v21 = vpop.f32.mrf.mxu0 }
 0x302   :  { %27267 = vmatpush3.msra.mxu1 %v30894_v63  ;;  %27235 = vmatprep.subr.mxu0 %v33841_v28  ;;  %v26834_v26 = vpop.f32.mrf.mxu1  ;;  %v2465_v44 = vadd.f32 %v2464_v43, %v2388_v31 }
 0x303   :  { %27268 = vmatprep.subr.mxu1 %v33841_v28  ;;  %27236 = vmatpush3.msra.mxu0 %v30906_v3  ;;  %v6023_v26 = vsel %vm6021_vm2, %v30564_v61, 0 }
 0x304   :  { %27269 = vmatpush3.msra.mxu1 %v30906_v3  ;;  %27237 = vmatprep.subr.mxu0 %v33841_v28 }
 0x305   :  { %27270 = vmatprep.subr.mxu1 %v33841_v28  ;;  %27238 = vmatpush3.msra.mxu0 %v30916_v20 }
 0x306   :  { %27239 = vmatprep.mubr.msk.f32.mxu0 %vm29419_vm1, %v33841_v28  ;;  %27271 = vmatpush3.msra.mxu1 %v30916_v20 }
 0x307   :  { %27272 = vmatprep.mubr.msk.f32.mxu1 %vm29419_vm1, %v33841_v28  ;;  %27240 = vmatmul.mubr.f32.vlgmr.msra.gmra.mxu0 %v29647_v58  ;;  %v31038_v58 = vand.u32 4294901760, %v6023_v26 }
 0x308   :  { %27253 = vmatprep.subr.mxu0 %v33841_v28  ;;  %27273 = vmatmul.mubr.f32.vlgmr.msra.gmra.mxu1 %v29629_v52 }
 0x309   :  { %27286 = vmatprep.subr.mxu1 %v33841_v28  ;;  %27254 = vmatpush3.msra.mxu0 %v30904_v9  ;;  %v2547_v34 = vpop.f32.mrf.mxu0 }
 0x30a   :  { %27287 = vmatpush3.msra.mxu1 %v30885_v36  ;;  %27255 = vmatprep.subr.mxu0 %v33841_v28  ;;  %v2548_v45 = vadd.f32 %v2547_v34, %v2465_v44  ;;  %v31034_v21 = vpop.f32.mrf.mxu1  ;;  %v6095_v44 = vsub.f32 %v6023_v26, %v31038_v58 }
 0x30b   :  { %27288 = vmatprep.subr.mxu1 %v33841_v28  ;;  %27256 = vmatpush3.msra.mxu0 %v30914_v42  ;;  %v26823_v52 = vpop.f32.mrf.mxu0 }
 0x30c   :  { %27289 = vmatpush3.msra.mxu1 %v30894_v63  ;;  %27257 = vmatprep.subr.mxu0 %v33841_v28  ;;  %v2623_v61 = vadd.f32 %v2622_v51, %v2548_v45  ;;  %v26856_v43 = vpop.f32.mrf.mxu1  ;;  %v6096_v52 = vand.u32 4294901760, %v6095_v44 }
 0x30d   :  { %27290 = vmatprep.subr.mxu1 %v33841_v28  ;;  %27258 = vmatpush3.msra.mxu0 %v30927_v38 }
 0x30e   :  { %27291 = vmatpush3.msra.mxu1 %v30906_v3  ;;  %27259 = vmatprep.subr.mxu0 %v33841_v28  ;;  %v6026_v31 = vsel %vm6021_vm2, %v2623_v61, 0 }
 0x30f   :  { %27292 = vmatprep.subr.mxu1 %v33841_v28  ;;  %27260 = vmatpush3.msra.mxu0 %v30937_v41  ;;  %v6059_v48 = vand.u32 4294901760, %v6026_v31 }
 0x310   :  { %27261 = vmatprep.mubr.msk.f32.mxu0 %vm29419_vm1, %v33841_v28  ;;  %27293 = vmatpush3.msra.mxu1 %v30916_v20 }
 0x311   :  { %27294 = vmatprep.mubr.msk.f32.mxu1 %vm29419_vm1, %v33841_v28  ;;  %27262 = vmatmul.mubr.f32.vlgmr.msra.gmra.mxu0 %v29616_v49  ;;  %v6136_v51 = vsub.f32 %v6026_v31, %v6059_v48 }
 0x312   :  { %27275 = vmatprep.subr.mxu0 %v33841_v28  ;;  %27295 = vmatmul.mubr.f32.vlgmr.msra.gmra.mxu1 %v29610_v47 }
 0x313   :  { %27276 = vmatpush3.msra.mxu0 %v30924_v5  ;;  %27283 = vmatprep.mubr.msk.f32.mxu0 %vm29419_vm1, %v33841_v28  ;;  %v2701_v26 = vpop.f32.mrf.mxu0  ;;  %v6137_v34 = vand.u32 4294901760, %v6136_v51  ;;  %v6097_v5 = vsub.f32 %v6095_v44, %v6096_v52 }
 0x314   :  { %27277 = vmatprep.subr.mxu0 %v33841_v28  ;;  %v2949_v45 = vpop.f32.mrf.mxu1  ;;  %27302 = vmatprep.subr.mxu1 %v33841_v28 }
 0x315   :  { %27278 = vmatpush3.msra.mxu0 %v30934_v46  ;;  %v26845_v49 = vpop.f32.mrf.mxu0  ;;  %v6138_v61 = vsub.f32 %v6136_v51, %v6137_v34  ;;  %27304 = vmatprep.mubr.msk.f32.mxu1 %vm29419_vm1, %v33841_v28 }
 0x316   :  { %27279 = vmatprep.subr.mxu0 %v33841_v28  ;;  %v26878_v43 = vpop.f32.mrf.mxu1  ;;  %v6098_v49 = vand.u32 4294901760, %v6097_v5 }
 0x317   :  { %27280 = vmatpush3.msra.mxu0 %v30948_v7  ;;  %v6139_v31 = vand.u32 4294901760, %v6138_v61  ;;  %v6475_v61 = vsel %vm6021_vm2, %v30692_v0, 0 }
 0x318   :  { %27281 = vmatprep.subr.mxu0 %v33841_v28 }
 0x319   :  { %27282 = vmatpush3.msra.mxu0 %v30959_v55  ;;  %27303 = vmatpush3.xpose.msra.mxu1 %v6139_v31  ;;  %v31083_v31 = vand.u32 4294901760, %v6475_v61  ;;  %v2793_v55 = vadd.f32 %v31034_v21, %v2701_v26 }
 0x31a   :  { %27284 = vmatmul.mubr.f32.vlgmr.msra.gmra.mxu0 %v29610_v47  ;;  %27297 = vmatprep.subr.mxu0 %v33841_v28 }
 0x31b   :  { %27298 = vmatpush3.xpose.msra.mxu0 %v6059_v48  ;;  %27299 = vmatprep.mubr.msk.f32.mxu0 %vm29419_vm1, %v33841_v28 }
 0x31c   :  { %27307 = vmatprep.subr.mxu0 %v33841_v28  ;;  %27305 = vmatmul.mubr.f32.vlgmr.msra.gmra.mxu1 %v31038_v58 }
 0x31d   :  { %v2872_v43 = vpop.f32.mrf.mxu0  ;;  %27312 = vmatprep.subr.mxu1 %v33841_v28  ;;  %27314 = vmatprep.mubr.msk.f32.mxu1 %vm29419_vm1, %v33841_v28 }
 0x31e   :  { %27300 = vmatmul.mubr.f32.vlgmr.msra.gmra.mxu0 %v6098_v49  ;;  %v3107_v47 = vpop.f32.mrf.mxu1  ;;  %27313 = vmatpush3.xpose.msra.mxu1 %v6059_v48  ;;  %v2873_v7 = vadd.f32 %v2872_v43, %v2793_v55 }
 0x31f   :  { %27308 = vmatpush3.xpose.msra.mxu0 %v6136_v51  ;;  %27309 = vmatprep.mubr.msk.f32.mxu0 %vm29419_vm1, %v33841_v28  ;;  %v26867_v5 = vpop.f32.mrf.mxu0  ;;  %v6547_v51 = vsub.f32 %v6475_v61, %v31083_v31 }
 0x320   :  { %27317 = vmatprep.subr.mxu0 %v33841_v28  ;;  %v26900_v0 = vpop.f32.mrf.mxu1  ;;  %27322 = vmatprep.subr.mxu1 %v33841_v28  ;;  %v2950_v21 = vadd.f32 %v2949_v45, %v2873_v7 }
 0x321   :  { %27315 = vmatmul.mubr.f32.vlgmr.msra.gmra.mxu1 %v6096_v52  ;;  %v6548_v26 = vand.u32 4294901760, %v6547_v51 }
 0x322   :  { %27310 = vmatmul.mubr.f32.vlgmr.msra.gmra.mxu0 %v6095_v44  ;;  %27323 = vmatpush3.xpose.msra.mxu1 %v6059_v48 }
 0x323   :  { %27318 = vmatpush3.xpose.msra.mxu0 %v6137_v34  ;;  %27319 = vmatprep.mubr.msk.f32.mxu0 %vm29419_vm1, %v33841_v28  ;;  %v6549_v43 = vsub.f32 %v6547_v51, %v6548_v26 }
 0x324   :  { %27324 = vmatprep.mubr.msk.f32.mxu1 %vm29419_vm1, %v33841_v28  ;;  %27327 = vmatprep.subr.mxu0 %v33841_v28 }
 0x325   :  { %27325 = vmatmul.mubr.f32.vlgmr.msra.gmra.mxu1 %v31038_v58  ;;  %27332 = vmatprep.subr.mxu1 %v33841_v28  ;;  %v6550_v7 = vand.u32 4294901760, %v6549_v43 }
 0x326   :  { %27320 = vmatmul.mubr.f32.vlgmr.msra.gmra.mxu0 %v31038_v58  ;;  %27334 = vmatprep.mubr.msk.f32.mxu1 %vm29419_vm1, %v33841_v28 }
 0x327   :  { %v3032_v55 = vpop.f32.mrf.mxu0  ;;  %27329 = vmatprep.mubr.msk.f32.mxu0 %vm29419_vm1, %v33841_v28 }
 0x328   :  { %v3033_v48 = vadd.f32 %v3032_v55, %v2950_v21  ;;  %v3277_v44 = vpop.f32.mrf.mxu1 }
 0x329   :  { %v26889_v34 = vpop.f32.mrf.mxu0 }
 0x32a   :  { %v3108_v52 = vadd.f32 %v3107_v47, %v3033_v48  ;;  %v26922_v49 = vpop.f32.mrf.mxu1 }
 0x32c   :  { %v6478_v61 = vsel %vm6021_vm2, %v3108_v52, 0 }
 0x32d   :  { %v6511_v5 = vand.u32 4294901760, %v6478_v61 }
 0x32f   :  { %v6588_v0 = vsub.f32 %v6478_v61, %v6511_v5  ;;  %27328 = vmatpush3.xpose.msra.mxu0 %v6511_v5 }
 0x330   :  { %27337 = vmatprep.subr.mxu0 %v33841_v28 }
 0x331   :  { %v3186_v58 = vpop.f32.mrf.mxu0  ;;  %v6589_v45 = vand.u32 4294901760, %v6588_v0 }
 0x332   :  { %v3434_v46 = vpop.f32.mrf.mxu1  ;;  %27330 = vmatmul.mubr.f32.vlgmr.msra.gmra.mxu0 %v6550_v7  ;;  %v3278_v49 = vadd.f32 %v3277_v44, %v3186_v58 }
 0x333   :  { %v26911_v41 = vpop.f32.mrf.mxu0  ;;  %27338 = vmatpush3.xpose.msra.mxu0 %v6588_v0  ;;  %27339 = vmatprep.mubr.msk.f32.mxu0 %vm29419_vm1, %v33841_v28  ;;  %v6590_v47 = vsub.f32 %v6588_v0, %v6589_v45 }
 0x334   :  { %v26944_v21 = vpop.f32.mrf.mxu1  ;;  %27347 = vmatprep.subr.mxu0 %v33841_v28  ;;  %v6927_v41 = vsel %vm6021_vm2, %v30820_v62, 0 }
 0x335   :  { %v6591_v55 = vand.u32 4294901760, %v6590_v47  ;;  %v6998_v52 = vand.u32 4294901760, %v6927_v41 }
 0x336   :  { %27340 = vmatmul.mubr.f32.vlgmr.msra.gmra.mxu0 %v6547_v51 }
 0x337   :  { %27333 = vmatpush3.xpose.msra.mxu1 %v6591_v55  ;;  %27348 = vmatpush3.xpose.msra.mxu0 %v6589_v45  ;;  %v6999_v43 = vsub.f32 %v6927_v41, %v6998_v52 }
 0x338   :  { %27349 = vmatprep.mubr.msk.f32.mxu0 %vm29419_vm1, %v33841_v28  ;;  %27342 = vmatprep.subr.mxu1 %v33841_v28 }
 0x339   :  { %27357 = vmatprep.subr.mxu0 %v33841_v28  ;;  %v7000_v44 = vand.u32 4294901760, %v6999_v43 }
 0x33a   :  { %27335 = vmatmul.mubr.f32.vlgmr.msra.gmra.mxu1 %v31083_v31  ;;  %27350 = vmatmul.mubr.f32.vlgmr.msra.gmra.mxu0 %v31083_v31 }
 0x33b   :  { %v3357_v48 = vpop.f32.mrf.mxu0  ;;  %27343 = vmatpush3.xpose.msra.mxu1 %v6511_v5  ;;  %27344 = vmatprep.mubr.msk.f32.mxu1 %vm29419_vm1, %v33841_v28  ;;  %v7001_v55 = vsub.f32 %v6999_v43, %v7000_v44 }
 0x33c   :  { %v3592_v51 = vpop.f32.mrf.mxu1  ;;  %27352 = vmatprep.subr.mxu1 %v33841_v28  ;;  %27359 = vmatprep.mubr.msk.f32.mxu0 %vm29419_vm1, %v33841_v28  ;;  %v3358_v62 = vadd.f32 %v3357_v48, %v3278_v49 }
 0x33d   :  { %v26933_v34 = vpop.f32.mrf.mxu0  ;;  %v7002_v41 = vand.u32 4294901760, %v7001_v55 }
 0x33e   :  { %v26966_v61 = vpop.f32.mrf.mxu1  ;;  %27345 = vmatmul.mubr.f32.vlgmr.msra.gmra.mxu1 %v6548_v26  ;;  %v3435_v0 = vadd.f32 %v3434_v46, %v3358_v62 }
 0x33f   :  { %27353 = vmatpush3.xpose.msra.mxu1 %v6511_v5  ;;  %27354 = vmatprep.mubr.msk.f32.mxu1 %vm29419_vm1, %v33841_v28 }
 0x340   :  { %27362 = vmatprep.subr.mxu1 %v33841_v28 }
 0x342   :  { %27355 = vmatmul.mubr.f32.vlgmr.msra.gmra.mxu1 %v31083_v31 }
 0x343   :  { %27364 = vmatprep.mubr.msk.f32.mxu1 %vm29419_vm1, %v33841_v28 }
 0x345   :  { %v3517_v7 = vpop.f32.mrf.mxu0 }
 0x346   :  { %v3518_v45 = vadd.f32 %v3517_v7, %v3435_v0  ;;  %v3762_v47 = vpop.f32.mrf.mxu1  ;;  %v7379_v7 = vsel %vm6021_vm2, %v30950_v13, 0 }
 0x347   :  { %v26955_v58 = vpop.f32.mrf.mxu0 }
 0x348   :  { %v3593_v26 = vadd.f32 %v3592_v51, %v3518_v45  ;;  %v26988_v5 = vpop.f32.mrf.mxu1 }
 0x34a   :  { %v6930_v21 = vsel %vm6021_vm2, %v3593_v26, 0  ;;  %v7450_v26 = vand.u32 4294901760, %v7379_v7 }
 0x34b   :  { %v6963_v48 = vand.u32 4294901760, %v6930_v21 }
 0x34c   :  { %v7451_v55 = vsub.f32 %v7379_v7, %v7450_v26 }
 0x34d   :  { %v7040_v34 = vsub.f32 %v6930_v21, %v6963_v48  ;;  %27358 = vmatpush3.xpose.msra.mxu0 %v6963_v48 }
 0x34e   :  { %27367 = vmatprep.subr.mxu0 %v33841_v28 }
 0x34f   :  { %v3671_v31 = vpop.f32.mrf.mxu0  ;;  %v7041_v49 = vand.u32 4294901760, %v7040_v34 }
 0x350   :  { %v3919_v61 = vpop.f32.mrf.mxu1  ;;  %27360 = vmatmul.mubr.f32.vlgmr.msra.gmra.mxu0 %v7002_v41  ;;  %v3763_v5 = vadd.f32 %v3762_v47, %v3671_v31 }
 0x351   :  { %v26977_v46 = vpop.f32.mrf.mxu0  ;;  %27368 = vmatpush3.xpose.msra.mxu0 %v7040_v34  ;;  %27369 = vmatprep.mubr.msk.f32.mxu0 %vm29419_vm1, %v33841_v28  ;;  %v7042_v51 = vsub.f32 %v7040_v34, %v7041_v49 }
 0x352   :  { %v27010_v62 = vpop.f32.mrf.mxu1  ;;  %27377 = vmatprep.subr.mxu0 %v33841_v28 }
 0x353   :  { %v7043_v0 = vand.u32 4294901760, %v7042_v51  ;;  %v7452_v51 = vand.u32 4294901760, %v7451_v55 }
 0x354   :  { %27370 = vmatmul.mubr.f32.vlgmr.msra.gmra.mxu0 %v6999_v43 }
 0x355   :  { %27363 = vmatpush3.xpose.msra.mxu1 %v7043_v0  ;;  %27378 = vmatpush3.xpose.msra.mxu0 %v7041_v49  ;;  %v7453_v62 = vsub.f32 %v7451_v55, %v7452_v51 }
 0x356   :  { %27379 = vmatprep.mubr.msk.f32.mxu0 %vm29419_vm1, %v33841_v28  ;;  %27372 = vmatprep.subr.mxu1 %v33841_v28 }
 0x357   :  { %27387 = vmatprep.subr.mxu0 %v33841_v28 }
 0x358   :  { %27365 = vmatmul.mubr.f32.vlgmr.msra.gmra.mxu1 %v6998_v52  ;;  %27380 = vmatmul.mubr.f32.vlgmr.msra.gmra.mxu0 %v6998_v52 }
 0x359   :  { %v3842_v45 = vpop.f32.mrf.mxu0  ;;  %27373 = vmatpush3.xpose.msra.mxu1 %v6963_v48  ;;  %27374 = vmatprep.mubr.msk.f32.mxu1 %vm29419_vm1, %v33841_v28 }
 0x35a   :  { %v4077_v43 = vpop.f32.mrf.mxu1  ;;  %27382 = vmatprep.subr.mxu1 %v33841_v28  ;;  %27389 = vmatprep.mubr.msk.f32.mxu0 %vm29419_vm1, %v33841_v28  ;;  %v3843_v13 = vadd.f32 %v3842_v45, %v3763_v5 }
 0x35b   :  { %v26999_v58 = vpop.f32.mrf.mxu0 }
 0x35c   :  { %v27032_v21 = vpop.f32.mrf.mxu1  ;;  %27375 = vmatmul.mubr.f32.vlgmr.msra.gmra.mxu1 %v7000_v44  ;;  %v3920_v34 = vadd.f32 %v3919_v61, %v3843_v13  ;;  %v7454_v58 = vand.u32 4294901760, %v7453_v62 }
 0x35d   :  { %27383 = vmatpush3.xpose.msra.mxu1 %v6963_v48  ;;  %27384 = vmatprep.mubr.msk.f32.mxu1 %vm29419_vm1, %v33841_v28 }
 0x35e   :  { %27392 = vmatprep.subr.mxu1 %v33841_v28 }
 0x360   :  { %27385 = vmatmul.mubr.f32.vlgmr.msra.gmra.mxu1 %v6998_v52 }
 0x361   :  { %27394 = vmatprep.mubr.msk.f32.mxu1 %vm29419_vm1, %v33841_v28 }
 0x363   :  { %v4002_v41 = vpop.f32.mrf.mxu0 }
 0x364   :  { %v4003_v49 = vadd.f32 %v4002_v41, %v3920_v34  ;;  %v4247_v46 = vpop.f32.mrf.mxu1 }
 0x365   :  { %v27021_v47 = vpop.f32.mrf.mxu0 }
 0x366   :  { %v4078_v31 = vadd.f32 %v4077_v43, %v4003_v49  ;;  %v27054_v44 = vpop.f32.mrf.mxu1 }
 0x368   :  { %v7382_v48 = vsel %vm6021_vm2, %v4078_v31, 0 }
 0x369   :  { %v7415_v0 = vand.u32 4294901760, %v7382_v48 }
 0x36b   :  { %v7492_v45 = vsub.f32 %v7382_v48, %v7415_v0  ;;  %27388 = vmatpush3.xpose.msra.mxu0 %v7415_v0 }
 0x36c   :  { %27397 = vmatprep.subr.mxu0 %v33841_v28 }
 0x36d   :  { %v4156_v52 = vpop.f32.mrf.mxu0  ;;  %v7493_v7 = vand.u32 4294901760, %v7492_v45 }
 0x36e   :  { %v4404_v5 = vpop.f32.mrf.mxu1  ;;  %27390 = vmatmul.mubr.f32.vlgmr.msra.gmra.mxu0 %v7454_v58  ;;  %v4248_v49 = vadd.f32 %v4247_v46, %v4156_v52 }
 0x36f   :  { %v27043_v61 = vpop.f32.mrf.mxu0  ;;  %27398 = vmatpush3.xpose.msra.mxu0 %v7492_v45  ;;  %27399 = vmatprep.mubr.msk.f32.mxu0 %vm29419_vm1, %v33841_v28  ;;  %v7494_v43 = vsub.f32 %v7492_v45, %v7493_v7 }
 0x370   :  { %v27076_v21 = vpop.f32.mrf.mxu1  ;;  %27407 = vmatprep.subr.mxu0 %v33841_v28 }
 0x371   :  { %v7495_v13 = vand.u32 4294901760, %v7494_v43 }
 0x372   :  { %27400 = vmatmul.mubr.f32.vlgmr.msra.gmra.mxu0 %v7451_v55 }
 0x373   :  { %27393 = vmatpush3.xpose.msra.mxu1 %v7495_v13  ;;  %27408 = vmatpush3.xpose.msra.mxu0 %v7493_v7 }
 0x374   :  { %27409 = vmatprep.mubr.msk.f32.mxu0 %vm29419_vm1, %v33841_v28  ;;  %27402 = vmatprep.subr.mxu1 %v33841_v28 }
 0x375   :  { %27417 = vmatprep.subr.mxu0 %v33841_v28 }
 0x376   :  { %27395 = vmatmul.mubr.f32.vlgmr.msra.gmra.mxu1 %v7450_v26  ;;  %27410 = vmatmul.mubr.f32.vlgmr.msra.gmra.mxu0 %v7450_v26 }
 0x377   :  { %v4327_v34 = vpop.f32.mrf.mxu0  ;;  %27403 = vmatpush3.xpose.msra.mxu1 %v7415_v0  ;;  %27404 = vmatprep.mubr.msk.f32.mxu1 %vm29419_vm1, %v33841_v28 }
 0x378   :  { %v4562_v41 = vpop.f32.mrf.mxu1  ;;  %27412 = vmatprep.subr.mxu1 %v33841_v28  ;;  %27419 = vmatprep.mubr.msk.f32.mxu0 %vm29419_vm1, %v33841_v28  ;;  %v4328_v31 = vadd.f32 %v4327_v34, %v4248_v49 }
 0x379   :  { %v27065_v55 = vpop.f32.mrf.mxu0 }
 0x37a   :  { %v27098_v47 = vpop.f32.mrf.mxu1  ;;  %27405 = vmatmul.mubr.f32.vlgmr.msra.gmra.mxu1 %v7452_v51  ;;  %v4405_v44 = vadd.f32 %v4404_v5, %v4328_v31 }
 0x37b   :  { %27413 = vmatpush3.xpose.msra.mxu1 %v7415_v0  ;;  %27414 = vmatprep.mubr.msk.f32.mxu1 %vm29419_vm1, %v33841_v28 }
 0x37c   :  { %27422 = vmatprep.subr.mxu1 %v33841_v28 }
 0x37e   :  { %27415 = vmatmul.mubr.f32.vlgmr.msra.gmra.mxu1 %v7450_v26 }
 0x37f   :  { %27424 = vmatprep.mubr.msk.f32.mxu1 %vm29419_vm1, %v33841_v28 }
 0x381   :  { %v4487_v48 = vpop.f32.mrf.mxu0 }
 0x382   :  { %v4488_v62 = vadd.f32 %v4487_v48, %v4405_v44  ;;  %v4732_v45 = vpop.f32.mrf.mxu1 }
 0x383   :  { %v27087_v58 = vpop.f32.mrf.mxu0 }
 0x384   :  { %v4563_v7 = vadd.f32 %v4562_v41, %v4488_v62  ;;  %v27120_v46 = vpop.f32.mrf.mxu1 }
 0x386   :  { %v31165_v52 = vand.u32 4294901760, %v4563_v7 }
 0x388   :  { %v31168_v51 = vsub.f32 %v4563_v7, %v31165_v52  ;;  %27418 = vmatpush3.msra.mxu0 %v31165_v52 }
 0x389   :  { %27427 = vmatprep.subr.mxu0 %v33841_v28 }
 0x38a   :  { %v33840_v26 = vand.u32 4294901760, %v31168_v51 }
 0x38b   :  { %v4641_v0 = vpop.f32.mrf.mxu0 }
 0x38c   :  { %v4733_v61 = vadd.f32 %v4732_v45, %v4641_v0  ;;  %v4889_v5 = vpop.f32.mrf.mxu1  ;;  %v7979_v43 = vsub.f32 %v31168_v51, %v33840_v26 }
 0x38d   :  { %v27109_v21 = vpop.f32.mrf.mxu0 }
 0x38e   :  { %v27142_v13 = vpop.f32.mrf.mxu1  ;;  %v7980_v34 = vand.u32 4294901760, %v7979_v43 }
 0x390   :  { %27423 = vmatpush3.msra.mxu1 %v7980_v34 }
 0x391   :  { %27432 = vmatprep.subr.mxu1 %v33841_v28 }
 0x395   :  { %v4812_v41 = vpop.f32.mrf.mxu0 }
 0x396   :  { %v4813_v55 = vadd.f32 %v4812_v41, %v4733_v61  ;;  %v5047_v49 = vpop.f32.mrf.mxu1 }
 0x397   :  { %v27131_v47 = vpop.f32.mrf.mxu0 }
 0x398   :  { %v27164_v31 = vpop.f32.mrf.mxu1  ;;  %v4890_v44 = vadd.f32 %v4889_v5, %v4813_v55 }
 0x39f   :  { %v4972_v48 = vpop.f32.mrf.mxu0 }
 0x3a0   :  { %v4973_v62 = vadd.f32 %v4972_v48, %v4890_v44  ;;  %v5217_v45 = vpop.f32.mrf.mxu1 }
 0x3a1   :  { %v27153_v58 = vpop.f32.mrf.mxu0 }
 0x3a2   :  { %v31177_v7 = vadd.f32 %v5047_v49, %v4973_v62  ;;  %v27186_v46 = vpop.f32.mrf.mxu1 }
 0x3a9   :  { %v5126_v0 = vpop.f32.mrf.mxu0 }
 0x3aa   :  { %v5218_v21 = vadd.f32 %v5217_v45, %v5126_v0  ;;  %v5374_v13 = vpop.f32.mrf.mxu1 }
 0x3ab   :  { %v27175_v43 = vpop.f32.mrf.mxu0 }
 0x3ac   :  { %v27208_v34 = vpop.f32.mrf.mxu1 }
 0x3b3   :  { %v5297_v26 = vpop.f32.mrf.mxu0 }
 0x3b4   :  { %v5298_v28 = vadd.f32 %v5297_v26, %v5218_v21  ;;  %v5532_v38 = vpop.f32.mrf.mxu1 }
 0x3b5   :  { %v27197_v61 = vpop.f32.mrf.mxu0 }
 0x3b6   :  { %v27230_v41 = vpop.f32.mrf.mxu1  ;;  %v5375_v47 = vadd.f32 %v5374_v13, %v5298_v28 }
 0x3bd   :  { %v5457_v31 = vpop.f32.mrf.mxu0 }
 0x3be   :  { %v5458_v5 = vadd.f32 %v5457_v31, %v5375_v47  ;;  %v5702_v55 = vpop.f32.mrf.mxu1 }
 0x3bf   :  { %v27219_v44 = vpop.f32.mrf.mxu0 }
 0x3c0   :  { %v31179_v48 = vadd.f32 %v5532_v38, %v5458_v5  ;;  %v27252_v49 = vpop.f32.mrf.mxu1  ;;  %v105_v38 = vld [vmem:[%s33644_s8] sm:$0xff] }
 0x3c7   :  { %v5611_v62 = vpop.f32.mrf.mxu0 }
 0x3c8   :  { %v5703_v58 = vadd.f32 %v5702_v55, %v5611_v62  ;;  %v5859_v46 = vpop.f32.mrf.mxu1 }
 0x3c9   :  { %v27241_v45 = vpop.f32.mrf.mxu0 }
 0x3ca   :  { %v27274_v0 = vpop.f32.mrf.mxu1 }
 0x3d1   :  { %v5782_v43 = vpop.f32.mrf.mxu0 }
 0x3d2   :  { %v5783_v34 = vadd.f32 %v5782_v43, %v5703_v58  ;;  %v6017_v42 = vpop.f32.mrf.mxu1 }
 0x3d3   :  { %v27263_v26 = vpop.f32.mrf.mxu0 }
 0x3d4   :  { %v27296_v21 = vpop.f32.mrf.mxu1  ;;  %v5860_v61 = vadd.f32 %v5859_v46, %v5783_v34 }
 0x3da   :  { %v5942_v41 = vpop.f32.mrf.mxu0 }
 0x3db   :  { %v5943_v28 = vadd.f32 %v5942_v41, %v5860_v61 }
 0x3dc   :  { %v27285_v13 = vpop.f32.mrf.mxu0  ;;  %v6176_v47 = vpop.f32.mrf.mxu1 }
 0x3dd   :  { %v31184_v31 = vadd.f32 %v6017_v42, %v5943_v28 }
 0x3de   :  { %v6100_v5 = vpop.f32.mrf.mxu0  ;;  %v27306_v55 = vpop.f32.mrf.mxu1 }
 0x3df   :  { %v6101_v44 = vadd.f32 %v6100_v5, %v105_v38 }
 0x3e0   :  { %v27301_v49 = vpop.f32.mrf.mxu0 }
 0x3e1   :  { %v6177_v62 = vadd.f32 %v6176_v47, %v6101_v44  ;;  %v6324_v58 = vpop.f32.mrf.mxu1  ;;  %v106_v47 = vld [vmem:[%s33644_s8 + $0x8] sm:$0xff] }
 0x3e2   :  { %v6250_v45 = vpop.f32.mrf.mxu0 }
 0x3e3   :  { %v6251_v0 = vadd.f32 %v6250_v45, %v6177_v62  ;;  %v27316_v43 = vpop.f32.mrf.mxu1 }
 0x3e4   :  { %v27311_v46 = vpop.f32.mrf.mxu0 }
 0x3e5   :  { %v6325_v34 = vadd.f32 %v6324_v58, %v6251_v0  ;;  %v6470_v26 = vpop.f32.mrf.mxu1 }
 0x3e6   :  { %v6398_v21 = vpop.f32.mrf.mxu0 }
 0x3e7   :  { %v6399_v61 = vadd.f32 %v6398_v21, %v6325_v34  ;;  %v27326_v41 = vpop.f32.mrf.mxu1 }
 0x3e8   :  { %v27321_v13 = vpop.f32.mrf.mxu0 }
 0x3e9   :  { %v31186_v9 = vadd.f32 %v6470_v26, %v6399_v61 }
 0x3eb   :  { %v7830_v42 = vsel %vm6021_vm2, %v31186_v9, -inf }
 0x3ec   :  { %7831 = vmax.xlane.f32.xlu1 %v7830_v42 }
 0x3f2   :  { %v6552_v28 = vpop.f32.mrf.mxu0 }
 0x3f3   :  { %v6553_v44 = vadd.f32 %v6552_v28, %v106_v47  ;;  %v107_v47 = vld [vmem:[%s33644_s8 + $0x10] sm:$0xff] }
 0x3f4   :  { %v27331_v38 = vpop.f32.mrf.mxu0 }
 0x3f6   :  { %v6702_v5 = vpop.f32.mrf.mxu0 }
 0x3f8   :  { %v27341_v55 = vpop.f32.mrf.mxu0 }
 0x3fa   :  { %v6628_v49 = vpop.f32.mrf.mxu1  ;;  %v6850_v62 = vpop.f32.mrf.mxu0 }
 0x3fb   :  { %v6629_v58 = vadd.f32 %v6628_v49, %v6553_v44 }
 0x3fc   :  { %v27336_v45 = vpop.f32.mrf.mxu1  ;;  %v27351_v0 = vpop.f32.mrf.mxu0 }
 0x3fd   :  { %v6703_v43 = vadd.f32 %v6702_v5, %v6629_v58 }
 0x3fe   :  { %v6776_v46 = vpop.f32.mrf.mxu1 }
 0x3ff   :  { %v6777_v34 = vadd.f32 %v6776_v46, %v6703_v43 }
 0x400   :  { %v27346_v26 = vpop.f32.mrf.mxu1 }
 0x401   :  { %v6851_v21 = vadd.f32 %v6850_v62, %v6777_v34 }
 0x402   :  { %v6922_v61 = vpop.f32.mrf.mxu1 }
 0x403   :  { %v31193_v41 = vadd.f32 %v6922_v61, %v6851_v21 }
 0x404   :  { %v27356_v13 = vpop.f32.mrf.mxu1 }
 0x405   :  { %v7833_v42 = vsel %vm6021_vm2, %v31193_v41, -inf }
 0x406   :  { %7834 = vmax.xlane.f32.xlu1 %v7833_v42 }
 0x410   :  { %v7004_v38 = vpop.f32.mrf.mxu0 }
 0x411   :  { %v7005_v44 = vadd.f32 %v7004_v38, %v107_v47  ;;  %v108_v47 = vld [vmem:[%s33644_s8 + $0x18] sm:$0xff] }
 0x412   :  { %v27361_v28 = vpop.f32.mrf.mxu0 }
 0x414   :  { %v7154_v55 = vpop.f32.mrf.mxu0 }
 0x416   :  { %v27371_v5 = vpop.f32.mrf.mxu0 }
 0x418   :  { %v7080_v49 = vpop.f32.mrf.mxu1  ;;  %v7302_v58 = vpop.f32.mrf.mxu0 }
 0x419   :  { %v7081_v62 = vadd.f32 %v7080_v49, %v7005_v44 }
 0x41a   :  { %v27366_v45 = vpop.f32.mrf.mxu1  ;;  %v27381_v0 = vpop.f32.mrf.mxu0 }
 0x41b   :  { %v7155_v43 = vadd.f32 %v7154_v55, %v7081_v62 }
 0x41c   :  { %v7228_v46 = vpop.f32.mrf.mxu1 }
 0x41d   :  { %v7229_v34 = vadd.f32 %v7228_v46, %v7155_v43 }
 0x41e   :  { %v27376_v26 = vpop.f32.mrf.mxu1 }
 0x41f   :  { %v7303_v21 = vadd.f32 %v7302_v58, %v7229_v34 }
 0x420   :  { %v7374_v61 = vpop.f32.mrf.mxu1 }
 0x421   :  { %v31200_v13 = vadd.f32 %v7374_v61, %v7303_v21 }
 0x422   :  { %v27386_v42 = vpop.f32.mrf.mxu1 }
 0x423   :  { %v7836_v28 = vsel %vm6021_vm2, %v31200_v13, -inf }
 0x424   :  { %7837 = vmax.xlane.f32.xlu0 %v7836_v28 }
 0x42e   :  { %v7456_v5 = vpop.f32.mrf.mxu0 }
 0x42f   :  { %v7457_v49 = vadd.f32 %v7456_v5, %v108_v47 }
 0x430   :  { %v27391_v38 = vpop.f32.mrf.mxu0 }
 0x432   :  { %v7606_v44 = vpop.f32.mrf.mxu0 }
 0x434   :  { %v27401_v55 = vpop.f32.mrf.mxu0 }
 0x436   :  { %v7532_v62 = vpop.f32.mrf.mxu1  ;;  %v7754_v45 = vpop.f32.mrf.mxu0 }
 0x437   :  { %v7533_v58 = vadd.f32 %v7532_v62, %v7457_v49  ;;  %v8349_v49 = vand.u32 4294901760, %v31177_v7 }
 0x438   :  { %v27396_v0 = vpop.f32.mrf.mxu1  ;;  %v27411_v43 = vpop.f32.mrf.mxu0 }
 0x439   :  { %v7607_v46 = vadd.f32 %v7606_v44, %v7533_v58  ;;  %v31214_v44 = vsub.f32 %v31177_v7, %v8349_v49 }
 0x43a   :  { %v7680_v34 = vpop.f32.mrf.mxu1 }
 0x43b   :  { %v7681_v26 = vadd.f32 %v7680_v34, %v7607_v46  ;;  %v8427_v43 = vand.u32 4294901760, %v31214_v44 }
 0x43c   :  { %v27406_v21 = vpop.f32.mrf.mxu1 }
 0x43d   :  { %v7755_v61 = vadd.f32 %v7754_v45, %v7681_v26  ;;  %v8428_v46 = vsub.f32 %v31214_v44, %v8427_v43 }
 0x43e   :  { %v7826_v42 = vpop.f32.mrf.mxu1 }
 0x43f   :  { %v31207_v28 = vadd.f32 %v7826_v42, %v7755_v61 }
 0x440   :  { %v27416_v38 = vpop.f32.mrf.mxu1 }
 0x441   :  { %v7839_v20 = vsel %vm6021_vm2, %v31207_v28, -inf  ;;  %v8429_v38 = vand.u32 4294901760, %v8428_v46 }
 0x442   :  { %7840 = vmax.xlane.f32.xlu1 %v7839_v20 }
 0x475   :  { %v7832_v55 = vpop.xlane.xlu1 %7831 }
 0x476   :  { %v7842_v5 = vsub.f32 %v31186_v9, %v7832_v55  ;;  %v34173_v9 = vmov 0.0  }
 0x478   :  { %v7846_v47 = vmul.f32 1.442695, %v7842_v5 }
 0x47a   :  { %29365 = vpow2.f32 %v7846_v47 }
 0x487   :  { %v29366_v62 = vpop.eup %29365 }
 0x488   :  { %v7854_v45 = vsel %vm6021_vm2, %v29366_v62, 0.0  ;;  %v7867_v58 = vsel %vm6021_vm2, %v29366_v62, 0 }
 0x489   :  { %7855 = vadd.xlane.f32.xlu1 %v7854_v45  ;;  %v7935_v0 = vand.u32 4294901760, %v7867_v58 }
 0x48b   :  { %v7936_v20 = vsub.f32 %v7867_v58, %v7935_v0  ;;  %27425 = vmatmul.mubr.f32.vlgmr.msra.gmra.mxu1 %v7935_v0 }
 0x48c   :  { %27433 = vmatpush3.msra.mxu1 %v31165_v52  ;;  %27434 = vmatprep.mubr.msk.f32.mxu1 %vm29419_vm1, %v34173_v9 }
 0x48d   :  { %27442 = vmatprep.subr.mxu1 %v34173_v9  ;;  %v7937_v7 = vand.u32 4294901760, %v7936_v20 }
 0x48f   :  { %v7835_v34 = vpop.xlane.xlu1 %7834  ;;  %27435 = vmatmul.mubr.f32.vlgmr.msra.gmra.mxu1 %v7937_v7  ;;  %v7938_v26 = vsub.f32 %v7936_v20, %v7937_v7 }
 0x490   :  { %v7843_v21 = vsub.f32 %v31193_v41, %v7835_v34  ;;  %27443 = vmatpush3.msra.mxu1 %v31165_v52  ;;  %27444 = vmatprep.mubr.msk.f32.mxu1 %vm29419_vm1, %v34173_v9  ;;  %v34174_v52 = vand.u32 4294901760, %v31168_v51  ;;  %v8798_v41 = vand.u32 4294901760, %v31179_v48 }
 0x491   :  { %27452 = vmatprep.subr.mxu1 %v34173_v9  ;;  %v7939_v61 = vand.u32 4294901760, %v7938_v26 }
 0x492   :  { %v7848_v42 = vmul.f32 1.442695, %v7843_v21  ;;  %v31248_v55 = vsub.f32 %v31179_v48, %v8798_v41 }
 0x493   :  { %27420 = vmatmul.mubr.f32.vlgmr.msra.gmra.mxu0 %v7939_v61  ;;  %27445 = vmatmul.mubr.f32.vlgmr.msra.gmra.mxu1 %v7935_v0 }
 0x494   :  { %29367 = vpow2.f32 %v7848_v42  ;;  %27428 = vmatpush3.msra.mxu0 %v31168_v51  ;;  %27453 = vmatpush3.msra.mxu1 %v8429_v38  ;;  %v8876_v45 = vand.u32 4294901760, %v31248_v55 }
 0x495   :  { %27429 = vmatprep.mubr.msk.f32.mxu0 %vm29419_vm1, %v34173_v9  ;;  %27437 = vmatprep.subr.mxu0 %v34173_v9 }
 0x496   :  { %27454 = vmatprep.mubr.msk.f32.mxu1 %vm29419_vm1, %v34173_v9  ;;  %27462 = vmatprep.subr.mxu1 %v34173_v9  ;;  %v8877_v48 = vsub.f32 %v31248_v55, %v8876_v45 }
 0x497   :  { %27430 = vmatmul.mubr.f32.vlgmr.msra.gmra.mxu0 %v7936_v20 }
 0x498   :  { %27438 = vmatpush3.msra.mxu0 %v34174_v52  ;;  %27439 = vmatprep.mubr.msk.f32.mxu0 %vm29419_vm1, %v34173_v9  ;;  %v8878_v46 = vand.u32 4294901760, %v8877_v48 }
 0x499   :  { %27447 = vmatprep.subr.mxu0 %v34173_v9 }
 0x49b   :  { %27440 = vmatmul.mubr.f32.vlgmr.msra.gmra.mxu0 %v7935_v0 }
 0x49c   :  { %27448 = vmatpush3.msra.mxu0 %v8349_v49  ;;  %27449 = vmatprep.mubr.msk.f32.mxu0 %vm29419_vm1, %v34173_v9 }
 0x49d   :  { %27457 = vmatprep.subr.mxu0 %v34173_v9 }
 0x4a1   :  { %v29368_v5 = vpop.eup %29367 }
 0x4a2   :  { %v7857_v51 = vsel %vm6021_vm2, %v29368_v5, 0.0  ;;  %v8316_v47 = vsel %vm6021_vm2, %v29368_v5, 0 }
 0x4a3   :  { %7858 = vadd.xlane.f32.xlu1 %v7857_v51  ;;  %v8384_v62 = vand.u32 4294901760, %v8316_v47 }
 0x4a5   :  { %v8385_v58 = vsub.f32 %v8316_v47, %v8384_v62  ;;  %27455 = vmatmul.mubr.f32.vlgmr.msra.gmra.mxu1 %v8384_v62 }
 0x4a6   :  { %27463 = vmatpush3.msra.mxu1 %v8349_v49  ;;  %27464 = vmatprep.mubr.msk.f32.mxu1 %vm29419_vm1, %v34173_v9 }
 0x4a7   :  { %27472 = vmatprep.subr.mxu1 %v34173_v9  ;;  %v8386_v0 = vand.u32 4294901760, %v8385_v58 }
 0x4a9   :  { %27465 = vmatmul.mubr.f32.vlgmr.msra.gmra.mxu1 %v8386_v0  ;;  %v8387_v20 = vsub.f32 %v8385_v58, %v8386_v0 }
 0x4aa   :  { %27473 = vmatpush3.msra.mxu1 %v8349_v49  ;;  %27474 = vmatprep.mubr.msk.f32.mxu1 %vm29419_vm1, %v34173_v9 }
 0x4ab   :  { %27482 = vmatprep.subr.mxu1 %v34173_v9  ;;  %v8388_v7 = vand.u32 4294901760, %v8387_v20 }
 0x4ad   :  { %v7838_v34 = vpop.xlane.xlu0 %7837  ;;  %27450 = vmatmul.mubr.f32.vlgmr.msra.gmra.mxu0 %v8388_v7  ;;  %27475 = vmatmul.mubr.f32.vlgmr.msra.gmra.mxu1 %v8384_v62 }
 0x4ae   :  { %v7844_v26 = vsub.f32 %v31200_v13, %v7838_v34  ;;  %27458 = vmatpush3.msra.mxu0 %v31214_v44  ;;  %27483 = vmatpush3.msra.mxu1 %v8878_v46  ;;  %v9247_v13 = vand.u32 4294901760, %v31184_v31 }
 0x4af   :  { %27459 = vmatprep.mubr.msk.f32.mxu0 %vm29419_vm1, %v34173_v9  ;;  %27467 = vmatprep.subr.mxu0 %v34173_v9 }
 0x4b0   :  { %v7850_v49 = vmul.f32 1.442695, %v7844_v26  ;;  %27484 = vmatprep.mubr.msk.f32.mxu1 %vm29419_vm1, %v34173_v9  ;;  %27492 = vmatprep.subr.mxu1 %v34173_v9  ;;  %v31280_v21 = vsub.f32 %v31184_v31, %v9247_v13  ;;  %v100_v26 = vld [vmem:[%s33645_s6] sm:$0xff] }
 0x4b1   :  { %27460 = vmatmul.mubr.f32.vlgmr.msra.gmra.mxu0 %v8385_v58 }
 0x4b2   :  { %29369 = vpow2.f32 %v7850_v49  ;;  %27468 = vmatpush3.msra.mxu0 %v8427_v43  ;;  %27469 = vmatprep.mubr.msk.f32.mxu0 %vm29419_vm1, %v34173_v9  ;;  %v9325_v38 = vand.u32 4294901760, %v31280_v21  ;;  %v31325_v49 = vand.u32 4294901760, %v100_v26 }
 0x4b3   :  { %27477 = vmatprep.subr.mxu0 %v34173_v9 }
 0x4b4   :  { %v9326_v31 = vsub.f32 %v31280_v21, %v9325_v38  ;;  %34175 = vst [vmem:[#allocation194_spill] sm:$0xff] %v31325_v49 }
 0x4b5   :  { %27470 = vmatmul.mubr.f32.vlgmr.msra.gmra.mxu0 %v8384_v62 }
 0x4b6   :  { %27478 = vmatpush3.msra.mxu0 %v8798_v41  ;;  %27479 = vmatprep.mubr.msk.f32.mxu0 %vm29419_vm1, %v34173_v9  ;;  %v9327_v62 = vand.u32 4294901760, %v9326_v31 }
 0x4b7   :  { %27487 = vmatprep.subr.mxu0 %v34173_v9 }
 0x4bf   :  { %v29370_v61 = vpop.eup %29369 }
 0x4c0   :  { %v7860_v44 = vsel %vm6021_vm2, %v29370_v61, 0.0  ;;  %v8765_v43 = vsel %vm6021_vm2, %v29370_v61, 0 }
 0x4c1   :  { %7861 = vadd.xlane.f32.xlu1 %v7860_v44  ;;  %v8833_v42 = vand.u32 4294901760, %v8765_v43 }
 0x4c3   :  { %v8834_v52 = vsub.f32 %v8765_v43, %v8833_v42  ;;  %27485 = vmatmul.mubr.f32.vlgmr.msra.gmra.mxu1 %v8833_v42 }
 0x4c4   :  { %27493 = vmatpush3.msra.mxu1 %v8798_v41  ;;  %27494 = vmatprep.mubr.msk.f32.mxu1 %vm29419_vm1, %v34173_v9 }
 0x4c5   :  { %27502 = vmatprep.subr.mxu1 %v34173_v9  ;;  %v8835_v5 = vand.u32 4294901760, %v8834_v52 }
 0x4c7   :  { %27495 = vmatmul.mubr.f32.vlgmr.msra.gmra.mxu1 %v8835_v5  ;;  %v8836_v51 = vsub.f32 %v8834_v52, %v8835_v5 }
 0x4c8   :  { %27503 = vmatpush3.msra.mxu1 %v8798_v41  ;;  %27504 = vmatprep.mubr.msk.f32.mxu1 %vm29419_vm1, %v34173_v9 }
 0x4c9   :  { %27512 = vmatprep.subr.mxu1 %v34173_v9  ;;  %v8837_v47 = vand.u32 4294901760, %v8836_v51 }
 0x4cb   :  { %v7841_v58 = vpop.xlane.xlu1 %7840  ;;  %27480 = vmatmul.mubr.f32.vlgmr.msra.gmra.mxu0 %v8837_v47  ;;  %27505 = vmatmul.mubr.f32.vlgmr.msra.gmra.mxu1 %v8833_v42 }
 0x4cc   :  { %v7845_v0 = vsub.f32 %v31207_v28, %v7841_v58  ;;  %27488 = vmatpush3.msra.mxu0 %v31248_v55  ;;  %27513 = vmatpush3.msra.mxu1 %v9327_v62 }
 0x4cd   :  { %27489 = vmatprep.mubr.msk.f32.mxu0 %vm29419_vm1, %v34173_v9  ;;  %27497 = vmatprep.subr.mxu0 %v34173_v9 }
 0x4ce   :  { %v7852_v41 = vmul.f32 1.442695, %v7845_v0  ;;  %27514 = vmatprep.mubr.msk.f32.mxu1 %vm29419_vm1, %v34173_v9  ;;  %27522 = vmatprep.subr.mxu1 %v34173_v9 }
 0x4cf   :  { %27490 = vmatmul.mubr.f32.vlgmr.msra.gmra.mxu0 %v8834_v52 }
 0x4d0   :  { %29371 = vpow2.f32 %v7852_v41  ;;  %27498 = vmatpush3.msra.mxu0 %v8876_v45  ;;  %27499 = vmatprep.mubr.msk.f32.mxu0 %vm29419_vm1, %v34173_v9 }
 0x4d1   :  { %27507 = vmatprep.subr.mxu0 %v34173_v9 }
 0x4d3   :  { %27500 = vmatmul.mubr.f32.vlgmr.msra.gmra.mxu0 %v8833_v42 }
 0x4d4   :  { %27508 = vmatpush3.msra.mxu0 %v9247_v13  ;;  %27509 = vmatprep.mubr.msk.f32.mxu0 %vm29419_vm1, %v34173_v9 }
 0x4d5   :  { %27517 = vmatprep.subr.mxu0 %v34173_v9 }
 0x4dd   :  { %v29372_v28 = vpop.eup %29371 }
 0x4de   :  { %v7863_v48 = vsel %vm6021_vm2, %v29372_v28, 0.0  ;;  %v9214_v20 = vsel %vm6021_vm2, %v29372_v28, 0  ;;  %v101_v28 = vld [vmem:[%s33645_s6 + $0x8] sm:$0xff] }
 0x4df   :  { %7864 = vadd.xlane.f32.xlu1 %v7863_v48  ;;  %v9282_v55 = vand.u32 4294901760, %v9214_v20 }
 0x4e1   :  { %v9283_v45 = vsub.f32 %v9214_v20, %v9282_v55  ;;  %27515 = vmatmul.mubr.f32.vlgmr.msra.gmra.mxu1 %v9282_v55 }
 0x4e2   :  { %27523 = vmatpush3.msra.mxu1 %v9247_v13  ;;  %27524 = vmatprep.mubr.msk.f32.mxu1 %vm29419_vm1, %v34173_v9 }
 0x4e3   :  { %27532 = vmatprep.subr.mxu1 %v34173_v9  ;;  %v9284_v7 = vand.u32 4294901760, %v9283_v45 }
 0x4e5   :  { %27525 = vmatmul.mubr.f32.vlgmr.msra.gmra.mxu1 %v9284_v7  ;;  %v9285_v46 = vsub.f32 %v9283_v45, %v9284_v7 }
 0x4e6   :  { %27533 = vmatpush3.msra.mxu1 %v9247_v13  ;;  %27534 = vmatprep.mubr.msk.f32.mxu1 %vm29419_vm1, %v34173_v9  ;;  %v31330_v13 = vsub.f32 %v100_v26, %v31325_v49 }
 0x4e7   :  { %v9286_v34 = vand.u32 4294901760, %v9285_v46  ;;  %27542 = vmatprep.subr.mxu1 %v34173_v9 }
 0x4e8   :  { %34176 = vst [vmem:[#allocation195_spill] sm:$0xff] %v31330_v13  ;;  %v31337_v61 = vand.u32 4294901760, %v31330_v13 }
 0x4e9   :  { %27510 = vmatmul.mubr.f32.vlgmr.msra.gmra.mxu0 %v9286_v34  ;;  %27535 = vmatmul.mubr.f32.vlgmr.msra.gmra.mxu1 %v9282_v55 }
 0x4ea   :  { %27518 = vmatpush3.msra.mxu0 %v31280_v21  ;;  %27519 = vmatprep.mubr.msk.f32.mxu0 %vm29419_vm1, %v34173_v9  ;;  %34177 = vst [vmem:[#allocation196_spill] sm:$0xff] %v31337_v61  ;;  %v9783_v44 = vsub.f32 %v31330_v13, %v31337_v61 }
 0x4eb   :  { %27527 = vmatprep.subr.mxu0 %v34173_v9  ;;  %27544 = vmatprep.mubr.msk.f32.mxu1 %vm29419_vm1, %v34173_v9 }
 0x4ec   :  { %v31345_v43 = vand.u32 4294901760, %v9783_v44 }
 0x4ed   :  { %27520 = vmatmul.mubr.f32.vlgmr.msra.gmra.mxu0 %v9283_v45  ;;  %v31353_v45 = vand.u32 4294901760, %v101_v28 }
 0x4ee   :  { %27528 = vmatpush3.msra.mxu0 %v9325_v38  ;;  %27529 = vmatprep.mubr.msk.f32.mxu0 %vm29419_vm1, %v34173_v9  ;;  %34178 = vst [vmem:[#allocation197_spill] sm:$0xff] %v31345_v43 }
 0x4ef   :  { %27537 = vmatprep.subr.mxu0 %v34173_v9  ;;  %27543 = vmatpush3.msra.mxu1 %v31345_v43  ;;  %34179 = vst [vmem:[#allocation198_spill] sm:$0xff] %v31353_v45  ;;  %v31356_v44 = vsub.f32 %v101_v28, %v31353_v45 }
 0x4f0   :  { %27552 = vmatprep.subr.mxu1 %v34173_v9 }
 0x4f1   :  { %27530 = vmatmul.mubr.f32.vlgmr.msra.gmra.mxu0 %v9282_v55  ;;  %34180 = vst [vmem:[#allocation199_spill] sm:$0xff] %v31356_v44 }
 0x4f2   :  { %27538 = vmatpush3.msra.mxu0 %v31325_v49  ;;  %27539 = vmatprep.mubr.msk.f32.mxu0 %vm29419_vm1, %v34173_v9 }
 0x4f3   :  { %27547 = vmatprep.subr.mxu0 %v34173_v9 }
 0x512   :  { %v7856_v38 = vpop.xlane.xlu1 %7855 }
 0x513   :  { %29373 = vrcp.f32 %v7856_v38 }
 0x520   :  { %v29374_v26 = vpop.eup %29373 }
 0x54b   :  { %v8017_v21 = vpop.f32.mrf.mxu1 }
 0x54d   :  { %v27426_v42 = vpop.f32.mrf.mxu1 }
 0x54f   :  { %v8165_v52 = vpop.f32.mrf.mxu1 }
 0x551   :  { %v27436_v5 = vpop.f32.mrf.mxu1 }
 0x552   :  { %v31360_v5 = vand.u32 4294901760, %v31356_v44 }
 0x553   :  { %v7941_v31 = vpop.f32.mrf.mxu0  ;;  %v8311_v51 = vpop.f32.mrf.mxu1 }
 0x554   :  { %v8018_v58 = vadd.f32 %v8017_v21, %v7941_v31  ;;  %34181 = vst [vmem:[#allocation200_spill] sm:$0xff] %v31360_v5 }
 0x555   :  { %v27421_v47 = vpop.f32.mrf.mxu0  ;;  %v27446_v62 = vpop.f32.mrf.mxu1 }
 0x556   :  { %v10232_v62 = vsub.f32 %v31356_v44, %v31360_v5 }
 0x557   :  { %v8091_v0 = vpop.f32.mrf.mxu0 }
 0x558   :  { %v8092_v41 = vadd.f32 %v8091_v0, %v8018_v58  ;;  %v7859_v58 = vpop.xlane.xlu1 %7858 }
 0x559   :  { %v27431_v48 = vpop.f32.mrf.mxu0  ;;  %29375 = vrcp.f32 %v7859_v58 }
 0x55a   :  { %v8166_v20 = vadd.f32 %v8165_v52, %v8092_v41 }
 0x55b   :  { %v8239_v55 = vpop.f32.mrf.mxu0 }
 0x55c   :  { %v8240_v7 = vadd.f32 %v8239_v55, %v8166_v20  ;;  %v31372_v20 = vand.u32 4294901760, %v10232_v62 }
 0x55d   :  { %v27441_v46 = vpop.f32.mrf.mxu0 }
 0x55e   :  { %v8312_v34 = vadd.f32 %v8311_v51, %v8240_v7  ;;  %34182 = vst [vmem:[#allocation201_spill] sm:$0xff] %v31372_v20 }
 0x560   :  { %v9666_v42 = vmul.f32 %v29374_v26, %v8312_v34 }
 0x562   :  { %v9671_v21 = vsel %vm6021_vm2, %v9666_v42, 0 }
 0x563   :  { %v9739_v38 = vand.u32 4294901760, %v9671_v21 }
 0x565   :  { %v9740_v31 = vsub.f32 %v9671_v21, %v9739_v38  ;;  %v8466_v47 = vpop.f32.mrf.mxu1  ;;  %27545 = vmatmul.mubr.f32.vlgmr.msra.gmra.mxu1 %v9739_v38 }
 0x566   :  { %27553 = vmatpush3.msra.mxu1 %v31325_v49  ;;  %27554 = vmatprep.mubr.msk.f32.mxu1 %vm29419_vm1, %v34173_v9 }
 0x567   :  { %v9741_v52 = vand.u32 4294901760, %v9740_v31  ;;  %v27456_v51 = vpop.f32.mrf.mxu1  ;;  %27562 = vmatprep.subr.mxu1 %v34173_v9 }
 0x569   :  { %v9742_v0 = vsub.f32 %v9740_v31, %v9741_v52  ;;  %v8614_v41 = vpop.f32.mrf.mxu1  ;;  %27555 = vmatmul.mubr.f32.vlgmr.msra.gmra.mxu1 %v9741_v52  ;;  %v102_v52 = vld [vmem:[%s33645_s6 + $0x10] sm:$0xff] }
 0x56a   :  { %27563 = vmatpush3.msra.mxu1 %v31325_v49  ;;  %27564 = vmatprep.mubr.msk.f32.mxu1 %vm29419_vm1, %v34173_v9  ;;  %v31389_v58 = vand.u32 4294901760, %v102_v52 }
 0x56b   :  { %v27466_v28 = vpop.f32.mrf.mxu1  ;;  %v9743_v48 = vand.u32 4294901760, %v9742_v0  ;;  %27572 = vmatprep.subr.mxu1 %v34173_v9 }
 0x56c   :  { %34183 = vst [vmem:[#allocation202_spill] sm:$0xff] %v31389_v58 }
 0x56d   :  { %v8390_v55 = vpop.f32.mrf.mxu0  ;;  %v8760_v7 = vpop.f32.mrf.mxu1  ;;  %27540 = vmatmul.mubr.f32.vlgmr.msra.gmra.mxu0 %v9743_v48  ;;  %27565 = vmatmul.mubr.f32.vlgmr.msra.gmra.mxu1 %v9739_v38 }
 0x56e   :  { %27548 = vmatpush3.msra.mxu0 %v31330_v13  ;;  %27549 = vmatprep.mubr.msk.f32.mxu0 %vm29419_vm1, %v34173_v9  ;;  %v8467_v26 = vadd.f32 %v8466_v47, %v8390_v55  ;;  %v29376_v48 = vpop.eup %29375  ;;  %v31396_v55 = vsub.f32 %v102_v52, %v31389_v58 }
 0x56f   :  { %v27451_v46 = vpop.f32.mrf.mxu0  ;;  %v27476_v34 = vpop.f32.mrf.mxu1  ;;  %27557 = vmatprep.subr.mxu0 %v34173_v9  ;;  %27573 = vmatpush3.msra.mxu1 %v31372_v20 }
 0x570   :  { %27574 = vmatprep.mubr.msk.f32.mxu1 %vm29419_vm1, %v34173_v9  ;;  %27582 = vmatprep.subr.mxu1 %v34173_v9  ;;  %34184 = vst [vmem:[#allocation203_spill] sm:$0xff] %v31396_v55  ;;  %v31400_v34 = vand.u32 4294901760, %v31396_v55 }
 0x571   :  { %v8540_v42 = vpop.f32.mrf.mxu0  ;;  %27550 = vmatmul.mubr.f32.vlgmr.msra.gmra.mxu0 %v9740_v31 }
 0x572   :  { %v8541_v21 = vadd.f32 %v8540_v42, %v8467_v26  ;;  %27558 = vmatpush3.msra.mxu0 %v31337_v61  ;;  %27559 = vmatprep.mubr.msk.f32.mxu0 %vm29419_vm1, %v34173_v9  ;;  %34185 = vst [vmem:[#allocation204_spill] sm:$0xff] %v31400_v34 }
 0x573   :  { %v27461_v51 = vpop.f32.mrf.mxu0  ;;  %27567 = vmatprep.subr.mxu0 %v34173_v9 }
 0x574   :  { %v8615_v47 = vadd.f32 %v8614_v41, %v8541_v21 }
 0x575   :  { %v8688_v62 = vpop.f32.mrf.mxu0  ;;  %27560 = vmatmul.mubr.f32.vlgmr.msra.gmra.mxu0 %v9739_v38 }
 0x576   :  { %v8689_v0 = vadd.f32 %v8688_v62, %v8615_v47  ;;  %27568 = vmatpush3.msra.mxu0 %v31353_v45  ;;  %27569 = vmatprep.mubr.msk.f32.mxu0 %vm29419_vm1, %v34173_v9 }
 0x577   :  { %v27471_v31 = vpop.f32.mrf.mxu0  ;;  %27577 = vmatprep.subr.mxu0 %v34173_v9 }
 0x578   :  { %v8761_v28 = vadd.f32 %v8760_v7, %v8689_v0  ;;  %v10681_v7 = vsub.f32 %v31396_v55, %v31400_v34  ;;  %v7862_v0 = vpop.xlane.xlu1 %7861 }
 0x579   :  { %29377 = vrcp.f32 %v7862_v0 }
 0x57a   :  { %v9667_v46 = vmul.f32 %v29376_v48, %v8761_v28  ;;  %v31412_v62 = vand.u32 4294901760, %v10681_v7 }
 0x57c   :  { %v10120_v41 = vsel %vm6021_vm2, %v9667_v46, 0  ;;  %34186 = vst [vmem:[#allocation205_spill] sm:$0xff] %v31412_v62 }
 0x57d   :  { %v10188_v38 = vand.u32 4294901760, %v10120_v41 }
 0x57f   :  { %v10189_v26 = vsub.f32 %v10120_v41, %v10188_v38  ;;  %27575 = vmatmul.mubr.f32.vlgmr.msra.gmra.mxu1 %v10188_v38 }
 0x580   :  { %27583 = vmatpush3.msra.mxu1 %v31353_v45  ;;  %27584 = vmatprep.mubr.msk.f32.mxu1 %vm29419_vm1, %v34173_v9 }
 0x581   :  { %v10190_v42 = vand.u32 4294901760, %v10189_v26  ;;  %27592 = vmatprep.subr.mxu1 %v34173_v9 }
 0x583   :  { %v10191_v21 = vsub.f32 %v10189_v26, %v10190_v42  ;;  %v8915_v52 = vpop.f32.mrf.mxu1  ;;  %27585 = vmatmul.mubr.f32.vlgmr.msra.gmra.mxu1 %v10190_v42 }
 0x584   :  { %27593 = vmatpush3.msra.mxu1 %v31353_v45  ;;  %27594 = vmatprep.mubr.msk.f32.mxu1 %vm29419_vm1, %v34173_v9 }
 0x585   :  { %v27486_v51 = vpop.f32.mrf.mxu1  ;;  %v10192_v47 = vand.u32 4294901760, %v10191_v21  ;;  %27602 = vmatprep.subr.mxu1 %v34173_v9 }
 0x587   :  { %v9063_v31 = vpop.f32.mrf.mxu1  ;;  %27570 = vmatmul.mubr.f32.vlgmr.msra.gmra.mxu0 %v10192_v47  ;;  %27595 = vmatmul.mubr.f32.vlgmr.msra.gmra.mxu1 %v10188_v38 }
 0x588   :  { %27578 = vmatpush3.msra.mxu0 %v31356_v44  ;;  %27579 = vmatprep.mubr.msk.f32.mxu0 %vm29419_vm1, %v34173_v9 }
 0x589   :  { %v27496_v28 = vpop.f32.mrf.mxu1  ;;  %27587 = vmatprep.subr.mxu0 %v34173_v9  ;;  %27603 = vmatpush3.msra.mxu1 %v31412_v62 }
 0x58a   :  { %27604 = vmatprep.mubr.msk.f32.mxu1 %vm29419_vm1, %v34173_v9  ;;  %27612 = vmatprep.subr.mxu1 %v34173_v9 }
 0x58b   :  { %v8839_v48 = vpop.f32.mrf.mxu0  ;;  %v9209_v46 = vpop.f32.mrf.mxu1  ;;  %27580 = vmatmul.mubr.f32.vlgmr.msra.gmra.mxu0 %v10189_v26  ;;  %v103_v26 = vld [vmem:[%s33645_s6 + $0x18] sm:$0xff] }
 0x58c   :  { %27588 = vmatpush3.msra.mxu0 %v31360_v5  ;;  %27589 = vmatprep.mubr.msk.f32.mxu0 %vm29419_vm1, %v34173_v9  ;;  %v8916_v7 = vadd.f32 %v8915_v52, %v8839_v48 }
 0x58d   :  { %v27481_v41 = vpop.f32.mrf.mxu0  ;;  %v27506_v42 = vpop.f32.mrf.mxu1  ;;  %27597 = vmatprep.subr.mxu0 %v34173_v9 }
 0x58e   :  { %v31433_v41 = vand.u32 4294901760, %v103_v26  ;;  %v29378_v42 = vpop.eup %29377 }
 0x58f   :  { %v8989_v21 = vpop.f32.mrf.mxu0  ;;  %27590 = vmatmul.mubr.f32.vlgmr.msra.gmra.mxu0 %v10188_v38 }
 0x590   :  { %v8990_v51 = vadd.f32 %v8989_v21, %v8916_v7  ;;  %27598 = vmatpush3.msra.mxu0 %v31389_v58  ;;  %27599 = vmatprep.mubr.msk.f32.mxu0 %vm29419_vm1, %v34173_v9  ;;  %34187 = vst [vmem:[#allocation206_spill] sm:$0xff] %v31433_v41  ;;  %v31436_v7 = vsub.f32 %v103_v26, %v31433_v41 }
 0x591   :  { %v27491_v47 = vpop.f32.mrf.mxu0  ;;  %27607 = vmatprep.subr.mxu0 %v34173_v9 }
 0x592   :  { %v9064_v0 = vadd.f32 %v9063_v31, %v8990_v51  ;;  %34188 = vst [vmem:[#allocation207_spill] sm:$0xff] %v31436_v7  ;;  %v31440_v44 = vand.u32 4294901760, %v31436_v7 }
 0x593   :  { %v9137_v28 = vpop.f32.mrf.mxu0 }
 0x594   :  { %v9138_v52 = vadd.f32 %v9137_v28, %v9064_v0  ;;  %34189 = vst [vmem:[#allocation208_spill] sm:$0xff] %v31440_v44 }
 0x595   :  { %v27501_v48 = vpop.f32.mrf.mxu0 }
 0x596   :  { %v9210_v38 = vadd.f32 %v9209_v46, %v9138_v52  ;;  %v11130_v46 = vsub.f32 %v31436_v7, %v31440_v44  ;;  %v7865_v52 = vpop.xlane.xlu1 %7864 }
 0x597   :  { %29379 = vrcp.f32 %v7865_v52 }
 0x598   :  { %v9668_v21 = vmul.f32 %v29378_v42, %v9210_v38  ;;  %v31452_v28 = vand.u32 4294901760, %v11130_v46 }
 0x59a   :  { %v10569_v5 = vsel %vm6021_vm2, %v9668_v21, 0  ;;  %34190 = vst [vmem:[#allocation209_spill] sm:$0xff] %v31452_v28 }
 0x59b   :  { %v10637_v62 = vand.u32 4294901760, %v10569_v5 }
 0x59d   :  { %v10638_v47 = vsub.f32 %v10569_v5, %v10637_v62  ;;  %27605 = vmatmul.mubr.f32.vlgmr.msra.gmra.mxu1 %v10637_v62 }
 0x59e   :  { %27613 = vmatpush3.msra.mxu1 %v31389_v58  ;;  %27614 = vmatprep.mubr.msk.f32.mxu1 %vm29419_vm1, %v34173_v9 }
 0x59f   :  { %v10639_v31 = vand.u32 4294901760, %v10638_v47  ;;  %27622 = vmatprep.subr.mxu1 %v34173_v9 }
 0x5a1   :  { %v10640_v51 = vsub.f32 %v10638_v47, %v10639_v31  ;;  %v9364_v26 = vpop.f32.mrf.mxu1  ;;  %27615 = vmatmul.mubr.f32.vlgmr.msra.gmra.mxu1 %v10639_v31 }
 0x5a2   :  { %27623 = vmatpush3.msra.mxu1 %v31389_v58  ;;  %27624 = vmatprep.mubr.msk.f32.mxu1 %vm29419_vm1, %v34173_v9 }
 0x5a3   :  { %v27516_v5 = vpop.f32.mrf.mxu1  ;;  %v10641_v0 = vand.u32 4294901760, %v10640_v51  ;;  %27632 = vmatprep.subr.mxu1 %v34173_v9 }
 0x5a5   :  { %v9512_v48 = vpop.f32.mrf.mxu1  ;;  %27600 = vmatmul.mubr.f32.vlgmr.msra.gmra.mxu0 %v10641_v0  ;;  %27625 = vmatmul.mubr.f32.vlgmr.msra.gmra.mxu1 %v10637_v62 }
 0x5a6   :  { %27608 = vmatpush3.msra.mxu0 %v31396_v55  ;;  %27609 = vmatprep.mubr.msk.f32.mxu0 %vm29419_vm1, %v34173_v9 }
 0x5a7   :  { %v27526_v38 = vpop.f32.mrf.mxu1  ;;  %27617 = vmatprep.subr.mxu0 %v34173_v9  ;;  %27633 = vmatpush3.msra.mxu1 %v31452_v28 }
 0x5a8   :  { %27634 = vmatprep.mubr.msk.f32.mxu1 %vm29419_vm1, %v34173_v9  ;;  %27642 = vmatprep.subr.mxu1 %v34173_v9 }
 0x5a9   :  { %v9288_v42 = vpop.f32.mrf.mxu0  ;;  %v9658_v21 = vpop.f32.mrf.mxu1  ;;  %27610 = vmatmul.mubr.f32.vlgmr.msra.gmra.mxu0 %v10638_v47 }
 0x5aa   :  { %27618 = vmatpush3.msra.mxu0 %v31400_v34  ;;  %27619 = vmatprep.mubr.msk.f32.mxu0 %vm29419_vm1, %v34173_v9  ;;  %v9365_v51 = vadd.f32 %v9364_v26, %v9288_v42 }
 0x5ab   :  { %v27511_v31 = vpop.f32.mrf.mxu0  ;;  %v27536_v46 = vpop.f32.mrf.mxu1  ;;  %27627 = vmatprep.subr.mxu0 %v34173_v9 }
 0x5ac   :  { %v29380_v46 = vpop.eup %29379 }
 0x5ad   :  { %v9438_v5 = vpop.f32.mrf.mxu0  ;;  %27620 = vmatmul.mubr.f32.vlgmr.msra.gmra.mxu0 %v10637_v62 }
 0x5ae   :  { %v9439_v0 = vadd.f32 %v9438_v5, %v9365_v51  ;;  %27628 = vmatpush3.msra.mxu0 %v31433_v41  ;;  %27629 = vmatprep.mubr.msk.f32.mxu0 %vm29419_vm1, %v34173_v9 }
 0x5af   :  { %v27521_v52 = vpop.f32.mrf.mxu0  ;;  %27637 = vmatprep.subr.mxu0 %v34173_v9 }
 0x5b0   :  { %v9513_v47 = vadd.f32 %v9512_v48, %v9439_v0 }
 0x5b1   :  { %v9586_v38 = vpop.f32.mrf.mxu0 }
 0x5b2   :  { %v9587_v34 = vadd.f32 %v9586_v38, %v9513_v47 }
 0x5b3   :  { %v27531_v28 = vpop.f32.mrf.mxu0 }
 0x5b4   :  { %v9659_v31 = vadd.f32 %v9658_v21, %v9587_v34 }
 0x5b6   :  { %v9669_v55 = vmul.f32 %v29380_v46, %v9659_v31 }
 0x5b8   :  { %v11018_v26 = vsel %vm6021_vm2, %v9669_v55, 0 }
 0x5b9   :  { %v11086_v42 = vand.u32 4294901760, %v11018_v26 }
 0x5bb   :  { %v11087_v62 = vsub.f32 %v11018_v26, %v11086_v42  ;;  %27635 = vmatmul.mubr.f32.vlgmr.msra.gmra.mxu1 %v11086_v42 }
 0x5bc   :  { %27643 = vmatpush3.msra.mxu1 %v31433_v41  ;;  %27644 = vmatprep.mubr.msk.f32.mxu1 %vm29419_vm1, %v34173_v9 }
 0x5bd   :  { %v11088_v51 = vand.u32 4294901760, %v11087_v62  ;;  %27652 = vmatprep.subr.mxu1 %v34173_v9 }
 0x5bf   :  { %v11089_v48 = vsub.f32 %v11087_v62, %v11088_v51  ;;  %27645 = vmatmul.mubr.f32.vlgmr.msra.gmra.mxu1 %v11088_v51 }
 0x5c0   :  { %27653 = vmatpush3.msra.mxu1 %v31433_v41  ;;  %27654 = vmatprep.mubr.msk.f32.mxu1 %vm29419_vm1, %v34173_v9 }
 0x5c1   :  { %v11090_v34 = vand.u32 4294901760, %v11089_v48  ;;  %27668 = vmatprep.subr.mxu1 %v34173_v9 }
 0x5c3   :  { %27630 = vmatmul.mubr.f32.vlgmr.msra.gmra.mxu0 %v11090_v34  ;;  %27655 = vmatmul.mubr.f32.vlgmr.msra.gmra.mxu1 %v11086_v42 }
 0x5c4   :  { %27638 = vmatpush3.msra.mxu0 %v31436_v7  ;;  %27639 = vmatprep.mubr.msk.f32.mxu0 %vm29419_vm1, %v34173_v9 }
 0x5c5   :  { %27647 = vmatprep.subr.mxu0 %v34173_v9  ;;  %27676 = vmatprep.mubr.msk.f32.mxu1 %vm29419_vm1, %v34173_v9 }
 0x5c7   :  { %27640 = vmatmul.mubr.f32.vlgmr.msra.gmra.mxu0 %v11087_v62 }
 0x5c8   :  { %27648 = vmatpush3.msra.mxu0 %v31440_v44  ;;  %27649 = vmatprep.mubr.msk.f32.mxu0 %vm29419_vm1, %v34173_v9 }
 0x5c9   :  { %27657 = vmatprep.subr.mxu0 %v34173_v9 }
 0x5cb   :  { %27650 = vmatmul.mubr.f32.vlgmr.msra.gmra.mxu0 %v11086_v42 }
 0x5cc   :  { %27665 = vmatprep.mubr.msk.f32.mxu0 %vm29419_vm1, %v34173_v9 }
 0x625   :  { %v9821_v55 = vpop.f32.mrf.mxu1 }
 0x627   :  { %v27546_v28 = vpop.f32.mrf.mxu1 }
 0x629   :  { %v9969_v21 = vpop.f32.mrf.mxu1 }
 0x62b   :  { %v27556_v5 = vpop.f32.mrf.mxu1 }
 0x62d   :  { %v9745_v0 = vpop.f32.mrf.mxu0  ;;  %v10115_v52 = vpop.f32.mrf.mxu1 }
 0x62e   :  { %v9822_v47 = vadd.f32 %v9821_v55, %v9745_v0 }
 0x62f   :  { %v27541_v38 = vpop.f32.mrf.mxu0  ;;  %v27566_v31 = vpop.f32.mrf.mxu1 }
 0x631   :  { %v9895_v46 = vpop.f32.mrf.mxu0 }
 0x632   :  { %v9896_v26 = vadd.f32 %v9895_v46, %v9822_v47 }
 0x633   :  { %v27551_v62 = vpop.f32.mrf.mxu0 }
 0x634   :  { %v9970_v51 = vadd.f32 %v9969_v21, %v9896_v26 }
 0x635   :  { %v10043_v48 = vpop.f32.mrf.mxu0 }
 0x636   :  { %v10044_v34 = vadd.f32 %v10043_v48, %v9970_v51 }
 0x637   :  { %v27561_v44 = vpop.f32.mrf.mxu0 }
 0x638   :  { %v10116_v42 = vadd.f32 %v10115_v52, %v10044_v34 }
 0x63a   :  { %v11466_v44 = vsel %vm169_vm0, %v10116_v42, 0.0 }
 0x63f   :  { %v10270_v7 = vpop.f32.mrf.mxu1 }
 0x641   :  { %v27576_v41 = vpop.f32.mrf.mxu1 }
 0x643   :  { %v10418_v58 = vpop.f32.mrf.mxu1 }
 0x645   :  { %v27586_v45 = vpop.f32.mrf.mxu1 }
 0x647   :  { %v10194_v28 = vpop.f32.mrf.mxu0  ;;  %v10564_v61 = vpop.f32.mrf.mxu1 }
 0x648   :  { %v10271_v13 = vadd.f32 %v10270_v7, %v10194_v28 }
 0x649   :  { %v27571_v5 = vpop.f32.mrf.mxu0  ;;  %v27596_v20 = vpop.f32.mrf.mxu1 }
 0x64b   :  { %v10344_v55 = vpop.f32.mrf.mxu0 }
 0x64c   :  { %v10345_v0 = vadd.f32 %v10344_v55, %v10271_v13 }
 0x64d   :  { %v27581_v38 = vpop.f32.mrf.mxu0 }
 0x64e   :  { %v10419_v31 = vadd.f32 %v10418_v58, %v10345_v0 }
 0x64f   :  { %v10492_v47 = vpop.f32.mrf.mxu0 }
 0x650   :  { %v10493_v46 = vadd.f32 %v10492_v47, %v10419_v31 }
 0x651   :  { %v27591_v21 = vpop.f32.mrf.mxu0 }
 0x652   :  { %v10565_v26 = vadd.f32 %v10564_v61, %v10493_v46 }
 0x654   :  { %v11467_v52 = vsel %vm169_vm0, %v10565_v26, 0.0 }
 0x655   :  { %v11468_v41 = vadd.f32 %v11467_v52, %v11466_v44 }
 0x65d   :  { %v10719_v62 = vpop.f32.mrf.mxu1 }
 0x65f   :  { %v27606_v45 = vpop.f32.mrf.mxu1 }
 0x661   :  { %v10867_v51 = vpop.f32.mrf.mxu1 }
 0x663   :  { %v27616_v48 = vpop.f32.mrf.mxu1 }
 0x665   :  { %v10643_v34 = vpop.f32.mrf.mxu0  ;;  %v11013_v20 = vpop.f32.mrf.mxu1 }
 0x666   :  { %v10720_v0 = vadd.f32 %v10719_v62, %v10643_v34 }
 0x667   :  { %v27601_v7 = vpop.f32.mrf.mxu0  ;;  %v27626_v28 = vpop.f32.mrf.mxu1 }
 0x669   :  { %v10793_v13 = vpop.f32.mrf.mxu0 }
 0x66a   :  { %v10794_v61 = vadd.f32 %v10793_v13, %v10720_v0 }
 0x66b   :  { %v27611_v5 = vpop.f32.mrf.mxu0 }
 0x66c   :  { %v10868_v47 = vadd.f32 %v10867_v51, %v10794_v61 }
 0x66d   :  { %v10941_v58 = vpop.f32.mrf.mxu0 }
 0x66e   :  { %v10942_v44 = vadd.f32 %v10941_v58, %v10868_v47  ;;  %v25220_v58 = vld [vmem:[%s33646_s7] ss:$0 sm:$0xff]  ;;  %v114_v47 = vld [vmem:[%s33647_s11 + $0x18] sm:$0xff] }
 0x66f   :  { %v27621_v55 = vpop.f32.mrf.mxu0 }
 0x670   :  { %v11014_v7 = vadd.f32 %v11013_v20, %v10942_v44 }
 0x672   :  { %v11469_v62 = vsel %vm169_vm0, %v11014_v7, 0.0 }
 0x673   :  { %v11470_v0 = vadd.f32 %v11469_v62, %v11468_v41 }
 0x67b   :  { %v11168_v38 = vpop.f32.mrf.mxu1 }
 0x67d   :  { %v27636_v31 = vpop.f32.mrf.mxu1 }
 0x67f   :  { %v11316_v42 = vpop.f32.mrf.mxu1 }
 0x681   :  { %v27646_v46 = vpop.f32.mrf.mxu1 }
 0x682   :  { %v112_v46 = vld [vmem:[%s33647_s11 + $0x8] sm:$0xff] }
 0x683   :  { %v11092_v21 = vpop.f32.mrf.mxu0  ;;  %v11462_v26 = vpop.f32.mrf.mxu1  ;;  %v31518_v44 = vand.u32 4294901760, %v112_v46 }
 0x684   :  { %v11169_v48 = vadd.f32 %v11168_v38, %v11092_v21  ;;  %v31514_v21 = vand.u32 4294901760, %v114_v47 }
 0x685   :  { %v27631_v52 = vpop.f32.mrf.mxu0  ;;  %v27656_v45 = vpop.f32.mrf.mxu1  ;;  %34194 = vst [vmem:[#allocation213_spill] sm:$0xff] %v31518_v44 }
 0x686   :  { %34192 = vst [vmem:[#allocation211_spill] sm:$0xff] %v31514_v21  ;;  %v111_v52 = vld [vmem:[%s33647_s11] sm:$0xff]  ;;  %27658 = vmatpush3.msra.mxu0 %v31514_v21 }
 0x687   :  { %v11242_v49 = vpop.f32.mrf.mxu0  ;;  %v31523_v45 = vand.u32 4294901760, %v111_v52  ;;  %27659 = vmatprep.subr.mxu0 %v34173_v9 }
 0x688   :  { %v11243_v28 = vadd.f32 %v11242_v49, %v11169_v48  ;;  %v31526_v48 = vsub.f32 %v114_v47, %v31514_v21  ;;  %v25227_v47 = vld [vmem:[%s33638_s0 + $0x30] sm:$0xff] }
 0x689   :  { %v27641_v43 = vpop.f32.mrf.mxu0  ;;  %34195 = vst [vmem:[#allocation214_spill] sm:$0xff] %v31523_v45 }
 0x68a   :  { %v11317_v5 = vadd.f32 %v11316_v42, %v11243_v28  ;;  %34196 = vst [vmem:[#allocation215_spill] sm:$0xff] %v31526_v48  ;;  %v31532_v28 = vsub.f32 %v112_v46, %v31518_v44  ;;  %v31540_v62 = vand.u32 4294901760, %v31526_v48 }
 0x68b   :  { %v11390_v3 = vpop.f32.mrf.mxu0 }
 0x68c   :  { %v11391_v34 = vadd.f32 %v11390_v3, %v11317_v5  ;;  %34198 = vst [vmem:[#allocation217_spill] sm:$0xff] %v31532_v28  ;;  %v31536_v5 = vsub.f32 %v111_v52, %v31523_v45  ;;  %34200 = vst [vmem:[#allocation219_spill] sm:$0xff] %v31540_v62 }
 0x68d   :  { %v27651_v13 = vpop.f32.mrf.mxu0 }
 0x68e   :  { %v11463_v55 = vadd.f32 %v11462_v26, %v11391_v34  ;;  %34199 = vst [vmem:[#allocation218_spill] sm:$0xff] %v31536_v5  ;;  %v31546_v13 = vand.u32 4294901760, %v31532_v28 }
 0x690   :  { %v11471_v51 = vsel %vm169_vm0, %v11463_v55, 0.0  ;;  %34202 = vst [vmem:[#allocation221_spill] sm:$0xff] %v31546_v13  ;;  %v31550_v55 = vand.u32 4294901760, %v31536_v5 }
 0x691   :  { %v11472_v61 = vadd.f32 %v11471_v51, %v11470_v0  ;;  %v11624_v0 = vsub.f32 %v31526_v48, %v31540_v62 }
 0x692   :  { %34203 = vst [vmem:[#allocation222_spill] sm:$0xff] %v31550_v55 }
 0x693   :  { %v11479_v38 = vadd.f32 %v25220_v58, %v11472_v61  ;;  %v11638_v58 = vsub.f32 %v31532_v28, %v31546_v13  ;;  %v31561_v61 = vand.u32 4294901760, %v11624_v0 }
 0x695   :  { %v31499_v20 = vadd.f32 %v11479_v38, %v29512_v4  ;;  %v113_v4 = vld [vmem:[%s33647_s11 + $0x10] sm:$0xff]  ;;  %34204 = vst [vmem:[#allocation223_spill] sm:$0xff] %v31561_v61  ;;  %27669 = vmatpush3.msra.mxu1 %v31561_v61 }
 0x696   :  { %v31516_v26 = vand.u32 4294901760, %v113_v4  ;;  %27670 = vmatprep.subr.mxu1 %v34173_v9 }
 0x697   :  { %34191 = vst [vmem:[#allocation210_spill] sm:$0xff] %v31499_v20  ;;  %v11481_v49 = vsel %vm169_vm0, %v31499_v20, 0.0 }
 0x698   :  { %11482 = vadd.xlane.f32.xlu1 %v11481_v49  ;;  %34193 = vst [vmem:[#allocation212_spill] sm:$0xff] %v31516_v26  ;;  %v31529_v7 = vsub.f32 %v113_v4, %v31516_v26  ;;  %27660 = vmatpush3.msra.mxu0 %v31516_v26  ;;  %v11645_v49 = vsub.f32 %v31536_v5, %v31550_v55  ;;  %v25228_v4 = vld [vmem:[%s33638_s0 + $0x38] sm:$0xff] }
 0x699   :  { %27661 = vmatprep.subr.mxu0 %v34173_v9 }
 0x69a   :  { %34197 = vst [vmem:[#allocation216_spill] sm:$0xff] %v31529_v7  ;;  %v31543_v34 = vand.u32 4294901760, %v31529_v7  ;;  %27662 = vmatpush3.msra.mxu0 %v31518_v44 }
 0x69b   :  { %27663 = vmatprep.subr.mxu0 %v34173_v9 }
 0x69c   :  { %34201 = vst [vmem:[#allocation220_spill] sm:$0xff] %v31543_v34  ;;  %v11631_v51 = vsub.f32 %v31529_v7, %v31543_v34  ;;  %27664 = vmatpush3.msra.mxu0 %v31523_v45 }
 0x69d   :  { %27679 = vmatprep.subr.mxu0 %v34173_v9 }
 0x69e   :  { %v31563_v38 = vand.u32 4294901760, %v11631_v51 }
 0x6a0   :  { %34205 = vst [vmem:[#allocation224_spill] sm:$0xff] %v31563_v38  ;;  %27671 = vmatpush3.msra.mxu1 %v31563_v38 }
 0x6a1   :  { %27672 = vmatprep.subr.mxu1 %v34173_v9 }
 0x721   :  { %v11483_v43 = vpop.xlane.xlu1 %11482 }
 0x722   :  { %v11484_v3 = vmul.f32 0.03125, %v11483_v43  ;;  %v31570_v43 = vand.u32 4294901760, %v11638_v58  ;;  %v25221_v58 = vld [vmem:[%s33648_s9] ss:$0 sm:$0xff] }
 0x724   :  { %v11485_v31 = vsub.f32 %v31499_v20, %v11484_v3  ;;  %34206 = vst [vmem:[#allocation225_spill] sm:$0xff] %v31570_v43  ;;  %v31574_v3 = vand.u32 4294901760, %v11645_v49  ;;  %27673 = vmatpush3.msra.mxu1 %v31570_v43 }
 0x725   :  { %27674 = vmatprep.subr.mxu1 %v34173_v9 }
 0x726   :  { %v11486_v41 = vmul.f32 %v11485_v31, %v11485_v31  ;;  %34207 = vst [vmem:[#allocation226_spill] sm:$0xff] %v31574_v3  ;;  %27675 = vmatpush3.msra.mxu1 %v31574_v3 }
 0x727   :  { %27690 = vmatprep.subr.mxu1 %v34173_v9 }
 0x728   :  { %v11487_v42 = vsel %vm169_vm0, %v11486_v41, 0.0  ;;  %v25225_v41 = vld [vmem:[%s33638_s0 + $0x20] sm:$0xff] }
 0x729   :  { %11488 = vadd.xlane.f32.xlu1 %v11487_v42  ;;  %v25226_v42 = vld [vmem:[%s33638_s0 + $0x28] sm:$0xff] }
 0x75c   :  { %12700 = vxpose.xlu1.b32.start [1/4] (short) (narrow) %v25225_v41, 8  ;;  %v25222_v41 = vld [vmem:[%s33649_s10] ss:$0 sm:$0xff] }
 0x760   :  { %12701 = vxpose.xlu1.b32.cont [2/4] (short) (narrow) %v25226_v42, 8 }
 0x764   :  { %12702 = vxpose.xlu1.b32.cont [3/4] (short) (narrow) %v25227_v47, 8 }
 0x768   :  { %12703 = vxpose.xlu1.b32.end [4/4] (short) (narrow) %v25228_v4, 8 }
 0x7b2   :  { %v11489_v46 = vpop.xlane.xlu1 %11488 }
 0x7b3   :  { %v11490_v52 = vmul.f32 0.03125, %v11489_v46 }
 0x7b5   :  { %v11491_v0 = vadd.f32 1e-05, %v11490_v52 }
 0x7b7   :  { %29381 = vrsqrt.f32 %v11491_v0 }
 0x7c4   :  { %v29382_v51 = vpop.eup %29381 }
 0x7c5   :  { %v11493_v49 = vmul.f32 %v29382_v51, %v11485_v31  ;;  %v131_v51 = vld [vmem:[%s33650_s13 + $0x78] sm:$0xff] }
 0x7c7   :  { %v11500_v42 = vmul.f32 %v25221_v58, %v11493_v49  ;;  %v31651_v58 = vand.u32 4294901760, %v131_v51  ;;  %v130_v49 = vld [vmem:[%s33650_s13 + $0x70] sm:$0xff] }
 0x7c9   :  { %v11507_v47 = vadd.f32 %v25222_v41, %v11500_v42  ;;  %v31657_v41 = vsub.f32 %v131_v51, %v31651_v58  ;;  %v31659_v42 = vand.u32 4294901760, %v130_v49  ;;  %v125_v51 = vld [vmem:[%s33650_s13 + $0x48] sm:$0xff] }
 0x7cb   :  { %v11515_v3 = vsel %vm169_vm0, %v11507_v47, 0  ;;  %v128_v47 = vld [vmem:[%s33650_s13 + $0x60] sm:$0xff] }
 0x7cc   :  { %v11586_v43 = vand.u32 4294901760, %v11515_v3 }
 0x7ce   :  { %v11587_v4 = vsub.f32 %v11515_v3, %v11586_v43  ;;  %27677 = vmatmul.mubr.f32.vlgmr.msra.gmra.mxu1 %v11586_v43 }
 0x7cf   :  { %27691 = vmatpush3.msra.mxu1 %v31514_v21  ;;  %27698 = vmatprep.mubr.msk.f32.mxu1 %vm29419_vm1, %v34173_v9 }
 0x7d0   :  { %27692 = vmatprep.subr.mxu1 %v34173_v9  ;;  %v11588_v46 = vand.u32 4294901760, %v11587_v4 }
 0x7d1   :  { %27693 = vmatpush3.msra.mxu1 %v31516_v26 }
 0x7d2   :  { %27694 = vmatprep.subr.mxu1 %v34173_v9  ;;  %v11589_v31 = vsub.f32 %v11587_v4, %v11588_v46 }
 0x7d3   :  { %27695 = vmatpush3.msra.mxu1 %v31518_v44 }
 0x7d4   :  { %27696 = vmatprep.subr.mxu1 %v34173_v9  ;;  %v11590_v52 = vand.u32 4294901760, %v11589_v31  ;;  %v31673_v31 = vand.u32 4294901760, %v128_v47 }
 0x7d5   :  { %27697 = vmatpush3.msra.mxu1 %v31523_v45 }
 0x7d6   :  { %27699 = vmatmul.mubr.f32.vlgmr.msra.gmra.mxu1 %v11588_v46  ;;  %27712 = vmatprep.subr.mxu1 %v34173_v9 }
 0x7d7   :  { %27666 = vmatmul.mubr.f32.vlgmr.msra.gmra.mxu0 %v11590_v52  ;;  %27713 = vmatpush3.msra.mxu1 %v31514_v21 }
 0x7d8   :  { %27680 = vmatpush3.msra.mxu0 %v31526_v48  ;;  %27714 = vmatprep.subr.mxu1 %v34173_v9  ;;  %v31613_v3 = vpop.trf.xlu1 }
 0x7d9   :  { %34208 = vst [vmem:[#allocation227_spill] sm:$0xff] %v31613_v3  ;;  %27681 = vmatprep.subr.mxu0 %v34173_v9  ;;  %27715 = vmatpush3.msra.mxu1 %v31516_v26  ;;  %v12732_v0 = vsel %vm169_vm0, %v31613_v3, 0.0 }
 0x7da   :  { %27682 = vmatpush3.msra.mxu0 %v31529_v7  ;;  %27716 = vmatprep.subr.mxu1 %v34173_v9  ;;  %v31702_v7 = vsub.f32 %v128_v47, %v31673_v31 }
 0x7db   :  { %27683 = vmatprep.subr.mxu0 %v34173_v9  ;;  %27717 = vmatpush3.msra.mxu1 %v31518_v44 }
 0x7dc   :  { %27684 = vmatpush3.msra.mxu0 %v31532_v28  ;;  %12733 = vadd.xlane.f32.xlu0 %v12732_v0  ;;  %v126_v0 = vld [vmem:[%s33650_s13 + $0x50] sm:$0xff] }
 0x7dd   :  { %27685 = vmatprep.subr.mxu0 %v34173_v9  ;;  %27718 = vmatprep.subr.mxu1 %v34173_v9 }
 0x7de   :  { %27686 = vmatpush3.msra.mxu0 %v31536_v5  ;;  %27687 = vmatprep.mubr.msk.f32.mxu0 %vm29419_vm1, %v34173_v9  ;;  %v31696_v5 = vand.u32 4294901760, %v125_v51 }
 0x7df   :  { %27719 = vmatpush3.msra.mxu1 %v31523_v45  ;;  %27720 = vmatprep.mubr.msk.f32.mxu1 %vm29419_vm1, %v34173_v9 }
 0x7e0   :  { %27688 = vmatmul.mubr.f32.vlgmr.msra.gmra.mxu0 %v11587_v4  ;;  %27701 = vmatprep.subr.mxu0 %v34173_v9  ;;  %v127_v4 = vld [vmem:[%s33650_s13 + $0x58] sm:$0xff] }
 0x7e1   :  { %27721 = vmatmul.mubr.f32.vlgmr.msra.gmra.mxu1 %v11586_v43  ;;  %27702 = vmatpush3.msra.mxu0 %v31540_v62  ;;  %v31675_v52 = vand.u32 4294901760, %v127_v4  ;;  %v31694_v62 = vand.u32 4294901760, %v126_v0 }
 0x7e2   :  { %27703 = vmatprep.subr.mxu0 %v34173_v9  ;;  %27709 = vmatprep.mubr.msk.f32.mxu0 %vm29419_vm1, %v34173_v9 }
 0x7e3   :  { %27704 = vmatpush3.msra.mxu0 %v31543_v34  ;;  %27758 = vmatprep.subr.mxu1 %v34173_v9  ;;  %v31691_v34 = vsub.f32 %v130_v49, %v31659_v42  ;;  %v31705_v48 = vsub.f32 %v127_v4, %v31675_v52  ;;  %v31716_v26 = vsub.f32 %v126_v0, %v31694_v62  ;;  %v31726_v4 = vand.u32 4294901760, %v31702_v7  ;;  %v123_v0 = vld [vmem:[%s33650_s13 + $0x38] sm:$0xff] }
 0x7e4   :  { %27705 = vmatprep.subr.mxu0 %v34173_v9  ;;  %27790 = vmatprep.mubr.msk.f32.mxu1 %vm29419_vm1, %v34173_v9  ;;  %v31763_v39 = vand.u32 4294901760, %v123_v0 }
 0x7e5   :  { %27706 = vmatpush3.msra.mxu0 %v31546_v13  ;;  %v31688_v13 = vand.u32 4294901760, %v31657_v41  ;;  %v31713_v44 = vand.u32 4294901760, %v31691_v34  ;;  %34212 = vst [vmem:[#allocation231_spill] sm:$0xff] %v31726_v4  ;;  %v31729_v21 = vand.u32 4294901760, %v31705_v48  ;;  %v31743_v63 = vand.u32 4294901760, %v31716_v26 }
 0x7e6   :  { %27707 = vmatprep.subr.mxu0 %v34173_v9  ;;  %v31787_v56 = vsub.f32 %v123_v0, %v31763_v39  ;;  %v118_v0 = vld [vmem:[%s33650_s13 + $0x10] sm:$0xff] }
 0x7e7   :  { %27708 = vmatpush3.msra.mxu0 %v31550_v55  ;;  %v124_v55 = vld [vmem:[%s33650_s13 + $0x40] sm:$0xff]  ;;  %34209 = vst [vmem:[#allocation228_spill] sm:$0xff] %v31688_v13  ;;  %v12112_v49 = vsub.f32 %v31657_v41, %v31688_v13  ;;  %34210 = vst [vmem:[#allocation229_spill] sm:$0xff] %v31713_v44  ;;  %v12119_v61 = vsub.f32 %v31691_v34, %v31713_v44  ;;  %v12140_v37 = vsub.f32 %v31705_v48, %v31729_v21 }
 0x7e8   :  { %27710 = vmatmul.mubr.f32.vlgmr.msra.gmra.mxu0 %v11586_v43  ;;  %27723 = vmatprep.subr.mxu0 %v34173_v9  ;;  %v129_v43 = vld [vmem:[%s33650_s13 + $0x68] sm:$0xff]  ;;  %v31708_v45 = vand.u32 4294901760, %v124_v55  ;;  %34213 = vst [vmem:[#allocation232_spill] sm:$0xff] %v31729_v21  ;;  %34215 = vst [vmem:[#allocation234_spill] sm:$0xff] %v31743_v63  ;;  %v12147_v59 = vsub.f32 %v31716_v26, %v31743_v63  ;;  %v31807_v53 = vand.u32 4294901760, %v31787_v56 }
 0x7e9   :  { %27755 = vmatprep.mubr.msk.f32.mxu0 %vm29419_vm1, %v34173_v9  ;;  %27724 = vmatpush3.msra.mxu0 %v31651_v58  ;;  %v31671_v46 = vand.u32 4294901760, %v129_v43  ;;  %v31758_v2 = vand.u32 4294901760, %v12119_v61  ;;  %v31804_v57 = vand.u32 4294901760, %v12140_v37  ;;  %v117_v37 = vld [vmem:[%s33650_s13 + $0x8] sm:$0xff] }
 0x7ea   :  { %27725 = vmatprep.subr.mxu0 %v34173_v9  ;;  %v31733_v38 = vsub.f32 %v124_v55, %v31708_v45  ;;  %v12133_v55 = vsub.f32 %v31702_v7, %v31726_v4  ;;  %34222 = vst [vmem:[#allocation241_spill] sm:$0xff] %v31807_v53 }
 0x7eb   :  { %27726 = vmatpush3.msra.mxu0 %v31659_v42  ;;  %v31699_v28 = vsub.f32 %v129_v43, %v31671_v46  ;;  %v31720_v43 = vsub.f32 %v125_v51, %v31696_v5  ;;  %v31738_v51 = vand.u32 4294901760, %v12112_v49  ;;  %v122_v49 = vld [vmem:[%s33650_s13 + $0x30] sm:$0xff]  ;;  %34217 = vst [vmem:[#allocation236_spill] sm:$0xff] %v31758_v2  ;;  %34221 = vst [vmem:[#allocation240_spill] sm:$0xff] %v31804_v57 }
 0x7ec   :  { %27727 = vmatprep.subr.mxu0 %v34173_v9  ;;  %v31775_v61 = vand.u32 4294901760, %v31733_v38  ;;  %v31782_v20 = vand.u32 4294901760, %v12133_v55  ;;  %v31798_v55 = vand.u32 4294901760, %v120_v16 }
 0x7ed   :  { %27728 = vmatpush3.msra.mxu0 %v31671_v46  ;;  %v31723_v47 = vand.u32 4294901760, %v31699_v28  ;;  %34214 = vst [vmem:[#allocation233_spill] sm:$0xff] %v31738_v51  ;;  %v31751_v40 = vand.u32 4294901760, %v31720_v43  ;;  %27759 = vmatpush3.msra.mxu1 %v31738_v51 }
 0x7ee   :  { %27729 = vmatprep.subr.mxu0 %v34173_v9  ;;  %27760 = vmatprep.subr.mxu1 %v34173_v9  ;;  %34219 = vst [vmem:[#allocation238_spill] sm:$0xff] %v31775_v61  ;;  %34220 = vst [vmem:[#allocation239_spill] sm:$0xff] %v31782_v20  ;;  %v12161_v32 = vsub.f32 %v31733_v38, %v31775_v61  ;;  %v31833_v27 = vsub.f32 %v120_v16, %v31798_v55 }
 0x7ef   :  { %34211 = vst [vmem:[#allocation230_spill] sm:$0xff] %v31723_v47  ;;  %27730 = vmatpush3.msra.mxu0 %v31673_v31  ;;  %v12126_v36 = vsub.f32 %v31699_v28, %v31723_v47  ;;  %34216 = vst [vmem:[#allocation235_spill] sm:$0xff] %v31751_v40  ;;  %27761 = vmatpush3.msra.mxu1 %v31758_v2  ;;  %v12154_v60 = vsub.f32 %v31720_v43, %v31751_v40  ;;  %v31796_v2 = vand.u32 4294901760, %v121_v1 }
 0x7f0   :  { %27731 = vmatprep.subr.mxu0 %v34173_v9  ;;  %27762 = vmatprep.subr.mxu1 %v34173_v9  ;;  %v31857_v6 = vand.u32 4294901760, %v12161_v32  ;;  %v31864_v17 = vand.u32 4294901760, %v31833_v27 }
 0x7f1   :  { %27732 = vmatpush3.msra.mxu0 %v31675_v52  ;;  %v31772_v51 = vand.u32 4294901760, %v12126_v36  ;;  %v31790_v36 = vand.u32 4294901760, %v122_v49  ;;  %v31819_v10 = vsub.f32 %v121_v1, %v31796_v2  ;;  %v31835_v1 = vand.u32 4294901760, %v118_v0 }
 0x7f2   :  { %27733 = vmatprep.subr.mxu0 %v34173_v9  ;;  %v31838_v8 = vand.u32 4294901760, %v12154_v60  ;;  %v31854_v60 = vand.u32 4294901760, %v117_v37  ;;  %34227 = vst [vmem:[#allocation246_spill] sm:$0xff] %v31857_v6  ;;  %34228 = vst [vmem:[#allocation247_spill] sm:$0xff] %v31864_v17 }
 0x7f3   :  { %34218 = vst [vmem:[#allocation237_spill] sm:$0xff] %v31772_v51  ;;  %27734 = vmatpush3.msra.mxu0 %v31694_v62  ;;  %27763 = vmatpush3.msra.mxu1 %v31772_v51  ;;  %v31810_v50 = vsub.f32 %v122_v49, %v31790_v36  ;;  %v31826_v49 = vand.u32 4294901760, %v12147_v59  ;;  %v116_v59 = vld [vmem:[%s33650_s13] sm:$0xff]  ;;  %v31848_v16 = vand.u32 4294901760, %v31819_v10  ;;  %v31868_v54 = vsub.f32 %v118_v0, %v31835_v1 }
 0x7f4   :  { %27735 = vmatprep.subr.mxu0 %v34173_v9  ;;  %27764 = vmatprep.subr.mxu1 %v34173_v9  ;;  %34225 = vst [vmem:[#allocation244_spill] sm:$0xff] %v31838_v8  ;;  %v31870_v29 = vand.u32 4294901760, %v116_v59  ;;  %v31884_v0 = vsub.f32 %v117_v37, %v31854_v60 }
 0x7f5   :  { %27736 = vmatpush3.msra.mxu0 %v31696_v5  ;;  %27765 = vmatpush3.msra.mxu1 %v31782_v20  ;;  %34223 = vst [vmem:[#allocation242_spill] sm:$0xff] %v31826_v49  ;;  %v31829_v51 = vand.u32 4294901760, %v31810_v50  ;;  %v12168_v20 = vsub.f32 %v31787_v56, %v31807_v53  ;;  %34226 = vst [vmem:[#allocation245_spill] sm:$0xff] %v31848_v16  ;;  %v31894_v18 = vand.u32 4294901760, %v31868_v54 }
 0x7f6   :  { %27737 = vmatprep.subr.mxu0 %v34173_v9  ;;  %27766 = vmatprep.subr.mxu1 %v34173_v9  ;;  %v31898_v14 = vsub.f32 %v116_v59, %v31870_v29 }
 0x7f7   :  { %34224 = vst [vmem:[#allocation243_spill] sm:$0xff] %v31829_v51  ;;  %27738 = vmatpush3.msra.mxu0 %v31708_v45  ;;  %27767 = vmatpush3.msra.mxu1 %v31804_v57  ;;  %v12175_v57 = vsub.f32 %v31810_v50, %v31829_v51  ;;  %v31875_v32 = vand.u32 4294901760, %v12168_v20  ;;  %v12189_v20 = vsub.f32 %v31833_v27, %v31864_v17  ;;  %34232 = vst [vmem:[#allocation251_spill] sm:$0xff] %v31894_v18 }
 0x7f8   :  { %27739 = vmatprep.subr.mxu0 %v34173_v9  ;;  %27768 = vmatprep.subr.mxu1 %v34173_v9 }
 0x7f9   :  { %27740 = vmatpush3.msra.mxu0 %v31763_v39  ;;  %27769 = vmatpush3.msra.mxu1 %v31826_v49  ;;  %34229 = vst [vmem:[#allocation248_spill] sm:$0xff] %v31875_v32  ;;  %v12182_v49 = vsub.f32 %v31819_v10, %v31848_v16  ;;  %v31914_v59 = vand.u32 4294901760, %v12189_v20 }
 0x7fa   :  { %27741 = vmatprep.subr.mxu0 %v34173_v9  ;;  %27770 = vmatprep.subr.mxu1 %v34173_v9 }
 0x7fb   :  { %27742 = vmatpush3.msra.mxu0 %v31790_v36  ;;  %27771 = vmatpush3.msra.mxu1 %v31838_v8  ;;  %v31889_v8 = vand.u32 4294901760, %v12175_v57  ;;  %v31903_v37 = vand.u32 4294901760, %v12182_v49  ;;  %v12196_v57 = vsub.f32 %v31852_v22, %v31880_v23  ;;  %34235 = vst [vmem:[#allocation254_spill] sm:$0xff] %v31914_v59  ;;  %v12203_v49 = vsub.f32 %v31868_v54, %v31894_v18 }
 0x7fc   :  { %27743 = vmatprep.subr.mxu0 %v34173_v9  ;;  %27772 = vmatprep.subr.mxu1 %v34173_v9 }
 0x7fd   :  { %27744 = vmatpush3.msra.mxu0 %v31796_v2  ;;  %27773 = vmatpush3.msra.mxu1 %v31857_v6  ;;  %34231 = vst [vmem:[#allocation250_spill] sm:$0xff] %v31889_v8  ;;  %34233 = vst [vmem:[#allocation252_spill] sm:$0xff] %v31903_v37  ;;  %v31908_v6 = vand.u32 4294901760, %v31884_v0  ;;  %v31925_v24 = vand.u32 4294901760, %v12196_v57 }
 0x7fe   :  { %27745 = vmatprep.subr.mxu0 %v34173_v9  ;;  %27774 = vmatprep.subr.mxu1 %v34173_v9 }
 0x7ff   :  { %27746 = vmatpush3.msra.mxu0 %v31798_v55  ;;  %27775 = vmatpush3.msra.mxu1 %v31875_v32  ;;  %34234 = vst [vmem:[#allocation253_spill] sm:$0xff] %v31908_v6  ;;  %v31919_v32 = vand.u32 4294901760, %v31898_v14  ;;  %34237 = vst [vmem:[#allocation256_spill] sm:$0xff] %v31925_v24  ;;  %v12210_v20 = vsub.f32 %v31884_v0, %v31908_v6 }
 0x800   :  { %27747 = vmatprep.subr.mxu0 %v34173_v9  ;;  %27776 = vmatprep.subr.mxu1 %v34173_v9 }
 0x801   :  { %27748 = vmatpush3.msra.mxu0 %v31813_v11  ;;  %27777 = vmatpush3.msra.mxu1 %v31889_v8  ;;  %34236 = vst [vmem:[#allocation255_spill] sm:$0xff] %v31919_v32  ;;  %v31933_v8 = vand.u32 4294901760, %v12203_v49  ;;  %v12217_v19 = vsub.f32 %v31898_v14, %v31919_v32  ;;  %v31941_v57 = vand.u32 4294901760, %v12210_v20 }
 0x802   :  { %27749 = vmatprep.subr.mxu0 %v34173_v9  ;;  %27778 = vmatprep.subr.mxu1 %v34173_v9 }
 0x803   :  { %27750 = vmatpush3.msra.mxu0 %v31835_v1  ;;  %27779 = vmatpush3.msra.mxu1 %v31903_v37  ;;  %34238 = vst [vmem:[#allocation257_spill] sm:$0xff] %v31933_v8  ;;  %34239 = vst [vmem:[#allocation258_spill] sm:$0xff] %v31941_v57 }
 0x804   :  { %27751 = vmatprep.subr.mxu0 %v34173_v9  ;;  %27780 = vmatprep.subr.mxu1 %v34173_v9 }
 0x805   :  { %27752 = vmatpush3.msra.mxu0 %v31854_v60  ;;  %27781 = vmatpush3.msra.mxu1 %v31914_v59  ;;  %v31945_v59 = vand.u32 4294901760, %v12217_v19 }
 0x806   :  { %27753 = vmatprep.subr.mxu0 %v34173_v9  ;;  %27782 = vmatprep.subr.mxu1 %v34173_v9 }
 0x807   :  { %27754 = vmatpush3.msra.mxu0 %v31870_v29  ;;  %27783 = vmatpush3.msra.mxu1 %v31925_v24  ;;  %34240 = vst [vmem:[#allocation259_spill] sm:$0xff] %v31945_v59 }
 0x808   :  { %27793 = vmatprep.subr.mxu0 %v34173_v9  ;;  %27784 = vmatprep.subr.mxu1 %v34173_v9 }
 0x809   :  { %27785 = vmatpush3.msra.mxu1 %v31933_v8 }
 0x80a   :  { %27786 = vmatprep.subr.mxu1 %v34173_v9 }
 0x80b   :  { %27787 = vmatpush3.msra.mxu1 %v31941_v57 }
 0x80c   :  { %27788 = vmatprep.subr.mxu1 %v34173_v9 }
 0x80d   :  { %27789 = vmatpush3.msra.mxu1 %v31945_v59  ;;  %v25223_v59 = vld [vmem:[%s33651_s12] ss:$0 sm:$0xff] }
 0x80e   :  { %27828 = vmatprep.subr.mxu1 %v34173_v9 }
 0x865   :  { %v12734_v49 = vpop.xlane.xlu0 %12733 }
 0x866   :  { %v12735_v24 = vmul.f32 0.03125, %v12734_v49 }
 0x868   :  { %v31953_v20 = vsub.f32 %v31613_v3, %v12735_v24 }
 0x86a   :  { %34241 = vst [vmem:[#allocation260_spill] sm:$0xff] %v31953_v20  ;;  %v12737_v8 = vmul.f32 %v31953_v20, %v31953_v20 }
 0x86c   :  { %v12738_v19 = vsel %vm169_vm0, %v12737_v8, 0.0 }
 0x86d   :  { %12739 = vadd.xlane.f32.xlu0 %v12738_v19 }
 0x88e   :  { %v11683_v37 = vpop.f32.mrf.mxu1 }
 0x890   :  { %v27678_v15 = vpop.f32.mrf.mxu1 }
 0x896   :  { %v11840_v57 = vpop.f32.mrf.mxu1 }
 0x897   :  { %v11592_v12 = vpop.f32.mrf.mxu0 }
 0x898   :  { %v27700_v35 = vpop.f32.mrf.mxu1  ;;  %v11593_v49 = vadd.f32 %v25223_v59, %v11592_v12 }
 0x899   :  { %v27667_v32 = vpop.f32.mrf.mxu0 }
 0x89a   :  { %v11684_v24 = vadd.f32 %v11683_v37, %v11593_v49  ;;  %v29407_v49 = vld [vmem:[%s33640_s1] ss:$0 sm:$0xff] }
 0x8a0   :  { %v11763_v33 = vpop.f32.mrf.mxu0 }
 0x8a1   :  { %v11998_v3 = vpop.f32.mrf.mxu1  ;;  %v11764_v30 = vadd.f32 %v11763_v33, %v11684_v24 }
 0x8a2   :  { %v27689_v6 = vpop.f32.mrf.mxu0 }
 0x8a3   :  { %v27722_v18 = vpop.f32.mrf.mxu1  ;;  %v11841_v25 = vadd.f32 %v11840_v57, %v11764_v30  ;;  %v34242_v6 = vld [vmem:[#allocation241_spill] sm:$0xff] }
 0x8a8   :  { %v11923_v8 = vpop.f32.mrf.mxu0 }
 0x8a9   :  { %v11924_v19 = vadd.f32 %v11923_v8, %v11841_v25  ;;  %v34246_v8 = vld [vmem:[#allocation247_spill] sm:$0xff] }
 0x8aa   :  { %v27711_v23 = vpop.f32.mrf.mxu0 }
 0x8ab   :  { %v11999_v15 = vadd.f32 %v11998_v3, %v11924_v19  ;;  %v34243_v3 = vld [vmem:[#allocation243_spill] sm:$0xff]  ;;  %v29408_v19 = vld [vmem:[%s33641_s2] ss:$0 sm:$0xff] }
 0x8ad   :  { %v12003_v17 = vmul.f32 0.044715, %v11999_v15  ;;  %v12002_v53 = vmul.f32 0.5, %v11999_v15 }
 0x8af   :  { %v12004_v16 = vmul.f32 %v12003_v17, %v11999_v15 }
 0x8b1   :  { %v12005_v35 = vmul.f32 %v12004_v16, %v11999_v15  ;;  %v34244_v16 = vld [vmem:[#allocation260_spill] sm:$0xff] }
 0x8b3   :  { %v12006_v32 = vadd.f32 %v12005_v35, %v11999_v15  ;;  %v34247_v35 = vld [vmem:[#allocation249_spill] sm:$0xff] }
 0x8b5   :  { %v12007_v20 = vmul.f32 0.7978846, %v12006_v32 }
 0x8b7   :  { %29383 = vtanh.f32 %v12007_v20  ;;  %v34245_v20 = vld [vmem:[#allocation245_spill] sm:$0xff] }
 0x8c4   :  { %v29384_v51 = vpop.eup %29383 }
 0x8c5   :  { %v12009_v12 = vadd.f32 1.0, %v29384_v51 }
 0x8c7   :  { %v12010_v59 = vmul.f32 %v12009_v12, %v12002_v53  ;;  %v34248_v12 = vld [vmem:[#allocation11_spill] sm:$0xff] }
 0x8c9   :  { %v31961_v37 = vand.u32 4294901760, %v12010_v59 }
 0x8cb   :  { %v31964_v33 = vsub.f32 %v12010_v59, %v31961_v37  ;;  %27791 = vmatmul.mubr.f32.vlgmr.msra.gmra.mxu1 %v31961_v37 }
 0x8cc   :  { %27829 = vmatpush3.msra.mxu1 %v31651_v58  ;;  %27860 = vmatprep.mubr.msk.f32.mxu1 %vm29419_vm1, %v34173_v9 }
 0x8cd   :  { %27830 = vmatprep.subr.mxu1 %v34173_v9  ;;  %v12100_v17 = vand.u32 4294901760, %v31964_v33 }
 0x8ce   :  { %27831 = vmatpush3.msra.mxu1 %v31659_v42 }
 0x8cf   :  { %27832 = vmatprep.subr.mxu1 %v34173_v9  ;;  %v12101_v18 = vsub.f32 %v31964_v33, %v12100_v17 }
 0x8d0   :  { %27833 = vmatpush3.msra.mxu1 %v31671_v46 }
 0x8d1   :  { %27834 = vmatprep.subr.mxu1 %v34173_v9  ;;  %v12102_v23 = vand.u32 4294901760, %v12101_v18 }
 0x8d2   :  { %27835 = vmatpush3.msra.mxu1 %v31673_v31 }
 0x8d3   :  { %27836 = vmatprep.subr.mxu1 %v34173_v9  ;;  %27756 = vmatmul.mubr.f32.vlgmr.msra.gmra.mxu0 %v12102_v23  ;;  %v34251_v23 = vld [vmem:[#allocation253_spill] sm:$0xff] }
 0x8d4   :  { %27794 = vmatpush3.msra.mxu0 %v31657_v41  ;;  %27837 = vmatpush3.msra.mxu1 %v31675_v52 }
 0x8d5   :  { %27795 = vmatprep.subr.mxu0 %v34173_v9  ;;  %27838 = vmatprep.subr.mxu1 %v34173_v9 }
 0x8d6   :  { %27796 = vmatpush3.msra.mxu0 %v31691_v34  ;;  %27839 = vmatpush3.msra.mxu1 %v31694_v62 }
 0x8d7   :  { %27797 = vmatprep.subr.mxu0 %v34173_v9  ;;  %27840 = vmatprep.subr.mxu1 %v34173_v9 }
 0x8d8   :  { %27798 = vmatpush3.msra.mxu0 %v31699_v28  ;;  %27841 = vmatpush3.msra.mxu1 %v31696_v5 }
 0x8d9   :  { %27799 = vmatprep.subr.mxu0 %v34173_v9  ;;  %27842 = vmatprep.subr.mxu1 %v34173_v9 }
 0x8da   :  { %27800 = vmatpush3.msra.mxu0 %v31702_v7  ;;  %27843 = vmatpush3.msra.mxu1 %v31708_v45 }
 0x8db   :  { %27801 = vmatprep.subr.mxu0 %v34173_v9  ;;  %27844 = vmatprep.subr.mxu1 %v34173_v9 }
 0x8dc   :  { %27802 = vmatpush3.msra.mxu0 %v31705_v48  ;;  %27845 = vmatpush3.msra.mxu1 %v31763_v39 }
 0x8dd   :  { %27803 = vmatprep.subr.mxu0 %v34173_v9  ;;  %27846 = vmatprep.subr.mxu1 %v34173_v9 }
 0x8de   :  { %27804 = vmatpush3.msra.mxu0 %v31716_v26  ;;  %27847 = vmatpush3.msra.mxu1 %v31790_v36 }
 0x8df   :  { %27805 = vmatprep.subr.mxu0 %v34173_v9  ;;  %27848 = vmatprep.subr.mxu1 %v34173_v9 }
 0x8e0   :  { %27806 = vmatpush3.msra.mxu0 %v31720_v43  ;;  %27849 = vmatpush3.msra.mxu1 %v31796_v2 }
 0x8e1   :  { %27807 = vmatprep.subr.mxu0 %v34173_v9  ;;  %27850 = vmatprep.subr.mxu1 %v34173_v9 }
 0x8e2   :  { %27808 = vmatpush3.msra.mxu0 %v31733_v38  ;;  %27851 = vmatpush3.msra.mxu1 %v31798_v55 }
 0x8e3   :  { %27809 = vmatprep.subr.mxu0 %v34173_v9  ;;  %27852 = vmatprep.subr.mxu1 %v34173_v9 }
 0x8e4   :  { %27810 = vmatpush3.msra.mxu0 %v31787_v56  ;;  %27853 = vmatpush3.msra.mxu1 %v31813_v11 }
 0x8e5   :  { %27811 = vmatprep.subr.mxu0 %v34173_v9  ;;  %27854 = vmatprep.subr.mxu1 %v34173_v9 }
 0x8e6   :  { %27812 = vmatpush3.msra.mxu0 %v31810_v50  ;;  %27855 = vmatpush3.msra.mxu1 %v31835_v1 }
 0x8e7   :  { %27813 = vmatprep.subr.mxu0 %v34173_v9  ;;  %27856 = vmatprep.subr.mxu1 %v34173_v9 }
 0x8e8   :  { %27814 = vmatpush3.msra.mxu0 %v31819_v10  ;;  %27857 = vmatpush3.msra.mxu1 %v31854_v60 }
 0x8e9   :  { %27815 = vmatprep.subr.mxu0 %v34173_v9  ;;  %27858 = vmatprep.subr.mxu1 %v34173_v9 }
 0x8ea   :  { %27816 = vmatpush3.msra.mxu0 %v31833_v27  ;;  %27859 = vmatpush3.msra.mxu1 %v31870_v29 }
 0x8eb   :  { %27817 = vmatprep.subr.mxu0 %v34173_v9  ;;  %27861 = vmatmul.mubr.f32.vlgmr.msra.gmra.mxu1 %v12100_v17  ;;  %v34250_v17 = vld [vmem:[#allocation14_spill] sm:$0xff] }
 0x8ec   :  { %27898 = vmatprep.subr.mxu1 %v34173_v9  ;;  %27818 = vmatpush3.msra.mxu0 %v31852_v22 }
 0x8ed   :  { %27899 = vmatpush3.msra.mxu1 %v31651_v58  ;;  %27819 = vmatprep.subr.mxu0 %v34173_v9 }
 0x8ee   :  { %27900 = vmatprep.subr.mxu1 %v34173_v9  ;;  %27820 = vmatpush3.msra.mxu0 %v31868_v54 }
 0x8ef   :  { %27901 = vmatpush3.msra.mxu1 %v31659_v42  ;;  %27821 = vmatprep.subr.mxu0 %v34173_v9 }
 0x8f0   :  { %27902 = vmatprep.subr.mxu1 %v34173_v9  ;;  %27822 = vmatpush3.msra.mxu0 %v31884_v0 }
 0x8f1   :  { %27903 = vmatpush3.msra.mxu1 %v31671_v46  ;;  %27823 = vmatprep.subr.mxu0 %v34173_v9 }
 0x8f2   :  { %27904 = vmatprep.subr.mxu1 %v34173_v9  ;;  %27824 = vmatpush3.msra.mxu0 %v31898_v14 }
 0x8f3   :  { %27825 = vmatprep.mubr.msk.f32.mxu0 %vm29419_vm1, %v34173_v9  ;;  %27905 = vmatpush3.msra.mxu1 %v31673_v31 }
 0x8f4   :  { %27826 = vmatmul.mubr.f32.vlgmr.msra.gmra.mxu0 %v31964_v33  ;;  %27863 = vmatprep.subr.mxu0 %v34173_v9  ;;  %v34249_v33 = vld [vmem:[#allocation251_spill] sm:$0xff] }
 0x8f5   :  { %27906 = vmatprep.subr.mxu1 %v34173_v9  ;;  %27864 = vmatpush3.msra.mxu0 %v31688_v13 }
 0x8f6   :  { %27907 = vmatpush3.msra.mxu1 %v31675_v52  ;;  %27865 = vmatprep.subr.mxu0 %v34173_v9  ;;  %v12740_v25 = vpop.xlane.xlu0 %12739 }
 0x8f7   :  { %27908 = vmatprep.subr.mxu1 %v34173_v9  ;;  %27866 = vmatpush3.msra.mxu0 %v31713_v44  ;;  %v12741_v30 = vmul.f32 0.03125, %v12740_v25  ;;  %v34252_v25 = vld [vmem:[#allocation16_spill] sm:$0xff] }
 0x8f8   :  { %27909 = vmatpush3.msra.mxu1 %v31694_v62  ;;  %27867 = vmatprep.subr.mxu0 %v34173_v9 }
 0x8f9   :  { %27910 = vmatprep.subr.mxu1 %v34173_v9  ;;  %v12742_v53 = vadd.f32 1e-05, %v12741_v30  ;;  %27868 = vmatpush3.msra.mxu0 %v31723_v47  ;;  %v34253_v30 = vld [vmem:[#allocation255_spill] sm:$0xff] }
 0x8fa   :  { %27911 = vmatpush3.msra.mxu1 %v31696_v5  ;;  %27869 = vmatprep.subr.mxu0 %v34173_v9 }
 0x8fb   :  { %29385 = vrsqrt.f32 %v12742_v53  ;;  %27912 = vmatprep.subr.mxu1 %v34173_v9  ;;  %27870 = vmatpush3.msra.mxu0 %v31726_v4  ;;  %v34254_v53 = vld [vmem:[#allocation17_spill] sm:$0xff] }
 0x8fc   :  { %27913 = vmatpush3.msra.mxu1 %v31708_v45  ;;  %27871 = vmatprep.subr.mxu0 %v34173_v9 }
 0x8fd   :  { %27914 = vmatprep.subr.mxu1 %v34173_v9  ;;  %27872 = vmatpush3.msra.mxu0 %v31729_v21 }
 0x8fe   :  { %27915 = vmatpush3.msra.mxu1 %v31763_v39  ;;  %27873 = vmatprep.subr.mxu0 %v34173_v9 }
 0x8ff   :  { %27916 = vmatprep.subr.mxu1 %v34173_v9  ;;  %27874 = vmatpush3.msra.mxu0 %v31743_v63 }
 0x900   :  { %27917 = vmatpush3.msra.mxu1 %v31790_v36  ;;  %27875 = vmatprep.subr.mxu0 %v34173_v9 }
 0x901   :  { %27918 = vmatprep.subr.mxu1 %v34173_v9  ;;  %27876 = vmatpush3.msra.mxu0 %v31751_v40 }
 0x902   :  { %27919 = vmatpush3.msra.mxu1 %v31796_v2  ;;  %27877 = vmatprep.subr.mxu0 %v34173_v9 }
 0x903   :  { %27920 = vmatprep.subr.mxu1 %v34173_v9  ;;  %27878 = vmatpush3.msra.mxu0 %v31775_v61 }
 0x904   :  { %27921 = vmatpush3.msra.mxu1 %v31798_v55  ;;  %27879 = vmatprep.subr.mxu0 %v34173_v9 }
 0x905   :  { %27922 = vmatprep.subr.mxu1 %v34173_v9  ;;  %27880 = vmatpush3.msra.mxu0 %v34242_v6 }
 0x906   :  { %27923 = vmatpush3.msra.mxu1 %v31813_v11  ;;  %27881 = vmatprep.subr.mxu0 %v34173_v9 }
 0x907   :  { %27924 = vmatprep.subr.mxu1 %v34173_v9  ;;  %27882 = vmatpush3.msra.mxu0 %v34243_v3 }
 0x908   :  { %v29386_v51 = vpop.eup %29385  ;;  %27925 = vmatpush3.msra.mxu1 %v31835_v1  ;;  %27883 = vmatprep.subr.mxu0 %v34173_v9 }
 0x909   :  { %v12744_v57 = vmul.f32 %v29386_v51, %v34244_v16  ;;  %27926 = vmatprep.subr.mxu1 %v34173_v9  ;;  %27884 = vmatpush3.msra.mxu0 %v34245_v20  ;;  %v34255_v16 = vld [vmem:[#allocation2_spill] sm:$0xff] }
 0x90a   :  { %27927 = vmatpush3.msra.mxu1 %v31854_v60  ;;  %27885 = vmatprep.subr.mxu0 %v34173_v9 }
 0x90b   :  { %v12745_v24 = vmul.f32 %v29407_v49, %v12744_v57  ;;  %27928 = vmatprep.subr.mxu1 %v34173_v9  ;;  %27886 = vmatpush3.msra.mxu0 %v34246_v8  ;;  %v34257_v49 = vld [vmem:[#allocation7_spill] sm:$0xff] }
 0x90c   :  { %27929 = vmatpush3.msra.mxu1 %v31870_v29  ;;  %27930 = vmatprep.mubr.msk.f32.mxu1 %vm29419_vm1, %v34173_v9 }
 0x90d   :  { %v12746_v15 = vadd.f32 %v29408_v19, %v12745_v24  ;;  %27887 = vmatprep.subr.mxu0 %v34173_v9  ;;  %27931 = vmatmul.mubr.f32.vlgmr.msra.gmra.mxu1 %v31961_v37  ;;  %v34258_v24 = vld [vmem:[#allocation10_spill] sm:$0xff] }
 0x90e   :  { %27944 = vmatprep.subr.mxu1 %v34173_v9  ;;  %27888 = vmatpush3.msra.mxu0 %v34247_v35 }
 0x90f   :  { %v12748_v32 = vsel %vm169_vm0, %v12746_v15, 0  ;;  %27945 = vmatpush3.msra.mxu1 %v34248_v12  ;;  %27889 = vmatprep.subr.mxu0 %v34173_v9  ;;  %v34259_v15 = vld [vmem:[#allocation3_spill] sm:$0xff]  ;;  %v34261_v12 = vld [vmem:[#allocation9_spill] sm:$0xff] }
 0x910   :  { %v32108_v59 = vand.u32 4294901760, %v12748_v32  ;;  %27946 = vmatprep.subr.mxu1 %v34173_v9  ;;  %27890 = vmatpush3.msra.mxu0 %v34249_v33  ;;  %v34365_v33 = vld [vmem:[#allocation109_spill] sm:$0xff] }
 0x911   :  { %27947 = vmatpush3.msra.mxu1 %v34250_v17  ;;  %27891 = vmatprep.subr.mxu0 %v34173_v9  ;;  %v34262_v17 = vld [vmem:[#allocation13_spill] sm:$0xff] }
 0x912   :  { %v32115_v18 = vsub.f32 %v12748_v32, %v32108_v59  ;;  %27948 = vmatprep.subr.mxu1 %v34173_v9  ;;  %27892 = vmatpush3.msra.mxu0 %v34251_v23  ;;  %v34260_v32 = vld [vmem:[#allocation6_spill] sm:$0xff]  ;;  %v34363_v23 = vld [vmem:[#allocation108_spill] sm:$0xff] }
 0x913   :  { %27949 = vmatpush3.msra.mxu1 %v34252_v25  ;;  %27893 = vmatprep.subr.mxu0 %v34173_v9  ;;  %v34263_v25 = vld [vmem:[#allocation5_spill] sm:$0xff] }
 0x914   :  { %27950 = vmatprep.subr.mxu1 %v34173_v9  ;;  %27894 = vmatpush3.msra.mxu0 %v34253_v30  ;;  %v32129_v51 = vand.u32 4294901760, %v32115_v18  ;;  %v34357_v30 = vld [vmem:[#allocation105_spill] sm:$0xff] }
 0x915   :  { %27895 = vmatprep.mubr.msk.f32.mxu0 %vm29419_vm1, %v34173_v9  ;;  %27951 = vmatpush3.msra.mxu1 %v34254_v53  ;;  %v34264_v53 = vld [vmem:[#allocation30_spill] sm:$0xff] }
 0x916   :  { %27896 = vmatmul.mubr.f32.vlgmr.msra.gmra.mxu0 %v31961_v37  ;;  %27933 = vmatprep.subr.mxu0 %v34173_v9  ;;  %v34256_v37 = vld [vmem:[#allocation4_spill] sm:$0xff]  ;;  %v12822_v57 = vsub.f32 %v32115_v18, %v32129_v51 }
 0x917   :  { %27952 = vmatprep.mubr.msk.f32.mxu1 %vm29419_vm1, %v34173_v9  ;;  %27966 = vmatprep.subr.mxu1 %v34173_v9 }
 0x918   :  { %27934 = vmatpush3.msra.mxu0 %v34255_v16  ;;  %27953 = vmatmul.mubr.f32.vlgmr.msra.gmra.mxu1 %v32108_v59  ;;  %v32150_v19 = vand.u32 4294901760, %v12822_v57  ;;  %v34267_v57 = vld [vmem:[#allocation12_spill] sm:$0xff] }
 0x919   :  { %27967 = vmatpush3.msra.mxu1 %v34255_v16  ;;  %27935 = vmatprep.subr.mxu0 %v34173_v9 }
 0x91a   :  { %27968 = vmatprep.subr.mxu1 %v34173_v9  ;;  %27936 = vmatpush3.msra.mxu0 %v34256_v37 }
 0x91b   :  { %27969 = vmatpush3.msra.mxu1 %v34256_v37  ;;  %27937 = vmatprep.subr.mxu0 %v34173_v9 }
 0x91c   :  { %27970 = vmatprep.subr.mxu1 %v34173_v9  ;;  %27938 = vmatpush3.msra.mxu0 %v34257_v49 }
 0x91d   :  { %27971 = vmatpush3.msra.mxu1 %v34257_v49  ;;  %27939 = vmatprep.subr.mxu0 %v34173_v9 }
 0x91e   :  { %27972 = vmatprep.subr.mxu1 %v34173_v9  ;;  %27940 = vmatpush3.msra.mxu0 %v34258_v24 }
 0x91f   :  { %27973 = vmatpush3.msra.mxu1 %v34258_v24  ;;  %27974 = vmatprep.mubr.msk.f32.mxu1 %vm29419_vm1, %v34173_v9 }
 0x920   :  { %27941 = vmatprep.mubr.msk.f32.mxu0 %vm29419_vm1, %v34173_v9  ;;  %27955 = vmatprep.subr.mxu0 %v34173_v9 }
 0x921   :  { %27975 = vmatmul.mubr.f32.vlgmr.msra.gmra.mxu1 %v32129_v51  ;;  %27988 = vmatprep.subr.mxu1 %v34173_v9 }
 0x922   :  { %27942 = vmatmul.mubr.f32.vlgmr.msra.gmra.mxu0 %v32150_v19  ;;  %27989 = vmatpush3.msra.mxu1 %v34255_v16  ;;  %v34265_v16 = vld [vmem:[#allocation8_spill] sm:$0xff] }
 0x923   :  { %27956 = vmatpush3.msra.mxu0 %v34259_v15  ;;  %27990 = vmatprep.subr.mxu1 %v34173_v9  ;;  %v34270_v15 = vld [vmem:[#allocation33_spill] sm:$0xff] }
 0x924   :  { %27957 = vmatprep.subr.mxu0 %v34173_v9  ;;  %27991 = vmatpush3.msra.mxu1 %v34256_v37  ;;  %v34266_v37 = vld [vmem:[#allocation31_spill] sm:$0xff] }
 0x925   :  { %27958 = vmatpush3.msra.mxu0 %v34260_v32  ;;  %27992 = vmatprep.subr.mxu1 %v34173_v9  ;;  %v34271_v32 = vld [vmem:[#allocation18_spill] sm:$0xff] }
 0x926   :  { %27959 = vmatprep.subr.mxu0 %v34173_v9  ;;  %27993 = vmatpush3.msra.mxu1 %v34257_v49  ;;  %v34268_v49 = vld [vmem:[#allocation32_spill] sm:$0xff] }
 0x927   :  { %27960 = vmatpush3.msra.mxu0 %v34261_v12  ;;  %27994 = vmatprep.subr.mxu1 %v34173_v9  ;;  %v34272_v12 = vld [vmem:[#allocation19_spill] sm:$0xff] }
 0x928   :  { %27961 = vmatprep.subr.mxu0 %v34173_v9  ;;  %27963 = vmatprep.mubr.msk.f32.mxu0 %vm29419_vm1, %v34173_v9 }
 0x929   :  { %27962 = vmatpush3.msra.mxu0 %v34262_v17  ;;  %27995 = vmatpush3.msra.mxu1 %v34258_v24  ;;  %v34269_v24 = vld [vmem:[#allocation15_spill] sm:$0xff]  ;;  %v34273_v17 = vld [vmem:[#allocation21_spill] sm:$0xff] }
 0x92a   :  { %27996 = vmatprep.mubr.msk.f32.mxu1 %vm29419_vm1, %v34173_v9  ;;  %27964 = vmatmul.mubr.f32.vlgmr.msra.gmra.mxu0 %v32115_v18 }
 0x92b   :  { %27977 = vmatprep.subr.mxu0 %v34173_v9  ;;  %27997 = vmatmul.mubr.f32.vlgmr.msra.gmra.mxu1 %v32108_v59 }
 0x92c   :  { %28010 = vmatprep.subr.mxu1 %v34173_v9  ;;  %27978 = vmatpush3.msra.mxu0 %v34263_v25  ;;  %v34274_v25 = vld [vmem:[#allocation23_spill] sm:$0xff] }
 0x92d   :  { %28011 = vmatpush3.msra.mxu1 %v34264_v53  ;;  %27979 = vmatprep.subr.mxu0 %v34173_v9  ;;  %v34275_v53 = vld [vmem:[#allocation20_spill] sm:$0xff] }
 0x92e   :  { %28012 = vmatprep.subr.mxu1 %v34173_v9  ;;  %27980 = vmatpush3.msra.mxu0 %v34265_v16  ;;  %v34276_v16 = vld [vmem:[#allocation22_spill] sm:$0xff] }
 0x92f   :  { %28013 = vmatpush3.msra.mxu1 %v34266_v37  ;;  %27981 = vmatprep.subr.mxu0 %v34173_v9  ;;  %v34277_v37 = vld [vmem:[#allocation25_spill] sm:$0xff] }
 0x930   :  { %28014 = vmatprep.subr.mxu1 %v34173_v9  ;;  %27982 = vmatpush3.msra.mxu0 %v34267_v57  ;;  %v34278_v57 = vld [vmem:[#allocation27_spill] sm:$0xff] }
 0x931   :  { %28015 = vmatpush3.msra.mxu1 %v34268_v49  ;;  %27983 = vmatprep.subr.mxu0 %v34173_v9  ;;  %v34279_v49 = vld [vmem:[#allocation24_spill] sm:$0xff] }
 0x932   :  { %28016 = vmatprep.subr.mxu1 %v34173_v9  ;;  %27984 = vmatpush3.msra.mxu0 %v34269_v24  ;;  %v34280_v24 = vld [vmem:[#allocation46_spill] sm:$0xff] }
 0x933   :  { %27985 = vmatprep.mubr.msk.f32.mxu0 %vm29419_vm1, %v34173_v9  ;;  %28017 = vmatpush3.msra.mxu1 %v34270_v15  ;;  %v34281_v15 = vld [vmem:[#allocation26_spill] sm:$0xff] }
 0x934   :  { %28018 = vmatprep.mubr.msk.f32.mxu1 %vm29419_vm1, %v34173_v9  ;;  %27986 = vmatmul.mubr.f32.vlgmr.msra.gmra.mxu0 %v32108_v59 }
 0x935   :  { %27999 = vmatprep.subr.mxu0 %v34173_v9  ;;  %28019 = vmatmul.mubr.f32.vlgmr.msra.gmra.mxu1 %v32108_v59 }
 0x936   :  { %28032 = vmatprep.subr.mxu1 %v34173_v9  ;;  %28000 = vmatpush3.msra.mxu0 %v34271_v32 }
 0x937   :  { %28033 = vmatpush3.msra.mxu1 %v34271_v32  ;;  %28001 = vmatprep.subr.mxu0 %v34173_v9 }
 0x938   :  { %28034 = vmatprep.subr.mxu1 %v34173_v9  ;;  %28002 = vmatpush3.msra.mxu0 %v34272_v12 }
 0x939   :  { %28035 = vmatpush3.msra.mxu1 %v34272_v12  ;;  %28003 = vmatprep.subr.mxu0 %v34173_v9 }
 0x93a   :  { %28036 = vmatprep.subr.mxu1 %v34173_v9  ;;  %28004 = vmatpush3.msra.mxu0 %v34273_v17 }
 0x93b   :  { %28037 = vmatpush3.msra.mxu1 %v34273_v17  ;;  %28005 = vmatprep.subr.mxu0 %v34173_v9 }
 0x93c   :  { %28038 = vmatprep.subr.mxu1 %v34173_v9  ;;  %28006 = vmatpush3.msra.mxu0 %v34274_v25 }
 0x93d   :  { %28007 = vmatprep.mubr.msk.f32.mxu0 %vm29419_vm1, %v34173_v9  ;;  %28039 = vmatpush3.msra.mxu1 %v34274_v25 }
 0x93e   :  { %28040 = vmatprep.mubr.msk.f32.mxu1 %vm29419_vm1, %v34173_v9  ;;  %28008 = vmatmul.mubr.f32.vlgmr.msra.gmra.mxu0 %v32150_v19 }
 0x93f   :  { %28021 = vmatprep.subr.mxu0 %v34173_v9  ;;  %28041 = vmatmul.mubr.f32.vlgmr.msra.gmra.mxu1 %v32129_v51 }
 0x940   :  { %28054 = vmatprep.subr.mxu1 %v34173_v9  ;;  %28022 = vmatpush3.msra.mxu0 %v34275_v53  ;;  %v34286_v53 = vld [vmem:[#allocation49_spill] sm:$0xff] }
 0x941   :  { %28055 = vmatpush3.msra.mxu1 %v34271_v32  ;;  %28023 = vmatprep.subr.mxu0 %v34173_v9  ;;  %v34282_v32 = vld [vmem:[#allocation47_spill] sm:$0xff] }
 0x942   :  { %28056 = vmatprep.subr.mxu1 %v34173_v9  ;;  %28024 = vmatpush3.msra.mxu0 %v34276_v16  ;;  %v34287_v16 = vld [vmem:[#allocation34_spill] sm:$0xff] }
 0x943   :  { %28057 = vmatpush3.msra.mxu1 %v34272_v12  ;;  %28025 = vmatprep.subr.mxu0 %v34173_v9  ;;  %v34283_v12 = vld [vmem:[#allocation28_spill] sm:$0xff] }
 0x944   :  { %28058 = vmatprep.subr.mxu1 %v34173_v9  ;;  %28026 = vmatpush3.msra.mxu0 %v34277_v37  ;;  %v34288_v37 = vld [vmem:[#allocation35_spill] sm:$0xff] }
 0x945   :  { %28059 = vmatpush3.msra.mxu1 %v34273_v17  ;;  %28027 = vmatprep.subr.mxu0 %v34173_v9  ;;  %v34284_v17 = vld [vmem:[#allocation48_spill] sm:$0xff] }
 0x946   :  { %28060 = vmatprep.subr.mxu1 %v34173_v9  ;;  %28028 = vmatpush3.msra.mxu0 %v34278_v57  ;;  %v34289_v57 = vld [vmem:[#allocation37_spill] sm:$0xff] }
 0x947   :  { %28029 = vmatprep.mubr.msk.f32.mxu0 %vm29419_vm1, %v34173_v9  ;;  %28061 = vmatpush3.msra.mxu1 %v34274_v25  ;;  %v34285_v25 = vld [vmem:[#allocation29_spill] sm:$0xff] }
 0x948   :  { %28062 = vmatprep.mubr.msk.f32.mxu1 %vm29419_vm1, %v34173_v9  ;;  %28030 = vmatmul.mubr.f32.vlgmr.msra.gmra.mxu0 %v32115_v18 }
 0x949   :  { %28043 = vmatprep.subr.mxu0 %v34173_v9  ;;  %28063 = vmatmul.mubr.f32.vlgmr.msra.gmra.mxu1 %v32108_v59 }
 0x94a   :  { %28076 = vmatprep.subr.mxu1 %v34173_v9  ;;  %28044 = vmatpush3.msra.mxu0 %v34279_v49  ;;  %v34290_v49 = vld [vmem:[#allocation39_spill] sm:$0xff] }
 0x94b   :  { %28077 = vmatpush3.msra.mxu1 %v34280_v24  ;;  %28045 = vmatprep.subr.mxu0 %v34173_v9  ;;  %v34291_v24 = vld [vmem:[#allocation36_spill] sm:$0xff] }
 0x94c   :  { %28078 = vmatprep.subr.mxu1 %v34173_v9  ;;  %28046 = vmatpush3.msra.mxu0 %v34281_v15  ;;  %v34292_v15 = vld [vmem:[#allocation38_spill] sm:$0xff] }
 0x94d   :  { %28079 = vmatpush3.msra.mxu1 %v34282_v32  ;;  %28047 = vmatprep.subr.mxu0 %v34173_v9  ;;  %v34293_v32 = vld [vmem:[#allocation41_spill] sm:$0xff] }
 0x94e   :  { %28080 = vmatprep.subr.mxu1 %v34173_v9  ;;  %28048 = vmatpush3.msra.mxu0 %v34283_v12  ;;  %v34294_v12 = vld [vmem:[#allocation43_spill] sm:$0xff] }
 0x94f   :  { %28081 = vmatpush3.msra.mxu1 %v34284_v17  ;;  %28049 = vmatprep.subr.mxu0 %v34173_v9  ;;  %v34295_v17 = vld [vmem:[#allocation40_spill] sm:$0xff] }
 0x950   :  { %28082 = vmatprep.subr.mxu1 %v34173_v9  ;;  %28050 = vmatpush3.msra.mxu0 %v34285_v25  ;;  %v34296_v25 = vld [vmem:[#allocation62_spill] sm:$0xff] }
 0x951   :  { %28051 = vmatprep.mubr.msk.f32.mxu0 %vm29419_vm1, %v34173_v9  ;;  %28083 = vmatpush3.msra.mxu1 %v34286_v53  ;;  %v34297_v53 = vld [vmem:[#allocation42_spill] sm:$0xff] }
 0x952   :  { %28084 = vmatprep.mubr.msk.f32.mxu1 %vm29419_vm1, %v34173_v9  ;;  %28052 = vmatmul.mubr.f32.vlgmr.msra.gmra.mxu0 %v32108_v59 }
 0x953   :  { %28065 = vmatprep.subr.mxu0 %v34173_v9  ;;  %28085 = vmatmul.mubr.f32.vlgmr.msra.gmra.mxu1 %v32108_v59 }
 0x954   :  { %28098 = vmatprep.subr.mxu1 %v34173_v9  ;;  %28066 = vmatpush3.msra.mxu0 %v34287_v16 }
 0x955   :  { %28099 = vmatpush3.msra.mxu1 %v34287_v16  ;;  %28067 = vmatprep.subr.mxu0 %v34173_v9 }
 0x956   :  { %28100 = vmatprep.subr.mxu1 %v34173_v9  ;;  %28068 = vmatpush3.msra.mxu0 %v34288_v37 }
 0x957   :  { %28101 = vmatpush3.msra.mxu1 %v34288_v37  ;;  %28069 = vmatprep.subr.mxu0 %v34173_v9 }
 0x958   :  { %28102 = vmatprep.subr.mxu1 %v34173_v9  ;;  %28070 = vmatpush3.msra.mxu0 %v34289_v57 }
 0x959   :  { %28103 = vmatpush3.msra.mxu1 %v34289_v57  ;;  %28071 = vmatprep.subr.mxu0 %v34173_v9 }
 0x95a   :  { %28104 = vmatprep.subr.mxu1 %v34173_v9  ;;  %28072 = vmatpush3.msra.mxu0 %v34290_v49 }
 0x95b   :  { %28073 = vmatprep.mubr.msk.f32.mxu0 %vm29419_vm1, %v34173_v9  ;;  %28105 = vmatpush3.msra.mxu1 %v34290_v49 }
 0x95c   :  { %28106 = vmatprep.mubr.msk.f32.mxu1 %vm29419_vm1, %v34173_v9  ;;  %28074 = vmatmul.mubr.f32.vlgmr.msra.gmra.mxu0 %v32150_v19 }
 0x95d   :  { %28087 = vmatprep.subr.mxu0 %v34173_v9  ;;  %28107 = vmatmul.mubr.f32.vlgmr.msra.gmra.mxu1 %v32129_v51 }
 0x95e   :  { %28120 = vmatprep.subr.mxu1 %v34173_v9  ;;  %28088 = vmatpush3.msra.mxu0 %v34291_v24  ;;  %v34302_v24 = vld [vmem:[#allocation65_spill] sm:$0xff] }
 0x95f   :  { %28121 = vmatpush3.msra.mxu1 %v34287_v16  ;;  %28089 = vmatprep.subr.mxu0 %v34173_v9  ;;  %v34298_v16 = vld [vmem:[#allocation63_spill] sm:$0xff] }
 0x960   :  { %28122 = vmatprep.subr.mxu1 %v34173_v9  ;;  %28090 = vmatpush3.msra.mxu0 %v34292_v15  ;;  %v34303_v15 = vld [vmem:[#allocation50_spill] sm:$0xff] }
 0x961   :  { %28123 = vmatpush3.msra.mxu1 %v34288_v37  ;;  %28091 = vmatprep.subr.mxu0 %v34173_v9  ;;  %v34299_v37 = vld [vmem:[#allocation44_spill] sm:$0xff] }
 0x962   :  { %28124 = vmatprep.subr.mxu1 %v34173_v9  ;;  %28092 = vmatpush3.msra.mxu0 %v34293_v32  ;;  %v34304_v32 = vld [vmem:[#allocation51_spill] sm:$0xff] }
 0x963   :  { %28125 = vmatpush3.msra.mxu1 %v34289_v57  ;;  %28093 = vmatprep.subr.mxu0 %v34173_v9  ;;  %v34300_v57 = vld [vmem:[#allocation64_spill] sm:$0xff] }
 0x964   :  { %28126 = vmatprep.subr.mxu1 %v34173_v9  ;;  %28094 = vmatpush3.msra.mxu0 %v34294_v12  ;;  %v34305_v12 = vld [vmem:[#allocation53_spill] sm:$0xff] }
 0x965   :  { %28095 = vmatprep.mubr.msk.f32.mxu0 %vm29419_vm1, %v34173_v9  ;;  %28127 = vmatpush3.msra.mxu1 %v34290_v49  ;;  %v34301_v49 = vld [vmem:[#allocation45_spill] sm:$0xff] }
 0x966   :  { %28128 = vmatprep.mubr.msk.f32.mxu1 %vm29419_vm1, %v34173_v9  ;;  %28096 = vmatmul.mubr.f32.vlgmr.msra.gmra.mxu0 %v32115_v18 }
 0x967   :  { %28109 = vmatprep.subr.mxu0 %v34173_v9  ;;  %28129 = vmatmul.mubr.f32.vlgmr.msra.gmra.mxu1 %v32108_v59 }
 0x968   :  { %28142 = vmatprep.subr.mxu1 %v34173_v9  ;;  %28110 = vmatpush3.msra.mxu0 %v34295_v17  ;;  %v34306_v17 = vld [vmem:[#allocation55_spill] sm:$0xff] }
 0x969   :  { %28143 = vmatpush3.msra.mxu1 %v34296_v25  ;;  %28111 = vmatprep.subr.mxu0 %v34173_v9  ;;  %v34307_v25 = vld [vmem:[#allocation52_spill] sm:$0xff] }
 0x96a   :  { %28144 = vmatprep.subr.mxu1 %v34173_v9  ;;  %28112 = vmatpush3.msra.mxu0 %v34297_v53  ;;  %v34308_v53 = vld [vmem:[#allocation54_spill] sm:$0xff] }
 0x96b   :  { %28145 = vmatpush3.msra.mxu1 %v34298_v16  ;;  %28113 = vmatprep.subr.mxu0 %v34173_v9  ;;  %v34309_v16 = vld [vmem:[#allocation57_spill] sm:$0xff] }
 0x96c   :  { %28146 = vmatprep.subr.mxu1 %v34173_v9  ;;  %28114 = vmatpush3.msra.mxu0 %v34299_v37  ;;  %v34310_v37 = vld [vmem:[#allocation59_spill] sm:$0xff] }
 0x96d   :  { %28147 = vmatpush3.msra.mxu1 %v34300_v57  ;;  %28115 = vmatprep.subr.mxu0 %v34173_v9  ;;  %v34311_v57 = vld [vmem:[#allocation56_spill] sm:$0xff] }
 0x96e   :  { %28148 = vmatprep.subr.mxu1 %v34173_v9  ;;  %28116 = vmatpush3.msra.mxu0 %v34301_v49  ;;  %v34312_v49 = vld [vmem:[#allocation78_spill] sm:$0xff] }
 0x96f   :  { %28117 = vmatprep.mubr.msk.f32.mxu0 %vm29419_vm1, %v34173_v9  ;;  %28149 = vmatpush3.msra.mxu1 %v34302_v24  ;;  %v34313_v24 = vld [vmem:[#allocation58_spill] sm:$0xff] }
 0x970   :  { %28150 = vmatprep.mubr.msk.f32.mxu1 %vm29419_vm1, %v34173_v9  ;;  %28118 = vmatmul.mubr.f32.vlgmr.msra.gmra.mxu0 %v32108_v59 }
 0x971   :  { %28131 = vmatprep.subr.mxu0 %v34173_v9  ;;  %28151 = vmatmul.mubr.f32.vlgmr.msra.gmra.mxu1 %v32108_v59 }
 0x972   :  { %28164 = vmatprep.subr.mxu1 %v34173_v9  ;;  %28132 = vmatpush3.msra.mxu0 %v34303_v15 }
 0x973   :  { %28165 = vmatpush3.msra.mxu1 %v34303_v15  ;;  %28133 = vmatprep.subr.mxu0 %v34173_v9 }
 0x974   :  { %28166 = vmatprep.subr.mxu1 %v34173_v9  ;;  %28134 = vmatpush3.msra.mxu0 %v34304_v32 }
 0x975   :  { %28167 = vmatpush3.msra.mxu1 %v34304_v32  ;;  %28135 = vmatprep.subr.mxu0 %v34173_v9 }
 0x976   :  { %28168 = vmatprep.subr.mxu1 %v34173_v9  ;;  %28136 = vmatpush3.msra.mxu0 %v34305_v12 }
 0x977   :  { %28169 = vmatpush3.msra.mxu1 %v34305_v12  ;;  %28137 = vmatprep.subr.mxu0 %v34173_v9 }
 0x978   :  { %28170 = vmatprep.subr.mxu1 %v34173_v9  ;;  %28138 = vmatpush3.msra.mxu0 %v34306_v17 }
 0x979   :  { %28139 = vmatprep.mubr.msk.f32.mxu0 %vm29419_vm1, %v34173_v9  ;;  %28171 = vmatpush3.msra.mxu1 %v34306_v17 }
 0x97a   :  { %28172 = vmatprep.mubr.msk.f32.mxu1 %vm29419_vm1, %v34173_v9  ;;  %28140 = vmatmul.mubr.f32.vlgmr.msra.gmra.mxu0 %v32150_v19 }
 0x97b   :  { %28153 = vmatprep.subr.mxu0 %v34173_v9  ;;  %28173 = vmatmul.mubr.f32.vlgmr.msra.gmra.mxu1 %v32129_v51 }
 0x97c   :  { %28186 = vmatprep.subr.mxu1 %v34173_v9  ;;  %28154 = vmatpush3.msra.mxu0 %v34307_v25  ;;  %v34317_v25 = vld [vmem:[#allocation61_spill] sm:$0xff] }
 0x97d   :  { %28187 = vmatpush3.msra.mxu1 %v34303_v15  ;;  %28155 = vmatprep.subr.mxu0 %v34173_v9  ;;  %v34314_v15 = vld [vmem:[#allocation79_spill] sm:$0xff] }
 0x97e   :  { %28188 = vmatprep.subr.mxu1 %v34173_v9  ;;  %28156 = vmatpush3.msra.mxu0 %v34308_v53  ;;  %v34318_v53 = vld [vmem:[#allocation81_spill] sm:$0xff] }
 0x97f   :  { %28189 = vmatpush3.msra.mxu1 %v34304_v32  ;;  %28157 = vmatprep.subr.mxu0 %v34173_v9  ;;  %v34315_v32 = vld [vmem:[#allocation60_spill] sm:$0xff] }
 0x980   :  { %28190 = vmatprep.subr.mxu1 %v34173_v9  ;;  %28158 = vmatpush3.msra.mxu0 %v34309_v16 }
 0x981   :  { %28191 = vmatpush3.msra.mxu1 %v34305_v12  ;;  %28159 = vmatprep.subr.mxu0 %v34173_v9  ;;  %v34316_v12 = vld [vmem:[#allocation80_spill] sm:$0xff] }
 0x982   :  { %28192 = vmatprep.subr.mxu1 %v34173_v9  ;;  %28160 = vmatpush3.msra.mxu0 %v34310_v37  ;;  %v34319_v37 = vld [vmem:[#allocation66_spill] sm:$0xff] }
 0x983   :  { %28161 = vmatprep.mubr.msk.f32.mxu0 %vm29419_vm1, %v34173_v9  ;;  %28193 = vmatpush3.msra.mxu1 %v34306_v17 }
 0x984   :  { %28194 = vmatprep.mubr.msk.f32.mxu1 %vm29419_vm1, %v34173_v9  ;;  %28162 = vmatmul.mubr.f32.vlgmr.msra.gmra.mxu0 %v32115_v18 }
 0x985   :  { %28175 = vmatprep.subr.mxu0 %v34173_v9  ;;  %28195 = vmatmul.mubr.f32.vlgmr.msra.gmra.mxu1 %v32108_v59 }
 0x986   :  { %28208 = vmatprep.subr.mxu1 %v34173_v9  ;;  %28176 = vmatpush3.msra.mxu0 %v34311_v57  ;;  %v25224_v57 = vld [vmem:[%s33652_s14] ss:$0 sm:$0xff] }
 0x987   :  { %28209 = vmatpush3.msra.mxu1 %v34312_v49  ;;  %28177 = vmatprep.subr.mxu0 %v34173_v9  ;;  %v34320_v49 = vld [vmem:[#allocation67_spill] sm:$0xff] }
 0x988   :  { %28210 = vmatprep.subr.mxu1 %v34173_v9  ;;  %28178 = vmatpush3.msra.mxu0 %v34313_v24 }
 0x989   :  { %28211 = vmatpush3.msra.mxu1 %v34314_v15  ;;  %28179 = vmatprep.subr.mxu0 %v34173_v9  ;;  %v34321_v15 = vld [vmem:[#allocation69_spill] sm:$0xff] }
 0x98a   :  { %28212 = vmatprep.subr.mxu1 %v34173_v9  ;;  %28180 = vmatpush3.msra.mxu0 %v34315_v32 }
 0x98b   :  { %28213 = vmatpush3.msra.mxu1 %v34316_v12  ;;  %28181 = vmatprep.subr.mxu0 %v34173_v9  ;;  %v12255_v17 = vpop.f32.mrf.mxu1 }
 0x98c   :  { %28214 = vmatprep.subr.mxu1 %v34173_v9  ;;  %28182 = vmatpush3.msra.mxu0 %v34317_v25  ;;  %v34322_v25 = vld [vmem:[#allocation71_spill] sm:$0xff] }
 0x98d   :  { %28183 = vmatprep.mubr.msk.f32.mxu0 %vm29419_vm1, %v34173_v9  ;;  %28215 = vmatpush3.msra.mxu1 %v34318_v53  ;;  %v27792_v16 = vpop.f32.mrf.mxu1 }
 0x98e   :  { %28216 = vmatprep.mubr.msk.f32.mxu1 %vm29419_vm1, %v34173_v9  ;;  %28184 = vmatmul.mubr.f32.vlgmr.msra.gmra.mxu0 %v32108_v59  ;;  %v34323_v16 = vld [vmem:[#allocation68_spill] sm:$0xff] }
 0x98f   :  { %28197 = vmatprep.subr.mxu0 %v34173_v9  ;;  %28217 = vmatmul.mubr.f32.vlgmr.msra.gmra.mxu1 %v32108_v59 }
 0x990   :  { %28230 = vmatprep.subr.mxu1 %v34173_v9  ;;  %28198 = vmatpush3.msra.mxu0 %v34319_v37 }
 0x991   :  { %28231 = vmatpush3.msra.mxu1 %v34319_v37  ;;  %28199 = vmatprep.subr.mxu0 %v34173_v9 }
 0x992   :  { %28232 = vmatprep.subr.mxu1 %v34173_v9  ;;  %28200 = vmatpush3.msra.mxu0 %v34320_v49 }
 0x993   :  { %28233 = vmatpush3.msra.mxu1 %v34320_v49  ;;  %28201 = vmatprep.subr.mxu0 %v34173_v9  ;;  %v12104_v24 = vpop.f32.mrf.mxu0 }
 0x994   :  { %28234 = vmatprep.subr.mxu1 %v34173_v9  ;;  %28202 = vmatpush3.msra.mxu0 %v34321_v15  ;;  %v12105_v32 = vadd.f32 %v25224_v57, %v12104_v24  ;;  %v34325_v57 = vld [vmem:[#allocation73_spill] sm:$0xff]  ;;  %v34328_v24 = vld [vmem:[#allocation94_spill] sm:$0xff] }
 0x995   :  { %28235 = vmatpush3.msra.mxu1 %v34321_v15  ;;  %28203 = vmatprep.subr.mxu0 %v34173_v9  ;;  %v27757_v12 = vpop.f32.mrf.mxu0 }
 0x996   :  { %28236 = vmatprep.subr.mxu1 %v34173_v9  ;;  %28204 = vmatpush3.msra.mxu0 %v34322_v25  ;;  %v32419_v53 = vadd.f32 %v12255_v17, %v12105_v32  ;;  %v34324_v17 = vld [vmem:[#allocation70_spill] sm:$0xff]  ;;  %v34330_v32 = vld [vmem:[#allocation95_spill] sm:$0xff]  ;;  %v34331_v12 = vld [vmem:[#allocation76_spill] sm:$0xff] }
 0x997   :  { %28205 = vmatprep.mubr.msk.f32.mxu0 %vm29419_vm1, %v34173_v9  ;;  %28237 = vmatpush3.msra.mxu1 %v34322_v25 }
 0x998   :  { %28238 = vmatprep.mubr.msk.f32.mxu1 %vm29419_vm1, %v34173_v9  ;;  %28206 = vmatmul.mubr.f32.vlgmr.msra.gmra.mxu0 %v32150_v19 }
 0x999   :  { %28219 = vmatprep.subr.mxu0 %v34173_v9  ;;  %28239 = vmatmul.mubr.f32.vlgmr.msra.gmra.mxu1 %v32129_v51 }
 0x99a   :  { %28252 = vmatprep.subr.mxu1 %v34173_v9  ;;  %28220 = vmatpush3.msra.mxu0 %v34323_v16  ;;  %v34333_v16 = vld [vmem:[#allocation77_spill] sm:$0xff] }
 0x99b   :  { %28253 = vmatpush3.msra.mxu1 %v34319_v37  ;;  %28221 = vmatprep.subr.mxu0 %v34173_v9  ;;  %v34326_v37 = vld [vmem:[#allocation75_spill] sm:$0xff] }
 0x99c   :  { %28254 = vmatprep.subr.mxu1 %v34173_v9  ;;  %28222 = vmatpush3.msra.mxu0 %v34324_v17  ;;  %v34334_v17 = vld [vmem:[#allocation97_spill] sm:$0xff] }
 0x99d   :  { %28255 = vmatpush3.msra.mxu1 %v34320_v49  ;;  %28223 = vmatprep.subr.mxu0 %v34173_v9  ;;  %v34327_v49 = vld [vmem:[#allocation72_spill] sm:$0xff] }
 0x99e   :  { %28256 = vmatprep.subr.mxu1 %v34173_v9  ;;  %28224 = vmatpush3.msra.mxu0 %v34325_v57 }
 0x99f   :  { %28257 = vmatpush3.msra.mxu1 %v34321_v15  ;;  %28225 = vmatprep.subr.mxu0 %v34173_v9  ;;  %v34329_v15 = vld [vmem:[#allocation74_spill] sm:$0xff] }
 0x9a0   :  { %28258 = vmatprep.subr.mxu1 %v34173_v9  ;;  %28226 = vmatpush3.msra.mxu0 %v34326_v37 }
 0x9a1   :  { %28227 = vmatprep.mubr.msk.f32.mxu0 %vm29419_vm1, %v34173_v9  ;;  %28259 = vmatpush3.msra.mxu1 %v34322_v25  ;;  %v34332_v25 = vld [vmem:[#allocation96_spill] sm:$0xff] }
 0x9a2   :  { %28260 = vmatprep.mubr.msk.f32.mxu1 %vm29419_vm1, %v34173_v9  ;;  %28228 = vmatmul.mubr.f32.vlgmr.msra.gmra.mxu0 %v32115_v18 }
 0x9a3   :  { %28241 = vmatprep.subr.mxu0 %v34173_v9  ;;  %28261 = vmatmul.mubr.f32.vlgmr.msra.gmra.mxu1 %v32108_v59 }
 0x9a4   :  { %28274 = vmatprep.subr.mxu1 %v34173_v9  ;;  %28242 = vmatpush3.msra.mxu0 %v34327_v49  ;;  %v34335_v49 = vld [vmem:[#allocation82_spill] sm:$0xff] }
 0x9a5   :  { %28275 = vmatpush3.msra.mxu1 %v34328_v24  ;;  %28243 = vmatprep.subr.mxu0 %v34173_v9  ;;  %v34336_v24 = vld [vmem:[#allocation83_spill] sm:$0xff] }
 0x9a6   :  { %28276 = vmatprep.subr.mxu1 %v34173_v9  ;;  %28244 = vmatpush3.msra.mxu0 %v34329_v15  ;;  %v34337_v15 = vld [vmem:[#allocation85_spill] sm:$0xff] }
 0x9a7   :  { %28277 = vmatpush3.msra.mxu1 %v34330_v32  ;;  %28245 = vmatprep.subr.mxu0 %v34173_v9  ;;  %v34338_v32 = vld [vmem:[#allocation87_spill] sm:$0xff] }
 0x9a8   :  { %28278 = vmatprep.subr.mxu1 %v34173_v9  ;;  %28246 = vmatpush3.msra.mxu0 %v34331_v12 }
 0x9a9   :  { %28279 = vmatpush3.msra.mxu1 %v34332_v25  ;;  %28247 = vmatprep.subr.mxu0 %v34173_v9 }
 0x9aa   :  { %28280 = vmatprep.subr.mxu1 %v34173_v9  ;;  %28248 = vmatpush3.msra.mxu0 %v34333_v16 }
 0x9ab   :  { %28249 = vmatprep.mubr.msk.f32.mxu0 %vm29419_vm1, %v34173_v9  ;;  %28281 = vmatpush3.msra.mxu1 %v34334_v17  ;;  %v12448_v57 = vpop.f32.mrf.mxu1 }
 0x9ac   :  { %28282 = vmatprep.mubr.msk.f32.mxu1 %vm29419_vm1, %v34173_v9  ;;  %28250 = vmatmul.mubr.f32.vlgmr.msra.gmra.mxu0 %v32108_v59 }
 0x9ad   :  { %28263 = vmatprep.subr.mxu0 %v34173_v9  ;;  %28283 = vmatmul.mubr.f32.vlgmr.msra.gmra.mxu1 %v32108_v59  ;;  %v27862_v37 = vpop.f32.mrf.mxu1 }
 0x9ae   :  { %28296 = vmatprep.subr.mxu1 %v34173_v9  ;;  %28264 = vmatpush3.msra.mxu0 %v34335_v49  ;;  %v34339_v37 = vld [vmem:[#allocation84_spill] sm:$0xff] }
 0x9af   :  { %28297 = vmatpush3.msra.mxu1 %v34335_v49  ;;  %28265 = vmatprep.subr.mxu0 %v34173_v9 }
 0x9b0   :  { %28298 = vmatprep.subr.mxu1 %v34173_v9  ;;  %28266 = vmatpush3.msra.mxu0 %v34336_v24 }
 0x9b1   :  { %28299 = vmatpush3.msra.mxu1 %v34336_v24  ;;  %28267 = vmatprep.subr.mxu0 %v34173_v9 }
 0x9b2   :  { %28300 = vmatprep.subr.mxu1 %v34173_v9  ;;  %28268 = vmatpush3.msra.mxu0 %v34337_v15 }
 0x9b3   :  { %28301 = vmatpush3.msra.mxu1 %v34337_v15  ;;  %28269 = vmatprep.subr.mxu0 %v34173_v9 }
 0x9b4   :  { %28302 = vmatprep.subr.mxu1 %v34173_v9  ;;  %28270 = vmatpush3.msra.mxu0 %v34338_v32  ;;  %v12359_v12 = vpop.f32.mrf.mxu0 }
 0x9b5   :  { %28271 = vmatprep.mubr.msk.f32.mxu0 %vm29419_vm1, %v34173_v9  ;;  %28303 = vmatpush3.msra.mxu1 %v34338_v32  ;;  %v12360_v25 = vadd.f32 %v12359_v12, %v32419_v53  ;;  %v34340_v53 = vld [vmem:[#allocation86_spill] sm:$0xff]  ;;  %v34346_v12 = vld [vmem:[#allocation111_spill] sm:$0xff] }
 0x9b6   :  { %28304 = vmatprep.mubr.msk.f32.mxu1 %vm29419_vm1, %v34173_v9  ;;  %28272 = vmatmul.mubr.f32.vlgmr.msra.gmra.mxu0 %v32150_v19  ;;  %v27827_v16 = vpop.f32.mrf.mxu0 }
 0x9b7   :  { %28285 = vmatprep.subr.mxu0 %v34173_v9  ;;  %28305 = vmatmul.mubr.f32.vlgmr.msra.gmra.mxu1 %v32129_v51  ;;  %v32496_v17 = vadd.f32 %v12448_v57, %v12360_v25  ;;  %v34341_v57 = vld [vmem:[#allocation89_spill] sm:$0xff]  ;;  %v34347_v25 = vld [vmem:[#allocation92_spill] sm:$0xff] }
 0x9b8   :  { %28318 = vmatprep.subr.mxu1 %v34173_v9  ;;  %28286 = vmatpush3.msra.mxu0 %v34339_v37  ;;  %v34348_v16 = vld [vmem:[#allocation112_spill] sm:$0xff]  ;;  %v34349_v37 = vld [vmem:[#allocation93_spill] sm:$0xff] }
 0x9b9   :  { %28319 = vmatpush3.msra.mxu1 %v34335_v49  ;;  %28287 = vmatprep.subr.mxu0 %v34173_v9  ;;  %v34342_v49 = vld [vmem:[#allocation91_spill] sm:$0xff] }
 0x9ba   :  { %28320 = vmatprep.subr.mxu1 %v34173_v9  ;;  %28288 = vmatpush3.msra.mxu0 %v34340_v53  ;;  %v34350_v53 = vld [vmem:[#allocation113_spill] sm:$0xff] }
 0x9bb   :  { %28321 = vmatpush3.msra.mxu1 %v34336_v24  ;;  %28289 = vmatprep.subr.mxu0 %v34173_v9  ;;  %v34343_v24 = vld [vmem:[#allocation88_spill] sm:$0xff] }
 0x9bc   :  { %28322 = vmatprep.subr.mxu1 %v34173_v9  ;;  %28290 = vmatpush3.msra.mxu0 %v34341_v57  ;;  %v34351_v57 = vld [vmem:[#allocation98_spill] sm:$0xff] }
 0x9bd   :  { %28323 = vmatpush3.msra.mxu1 %v34337_v15  ;;  %28291 = vmatprep.subr.mxu0 %v34173_v9  ;;  %v34344_v15 = vld [vmem:[#allocation110_spill] sm:$0xff] }
 0x9be   :  { %28324 = vmatprep.subr.mxu1 %v34173_v9  ;;  %28292 = vmatpush3.msra.mxu0 %v34342_v49 }
 0x9bf   :  { %28293 = vmatprep.mubr.msk.f32.mxu0 %vm29419_vm1, %v34173_v9  ;;  %28325 = vmatpush3.msra.mxu1 %v34338_v32  ;;  %v34345_v32 = vld [vmem:[#allocation90_spill] sm:$0xff] }
 0x9c0   :  { %28326 = vmatprep.mubr.msk.f32.mxu1 %vm29419_vm1, %v34173_v9  ;;  %28294 = vmatmul.mubr.f32.vlgmr.msra.gmra.mxu0 %v32115_v18 }
 0x9c1   :  { %28307 = vmatprep.subr.mxu0 %v34173_v9  ;;  %28327 = vmatmul.mubr.f32.vlgmr.msra.gmra.mxu1 %v32108_v59 }
 0x9c2   :  { %28340 = vmatprep.subr.mxu1 %v34173_v9  ;;  %28308 = vmatpush3.msra.mxu0 %v34343_v24  ;;  %v34352_v24 = vld [vmem:[#allocation99_spill] sm:$0xff] }
 0x9c3   :  { %28341 = vmatpush3.msra.mxu1 %v34344_v15  ;;  %28309 = vmatprep.subr.mxu0 %v34173_v9 }
 0x9c4   :  { %28342 = vmatprep.subr.mxu1 %v34173_v9  ;;  %28310 = vmatpush3.msra.mxu0 %v34345_v32  ;;  %v34353_v32 = vld [vmem:[#allocation101_spill] sm:$0xff] }
 0x9c5   :  { %28343 = vmatpush3.msra.mxu1 %v34346_v12  ;;  %28311 = vmatprep.subr.mxu0 %v34173_v9  ;;  %v34354_v12 = vld [vmem:[#allocation103_spill] sm:$0xff] }
 0x9c6   :  { %28344 = vmatprep.subr.mxu1 %v34173_v9  ;;  %28312 = vmatpush3.msra.mxu0 %v34347_v25  ;;  %v34355_v25 = vld [vmem:[#allocation100_spill] sm:$0xff] }
 0x9c7   :  { %28345 = vmatpush3.msra.mxu1 %v34348_v16  ;;  %28313 = vmatprep.subr.mxu0 %v34173_v9 }
 0x9c8   :  { %28346 = vmatprep.subr.mxu1 %v34173_v9  ;;  %28314 = vmatpush3.msra.mxu0 %v34349_v37  ;;  %v34356_v37 = vld [vmem:[#allocation102_spill] sm:$0xff] }
 0x9c9   :  { %28315 = vmatprep.mubr.msk.f32.mxu0 %vm29419_vm1, %v34173_v9  ;;  %28347 = vmatpush3.msra.mxu1 %v34350_v53 }
 0x9ca   :  { %28348 = vmatprep.mubr.msk.f32.mxu1 %vm29419_vm1, %v34173_v9  ;;  %28316 = vmatmul.mubr.f32.vlgmr.msra.gmra.mxu0 %v32108_v59 }
 0x9cb   :  { %28329 = vmatprep.subr.mxu0 %v34173_v9  ;;  %28349 = vmatmul.mubr.f32.vlgmr.msra.gmra.mxu1 %v32108_v59 }
 0x9cc   :  { %28362 = vmatprep.subr.mxu1 %v34173_v9  ;;  %28330 = vmatpush3.msra.mxu0 %v34351_v57 }
 0x9cd   :  { %28363 = vmatpush3.msra.mxu1 %v34351_v57  ;;  %28331 = vmatprep.subr.mxu0 %v34173_v9  ;;  %v32546_v49 = vpop.f32.mrf.mxu1 }
 0x9ce   :  { %28364 = vmatprep.subr.mxu1 %v34173_v9  ;;  %28332 = vmatpush3.msra.mxu0 %v34352_v24 }
 0x9cf   :  { %28365 = vmatpush3.msra.mxu1 %v34352_v24  ;;  %28333 = vmatprep.subr.mxu0 %v34173_v9  ;;  %v27932_v15 = vpop.f32.mrf.mxu1 }
 0x9d0   :  { %28366 = vmatprep.subr.mxu1 %v34173_v9  ;;  %28334 = vmatpush3.msra.mxu0 %v34353_v32 }
 0x9d1   :  { %28367 = vmatpush3.msra.mxu1 %v34353_v32  ;;  %28335 = vmatprep.subr.mxu0 %v34173_v9 }
 0x9d2   :  { %28368 = vmatprep.subr.mxu1 %v34173_v9  ;;  %28336 = vmatpush3.msra.mxu0 %v34354_v12 }
 0x9d3   :  { %28337 = vmatprep.mubr.msk.f32.mxu0 %vm29419_vm1, %v34173_v9  ;;  %28369 = vmatpush3.msra.mxu1 %v34354_v12 }
 0x9d4   :  { %28370 = vmatprep.mubr.msk.f32.mxu1 %vm29419_vm1, %v34173_v9  ;;  %28338 = vmatmul.mubr.f32.vlgmr.msra.gmra.mxu0 %v32150_v19 }
 0x9d5   :  { %28351 = vmatprep.subr.mxu0 %v34173_v9  ;;  %28371 = vmatmul.mubr.f32.vlgmr.msra.gmra.mxu1 %v32129_v51 }
 0x9d6   :  { %28384 = vmatprep.subr.mxu1 %v34173_v9  ;;  %28352 = vmatpush3.msra.mxu0 %v34355_v25  ;;  %v32568_v16 = vpop.f32.mrf.mxu0 }
 0x9d7   :  { %28385 = vmatpush3.msra.mxu1 %v34351_v57  ;;  %28353 = vmatprep.subr.mxu0 %v34173_v9  ;;  %v34358_v57 = vld [vmem:[#allocation107_spill] sm:$0xff] }
 0x9d8   :  { %28386 = vmatprep.subr.mxu1 %v34173_v9  ;;  %28354 = vmatpush3.msra.mxu0 %v34356_v37  ;;  %v12916_v53 = vpop.f32.mrf.mxu1  ;;  %v27897_v15 = vpop.f32.mrf.mxu0 }
 0x9d9   :  { %28387 = vmatpush3.msra.mxu1 %v34352_v24  ;;  %28355 = vmatprep.subr.mxu0 %v34173_v9  ;;  %v34360_v24 = vld [vmem:[#allocation126_spill] sm:$0xff]  ;;  %v34362_v15 = vld [vmem:[#allocation127_spill] sm:$0xff] }
 0x9da   :  { %28388 = vmatprep.subr.mxu1 %v34173_v9  ;;  %28356 = vmatpush3.msra.mxu0 %v34357_v30  ;;  %v27954_v25 = vpop.f32.mrf.mxu1  ;;  %v34359_v30 = vld [vmem:[#allocation104_spill] sm:$0xff] }
 0x9db   :  { %28389 = vmatpush3.msra.mxu1 %v34353_v32  ;;  %28357 = vmatprep.subr.mxu0 %v34173_v9 }
 0x9dc   :  { %28390 = vmatprep.subr.mxu1 %v34173_v9  ;;  %28358 = vmatpush3.msra.mxu0 %v34358_v57 }
 0x9dd   :  { %28359 = vmatprep.mubr.msk.f32.mxu0 %vm29419_vm1, %v34173_v9  ;;  %28391 = vmatpush3.msra.mxu1 %v34354_v12  ;;  %v34361_v12 = vld [vmem:[#allocation106_spill] sm:$0xff] }
 0x9de   :  { %28392 = vmatprep.mubr.msk.f32.mxu1 %vm29419_vm1, %v34173_v9  ;;  %28360 = vmatmul.mubr.f32.vlgmr.msra.gmra.mxu0 %v32115_v18 }
 0x9df   :  { %28373 = vmatprep.subr.mxu0 %v34173_v9  ;;  %28393 = vmatmul.mubr.f32.vlgmr.msra.gmra.mxu1 %v32108_v59 }
 0x9e0   :  { %28406 = vmatprep.subr.mxu1 %v34173_v9  ;;  %28374 = vmatpush3.msra.mxu0 %v34359_v30 }
 0x9e1   :  { %28407 = vmatpush3.msra.mxu1 %v34360_v24  ;;  %28375 = vmatprep.subr.mxu0 %v34173_v9  ;;  %v13073_v32 = vpop.f32.mrf.mxu1  ;;  %v34364_v24 = vld [vmem:[#allocation128_spill] sm:$0xff] }
 0x9e2   :  { %28408 = vmatprep.subr.mxu1 %v34173_v9  ;;  %28376 = vmatpush3.msra.mxu0 %v34361_v12  ;;  %v12825_v37 = vpop.f32.mrf.mxu0  ;;  %v34366_v12 = vld [vmem:[#allocation129_spill] sm:$0xff] }
 0x9e3   :  { %28409 = vmatpush3.msra.mxu1 %v34362_v15  ;;  %28377 = vmatprep.subr.mxu0 %v34173_v9  ;;  %v12917_v25 = vadd.f32 %v12916_v53, %v12825_v37  ;;  %v27976_v57 = vpop.f32.mrf.mxu1  ;;  %v34368_v15 = vld [vmem:[#allocation115_spill] sm:$0xff] }
 0x9e4   :  { %28410 = vmatprep.subr.mxu1 %v34173_v9  ;;  %28378 = vmatpush3.msra.mxu0 %v34363_v23  ;;  %v27943_v30 = vpop.f32.mrf.mxu0  ;;  %v34367_v23 = vld [vmem:[#allocation114_spill] sm:$0xff] }
 0x9e5   :  { %28411 = vmatpush3.msra.mxu1 %v34364_v24  ;;  %28379 = vmatprep.subr.mxu0 %v34173_v9 }
 0x9e6   :  { %28412 = vmatprep.subr.mxu1 %v34173_v9  ;;  %28380 = vmatpush3.msra.mxu0 %v34365_v33 }
 0x9e7   :  { %28381 = vmatprep.mubr.msk.f32.mxu0 %vm29419_vm1, %v34173_v9  ;;  %28413 = vmatpush3.msra.mxu1 %v34366_v12  ;;  %v34369_v12 = vld [vmem:[#allocation117_spill] sm:$0xff] }
 0x9e8   :  { %28414 = vmatprep.mubr.msk.f32.mxu1 %vm29419_vm1, %v34173_v9  ;;  %28382 = vmatmul.mubr.f32.vlgmr.msra.gmra.mxu0 %v32108_v59 }
 0x9e9   :  { %28395 = vmatprep.subr.mxu0 %v34173_v9  ;;  %28415 = vmatmul.mubr.f32.vlgmr.msra.gmra.mxu1 %v32108_v59 }
 0x9ea   :  { %28428 = vmatprep.subr.mxu1 %v34173_v9  ;;  %28396 = vmatpush3.msra.mxu0 %v34367_v23  ;;  %v12996_v53 = vpop.f32.mrf.mxu0 }
 0x9eb   :  { %28429 = vmatpush3.msra.mxu1 %v34367_v23  ;;  %28397 = vmatprep.subr.mxu0 %v34173_v9  ;;  %v12997_v33 = vadd.f32 %v12996_v53, %v12917_v25  ;;  %v13231_v37 = vpop.f32.mrf.mxu1  ;;  %v34370_v25 = vld [vmem:[#allocation119_spill] sm:$0xff] }
 0x9ec   :  { %28430 = vmatprep.subr.mxu1 %v34173_v9  ;;  %28398 = vmatpush3.msra.mxu0 %v34368_v15  ;;  %v27965_v57 = vpop.f32.mrf.mxu0 }
 0x9ed   :  { %28431 = vmatpush3.msra.mxu1 %v34368_v15  ;;  %28399 = vmatprep.subr.mxu0 %v34173_v9  ;;  %v27998_v30 = vpop.f32.mrf.mxu1  ;;  %v13074_v24 = vadd.f32 %v13073_v32, %v12997_v33  ;;  %v34371_v32 = vld [vmem:[#allocation116_spill] sm:$0xff] }
 0x9ee   :  { %28432 = vmatprep.subr.mxu1 %v34173_v9  ;;  %28400 = vmatpush3.msra.mxu0 %v34369_v12  ;;  %v34372_v30 = vld [vmem:[#allocation118_spill] sm:$0xff] }
 0x9ef   :  { %28433 = vmatpush3.msra.mxu1 %v34369_v12  ;;  %28401 = vmatprep.subr.mxu0 %v34173_v9 }
 0x9f0   :  { %28434 = vmatprep.subr.mxu1 %v34173_v9  ;;  %28402 = vmatpush3.msra.mxu0 %v34370_v25 }
 0x9f1   :  { %28403 = vmatprep.mubr.msk.f32.mxu0 %vm29419_vm1, %v34173_v9  ;;  %28435 = vmatpush3.msra.mxu1 %v34370_v25 }
 0x9f2   :  { %28436 = vmatprep.mubr.msk.f32.mxu1 %vm29419_vm1, %v34173_v9  ;;  %28404 = vmatmul.mubr.f32.vlgmr.msra.gmra.mxu0 %v32150_v19 }
 0x9f3   :  { %28417 = vmatprep.subr.mxu0 %v34173_v9  ;;  %28437 = vmatmul.mubr.f32.vlgmr.msra.gmra.mxu1 %v32129_v51 }
 0x9f4   :  { %28450 = vmatprep.subr.mxu1 %v34173_v9  ;;  %28418 = vmatpush3.msra.mxu0 %v34371_v32  ;;  %v13156_v53 = vpop.f32.mrf.mxu0  ;;  %v34373_v32 = vld [vmem:[#allocation121_spill] sm:$0xff] }
 0x9f5   :  { %28451 = vmatpush3.msra.mxu1 %v34367_v23  ;;  %28419 = vmatprep.subr.mxu0 %v34173_v9  ;;  %v13157_v33 = vadd.f32 %v13156_v53, %v13074_v24  ;;  %v13401_v57 = vpop.f32.mrf.mxu1  ;;  %v34374_v23 = vld [vmem:[#allocation123_spill] sm:$0xff] }
 0x9f6   :  { %28452 = vmatprep.subr.mxu1 %v34173_v9  ;;  %28420 = vmatpush3.msra.mxu0 %v34372_v30  ;;  %v27987_v35 = vpop.f32.mrf.mxu0  ;;  %v34378_v53 = vld [vmem:[#allocation143_spill] sm:$0xff]  ;;  %v34379_v30 = vld [vmem:[#allocation124_spill] sm:$0xff] }
 0x9f7   :  { %28453 = vmatpush3.msra.mxu1 %v34368_v15  ;;  %28421 = vmatprep.subr.mxu0 %v34173_v9  ;;  %v32642_v8 = vadd.f32 %v13231_v37, %v13157_v33  ;;  %v28020_v20 = vpop.f32.mrf.mxu1  ;;  %v34376_v37 = vld [vmem:[#allocation142_spill] sm:$0xff] }
 0x9f8   :  { %28454 = vmatprep.subr.mxu1 %v34173_v9  ;;  %28422 = vmatpush3.msra.mxu0 %v34373_v32  ;;  %v34375_v20 = vld [vmem:[#allocation120_spill] sm:$0xff] }
 0x9f9   :  { %28455 = vmatpush3.msra.mxu1 %v34369_v12  ;;  %28423 = vmatprep.subr.mxu0 %v34173_v9  ;;  %v34377_v12 = vld [vmem:[#allocation122_spill] sm:$0xff]  ;;  %v34380_v32 = vld [vmem:[#allocation144_spill] sm:$0xff] }
 0x9fa   :  { %28456 = vmatprep.subr.mxu1 %v34173_v9  ;;  %28424 = vmatpush3.msra.mxu0 %v34374_v23  ;;  %v12568_v23 = vadd.f32 %v32568_v16, %v32496_v17 }
 0x9fb   :  { %28425 = vmatprep.mubr.msk.f32.mxu0 %vm29419_vm1, %v34173_v9  ;;  %28457 = vmatpush3.msra.mxu1 %v34370_v25 }
 0x9fc   :  { %28458 = vmatprep.mubr.msk.f32.mxu1 %vm29419_vm1, %v34173_v9  ;;  %28426 = vmatmul.mubr.f32.vlgmr.msra.gmra.mxu0 %v32115_v18 }
 0x9fd   :  { %28439 = vmatprep.subr.mxu0 %v34173_v9  ;;  %28459 = vmatmul.mubr.f32.vlgmr.msra.gmra.mxu1 %v32108_v59 }
 0x9fe   :  { %28472 = vmatprep.subr.mxu1 %v34173_v9  ;;  %28440 = vmatpush3.msra.mxu0 %v34375_v20  ;;  %v13310_v35 = vpop.f32.mrf.mxu0  ;;  %v34382_v20 = vld [vmem:[#allocation145_spill] sm:$0xff] }
 0x9ff   :  { %28473 = vmatpush3.msra.mxu1 %v34376_v37  ;;  %28441 = vmatprep.subr.mxu0 %v34173_v9  ;;  %v13402_v15 = vadd.f32 %v13401_v57, %v13310_v35  ;;  %v13558_v24 = vpop.f32.mrf.mxu1  ;;  %v34381_v57 = vld [vmem:[#allocation125_spill] sm:$0xff]  ;;  %v12655_v35 = vadd.f32 %v32546_v49, %v12568_v23  ;;  %v34383_v37 = vld [vmem:[#allocation130_spill] sm:$0xff]  ;;  %v34388_v23 = vld [vmem:[#allocation132_spill] sm:$0xff] }
 0xa00   :  { %28474 = vmatprep.subr.mxu1 %v34173_v9  ;;  %28442 = vmatpush3.msra.mxu0 %v34377_v12  ;;  %v28009_v25 = vpop.f32.mrf.mxu0 }
 0xa01   :  { %28475 = vmatpush3.msra.mxu1 %v34378_v53  ;;  %28443 = vmatprep.subr.mxu0 %v34173_v9  ;;  %v28042_v33 = vpop.f32.mrf.mxu1  ;;  %v34384_v25 = vld [vmem:[#allocation131_spill] sm:$0xff] }
 0xa02   :  { %28476 = vmatprep.subr.mxu1 %v34173_v9  ;;  %28444 = vmatpush3.msra.mxu0 %v34379_v30  ;;  %v34385_v30 = vld [vmem:[#allocation133_spill] sm:$0xff] }
 0xa03   :  { %28477 = vmatpush3.msra.mxu1 %v34380_v32  ;;  %28445 = vmatprep.subr.mxu0 %v34173_v9  ;;  %v34386_v32 = vld [vmem:[#allocation210_spill] sm:$0xff] }
 0xa04   :  { %28478 = vmatprep.subr.mxu1 %v34173_v9  ;;  %28446 = vmatpush3.msra.mxu0 %v34381_v57  ;;  %v12658_v57 = vadd.f32 %v12655_v35, %v34386_v32  ;;  %v34390_v32 = vld [vmem:[#allocation137_spill] sm:$0xff] }
 0xa05   :  { %28447 = vmatprep.mubr.msk.f32.mxu0 %vm29419_vm1, %v34173_v9  ;;  %28479 = vmatpush3.msra.mxu1 %v34382_v20 }
 0xa06   :  { %28480 = vmatprep.mubr.msk.f32.mxu1 %vm29419_vm1, %v34173_v9  ;;  %28448 = vmatmul.mubr.f32.vlgmr.msra.gmra.mxu0 %v32108_v59 }
 0xa07   :  { %28461 = vmatprep.subr.mxu0 %v34173_v9  ;;  %28481 = vmatmul.mubr.f32.vlgmr.msra.gmra.mxu1 %v32108_v59 }
 0xa08   :  { %28494 = vmatprep.subr.mxu1 %v34173_v9  ;;  %28462 = vmatpush3.msra.mxu0 %v34383_v37  ;;  %v13481_v17 = vpop.f32.mrf.mxu0 }
 0xa09   :  { %28495 = vmatpush3.msra.mxu1 %v34383_v37  ;;  %28463 = vmatprep.subr.mxu0 %v34173_v9  ;;  %v13482_v16 = vadd.f32 %v13481_v17, %v13402_v15  ;;  %v13716_v12 = vpop.f32.mrf.mxu1  ;;  %v34387_v15 = vld [vmem:[#allocation135_spill] sm:$0xff] }
 0xa0a   :  { %28496 = vmatprep.subr.mxu1 %v34173_v9  ;;  %28464 = vmatpush3.msra.mxu0 %v34384_v25  ;;  %v28031_v53 = vpop.f32.mrf.mxu0 }
 0xa0b   :  { %28497 = vmatpush3.msra.mxu1 %v34384_v25  ;;  %28465 = vmatprep.subr.mxu0 %v34173_v9  ;;  %v28064_v49 = vpop.f32.mrf.mxu1  ;;  %v13559_v33 = vadd.f32 %v13558_v24, %v13482_v16  ;;  %v34389_v16 = vld [vmem:[#allocation134_spill] sm:$0xff] }
 0xa0c   :  { %28498 = vmatprep.subr.mxu1 %v34173_v9  ;;  %28466 = vmatpush3.msra.mxu0 %v34385_v30 }
 0xa0d   :  { %28499 = vmatpush3.msra.mxu1 %v34385_v30  ;;  %28467 = vmatprep.subr.mxu0 %v34173_v9 }
 0xa0e   :  { %28500 = vmatprep.subr.mxu1 %v34173_v9  ;;  %28468 = vmatpush3.msra.mxu0 %v34387_v15 }
 0xa0f   :  { %28469 = vmatprep.mubr.msk.f32.mxu0 %vm29419_vm1, %v34173_v9  ;;  %28501 = vmatpush3.msra.mxu1 %v34387_v15 }
 0xa10   :  { %28502 = vmatprep.mubr.msk.f32.mxu1 %vm29419_vm1, %v34173_v9  ;;  %12659 = vxpose.xlu1.b32.start.end [1/1] (short) (narrow) %v12658_v57, 32 }
 0xa11   :  { %28470 = vmatmul.mubr.f32.vlgmr.msra.gmra.mxu0 %v32150_v19  ;;  %28483 = vmatprep.subr.mxu0 %v34173_v9 }
 0xa12   :  { %28503 = vmatmul.mubr.f32.vlgmr.msra.gmra.mxu1 %v32129_v51  ;;  %28516 = vmatprep.subr.mxu1 %v34173_v9  ;;  %v13641_v24 = vpop.f32.mrf.mxu0 }
 0xa13   :  { %28484 = vmatpush3.msra.mxu0 %v34388_v23  ;;  %28517 = vmatpush3.msra.mxu1 %v34383_v37  ;;  %v13642_v20 = vadd.f32 %v13641_v24, %v13559_v33  ;;  %v13886_v35 = vpop.f32.mrf.mxu1  ;;  %v34391_v37 = vld [vmem:[#allocation139_spill] sm:$0xff]  ;;  %v34393_v33 = vld [vmem:[#allocation158_spill] sm:$0xff] }
 0xa14   :  { %28485 = vmatprep.subr.mxu0 %v34173_v9  ;;  %28518 = vmatprep.subr.mxu1 %v34173_v9  ;;  %v28053_v17 = vpop.f32.mrf.mxu0  ;;  %v34394_v24 = vld [vmem:[#allocation138_spill] sm:$0xff]  ;;  %v34395_v23 = vld [vmem:[#allocation159_spill] sm:$0xff] }
 0xa15   :  { %28486 = vmatpush3.msra.mxu0 %v34389_v16  ;;  %28519 = vmatpush3.msra.mxu1 %v34384_v25  ;;  %v32713_v53 = vadd.f32 %v13716_v12, %v13642_v20  ;;  %v28086_v49 = vpop.f32.mrf.mxu1  ;;  %v34392_v25 = vld [vmem:[#allocation136_spill] sm:$0xff] }
 0xa16   :  { %28487 = vmatprep.subr.mxu0 %v34173_v9  ;;  %28520 = vmatprep.subr.mxu1 %v34173_v9  ;;  %v34396_v17 = vld [vmem:[#allocation140_spill] sm:$0xff]  ;;  %v34399_v49 = vld [vmem:[#allocation161_spill] sm:$0xff] }
 0xa17   :  { %28488 = vmatpush3.msra.mxu0 %v34390_v32  ;;  %28521 = vmatpush3.msra.mxu1 %v34385_v30  ;;  %v34397_v16 = vld [vmem:[#allocation160_spill] sm:$0xff] }
 0xa18   :  { %28489 = vmatprep.subr.mxu0 %v34173_v9  ;;  %28522 = vmatprep.subr.mxu1 %v34173_v9 }
 0xa19   :  { %28490 = vmatpush3.msra.mxu0 %v34391_v37  ;;  %28491 = vmatprep.mubr.msk.f32.mxu0 %vm29419_vm1, %v34173_v9  ;;  %v34400_v37 = vld [vmem:[#allocation146_spill] sm:$0xff] }
 0xa1a   :  { %28523 = vmatpush3.msra.mxu1 %v34387_v15  ;;  %28524 = vmatprep.mubr.msk.f32.mxu1 %vm29419_vm1, %v34173_v9 }
 0xa1b   :  { %28492 = vmatmul.mubr.f32.vlgmr.msra.gmra.mxu0 %v32115_v18  ;;  %28505 = vmatprep.subr.mxu0 %v34173_v9 }
 0xa1c   :  { %28525 = vmatmul.mubr.f32.vlgmr.msra.gmra.mxu1 %v32108_v59  ;;  %28538 = vmatprep.subr.mxu1 %v34173_v9  ;;  %v13795_v12 = vpop.f32.mrf.mxu0 }
 0xa1d   :  { %28506 = vmatpush3.msra.mxu0 %v34392_v25  ;;  %28539 = vmatpush3.msra.mxu1 %v34393_v33  ;;  %v13887_v30 = vadd.f32 %v13886_v35, %v13795_v12  ;;  %v14043_v57 = vpop.f32.mrf.mxu1  ;;  %v34398_v35 = vld [vmem:[#allocation141_spill] sm:$0xff] }
 0xa1e   :  { %28507 = vmatprep.subr.mxu0 %v34173_v9  ;;  %28540 = vmatprep.subr.mxu1 %v34173_v9  ;;  %v28075_v15 = vpop.f32.mrf.mxu0 }
 0xa1f   :  { %28508 = vmatpush3.msra.mxu0 %v34394_v24  ;;  %28541 = vmatpush3.msra.mxu1 %v34395_v23  ;;  %v28108_v20 = vpop.f32.mrf.mxu1  ;;  %v34401_v15 = vld [vmem:[#allocation147_spill] sm:$0xff] }
 0xa20   :  { %28509 = vmatprep.subr.mxu0 %v34173_v9  ;;  %28542 = vmatprep.subr.mxu1 %v34173_v9  ;;  %v34402_v20 = vld [vmem:[#allocation149_spill] sm:$0xff] }
 0xa21   :  { %28510 = vmatpush3.msra.mxu0 %v34396_v17  ;;  %28543 = vmatpush3.msra.mxu1 %v34397_v16  ;;  %v34404_v17 = vld [vmem:[#allocation148_spill] sm:$0xff] }
 0xa22   :  { %28511 = vmatprep.subr.mxu0 %v34173_v9  ;;  %28544 = vmatprep.subr.mxu1 %v34173_v9 }
 0xa23   :  { %28512 = vmatpush3.msra.mxu0 %v34398_v35  ;;  %28513 = vmatprep.mubr.msk.f32.mxu0 %vm29419_vm1, %v34173_v9 }
 0xa24   :  { %28545 = vmatpush3.msra.mxu1 %v34399_v49  ;;  %28546 = vmatprep.mubr.msk.f32.mxu1 %vm29419_vm1, %v34173_v9 }
 0xa25   :  { %28514 = vmatmul.mubr.f32.vlgmr.msra.gmra.mxu0 %v32108_v59  ;;  %28527 = vmatprep.subr.mxu0 %v34173_v9 }
 0xa26   :  { %28547 = vmatmul.mubr.f32.vlgmr.msra.gmra.mxu1 %v32108_v59  ;;  %28560 = vmatprep.subr.mxu1 %v34173_v9  ;;  %v13966_v32 = vpop.f32.mrf.mxu0 }
 0xa27   :  { %28528 = vmatpush3.msra.mxu0 %v34400_v37  ;;  %28561 = vmatpush3.msra.mxu1 %v34400_v37  ;;  %v13967_v12 = vadd.f32 %v13966_v32, %v13887_v30  ;;  %v14201_v25 = vpop.f32.mrf.mxu1  ;;  %v34403_v30 = vld [vmem:[#allocation151_spill] sm:$0xff]  ;;  %v34405_v32 = vld [vmem:[#allocation150_spill] sm:$0xff] }
 0xa28   :  { %28529 = vmatprep.subr.mxu0 %v34173_v9  ;;  %28562 = vmatprep.subr.mxu1 %v34173_v9  ;;  %v28097_v33 = vpop.f32.mrf.mxu0 }
 0xa29   :  { %28530 = vmatpush3.msra.mxu0 %v34401_v15  ;;  %28563 = vmatpush3.msra.mxu1 %v34401_v15  ;;  %v28130_v24 = vpop.f32.mrf.mxu1  ;;  %v14044_v23 = vadd.f32 %v14043_v57, %v13967_v12 }
 0xa2a   :  { %28531 = vmatprep.subr.mxu0 %v34173_v9  ;;  %28564 = vmatprep.subr.mxu1 %v34173_v9  ;;  %v34406_v24 = vld [vmem:[#allocation153_spill] sm:$0xff] }
 0xa2b   :  { %28532 = vmatpush3.msra.mxu0 %v34402_v20  ;;  %28565 = vmatpush3.msra.mxu1 %v34402_v20 }
 0xa2c   :  { %28533 = vmatprep.subr.mxu0 %v34173_v9  ;;  %28566 = vmatprep.subr.mxu1 %v34173_v9 }
 0xa2d   :  { %28534 = vmatpush3.msra.mxu0 %v34403_v30  ;;  %28535 = vmatprep.mubr.msk.f32.mxu0 %vm29419_vm1, %v34173_v9 }
 0xa2e   :  { %28567 = vmatpush3.msra.mxu1 %v34403_v30  ;;  %28568 = vmatprep.mubr.msk.f32.mxu1 %vm29419_vm1, %v34173_v9 }
 0xa2f   :  { %28536 = vmatmul.mubr.f32.vlgmr.msra.gmra.mxu0 %v32150_v19  ;;  %28549 = vmatprep.subr.mxu0 %v34173_v9 }
 0xa30   :  { %28569 = vmatmul.mubr.f32.vlgmr.msra.gmra.mxu1 %v32129_v51  ;;  %28582 = vmatprep.subr.mxu1 %v34173_v9  ;;  %v14126_v57 = vpop.f32.mrf.mxu0 }
 0xa31   :  { %28550 = vmatpush3.msra.mxu0 %v34404_v17  ;;  %28583 = vmatpush3.msra.mxu1 %v34400_v37  ;;  %v14127_v16 = vadd.f32 %v14126_v57, %v14044_v23  ;;  %v14371_v35 = vpop.f32.mrf.mxu1  ;;  %v34407_v37 = vld [vmem:[#allocation155_spill] sm:$0xff]  ;;  %v34409_v23 = vld [vmem:[#allocation174_spill] sm:$0xff] }
 0xa32   :  { %28551 = vmatprep.subr.mxu0 %v34173_v9  ;;  %28584 = vmatprep.subr.mxu1 %v34173_v9  ;;  %v28119_v49 = vpop.f32.mrf.mxu0  ;;  %v34410_v17 = vld [vmem:[#allocation154_spill] sm:$0xff] }
 0xa33   :  { %28552 = vmatpush3.msra.mxu0 %v34405_v32  ;;  %28585 = vmatpush3.msra.mxu1 %v34401_v15  ;;  %v32781_v12 = vadd.f32 %v14201_v25, %v14127_v16  ;;  %v28152_v33 = vpop.f32.mrf.mxu1  ;;  %v34408_v15 = vld [vmem:[#allocation152_spill] sm:$0xff]  ;;  %v34411_v16 = vld [vmem:[#allocation175_spill] sm:$0xff] }
 0xa34   :  { %28553 = vmatprep.subr.mxu0 %v34173_v9  ;;  %28586 = vmatprep.subr.mxu1 %v34173_v9  ;;  %v34412_v32 = vld [vmem:[#allocation156_spill] sm:$0xff] }
 0xa35   :  { %28554 = vmatpush3.msra.mxu0 %v34406_v24  ;;  %28587 = vmatpush3.msra.mxu1 %v34402_v20  ;;  %v34413_v33 = vld [vmem:[#allocation176_spill] sm:$0xff]  ;;  %v34415_v24 = vld [vmem:[#allocation177_spill] sm:$0xff] }
 0xa36   :  { %28555 = vmatprep.subr.mxu0 %v34173_v9  ;;  %28588 = vmatprep.subr.mxu1 %v34173_v9 }
 0xa37   :  { %28556 = vmatpush3.msra.mxu0 %v34407_v37  ;;  %28557 = vmatprep.mubr.msk.f32.mxu0 %vm29419_vm1, %v34173_v9 }
 0xa38   :  { %28589 = vmatpush3.msra.mxu1 %v34403_v30  ;;  %28590 = vmatprep.mubr.msk.f32.mxu1 %vm29419_vm1, %v34173_v9 }
 0xa39   :  { %28558 = vmatmul.mubr.f32.vlgmr.msra.gmra.mxu0 %v32115_v18  ;;  %28571 = vmatprep.subr.mxu0 %v34173_v9 }
 0xa3a   :  { %28591 = vmatmul.mubr.f32.vlgmr.msra.gmra.mxu1 %v32108_v59  ;;  %28604 = vmatprep.subr.mxu1 %v34173_v9  ;;  %v14280_v25 = vpop.f32.mrf.mxu0 }
 0xa3b   :  { %28572 = vmatpush3.msra.mxu0 %v34408_v15  ;;  %28605 = vmatpush3.msra.mxu1 %v34409_v23  ;;  %v14372_v20 = vadd.f32 %v14371_v35, %v14280_v25  ;;  %v14528_v57 = vpop.f32.mrf.mxu1  ;;  %v34414_v35 = vld [vmem:[#allocation157_spill] sm:$0xff]  ;;  %v34416_v25 = vld [vmem:[#allocation162_spill] sm:$0xff] }
 0xa3c   :  { %28573 = vmatprep.subr.mxu0 %v34173_v9  ;;  %28606 = vmatprep.subr.mxu1 %v34173_v9  ;;  %v28141_v30 = vpop.f32.mrf.mxu0 }
 0xa3d   :  { %28574 = vmatpush3.msra.mxu0 %v34410_v17  ;;  %28607 = vmatpush3.msra.mxu1 %v34411_v16  ;;  %v28174_v49 = vpop.f32.mrf.mxu1  ;;  %v34417_v17 = vld [vmem:[#allocation163_spill] sm:$0xff] }
 0xa3e   :  { %28575 = vmatprep.subr.mxu0 %v34173_v9  ;;  %28608 = vmatprep.subr.mxu1 %v34173_v9 }
 0xa3f   :  { %28576 = vmatpush3.msra.mxu0 %v34412_v32  ;;  %28609 = vmatpush3.msra.mxu1 %v34413_v33  ;;  %v34418_v32 = vld [vmem:[#allocation165_spill] sm:$0xff]  ;;  %v34420_v33 = vld [vmem:[#allocation164_spill] sm:$0xff] }
 0xa40   :  { %28577 = vmatprep.subr.mxu0 %v34173_v9  ;;  %28610 = vmatprep.subr.mxu1 %v34173_v9 }
 0xa41   :  { %28578 = vmatpush3.msra.mxu0 %v34414_v35  ;;  %28579 = vmatprep.mubr.msk.f32.mxu0 %vm29419_vm1, %v34173_v9 }
 0xa42   :  { %28611 = vmatpush3.msra.mxu1 %v34415_v24  ;;  %28612 = vmatprep.mubr.msk.f32.mxu1 %vm29419_vm1, %v34173_v9 }
 0xa43   :  { %28580 = vmatmul.mubr.f32.vlgmr.msra.gmra.mxu0 %v32108_v59  ;;  %28593 = vmatprep.subr.mxu0 %v34173_v9 }
 0xa44   :  { %28613 = vmatmul.mubr.f32.vlgmr.msra.gmra.mxu1 %v32108_v59  ;;  %28626 = vmatprep.subr.mxu1 %v34173_v9  ;;  %v14451_v37 = vpop.f32.mrf.mxu0 }
 0xa45   :  { %28594 = vmatpush3.msra.mxu0 %v34416_v25  ;;  %28627 = vmatpush3.msra.mxu1 %v34416_v25  ;;  %v14452_v15 = vadd.f32 %v14451_v37, %v14372_v20  ;;  %v14686_v23 = vpop.f32.mrf.mxu1  ;;  %v34419_v20 = vld [vmem:[#allocation167_spill] sm:$0xff] }
 0xa46   :  { %28595 = vmatprep.subr.mxu0 %v34173_v9  ;;  %28628 = vmatprep.subr.mxu1 %v34173_v9  ;;  %v28163_v30 = vpop.f32.mrf.mxu0 }
 0xa47   :  { %28596 = vmatpush3.msra.mxu0 %v34417_v17  ;;  %28629 = vmatpush3.msra.mxu1 %v34417_v17  ;;  %v28196_v16 = vpop.f32.mrf.mxu1  ;;  %v14529_v49 = vadd.f32 %v14528_v57, %v14452_v15  ;;  %v34421_v15 = vld [vmem:[#allocation166_spill] sm:$0xff] }
 0xa48   :  { %28597 = vmatprep.subr.mxu0 %v34173_v9  ;;  %28630 = vmatprep.subr.mxu1 %v34173_v9 }
 0xa49   :  { %28598 = vmatpush3.msra.mxu0 %v34418_v32  ;;  %28631 = vmatpush3.msra.mxu1 %v34418_v32 }
 0xa4a   :  { %28599 = vmatprep.subr.mxu0 %v34173_v9  ;;  %28632 = vmatprep.subr.mxu1 %v34173_v9 }
 0xa4b   :  { %28600 = vmatpush3.msra.mxu0 %v34419_v20  ;;  %28601 = vmatprep.mubr.msk.f32.mxu0 %vm29419_vm1, %v34173_v9 }
 0xa4c   :  { %28633 = vmatpush3.msra.mxu1 %v34419_v20  ;;  %28634 = vmatprep.mubr.msk.f32.mxu1 %vm29419_vm1, %v34173_v9 }
 0xa4d   :  { %28602 = vmatmul.mubr.f32.vlgmr.msra.gmra.mxu0 %v32150_v19  ;;  %28615 = vmatprep.subr.mxu0 %v34173_v9 }
 0xa4e   :  { %28635 = vmatmul.mubr.f32.vlgmr.msra.gmra.mxu1 %v32129_v51  ;;  %28648 = vmatprep.subr.mxu1 %v34173_v9  ;;  %v14611_v57 = vpop.f32.mrf.mxu0 }
 0xa4f   :  { %28616 = vmatpush3.msra.mxu0 %v34420_v33  ;;  %28649 = vmatpush3.msra.mxu1 %v34416_v25  ;;  %v14612_v35 = vadd.f32 %v14611_v57, %v14529_v49  ;;  %v14856_v24 = vpop.f32.mrf.mxu1  ;;  %v34422_v33 = vld [vmem:[#allocation169_spill] sm:$0xff]  ;;  %v34423_v25 = vld [vmem:[#allocation171_spill] sm:$0xff]  ;;  %v34425_v49 = vld [vmem:[#allocation190_spill] sm:$0xff] }
 0xa50   :  { %28617 = vmatprep.subr.mxu0 %v34173_v9  ;;  %28650 = vmatprep.subr.mxu1 %v34173_v9  ;;  %v28185_v37 = vpop.f32.mrf.mxu0  ;;  %v34426_v57 = vld [vmem:[#allocation170_spill] sm:$0xff] }
 0xa51   :  { %28618 = vmatpush3.msra.mxu0 %v34421_v15  ;;  %28651 = vmatpush3.msra.mxu1 %v34417_v17  ;;  %v32849_v30 = vadd.f32 %v14686_v23, %v14612_v35  ;;  %v28218_v16 = vpop.f32.mrf.mxu1  ;;  %v34424_v17 = vld [vmem:[#allocation168_spill] sm:$0xff]  ;;  %v34427_v35 = vld [vmem:[#allocation191_spill] sm:$0xff] }
 0xa52   :  { %28619 = vmatprep.subr.mxu0 %v34173_v9  ;;  %28652 = vmatprep.subr.mxu1 %v34173_v9  ;;  %v34428_v15 = vld [vmem:[#allocation172_spill] sm:$0xff] }
 0xa53   :  { %28620 = vmatpush3.msra.mxu0 %v34422_v33  ;;  %28653 = vmatpush3.msra.mxu1 %v34418_v32  ;;  %v34429_v16 = vld [vmem:[#allocation192_spill] sm:$0xff]  ;;  %v34430_v33 = vld [vmem:[#allocation173_spill] sm:$0xff] }
 0xa54   :  { %28621 = vmatprep.subr.mxu0 %v34173_v9  ;;  %28654 = vmatprep.subr.mxu1 %v34173_v9 }
 0xa55   :  { %28622 = vmatpush3.msra.mxu0 %v34423_v25  ;;  %28623 = vmatprep.mubr.msk.f32.mxu0 %vm29419_vm1, %v34173_v9  ;;  %v34431_v25 = vld [vmem:[#allocation193_spill] sm:$0xff] }
 0xa56   :  { %28655 = vmatpush3.msra.mxu1 %v34419_v20  ;;  %28656 = vmatprep.mubr.msk.f32.mxu1 %vm29419_vm1, %v34173_v9 }
 0xa57   :  { %28624 = vmatmul.mubr.f32.vlgmr.msra.gmra.mxu0 %v32115_v18  ;;  %28637 = vmatprep.subr.mxu0 %v34173_v9 }
 0xa58   :  { %28657 = vmatmul.mubr.f32.vlgmr.msra.gmra.mxu1 %v32108_v59  ;;  %28670 = vmatprep.subr.mxu1 %v34173_v9  ;;  %v14765_v23 = vpop.f32.mrf.mxu0 }
 0xa59   :  { %28638 = vmatpush3.msra.mxu0 %v34424_v17  ;;  %28671 = vmatpush3.msra.mxu1 %v34425_v49  ;;  %v15013_v32 = vpop.f32.mrf.mxu1  ;;  %v34432_v49 = vld [vmem:[#allocation178_spill] sm:$0xff] }
 0xa5a   :  { %28639 = vmatprep.subr.mxu0 %v34173_v9  ;;  %28672 = vmatprep.subr.mxu1 %v34173_v9  ;;  %v28207_v20 = vpop.f32.mrf.mxu0 }
 0xa5b   :  { %28640 = vmatpush3.msra.mxu0 %v34426_v57  ;;  %28673 = vmatpush3.msra.mxu1 %v34427_v35  ;;  %v28240_v37 = vpop.f32.mrf.mxu1  ;;  %v34433_v35 = vld [vmem:[#allocation179_spill] sm:$0xff] }
 0xa5c   :  { %28641 = vmatprep.subr.mxu0 %v34173_v9  ;;  %28674 = vmatprep.subr.mxu1 %v34173_v9  ;;  %v14857_v37 = vadd.f32 %v14856_v24, %v14765_v23  ;;  %v18571_v23 = vsel %vm6021_vm2, %v32642_v8, 0  ;;  %v34437_v8 = vld [vmem:[#allocation182_spill] sm:$0xff] }
 0xa5d   :  { %28642 = vmatpush3.msra.mxu0 %v34428_v15  ;;  %28675 = vmatpush3.msra.mxu1 %v34429_v16  ;;  %v34434_v16 = vld [vmem:[#allocation181_spill] sm:$0xff] }
 0xa5e   :  { %28643 = vmatprep.subr.mxu0 %v34173_v9  ;;  %28676 = vmatprep.subr.mxu1 %v34173_v9 }
 0xa5f   :  { %28644 = vmatpush3.msra.mxu0 %v34430_v33  ;;  %28645 = vmatprep.mubr.msk.f32.mxu0 %vm29419_vm1, %v34173_v9 }
 0xa60   :  { %28677 = vmatpush3.msra.mxu1 %v34431_v25  ;;  %28678 = vmatprep.mubr.msk.f32.mxu1 %vm29419_vm1, %v34173_v9  ;;  %v34435_v25 = vld [vmem:[#allocation183_spill] sm:$0xff] }
 0xa61   :  { %28646 = vmatmul.mubr.f32.vlgmr.msra.gmra.mxu0 %v32108_v59  ;;  %28659 = vmatprep.subr.mxu0 %v34173_v9 }
 0xa62   :  { %28679 = vmatmul.mubr.f32.vlgmr.msra.gmra.mxu1 %v32108_v59  ;;  %28692 = vmatprep.subr.mxu1 %v34173_v9  ;;  %v14936_v17 = vpop.f32.mrf.mxu0 }
 0xa63   :  { %28660 = vmatpush3.msra.mxu0 %v34432_v49  ;;  %28693 = vmatpush3.msra.mxu1 %v34432_v49  ;;  %v15171_v20 = vpop.f32.mrf.mxu1  ;;  %v14937_v33 = vadd.f32 %v14936_v17, %v14857_v37 }
 0xa64   :  { %28661 = vmatprep.subr.mxu0 %v34173_v9  ;;  %28694 = vmatprep.subr.mxu1 %v34173_v9  ;;  %v28229_v57 = vpop.f32.mrf.mxu0 }
 0xa65   :  { %28662 = vmatpush3.msra.mxu0 %v34433_v35  ;;  %28695 = vmatpush3.msra.mxu1 %v34433_v35  ;;  %v28262_v15 = vpop.f32.mrf.mxu1  ;;  %v15014_v24 = vadd.f32 %v15013_v32, %v14937_v33  ;;  %v34436_v57 = vld [vmem:[#allocation180_spill] sm:$0xff]  ;;  %v32919_v32 = vand.u32 4294901760, %v18571_v23 }
 0xa66   :  { %28663 = vmatprep.subr.mxu0 %v34173_v9  ;;  %28696 = vmatprep.subr.mxu1 %v34173_v9 }
 0xa67   :  { %28664 = vmatpush3.msra.mxu0 %v34434_v16  ;;  %28697 = vmatpush3.msra.mxu1 %v34434_v16 }
 0xa68   :  { %28665 = vmatprep.subr.mxu0 %v34173_v9  ;;  %28698 = vmatprep.subr.mxu1 %v34173_v9 }
 0xa69   :  { %28666 = vmatpush3.msra.mxu0 %v34435_v25  ;;  %28667 = vmatprep.mubr.msk.f32.mxu0 %vm29419_vm1, %v34173_v9 }
 0xa6a   :  { %28699 = vmatpush3.msra.mxu1 %v34435_v25  ;;  %28700 = vmatprep.mubr.msk.f32.mxu1 %vm29419_vm1, %v34173_v9 }
 0xa6b   :  { %28668 = vmatmul.mubr.f32.vlgmr.msra.gmra.mxu0 %v32150_v19  ;;  %28681 = vmatprep.subr.mxu0 %v34173_v9 }
 0xa6c   :  { %28701 = vmatmul.mubr.f32.vlgmr.msra.gmra.mxu1 %v32129_v51  ;;  %28714 = vmatprep.subr.mxu1 %v34173_v9  ;;  %v15096_v17 = vpop.f32.mrf.mxu0 }
 0xa6d   :  { %28682 = vmatpush3.msra.mxu0 %v34436_v57  ;;  %28715 = vmatpush3.msra.mxu1 %v34432_v49  ;;  %v15097_v37 = vadd.f32 %v15096_v17, %v15014_v24  ;;  %v32915_v15 = vpop.f32.mrf.mxu1  ;;  %v34438_v49 = vld [vmem:[#allocation185_spill] sm:$0xff]  ;;  %v18643_v57 = vsub.f32 %v18571_v23, %v32919_v32 }
 0xa6e   :  { %28683 = vmatprep.subr.mxu0 %v34173_v9  ;;  %28716 = vmatprep.subr.mxu1 %v34173_v9  ;;  %v28251_v19 = vpop.f32.mrf.mxu0 }
 0xa6f   :  { %28684 = vmatpush3.msra.mxu0 %v34437_v8  ;;  %28717 = vmatpush3.msra.mxu1 %v34433_v35  ;;  %v15172_v51 = vadd.f32 %v15171_v20, %v15097_v37  ;;  %v28284_v33 = vpop.f32.mrf.mxu1  ;;  %v34439_v35 = vld [vmem:[#allocation187_spill] sm:$0xff]  ;;  %v18644_v19 = vand.u32 4294901760, %v18643_v57  ;;  %v34441_v8 = vld [vmem:[#allocation186_spill] sm:$0xff] }
 0xa70   :  { %28685 = vmatprep.subr.mxu0 %v34173_v9  ;;  %28718 = vmatprep.subr.mxu1 %v34173_v9 }
 0xa71   :  { %28686 = vmatpush3.msra.mxu0 %v34438_v49  ;;  %28719 = vmatpush3.msra.mxu1 %v34434_v16  ;;  %v18574_v24 = vsel %vm6021_vm2, %v15172_v51, 0  ;;  %v34440_v16 = vld [vmem:[#allocation184_spill] sm:$0xff] }
 0xa72   :  { %28687 = vmatprep.subr.mxu0 %v34173_v9  ;;  %28720 = vmatprep.subr.mxu1 %v34173_v9  ;;  %v18607_v17 = vand.u32 4294901760, %v18574_v24  ;;  %v34442_v49 = vld [vmem:[#allocation188_spill] sm:$0xff] }
 0xa73   :  { %28688 = vmatpush3.msra.mxu0 %v34439_v35  ;;  %28689 = vmatprep.mubr.msk.f32.mxu0 %vm29419_vm1, %v34173_v9  ;;  %v18645_v35 = vsub.f32 %v18643_v57, %v18644_v19 }
 0xa74   :  { %28721 = vmatpush3.msra.mxu1 %v34435_v25  ;;  %28722 = vmatprep.mubr.msk.f32.mxu1 %vm29419_vm1, %v34173_v9  ;;  %v18684_v20 = vsub.f32 %v18574_v24, %v18607_v17 }
 0xa75   :  { %28690 = vmatmul.mubr.f32.vlgmr.msra.gmra.mxu0 %v32115_v18  ;;  %28703 = vmatprep.subr.mxu0 %v34173_v9 }
 0xa76   :  { %28723 = vmatmul.mubr.f32.vlgmr.msra.gmra.mxu1 %v32108_v59  ;;  %28704 = vmatpush3.msra.mxu0 %v34440_v16  ;;  %v15250_v23 = vpop.f32.mrf.mxu0  ;;  %v18685_v37 = vand.u32 4294901760, %v18684_v20  ;;  %v34443_v16 = vld [vmem:[#allocation189_spill] sm:$0xff] }
 0xa77   :  { %28705 = vmatprep.subr.mxu0 %v34173_v9  ;;  %28711 = vmatprep.mubr.msk.f32.mxu0 %vm29419_vm1, %v34173_v9  ;;  %v15498_v25 = vpop.f32.mrf.mxu1 }
 0xa78   :  { %28706 = vmatpush3.msra.mxu0 %v34441_v8  ;;  %v28273_v51 = vpop.f32.mrf.mxu0  ;;  %28730 = vmatprep.subr.mxu1 %v34173_v9  ;;  %v18686_v18 = vsub.f32 %v18684_v20, %v18685_v37  ;;  %v18646_v8 = vand.u32 4294901760, %v18645_v35 }
 0xa79   :  { %28707 = vmatprep.subr.mxu0 %v34173_v9  ;;  %v28306_v33 = vpop.f32.mrf.mxu1  ;;  %28732 = vmatprep.mubr.msk.f32.mxu1 %vm29419_vm1, %v34173_v9  ;;  %v19023_v51 = vsel %vm6021_vm2, %v32713_v53, 0 }
 0xa7a   :  { %28708 = vmatpush3.msra.mxu0 %v34442_v49  ;;  %v18687_v24 = vand.u32 4294901760, %v18686_v18  ;;  %v32965_v49 = vand.u32 4294901760, %v19023_v51 }
 0xa7b   :  { %28709 = vmatprep.subr.mxu0 %v34173_v9 }
 0xa7c   :  { %28710 = vmatpush3.msra.mxu0 %v34443_v16  ;;  %28731 = vmatpush3.xpose.msra.mxu1 %v18687_v24  ;;  %v15342_v24 = vadd.f32 %v32915_v15, %v15250_v23 }
 0xa7d   :  { %28712 = vmatmul.mubr.f32.vlgmr.msra.gmra.mxu0 %v32108_v59  ;;  %28725 = vmatprep.subr.mxu0 %v34173_v9 }
 0xa7e   :  { %28726 = vmatpush3.xpose.msra.mxu0 %v18607_v17  ;;  %28727 = vmatprep.mubr.msk.f32.mxu0 %vm29419_vm1, %v34173_v9 }
 0xa7f   :  { %28735 = vmatprep.subr.mxu0 %v34173_v9  ;;  %28733 = vmatmul.mubr.f32.vlgmr.msra.gmra.mxu1 %v32919_v32 }
 0xa80   :  { %v15421_v18 = vpop.f32.mrf.mxu0  ;;  %28740 = vmatprep.subr.mxu1 %v34173_v9  ;;  %28742 = vmatprep.mubr.msk.f32.mxu1 %vm29419_vm1, %v34173_v9 }
 0xa81   :  { %28728 = vmatmul.mubr.f32.vlgmr.msra.gmra.mxu0 %v18646_v8  ;;  %v15656_v59 = vpop.f32.mrf.mxu1  ;;  %28741 = vmatpush3.xpose.msra.mxu1 %v18607_v17  ;;  %v15422_v35 = vadd.f32 %v15421_v18, %v15342_v24 }
 0xa82   :  { %28736 = vmatpush3.xpose.msra.mxu0 %v18684_v20  ;;  %28737 = vmatprep.mubr.msk.f32.mxu0 %vm29419_vm1, %v34173_v9  ;;  %v28295_v33 = vpop.f32.mrf.mxu0  ;;  %v19095_v20 = vsub.f32 %v19023_v51, %v32965_v49 }
 0xa83   :  { %28745 = vmatprep.subr.mxu0 %v34173_v9  ;;  %v28328_v53 = vpop.f32.mrf.mxu1  ;;  %28750 = vmatprep.subr.mxu1 %v34173_v9  ;;  %v15499_v15 = vadd.f32 %v15498_v25, %v15422_v35 }
 0xa84   :  { %28743 = vmatmul.mubr.f32.vlgmr.msra.gmra.mxu1 %v18644_v19 }
 0xa85   :  { %28738 = vmatmul.mubr.f32.vlgmr.msra.gmra.mxu0 %v18643_v57  ;;  %28751 = vmatpush3.xpose.msra.mxu1 %v18607_v17  ;;  %v19096_v57 = vand.u32 4294901760, %v19095_v20 }
 0xa86   :  { %28746 = vmatpush3.xpose.msra.mxu0 %v18685_v37  ;;  %28747 = vmatprep.mubr.msk.f32.mxu0 %vm29419_vm1, %v34173_v9 }
 0xa87   :  { %28752 = vmatprep.mubr.msk.f32.mxu1 %vm29419_vm1, %v34173_v9  ;;  %28755 = vmatprep.subr.mxu0 %v34173_v9  ;;  %v19097_v51 = vsub.f32 %v19095_v20, %v19096_v57 }
 0xa88   :  { %28753 = vmatmul.mubr.f32.vlgmr.msra.gmra.mxu1 %v32919_v32  ;;  %28760 = vmatprep.subr.mxu1 %v34173_v9 }
 0xa89   :  { %28748 = vmatmul.mubr.f32.vlgmr.msra.gmra.mxu0 %v32919_v32  ;;  %28762 = vmatprep.mubr.msk.f32.mxu1 %vm29419_vm1, %v34173_v9  ;;  %v19098_v32 = vand.u32 4294901760, %v19097_v51 }
 0xa8a   :  { %v15581_v17 = vpop.f32.mrf.mxu0  ;;  %28757 = vmatprep.mubr.msk.f32.mxu0 %vm29419_vm1, %v34173_v9 }
 0xa8b   :  { %v15582_v23 = vadd.f32 %v15581_v17, %v15499_v15  ;;  %v15826_v37 = vpop.f32.mrf.mxu1 }
 0xa8c   :  { %v28317_v19 = vpop.f32.mrf.mxu0 }
 0xa8d   :  { %v15657_v16 = vadd.f32 %v15656_v59, %v15582_v23  ;;  %v28350_v8 = vpop.f32.mrf.mxu1 }
 0xa8f   :  { %v19026_v18 = vsel %vm6021_vm2, %v15657_v16, 0 }
 0xa90   :  { %v19059_v33 = vand.u32 4294901760, %v19026_v18 }
 0xa92   :  { %v19136_v24 = vsub.f32 %v19026_v18, %v19059_v33  ;;  %28756 = vmatpush3.xpose.msra.mxu0 %v19059_v33 }
 0xa93   :  { %28765 = vmatprep.subr.mxu0 %v34173_v9 }
 0xa94   :  { %v15735_v25 = vpop.f32.mrf.mxu0  ;;  %v19137_v53 = vand.u32 4294901760, %v19136_v24 }
 0xa95   :  { %v15983_v35 = vpop.f32.mrf.mxu1  ;;  %28758 = vmatmul.mubr.f32.vlgmr.msra.gmra.mxu0 %v19098_v32  ;;  %v15827_v8 = vadd.f32 %v15826_v37, %v15735_v25 }
 0xa96   :  { %v28339_v3 = vpop.f32.mrf.mxu0  ;;  %28766 = vmatpush3.xpose.msra.mxu0 %v19136_v24  ;;  %28767 = vmatprep.mubr.msk.f32.mxu0 %vm29419_vm1, %v34173_v9  ;;  %v19138_v59 = vsub.f32 %v19136_v24, %v19137_v53 }
 0xa97   :  { %v28372_v15 = vpop.f32.mrf.mxu1  ;;  %28775 = vmatprep.subr.mxu0 %v34173_v9  ;;  %v19475_v3 = vsel %vm6021_vm2, %v32781_v12, 0 }
 0xa98   :  { %v19139_v17 = vand.u32 4294901760, %v19138_v59  ;;  %v19546_v16 = vand.u32 4294901760, %v19475_v3 }
 0xa99   :  { %28768 = vmatmul.mubr.f32.vlgmr.msra.gmra.mxu0 %v19095_v20 }
 0xa9a   :  { %28761 = vmatpush3.xpose.msra.mxu1 %v19139_v17  ;;  %28776 = vmatpush3.xpose.msra.mxu0 %v19137_v53  ;;  %v19547_v18 = vsub.f32 %v19475_v3, %v19546_v16 }
 0xa9b   :  { %28777 = vmatprep.mubr.msk.f32.mxu0 %vm29419_vm1, %v34173_v9  ;;  %28770 = vmatprep.subr.mxu1 %v34173_v9 }
 0xa9c   :  { %28785 = vmatprep.subr.mxu0 %v34173_v9  ;;  %v19548_v53 = vand.u32 4294901760, %v19547_v18 }
 0xa9d   :  { %28763 = vmatmul.mubr.f32.vlgmr.msra.gmra.mxu1 %v32965_v49  ;;  %28778 = vmatmul.mubr.f32.vlgmr.msra.gmra.mxu0 %v32965_v49 }
 0xa9e   :  { %v15906_v23 = vpop.f32.mrf.mxu0  ;;  %28771 = vmatpush3.xpose.msra.mxu1 %v19059_v33  ;;  %28772 = vmatprep.mubr.msk.f32.mxu1 %vm29419_vm1, %v34173_v9  ;;  %v19549_v15 = vsub.f32 %v19547_v18, %v19548_v53 }
 0xa9f   :  { %v16141_v20 = vpop.f32.mrf.mxu1  ;;  %28780 = vmatprep.subr.mxu1 %v34173_v9  ;;  %28787 = vmatprep.mubr.msk.f32.mxu0 %vm29419_vm1, %v34173_v9  ;;  %v15907_v12 = vadd.f32 %v15906_v23, %v15827_v8 }
 0xaa0   :  { %v28361_v19 = vpop.f32.mrf.mxu0  ;;  %v19550_v3 = vand.u32 4294901760, %v19549_v15 }
 0xaa1   :  { %v28394_v51 = vpop.f32.mrf.mxu1  ;;  %28773 = vmatmul.mubr.f32.vlgmr.msra.gmra.mxu1 %v19096_v57  ;;  %v15984_v24 = vadd.f32 %v15983_v35, %v15907_v12 }
 0xaa2   :  { %28781 = vmatpush3.xpose.msra.mxu1 %v19059_v33  ;;  %28782 = vmatprep.mubr.msk.f32.mxu1 %vm29419_vm1, %v34173_v9 }
 0xaa3   :  { %28790 = vmatprep.subr.mxu1 %v34173_v9 }
 0xaa5   :  { %28783 = vmatmul.mubr.f32.vlgmr.msra.gmra.mxu1 %v32965_v49 }
 0xaa6   :  { %28792 = vmatprep.mubr.msk.f32.mxu1 %vm29419_vm1, %v34173_v9 }
 0xaa8   :  { %v16066_v32 = vpop.f32.mrf.mxu0 }
 0xaa9   :  { %v16067_v59 = vadd.f32 %v16066_v32, %v15984_v24  ;;  %v16311_v37 = vpop.f32.mrf.mxu1  ;;  %v19927_v32 = vsel %vm6021_vm2, %v32849_v30, 0 }
 0xaaa   :  { %v28383_v25 = vpop.f32.mrf.mxu0 }
 0xaab   :  { %v16142_v57 = vadd.f32 %v16141_v20, %v16067_v59  ;;  %v28416_v33 = vpop.f32.mrf.mxu1 }
 0xaad   :  { %v19478_v17 = vsel %vm6021_vm2, %v16142_v57, 0  ;;  %v19998_v57 = vand.u32 4294901760, %v19927_v32 }
 0xaae   :  { %v19511_v23 = vand.u32 4294901760, %v19478_v17 }
 0xab0   :  { %v19588_v19 = vsub.f32 %v19478_v17, %v19511_v23  ;;  %28786 = vmatpush3.xpose.msra.mxu0 %v19511_v23  ;;  %v19999_v17 = vsub.f32 %v19927_v32, %v19998_v57 }
 0xab1   :  { %28795 = vmatprep.subr.mxu0 %v34173_v9 }
 0xab2   :  { %v16220_v49 = vpop.f32.mrf.mxu0  ;;  %v19589_v8 = vand.u32 4294901760, %v19588_v19 }
 0xab3   :  { %v16468_v51 = vpop.f32.mrf.mxu1  ;;  %28788 = vmatmul.mubr.f32.vlgmr.msra.gmra.mxu0 %v19550_v3  ;;  %v16312_v33 = vadd.f32 %v16311_v37, %v16220_v49 }
 0xab4   :  { %v28405_v35 = vpop.f32.mrf.mxu0  ;;  %28796 = vmatpush3.xpose.msra.mxu0 %v19588_v19  ;;  %28797 = vmatprep.mubr.msk.f32.mxu0 %vm29419_vm1, %v34173_v9  ;;  %v19590_v20 = vsub.f32 %v19588_v19, %v19589_v8 }
 0xab5   :  { %v28438_v12 = vpop.f32.mrf.mxu1  ;;  %28805 = vmatprep.subr.mxu0 %v34173_v9 }
 0xab6   :  { %v19591_v24 = vand.u32 4294901760, %v19590_v20 }
 0xab7   :  { %28798 = vmatmul.mubr.f32.vlgmr.msra.gmra.mxu0 %v19547_v18 }
 0xab8   :  { %28791 = vmatpush3.xpose.msra.mxu1 %v19591_v24  ;;  %28806 = vmatpush3.xpose.msra.mxu0 %v19589_v8  ;;  %v20000_v8 = vand.u32 4294901760, %v19999_v17 }
 0xab9   :  { %28807 = vmatprep.mubr.msk.f32.mxu0 %vm29419_vm1, %v34173_v9  ;;  %28800 = vmatprep.subr.mxu1 %v34173_v9 }
 0xaba   :  { %28815 = vmatprep.subr.mxu0 %v34173_v9 }
 0xabb   :  { %28793 = vmatmul.mubr.f32.vlgmr.msra.gmra.mxu1 %v19546_v16  ;;  %28808 = vmatmul.mubr.f32.vlgmr.msra.gmra.mxu0 %v19546_v16 }
 0xabc   :  { %v16391_v59 = vpop.f32.mrf.mxu0  ;;  %28801 = vmatpush3.xpose.msra.mxu1 %v19511_v23  ;;  %28802 = vmatprep.mubr.msk.f32.mxu1 %vm29419_vm1, %v34173_v9 }
 0xabd   :  { %v16626_v18 = vpop.f32.mrf.mxu1  ;;  %28810 = vmatprep.subr.mxu1 %v34173_v9  ;;  %28817 = vmatprep.mubr.msk.f32.mxu0 %vm29419_vm1, %v34173_v9  ;;  %v16392_v30 = vadd.f32 %v16391_v59, %v16312_v33 }
 0xabe   :  { %v28427_v25 = vpop.f32.mrf.mxu0 }
 0xabf   :  { %v28460_v15 = vpop.f32.mrf.mxu1  ;;  %28803 = vmatmul.mubr.f32.vlgmr.msra.gmra.mxu1 %v19548_v53  ;;  %v16469_v19 = vadd.f32 %v16468_v51, %v16392_v30 }
 0xac0   :  { %28811 = vmatpush3.xpose.msra.mxu1 %v19511_v23  ;;  %28812 = vmatprep.mubr.msk.f32.mxu1 %vm29419_vm1, %v34173_v9  ;;  %v20001_v23 = vsub.f32 %v19999_v17, %v20000_v8 }
 0xac1   :  { %28820 = vmatprep.subr.mxu1 %v34173_v9 }
 0xac2   :  { %v20002_v25 = vand.u32 4294901760, %v20001_v23 }
 0xac3   :  { %28813 = vmatmul.mubr.f32.vlgmr.msra.gmra.mxu1 %v19546_v16 }
 0xac4   :  { %28822 = vmatprep.mubr.msk.f32.mxu1 %vm29419_vm1, %v34173_v9 }
 0xac6   :  { %v16551_v3 = vpop.f32.mrf.mxu0 }
 0xac7   :  { %v16552_v35 = vadd.f32 %v16551_v3, %v16469_v19  ;;  %v16796_v20 = vpop.f32.mrf.mxu1 }
 0xac8   :  { %v28449_v37 = vpop.f32.mrf.mxu0 }
 0xac9   :  { %v16627_v49 = vadd.f32 %v16626_v18, %v16552_v35  ;;  %v28482_v53 = vpop.f32.mrf.mxu1 }
 0xacb   :  { %v19930_v12 = vsel %vm6021_vm2, %v16627_v49, 0 }
 0xacc   :  { %v19963_v24 = vand.u32 4294901760, %v19930_v12 }
 0xace   :  { %v20040_v59 = vsub.f32 %v19930_v12, %v19963_v24  ;;  %28816 = vmatpush3.xpose.msra.mxu0 %v19963_v24 }
 0xacf   :  { %28825 = vmatprep.subr.mxu0 %v34173_v9 }
 0xad0   :  { %v20041_v16 = vand.u32 4294901760, %v20040_v59 }
 0xad1   :  { %v16705_v32 = vpop.f32.mrf.mxu0  ;;  %28818 = vmatmul.mubr.f32.vlgmr.msra.gmra.mxu0 %v20002_v25 }
 0xad2   :  { %v16953_v51 = vpop.f32.mrf.mxu1  ;;  %28826 = vmatpush3.xpose.msra.mxu0 %v20040_v59  ;;  %28827 = vmatprep.mubr.msk.f32.mxu0 %vm29419_vm1, %v34173_v9  ;;  %v20042_v33 = vsub.f32 %v20040_v59, %v20041_v16  ;;  %v16797_v35 = vadd.f32 %v16796_v20, %v16705_v32 }
 0xad3   :  { %v28471_v18 = vpop.f32.mrf.mxu0  ;;  %28835 = vmatprep.subr.mxu0 %v34173_v9 }
 0xad4   :  { %v28504_v15 = vpop.f32.mrf.mxu1  ;;  %v20043_v30 = vand.u32 4294901760, %v20042_v33 }
 0xad5   :  { %28828 = vmatmul.mubr.f32.vlgmr.msra.gmra.mxu0 %v19999_v17 }
 0xad6   :  { %28821 = vmatpush3.xpose.msra.mxu1 %v20043_v30  ;;  %28836 = vmatpush3.xpose.msra.mxu0 %v20041_v16 }
 0xad7   :  { %28837 = vmatprep.mubr.msk.f32.mxu0 %vm29419_vm1, %v34173_v9  ;;  %28830 = vmatprep.subr.mxu1 %v34173_v9 }
 0xad8   :  { %28845 = vmatprep.subr.mxu0 %v34173_v9 }
 0xad9   :  { %28823 = vmatmul.mubr.f32.vlgmr.msra.gmra.mxu1 %v19998_v57  ;;  %28838 = vmatmul.mubr.f32.vlgmr.msra.gmra.mxu0 %v19998_v57 }
 0xada   :  { %28831 = vmatpush3.xpose.msra.mxu1 %v19963_v24  ;;  %28832 = vmatprep.mubr.msk.f32.mxu1 %vm29419_vm1, %v34173_v9 }
 0xadb   :  { %v16876_v19 = vpop.f32.mrf.mxu0  ;;  %28840 = vmatprep.subr.mxu1 %v34173_v9  ;;  %28847 = vmatprep.mubr.msk.f32.mxu0 %vm29419_vm1, %v34173_v9 }
 0xadc   :  { %v17111_v17 = vpop.f32.mrf.mxu1  ;;  %v16877_v49 = vadd.f32 %v16876_v19, %v16797_v35 }
 0xadd   :  { %v28493_v3 = vpop.f32.mrf.mxu0  ;;  %28833 = vmatmul.mubr.f32.vlgmr.msra.gmra.mxu1 %v20000_v8 }
 0xade   :  { %v28526_v37 = vpop.f32.mrf.mxu1  ;;  %28841 = vmatpush3.xpose.msra.mxu1 %v19963_v24  ;;  %28842 = vmatprep.mubr.msk.f32.mxu1 %vm29419_vm1, %v34173_v9  ;;  %v16954_v53 = vadd.f32 %v16953_v51, %v16877_v49 }
 0xadf   :  { %28850 = vmatprep.subr.mxu1 %v34173_v9 }
 0xae1   :  { %28843 = vmatmul.mubr.f32.vlgmr.msra.gmra.mxu1 %v19998_v57 }
 0xae2   :  { %28852 = vmatprep.mubr.msk.f32.mxu1 %vm29419_vm1, %v34173_v9 }
 0xae5   :  { %v17036_v23 = vpop.f32.mrf.mxu0 }
 0xae6   :  { %v17037_v12 = vadd.f32 %v17036_v23, %v16954_v53  ;;  %v17281_v59 = vpop.f32.mrf.mxu1 }
 0xae7   :  { %v28515_v25 = vpop.f32.mrf.mxu0 }
 0xae8   :  { %v17112_v16 = vadd.f32 %v17111_v17, %v17037_v12  ;;  %v28548_v8 = vpop.f32.mrf.mxu1 }
 0xaea   :  { %v33047_v20 = vand.u32 4294901760, %v17112_v16 }
 0xaec   :  { %v33050_v24 = vsub.f32 %v17112_v16, %v33047_v20  ;;  %28846 = vmatpush3.msra.mxu0 %v33047_v20 }
 0xaed   :  { %28855 = vmatprep.subr.mxu0 %v34173_v9 }
 0xaee   :  { %v33972_v57 = vand.u32 4294901760, %v33050_v24 }
 0xaef   :  { %v17190_v32 = vpop.f32.mrf.mxu0 }
 0xaf0   :  { %v17282_v33 = vadd.f32 %v17281_v59, %v17190_v32  ;;  %v17438_v51 = vpop.f32.mrf.mxu1  ;;  %v20527_v18 = vsub.f32 %v33050_v24, %v33972_v57 }
 0xaf1   :  { %v28537_v15 = vpop.f32.mrf.mxu0 }
 0xaf2   :  { %v28570_v30 = vpop.f32.mrf.mxu1  ;;  %v20528_v19 = vand.u32 4294901760, %v20527_v18 }
 0xaf4   :  { %28851 = vmatpush3.msra.mxu1 %v20528_v19 }
 0xaf5   :  { %28860 = vmatprep.subr.mxu1 %v34173_v9 }
 0xaf9   :  { %v17361_v17 = vpop.f32.mrf.mxu0 }
 0xafa   :  { %v17362_v3 = vadd.f32 %v17361_v17, %v17282_v33  ;;  %v17596_v35 = vpop.f32.mrf.mxu1 }
 0xafb   :  { %v28559_v37 = vpop.f32.mrf.mxu0 }
 0xafc   :  { %v28592_v49 = vpop.f32.mrf.mxu1  ;;  %v17439_v53 = vadd.f32 %v17438_v51, %v17362_v3 }
 0xb03   :  { %v17521_v23 = vpop.f32.mrf.mxu0 }
 0xb04   :  { %v17522_v12 = vadd.f32 %v17521_v23, %v17439_v53  ;;  %v17766_v59 = vpop.f32.mrf.mxu1 }
 0xb05   :  { %v28581_v25 = vpop.f32.mrf.mxu0 }
 0xb06   :  { %v33059_v16 = vadd.f32 %v17596_v35, %v17522_v12  ;;  %v28614_v8 = vpop.f32.mrf.mxu1 }
 0xb0d   :  { %v17675_v32 = vpop.f32.mrf.mxu0 }
 0xb0e   :  { %v17767_v15 = vadd.f32 %v17766_v59, %v17675_v32  ;;  %v17923_v30 = vpop.f32.mrf.mxu1 }
 0xb0f   :  { %v28603_v18 = vpop.f32.mrf.mxu0 }
 0xb10   :  { %v28636_v19 = vpop.f32.mrf.mxu1 }
 0xb17   :  { %v17846_v57 = vpop.f32.mrf.mxu0 }
 0xb18   :  { %v17847_v6 = vadd.f32 %v17846_v57, %v17767_v15  ;;  %v18081_v61 = vpop.f32.mrf.mxu1 }
 0xb19   :  { %v28625_v33 = vpop.f32.mrf.mxu0 }
 0xb1a   :  { %v28658_v17 = vpop.f32.mrf.mxu1  ;;  %v17924_v37 = vadd.f32 %v17923_v30, %v17847_v6 }
 0xb21   :  { %v18006_v49 = vpop.f32.mrf.mxu0 }
 0xb22   :  { %v18007_v51 = vadd.f32 %v18006_v49, %v17924_v37  ;;  %v18251_v3 = vpop.f32.mrf.mxu1 }
 0xb23   :  { %v28647_v53 = vpop.f32.mrf.mxu0 }
 0xb24   :  { %v33061_v23 = vadd.f32 %v18081_v61, %v18007_v51  ;;  %v28680_v35 = vpop.f32.mrf.mxu1 }
 0xb2b   :  { %v18160_v12 = vpop.f32.mrf.mxu0 }
 0xb2c   :  { %v18252_v25 = vadd.f32 %v18251_v3, %v18160_v12  ;;  %v18408_v8 = vpop.f32.mrf.mxu1  ;;  %v29409_v3 = vld [vmem:[%s33644_s8] sm:$0xff] }
 0xb2d   :  { %v28669_v59 = vpop.f32.mrf.mxu0 }
 0xb2e   :  { %v28702_v32 = vpop.f32.mrf.mxu1 }
 0xb35   :  { %v18331_v18 = vpop.f32.mrf.mxu0 }
 0xb36   :  { %v18332_v19 = vadd.f32 %v18331_v18, %v18252_v25  ;;  %v18566_v40 = vpop.f32.mrf.mxu1 }
 0xb37   :  { %v28691_v57 = vpop.f32.mrf.mxu0 }
 0xb38   :  { %v28724_v15 = vpop.f32.mrf.mxu1  ;;  %v18409_v33 = vadd.f32 %v18408_v8, %v18332_v19 }
 0xb3d   :  { %v18491_v17 = vpop.f32.mrf.mxu0 }
 0xb3e   :  { %v18492_v6 = vadd.f32 %v18491_v17, %v18409_v33 }
 0xb3f   :  { %v28713_v30 = vpop.f32.mrf.mxu0  ;;  %v18724_v37 = vpop.f32.mrf.mxu1 }
 0xb40   :  { %v33063_v49 = vadd.f32 %v18566_v40, %v18492_v6 }
 0xb41   :  { %v18648_v61 = vpop.f32.mrf.mxu0  ;;  %v28734_v51 = vpop.f32.mrf.mxu1 }
 0xb42   :  { %v18649_v53 = vadd.f32 %v29409_v3, %v18648_v61 }
 0xb43   :  { %v28729_v35 = vpop.f32.mrf.mxu0 }
 0xb44   :  { %v18725_v12 = vadd.f32 %v18724_v37, %v18649_v53  ;;  %v18872_v25 = vpop.f32.mrf.mxu1  ;;  %v29410_v53 = vld [vmem:[%s33644_s8 + $0x8] sm:$0xff] }
 0xb45   :  { %v18798_v59 = vpop.f32.mrf.mxu0 }
 0xb46   :  { %v18799_v32 = vadd.f32 %v18798_v59, %v18725_v12  ;;  %v28744_v18 = vpop.f32.mrf.mxu1 }
 0xb47   :  { %v28739_v8 = vpop.f32.mrf.mxu0 }
 0xb48   :  { %v18873_v19 = vadd.f32 %v18872_v25, %v18799_v32  ;;  %v19018_v57 = vpop.f32.mrf.mxu1 }
 0xb49   :  { %v18946_v15 = vpop.f32.mrf.mxu0 }
 0xb4a   :  { %v18947_v33 = vadd.f32 %v18946_v15, %v18873_v19  ;;  %v28754_v40 = vpop.f32.mrf.mxu1 }
 0xb4b   :  { %v28749_v17 = vpop.f32.mrf.mxu0 }
 0xb4c   :  { %v33068_v6 = vadd.f32 %v19018_v57, %v18947_v33 }
 0xb4e   :  { %v20378_v30 = vsel %vm6021_vm2, %v33068_v6, -inf }
 0xb4f   :  { %20379 = vmax.xlane.f32.xlu0 %v20378_v30 }
 0xb55   :  { %v19100_v61 = vpop.f32.mrf.mxu0 }
 0xb56   :  { %v19101_v35 = vadd.f32 %v29410_v53, %v19100_v61 }
 0xb57   :  { %v28759_v51 = vpop.f32.mrf.mxu0 }
 0xb59   :  { %v19250_v37 = vpop.f32.mrf.mxu0 }
 0xb5b   :  { %v28769_v3 = vpop.f32.mrf.mxu0 }
 0xb5d   :  { %v19176_v12 = vpop.f32.mrf.mxu1  ;;  %v19398_v25 = vpop.f32.mrf.mxu0 }
 0xb5e   :  { %v19177_v59 = vadd.f32 %v19176_v12, %v19101_v35 }
 0xb5f   :  { %v28764_v32 = vpop.f32.mrf.mxu1  ;;  %v28779_v18 = vpop.f32.mrf.mxu0 }
 0xb60   :  { %v19251_v8 = vadd.f32 %v19250_v37, %v19177_v59  ;;  %v29411_v37 = vld [vmem:[%s33644_s8 + $0x10] sm:$0xff] }
 0xb61   :  { %v19324_v19 = vpop.f32.mrf.mxu1 }
 0xb62   :  { %v19325_v57 = vadd.f32 %v19324_v19, %v19251_v8 }
 0xb63   :  { %v28774_v15 = vpop.f32.mrf.mxu1 }
 0xb64   :  { %v19399_v33 = vadd.f32 %v19398_v25, %v19325_v57 }
 0xb65   :  { %v19470_v40 = vpop.f32.mrf.mxu1 }
 0xb66   :  { %v33075_v17 = vadd.f32 %v19470_v40, %v19399_v33 }
 0xb67   :  { %v28784_v30 = vpop.f32.mrf.mxu1 }
 0xb68   :  { %v20381_v51 = vsel %vm6021_vm2, %v33075_v17, -inf }
 0xb69   :  { %20382 = vmax.xlane.f32.xlu0 %v20381_v51 }
 0xb73   :  { %v19552_v3 = vpop.f32.mrf.mxu0 }
 0xb74   :  { %v19553_v35 = vadd.f32 %v29411_v37, %v19552_v3 }
 0xb75   :  { %v28789_v61 = vpop.f32.mrf.mxu0 }
 0xb77   :  { %v19702_v53 = vpop.f32.mrf.mxu0 }
 0xb79   :  { %v28799_v63 = vpop.f32.mrf.mxu0 }
 0xb7b   :  { %v19628_v12 = vpop.f32.mrf.mxu1  ;;  %v19850_v59 = vpop.f32.mrf.mxu0 }
 0xb7c   :  { %v19629_v25 = vadd.f32 %v19628_v12, %v19553_v35 }
 0xb7d   :  { %v28794_v32 = vpop.f32.mrf.mxu1  ;;  %v28809_v18 = vpop.f32.mrf.mxu0 }
 0xb7e   :  { %v19703_v8 = vadd.f32 %v19702_v53, %v19629_v25  ;;  %v29412_v53 = vld [vmem:[%s33644_s8 + $0x18] sm:$0xff] }
 0xb7f   :  { %v19776_v19 = vpop.f32.mrf.mxu1 }
 0xb80   :  { %v19777_v57 = vadd.f32 %v19776_v19, %v19703_v8 }
 0xb81   :  { %v28804_v15 = vpop.f32.mrf.mxu1 }
 0xb82   :  { %v19851_v33 = vadd.f32 %v19850_v59, %v19777_v57 }
 0xb83   :  { %v19922_v40 = vpop.f32.mrf.mxu1 }
 0xb84   :  { %v33082_v30 = vadd.f32 %v19922_v40, %v19851_v33 }
 0xb85   :  { %v28814_v51 = vpop.f32.mrf.mxu1 }
 0xb86   :  { %v20384_v63 = vsel %vm6021_vm2, %v33082_v30, -inf }
 0xb87   :  { %20385 = vmax.xlane.f32.xlu0 %v20384_v63 }
 0xb91   :  { %v20004_v61 = vpop.f32.mrf.mxu0 }
 0xb92   :  { %v20005_v35 = vadd.f32 %v29412_v53, %v20004_v61 }
 0xb93   :  { %v28819_v3 = vpop.f32.mrf.mxu0 }
 0xb95   :  { %v20154_v37 = vpop.f32.mrf.mxu0 }
 0xb97   :  { %v28829_v21 = vpop.f32.mrf.mxu0 }
 0xb99   :  { %v20080_v12 = vpop.f32.mrf.mxu1  ;;  %v20302_v25 = vpop.f32.mrf.mxu0 }
 0xb9a   :  { %v20081_v59 = vadd.f32 %v20080_v12, %v20005_v35  ;;  %v20897_v35 = vand.u32 4294901760, %v33059_v16 }
 0xb9b   :  { %v28824_v32 = vpop.f32.mrf.mxu1  ;;  %v28839_v18 = vpop.f32.mrf.mxu0 }
 0xb9c   :  { %v20155_v8 = vadd.f32 %v20154_v37, %v20081_v59  ;;  %v33096_v37 = vsub.f32 %v33059_v16, %v20897_v35 }
 0xb9d   :  { %v20228_v19 = vpop.f32.mrf.mxu1 }
 0xb9e   :  { %v20229_v57 = vadd.f32 %v20228_v19, %v20155_v8  ;;  %v20975_v18 = vand.u32 4294901760, %v33096_v37 }
 0xb9f   :  { %v28834_v15 = vpop.f32.mrf.mxu1 }
 0xba0   :  { %v20303_v33 = vadd.f32 %v20302_v25, %v20229_v57 }
 0xba1   :  { %v20374_v40 = vpop.f32.mrf.mxu1 }
 0xba2   :  { %v33089_v51 = vadd.f32 %v20374_v40, %v20303_v33 }
 0xba3   :  { %v28844_v63 = vpop.f32.mrf.mxu1 }
 0xba4   :  { %v20387_v21 = vsel %vm6021_vm2, %v33089_v51, -inf }
 0xba5   :  { %20388 = vmax.xlane.f32.xlu0 %v20387_v21 }
 0xbd8   :  { %v20380_v3 = vpop.xlane.xlu0 %20379 }
 0xbd9   :  { %v20390_v61 = vsub.f32 %v33068_v6, %v20380_v3  ;;  %v20976_v6 = vsub.f32 %v33096_v37, %v20975_v18 }
 0xbdb   :  { %v20394_v53 = vmul.f32 1.442695, %v20390_v61  ;;  %v20977_v63 = vand.u32 4294901760, %v20976_v6 }
 0xbdd   :  { %29387 = vpow2.f32 %v20394_v53 }
 0xbea   :  { %v29388_v12 = vpop.eup %29387 }
 0xbeb   :  { %v20402_v25 = vsel %vm6021_vm2, %v29388_v12, 0.0  ;;  %v20415_v59 = vsel %vm6021_vm2, %v29388_v12, 0 }
 0xbec   :  { %20403 = vadd.xlane.f32.xlu0 %v20402_v25  ;;  %v20483_v32 = vand.u32 4294901760, %v20415_v59 }
 0xbee   :  { %v20484_v8 = vsub.f32 %v20415_v59, %v20483_v32  ;;  %28853 = vmatmul.mubr.f32.vlgmr.msra.gmra.mxu1 %v20483_v32 }
 0xbef   :  { %28861 = vmatpush3.msra.mxu1 %v33047_v20  ;;  %28862 = vmatprep.mubr.msk.f32.mxu1 %vm29419_vm1, %v34173_v9 }
 0xbf0   :  { %28870 = vmatprep.subr.mxu1 %v34173_v9  ;;  %v20485_v16 = vand.u32 4294901760, %v20484_v8 }
 0xbf2   :  { %v20383_v19 = vpop.xlane.xlu0 %20382  ;;  %28863 = vmatmul.mubr.f32.vlgmr.msra.gmra.mxu1 %v20485_v16  ;;  %v20486_v57 = vsub.f32 %v20484_v8, %v20485_v16 }
 0xbf3   :  { %v20391_v15 = vsub.f32 %v33075_v17, %v20383_v19  ;;  %28871 = vmatpush3.msra.mxu1 %v33047_v20  ;;  %28872 = vmatprep.mubr.msk.f32.mxu1 %vm29419_vm1, %v34173_v9  ;;  %v34444_v20 = vand.u32 4294901760, %v33050_v24  ;;  %v21346_v17 = vand.u32 4294901760, %v33061_v23 }
 0xbf4   :  { %28880 = vmatprep.subr.mxu1 %v34173_v9  ;;  %v20487_v33 = vand.u32 4294901760, %v20486_v57 }
 0xbf5   :  { %v20396_v40 = vmul.f32 1.442695, %v20391_v15  ;;  %v33130_v21 = vsub.f32 %v33061_v23, %v21346_v17 }
 0xbf6   :  { %28848 = vmatmul.mubr.f32.vlgmr.msra.gmra.mxu0 %v20487_v33  ;;  %28873 = vmatmul.mubr.f32.vlgmr.msra.gmra.mxu1 %v20483_v32 }
 0xbf7   :  { %29389 = vpow2.f32 %v20396_v40  ;;  %28856 = vmatpush3.msra.mxu0 %v33050_v24  ;;  %28881 = vmatpush3.msra.mxu1 %v20977_v63  ;;  %v21424_v12 = vand.u32 4294901760, %v33130_v21 }
 0xbf8   :  { %28857 = vmatprep.mubr.msk.f32.mxu0 %vm29419_vm1, %v34173_v9  ;;  %28865 = vmatprep.subr.mxu0 %v34173_v9 }
 0xbf9   :  { %28882 = vmatprep.mubr.msk.f32.mxu1 %vm29419_vm1, %v34173_v9  ;;  %28890 = vmatprep.subr.mxu1 %v34173_v9  ;;  %v21425_v23 = vsub.f32 %v33130_v21, %v21424_v12 }
 0xbfa   :  { %28858 = vmatmul.mubr.f32.vlgmr.msra.gmra.mxu0 %v20484_v8 }
 0xbfb   :  { %28866 = vmatpush3.msra.mxu0 %v34444_v20  ;;  %28867 = vmatprep.mubr.msk.f32.mxu0 %vm29419_vm1, %v34173_v9  ;;  %v21426_v16 = vand.u32 4294901760, %v21425_v23 }
 0xbfc   :  { %28875 = vmatprep.subr.mxu0 %v34173_v9 }
 0xbfe   :  { %28868 = vmatmul.mubr.f32.vlgmr.msra.gmra.mxu0 %v20483_v32 }
 0xbff   :  { %28876 = vmatpush3.msra.mxu0 %v20897_v35  ;;  %28877 = vmatprep.mubr.msk.f32.mxu0 %vm29419_vm1, %v34173_v9 }
 0xc00   :  { %28885 = vmatprep.subr.mxu0 %v34173_v9 }
 0xc04   :  { %v29390_v3 = vpop.eup %29389 }
 0xc05   :  { %v20405_v24 = vsel %vm6021_vm2, %v29390_v3, 0.0  ;;  %v20864_v61 = vsel %vm6021_vm2, %v29390_v3, 0 }
 0xc06   :  { %20406 = vadd.xlane.f32.xlu0 %v20405_v24  ;;  %v20932_v53 = vand.u32 4294901760, %v20864_v61 }
 0xc08   :  { %v20933_v25 = vsub.f32 %v20864_v61, %v20932_v53  ;;  %28883 = vmatmul.mubr.f32.vlgmr.msra.gmra.mxu1 %v20932_v53 }
 0xc09   :  { %28891 = vmatpush3.msra.mxu1 %v20897_v35  ;;  %28892 = vmatprep.mubr.msk.f32.mxu1 %vm29419_vm1, %v34173_v9 }
 0xc0a   :  { %28900 = vmatprep.subr.mxu1 %v34173_v9  ;;  %v20934_v59 = vand.u32 4294901760, %v20933_v25 }
 0xc0c   :  { %28893 = vmatmul.mubr.f32.vlgmr.msra.gmra.mxu1 %v20934_v59  ;;  %v20935_v32 = vsub.f32 %v20933_v25, %v20934_v59 }
 0xc0d   :  { %28901 = vmatpush3.msra.mxu1 %v20897_v35  ;;  %28902 = vmatprep.mubr.msk.f32.mxu1 %vm29419_vm1, %v34173_v9 }
 0xc0e   :  { %28910 = vmatprep.subr.mxu1 %v34173_v9  ;;  %v20936_v8 = vand.u32 4294901760, %v20935_v32 }
 0xc10   :  { %v20386_v6 = vpop.xlane.xlu0 %20385  ;;  %28878 = vmatmul.mubr.f32.vlgmr.msra.gmra.mxu0 %v20936_v8  ;;  %28903 = vmatmul.mubr.f32.vlgmr.msra.gmra.mxu1 %v20932_v53 }
 0xc11   :  { %v20392_v19 = vsub.f32 %v33082_v30, %v20386_v6  ;;  %28886 = vmatpush3.msra.mxu0 %v33096_v37  ;;  %28911 = vmatpush3.msra.mxu1 %v21426_v16  ;;  %v21795_v30 = vand.u32 4294901760, %v33063_v49  ;;  %v34445_v6 = vld [vmem:[#allocation197_spill] sm:$0xff] }
 0xc12   :  { %28887 = vmatprep.mubr.msk.f32.mxu0 %vm29419_vm1, %v34173_v9  ;;  %28895 = vmatprep.subr.mxu0 %v34173_v9 }
 0xc13   :  { %v20398_v35 = vmul.f32 1.442695, %v20392_v19  ;;  %28912 = vmatprep.mubr.msk.f32.mxu1 %vm29419_vm1, %v34173_v9  ;;  %28920 = vmatprep.subr.mxu1 %v34173_v9  ;;  %v33162_v57 = vsub.f32 %v33063_v49, %v21795_v30  ;;  %v34446_v19 = vld [vmem:[#allocation194_spill] sm:$0xff] }
 0xc14   :  { %28888 = vmatmul.mubr.f32.vlgmr.msra.gmra.mxu0 %v20933_v25 }
 0xc15   :  { %29391 = vpow2.f32 %v20398_v35  ;;  %28896 = vmatpush3.msra.mxu0 %v20975_v18  ;;  %28897 = vmatprep.mubr.msk.f32.mxu0 %vm29419_vm1, %v34173_v9  ;;  %v21873_v40 = vand.u32 4294901760, %v33162_v57 }
 0xc16   :  { %28905 = vmatprep.subr.mxu0 %v34173_v9 }
 0xc17   :  { %v21874_v49 = vsub.f32 %v33162_v57, %v21873_v40 }
 0xc18   :  { %28898 = vmatmul.mubr.f32.vlgmr.msra.gmra.mxu0 %v20932_v53 }
 0xc19   :  { %28906 = vmatpush3.msra.mxu0 %v21346_v17  ;;  %28907 = vmatprep.mubr.msk.f32.mxu0 %vm29419_vm1, %v34173_v9  ;;  %v21875_v61 = vand.u32 4294901760, %v21874_v49 }
 0xc1a   :  { %28915 = vmatprep.subr.mxu0 %v34173_v9 }
 0xc22   :  { %v29392_v15 = vpop.eup %29391 }
 0xc23   :  { %v20408_v37 = vsel %vm6021_vm2, %v29392_v15, 0.0  ;;  %v21313_v18 = vsel %vm6021_vm2, %v29392_v15, 0 }
 0xc24   :  { %20409 = vadd.xlane.f32.xlu0 %v20408_v37  ;;  %v21381_v33 = vand.u32 4294901760, %v21313_v18 }
 0xc26   :  { %v21382_v63 = vsub.f32 %v21313_v18, %v21381_v33  ;;  %28913 = vmatmul.mubr.f32.vlgmr.msra.gmra.mxu1 %v21381_v33 }
 0xc27   :  { %28921 = vmatpush3.msra.mxu1 %v21346_v17  ;;  %28922 = vmatprep.mubr.msk.f32.mxu1 %vm29419_vm1, %v34173_v9 }
 0xc28   :  { %28930 = vmatprep.subr.mxu1 %v34173_v9  ;;  %v21383_v20 = vand.u32 4294901760, %v21382_v63 }
 0xc2a   :  { %28923 = vmatmul.mubr.f32.vlgmr.msra.gmra.mxu1 %v21383_v20  ;;  %v21384_v3 = vsub.f32 %v21382_v63, %v21383_v20 }
 0xc2b   :  { %28931 = vmatpush3.msra.mxu1 %v21346_v17  ;;  %28932 = vmatprep.mubr.msk.f32.mxu1 %vm29419_vm1, %v34173_v9 }
 0xc2c   :  { %28940 = vmatprep.subr.mxu1 %v34173_v9  ;;  %v21385_v24 = vand.u32 4294901760, %v21384_v3 }
 0xc2e   :  { %v20389_v53 = vpop.xlane.xlu0 %20388  ;;  %28908 = vmatmul.mubr.f32.vlgmr.msra.gmra.mxu0 %v21385_v24  ;;  %28933 = vmatmul.mubr.f32.vlgmr.msra.gmra.mxu1 %v21381_v33 }
 0xc2f   :  { %v20393_v25 = vsub.f32 %v33089_v51, %v20389_v53  ;;  %28916 = vmatpush3.msra.mxu0 %v33130_v21  ;;  %28941 = vmatpush3.msra.mxu1 %v21875_v61 }
 0xc30   :  { %28917 = vmatprep.mubr.msk.f32.mxu0 %vm29419_vm1, %v34173_v9  ;;  %28925 = vmatprep.subr.mxu0 %v34173_v9 }
 0xc31   :  { %v20400_v17 = vmul.f32 1.442695, %v20393_v25  ;;  %28942 = vmatprep.mubr.msk.f32.mxu1 %vm29419_vm1, %v34173_v9  ;;  %28950 = vmatprep.subr.mxu1 %v34173_v9 }
 0xc32   :  { %28918 = vmatmul.mubr.f32.vlgmr.msra.gmra.mxu0 %v21382_v63 }
 0xc33   :  { %29393 = vpow2.f32 %v20400_v17  ;;  %28926 = vmatpush3.msra.mxu0 %v21424_v12  ;;  %28927 = vmatprep.mubr.msk.f32.mxu0 %vm29419_vm1, %v34173_v9 }
 0xc34   :  { %28935 = vmatprep.subr.mxu0 %v34173_v9 }
 0xc36   :  { %28928 = vmatmul.mubr.f32.vlgmr.msra.gmra.mxu0 %v21381_v33 }
 0xc37   :  { %28936 = vmatpush3.msra.mxu0 %v21795_v30  ;;  %28937 = vmatprep.mubr.msk.f32.mxu0 %vm29419_vm1, %v34173_v9 }
 0xc38   :  { %28945 = vmatprep.subr.mxu0 %v34173_v9 }
 0xc40   :  { %v29394_v51 = vpop.eup %29393 }
 0xc41   :  { %v20411_v59 = vsel %vm6021_vm2, %v29394_v51, 0.0  ;;  %v21762_v23 = vsel %vm6021_vm2, %v29394_v51, 0 }
 0xc42   :  { %20412 = vadd.xlane.f32.xlu0 %v20411_v59  ;;  %v21830_v21 = vand.u32 4294901760, %v21762_v23 }
 0xc44   :  { %v21831_v12 = vsub.f32 %v21762_v23, %v21830_v21  ;;  %28943 = vmatmul.mubr.f32.vlgmr.msra.gmra.mxu1 %v21830_v21 }
 0xc45   :  { %28951 = vmatpush3.msra.mxu1 %v21795_v30  ;;  %28952 = vmatprep.mubr.msk.f32.mxu1 %vm29419_vm1, %v34173_v9 }
 0xc46   :  { %28960 = vmatprep.subr.mxu1 %v34173_v9  ;;  %v21832_v32 = vand.u32 4294901760, %v21831_v12 }
 0xc48   :  { %28953 = vmatmul.mubr.f32.vlgmr.msra.gmra.mxu1 %v21832_v32  ;;  %v21833_v8 = vsub.f32 %v21831_v12, %v21832_v32 }
 0xc49   :  { %28961 = vmatpush3.msra.mxu1 %v21795_v30  ;;  %28962 = vmatprep.mubr.msk.f32.mxu1 %vm29419_vm1, %v34173_v9 }
 0xc4a   :  { %v21834_v16 = vand.u32 4294901760, %v21833_v8  ;;  %28970 = vmatprep.subr.mxu1 %v34173_v9 }
 0xc4c   :  { %28938 = vmatmul.mubr.f32.vlgmr.msra.gmra.mxu0 %v21834_v16  ;;  %28963 = vmatmul.mubr.f32.vlgmr.msra.gmra.mxu1 %v21830_v21 }
 0xc4d   :  { %28946 = vmatpush3.msra.mxu0 %v33162_v57  ;;  %28947 = vmatprep.mubr.msk.f32.mxu0 %vm29419_vm1, %v34173_v9 }
 0xc4e   :  { %28955 = vmatprep.subr.mxu0 %v34173_v9  ;;  %28971 = vmatpush3.msra.mxu1 %v34445_v6 }
 0xc4f   :  { %28972 = vmatprep.mubr.msk.f32.mxu1 %vm29419_vm1, %v34173_v9  ;;  %28980 = vmatprep.subr.mxu1 %v34173_v9 }
 0xc50   :  { %28948 = vmatmul.mubr.f32.vlgmr.msra.gmra.mxu0 %v21831_v12 }
 0xc51   :  { %28956 = vmatpush3.msra.mxu0 %v21873_v40  ;;  %28957 = vmatprep.mubr.msk.f32.mxu0 %vm29419_vm1, %v34173_v9 }
 0xc52   :  { %28965 = vmatprep.subr.mxu0 %v34173_v9 }
 0xc54   :  { %28958 = vmatmul.mubr.f32.vlgmr.msra.gmra.mxu0 %v21830_v21 }
 0xc55   :  { %28966 = vmatpush3.msra.mxu0 %v34446_v19  ;;  %28967 = vmatprep.mubr.msk.f32.mxu0 %vm29419_vm1, %v34173_v9 }
 0xc56   :  { %28975 = vmatprep.subr.mxu0 %v34173_v9 }
 0xc75   :  { %v20404_v57 = vpop.xlane.xlu0 %20403 }
 0xc76   :  { %29395 = vrcp.f32 %v20404_v57 }
 0xc83   :  { %v29396_v59 = vpop.eup %29395 }
 0xcae   :  { %v20565_v35 = vpop.f32.mrf.mxu1 }
 0xcb0   :  { %v28854_v30 = vpop.f32.mrf.mxu1 }
 0xcb2   :  { %v20713_v15 = vpop.f32.mrf.mxu1 }
 0xcb4   :  { %v28864_v37 = vpop.f32.mrf.mxu1 }
 0xcb6   :  { %v20489_v18 = vpop.f32.mrf.mxu0  ;;  %v20859_v33 = vpop.f32.mrf.mxu1 }
 0xcb7   :  { %v20566_v20 = vadd.f32 %v20565_v35, %v20489_v18  ;;  %v20407_v35 = vpop.xlane.xlu0 %20406 }
 0xcb8   :  { %v28849_v40 = vpop.f32.mrf.mxu0  ;;  %v28874_v63 = vpop.f32.mrf.mxu1  ;;  %29397 = vrcp.f32 %v20407_v35 }
 0xcb9   :  { %v34447_v40 = vld [vmem:[#allocation195_spill] sm:$0xff] }
 0xcba   :  { %v20639_v49 = vpop.f32.mrf.mxu0 }
 0xcbb   :  { %v20640_v3 = vadd.f32 %v20639_v49, %v20566_v20 }
 0xcbc   :  { %v28859_v24 = vpop.f32.mrf.mxu0 }
 0xcbd   :  { %v20714_v61 = vadd.f32 %v20713_v15, %v20640_v3 }
 0xcbe   :  { %v20787_v53 = vpop.f32.mrf.mxu0 }
 0xcbf   :  { %v20788_v25 = vadd.f32 %v20787_v53, %v20714_v61  ;;  %v34449_v61 = vld [vmem:[#allocation196_spill] sm:$0xff] }
 0xcc0   :  { %v28869_v17 = vpop.f32.mrf.mxu0 }
 0xcc1   :  { %v20860_v51 = vadd.f32 %v20859_v33, %v20788_v25 }
 0xcc3   :  { %v22214_v23 = vmul.f32 %v29396_v59, %v20860_v51  ;;  %v34450_v59 = vld [vmem:[#allocation198_spill] sm:$0xff] }
 0xcc5   :  { %v22219_v21 = vsel %vm6021_vm2, %v22214_v23, 0 }
 0xcc6   :  { %v22287_v12 = vand.u32 4294901760, %v22219_v21 }
 0xcc8   :  { %v22288_v32 = vsub.f32 %v22219_v21, %v22287_v12  ;;  %v21014_v8 = vpop.f32.mrf.mxu1  ;;  %28973 = vmatmul.mubr.f32.vlgmr.msra.gmra.mxu1 %v22287_v12 }
 0xcc9   :  { %28981 = vmatpush3.msra.mxu1 %v34446_v19  ;;  %28982 = vmatprep.mubr.msk.f32.mxu1 %vm29419_vm1, %v34173_v9 }
 0xcca   :  { %v22289_v16 = vand.u32 4294901760, %v22288_v32  ;;  %v28884_v6 = vpop.f32.mrf.mxu1  ;;  %28990 = vmatprep.subr.mxu1 %v34173_v9 }
 0xccc   :  { %v22290_v30 = vsub.f32 %v22288_v32, %v22289_v16  ;;  %v21162_v57 = vpop.f32.mrf.mxu1  ;;  %28983 = vmatmul.mubr.f32.vlgmr.msra.gmra.mxu1 %v22289_v16 }
 0xccd   :  { %28991 = vmatpush3.msra.mxu1 %v34446_v19  ;;  %28992 = vmatprep.mubr.msk.f32.mxu1 %vm29419_vm1, %v34173_v9  ;;  %v34448_v19 = vld [vmem:[#allocation201_spill] sm:$0xff] }
 0xcce   :  { %v28894_v15 = vpop.f32.mrf.mxu1  ;;  %v22291_v37 = vand.u32 4294901760, %v22290_v30  ;;  %29000 = vmatprep.subr.mxu1 %v34173_v9 }
 0xcd0   :  { %v20938_v18 = vpop.f32.mrf.mxu0  ;;  %v21308_v33 = vpop.f32.mrf.mxu1  ;;  %28968 = vmatmul.mubr.f32.vlgmr.msra.gmra.mxu0 %v22291_v37  ;;  %28993 = vmatmul.mubr.f32.vlgmr.msra.gmra.mxu1 %v22287_v12 }
 0xcd1   :  { %28976 = vmatpush3.msra.mxu0 %v34447_v40  ;;  %28977 = vmatprep.mubr.msk.f32.mxu0 %vm29419_vm1, %v34173_v9  ;;  %v21015_v49 = vadd.f32 %v21014_v8, %v20938_v18  ;;  %v20410_v18 = vpop.xlane.xlu0 %20409  ;;  %v34451_v40 = vld [vmem:[#allocation199_spill] sm:$0xff] }
 0xcd2   :  { %v28879_v63 = vpop.f32.mrf.mxu0  ;;  %v28904_v20 = vpop.f32.mrf.mxu1  ;;  %28985 = vmatprep.subr.mxu0 %v34173_v9  ;;  %29001 = vmatpush3.msra.mxu1 %v34448_v19  ;;  %29399 = vrcp.f32 %v20410_v18 }
 0xcd3   :  { %29002 = vmatprep.mubr.msk.f32.mxu1 %vm29419_vm1, %v34173_v9  ;;  %29010 = vmatprep.subr.mxu1 %v34173_v9  ;;  %v34452_v20 = vld [vmem:[#allocation205_spill] sm:$0xff] }
 0xcd4   :  { %v21088_v3 = vpop.f32.mrf.mxu0  ;;  %28978 = vmatmul.mubr.f32.vlgmr.msra.gmra.mxu0 %v22288_v32  ;;  %v29398_v32 = vpop.eup %29397 }
 0xcd5   :  { %v21089_v24 = vadd.f32 %v21088_v3, %v21015_v49  ;;  %28986 = vmatpush3.msra.mxu0 %v34449_v61  ;;  %28987 = vmatprep.mubr.msk.f32.mxu0 %vm29419_vm1, %v34173_v9  ;;  %v34453_v3 = vld [vmem:[#allocation200_spill] sm:$0xff] }
 0xcd6   :  { %v28889_v53 = vpop.f32.mrf.mxu0  ;;  %28995 = vmatprep.subr.mxu0 %v34173_v9 }
 0xcd7   :  { %v21163_v25 = vadd.f32 %v21162_v57, %v21089_v24 }
 0xcd8   :  { %v21236_v17 = vpop.f32.mrf.mxu0  ;;  %28988 = vmatmul.mubr.f32.vlgmr.msra.gmra.mxu0 %v22287_v12 }
 0xcd9   :  { %v21237_v51 = vadd.f32 %v21236_v17, %v21163_v25  ;;  %28996 = vmatpush3.msra.mxu0 %v34450_v59  ;;  %28997 = vmatprep.mubr.msk.f32.mxu0 %vm29419_vm1, %v34173_v9 }
 0xcda   :  { %v28899_v23 = vpop.f32.mrf.mxu0  ;;  %29005 = vmatprep.subr.mxu0 %v34173_v9 }
 0xcdb   :  { %v21309_v21 = vadd.f32 %v21308_v33, %v21237_v51  ;;  %v34454_v51 = vld [vmem:[#allocation202_spill] sm:$0xff] }
 0xcdd   :  { %v22215_v8 = vmul.f32 %v29398_v32, %v21309_v21 }
 0xcdf   :  { %v22668_v16 = vsel %vm6021_vm2, %v22215_v8, 0 }
 0xce0   :  { %v22736_v6 = vand.u32 4294901760, %v22668_v16 }
 0xce2   :  { %v22737_v35 = vsub.f32 %v22668_v16, %v22736_v6  ;;  %29003 = vmatmul.mubr.f32.vlgmr.msra.gmra.mxu1 %v22736_v6 }
 0xce3   :  { %29011 = vmatpush3.msra.mxu1 %v34450_v59  ;;  %29012 = vmatprep.mubr.msk.f32.mxu1 %vm29419_vm1, %v34173_v9 }
 0xce4   :  { %v22738_v12 = vand.u32 4294901760, %v22737_v35  ;;  %29020 = vmatprep.subr.mxu1 %v34173_v9 }
 0xce6   :  { %v22739_v30 = vsub.f32 %v22737_v35, %v22738_v12  ;;  %v21463_v57 = vpop.f32.mrf.mxu1  ;;  %29013 = vmatmul.mubr.f32.vlgmr.msra.gmra.mxu1 %v22738_v12 }
 0xce7   :  { %29021 = vmatpush3.msra.mxu1 %v34450_v59  ;;  %29022 = vmatprep.mubr.msk.f32.mxu1 %vm29419_vm1, %v34173_v9 }
 0xce8   :  { %v28914_v15 = vpop.f32.mrf.mxu1  ;;  %v22740_v37 = vand.u32 4294901760, %v22739_v30  ;;  %29030 = vmatprep.subr.mxu1 %v34173_v9 }
 0xcea   :  { %v21611_v33 = vpop.f32.mrf.mxu1  ;;  %28998 = vmatmul.mubr.f32.vlgmr.msra.gmra.mxu0 %v22740_v37  ;;  %29023 = vmatmul.mubr.f32.vlgmr.msra.gmra.mxu1 %v22736_v6 }
 0xceb   :  { %29006 = vmatpush3.msra.mxu0 %v34451_v40  ;;  %29007 = vmatprep.mubr.msk.f32.mxu0 %vm29419_vm1, %v34173_v9 }
 0xcec   :  { %v28924_v63 = vpop.f32.mrf.mxu1  ;;  %29015 = vmatprep.subr.mxu0 %v34173_v9  ;;  %29031 = vmatpush3.msra.mxu1 %v34452_v20 }
 0xced   :  { %29032 = vmatprep.mubr.msk.f32.mxu1 %vm29419_vm1, %v34173_v9  ;;  %29040 = vmatprep.subr.mxu1 %v34173_v9  ;;  %v20413_v63 = vpop.xlane.xlu0 %20412 }
 0xcee   :  { %v21387_v19 = vpop.f32.mrf.mxu0  ;;  %v21757_v49 = vpop.f32.mrf.mxu1  ;;  %29008 = vmatmul.mubr.f32.vlgmr.msra.gmra.mxu0 %v22737_v35  ;;  %29401 = vrcp.f32 %v20413_v63 }
 0xcef   :  { %29016 = vmatpush3.msra.mxu0 %v34453_v3  ;;  %29017 = vmatprep.mubr.msk.f32.mxu0 %vm29419_vm1, %v34173_v9  ;;  %v21464_v53 = vadd.f32 %v21463_v57, %v21387_v19  ;;  %v29400_v35 = vpop.eup %29399  ;;  %v34455_v19 = vld [vmem:[#allocation203_spill] sm:$0xff]  ;;  %v34456_v3 = vld [vmem:[#allocation209_spill] sm:$0xff] }
 0xcf0   :  { %v28909_v24 = vpop.f32.mrf.mxu0  ;;  %v28934_v61 = vpop.f32.mrf.mxu1  ;;  %29025 = vmatprep.subr.mxu0 %v34173_v9 }
 0xcf2   :  { %v21537_v25 = vpop.f32.mrf.mxu0  ;;  %29018 = vmatmul.mubr.f32.vlgmr.msra.gmra.mxu0 %v22736_v6 }
 0xcf3   :  { %v21538_v17 = vadd.f32 %v21537_v25, %v21464_v53  ;;  %29026 = vmatpush3.msra.mxu0 %v34454_v51  ;;  %29027 = vmatprep.mubr.msk.f32.mxu0 %vm29419_vm1, %v34173_v9  ;;  %v34457_v53 = vld [vmem:[#allocation204_spill] sm:$0xff] }
 0xcf4   :  { %v28919_v59 = vpop.f32.mrf.mxu0  ;;  %29035 = vmatprep.subr.mxu0 %v34173_v9 }
 0xcf5   :  { %v21612_v23 = vadd.f32 %v21611_v33, %v21538_v17 }
 0xcf6   :  { %v21685_v21 = vpop.f32.mrf.mxu0 }
 0xcf7   :  { %v21686_v32 = vadd.f32 %v21685_v21, %v21612_v23  ;;  %v34458_v21 = vld [vmem:[#allocation206_spill] sm:$0xff] }
 0xcf8   :  { %v28929_v8 = vpop.f32.mrf.mxu0 }
 0xcf9   :  { %v21758_v16 = vadd.f32 %v21757_v49, %v21686_v32 }
 0xcfb   :  { %v22216_v12 = vmul.f32 %v29400_v35, %v21758_v16 }
 0xcfd   :  { %v23117_v30 = vsel %vm6021_vm2, %v22216_v12, 0 }
 0xcfe   :  { %v23185_v57 = vand.u32 4294901760, %v23117_v30 }
 0xd00   :  { %v23186_v6 = vsub.f32 %v23117_v30, %v23185_v57  ;;  %29033 = vmatmul.mubr.f32.vlgmr.msra.gmra.mxu1 %v23185_v57 }
 0xd01   :  { %29041 = vmatpush3.msra.mxu1 %v34454_v51  ;;  %29042 = vmatprep.mubr.msk.f32.mxu1 %vm29419_vm1, %v34173_v9 }
 0xd02   :  { %v23187_v15 = vand.u32 4294901760, %v23186_v6  ;;  %29050 = vmatprep.subr.mxu1 %v34173_v9 }
 0xd04   :  { %v23188_v37 = vsub.f32 %v23186_v6, %v23187_v15  ;;  %v21912_v18 = vpop.f32.mrf.mxu1  ;;  %29043 = vmatmul.mubr.f32.vlgmr.msra.gmra.mxu1 %v23187_v15 }
 0xd05   :  { %29051 = vmatpush3.msra.mxu1 %v34454_v51  ;;  %29052 = vmatprep.mubr.msk.f32.mxu1 %vm29419_vm1, %v34173_v9 }
 0xd06   :  { %v28944_v33 = vpop.f32.mrf.mxu1  ;;  %v23189_v40 = vand.u32 4294901760, %v23188_v37  ;;  %29060 = vmatprep.subr.mxu1 %v34173_v9 }
 0xd08   :  { %v22060_v20 = vpop.f32.mrf.mxu1  ;;  %29028 = vmatmul.mubr.f32.vlgmr.msra.gmra.mxu0 %v23189_v40  ;;  %29053 = vmatmul.mubr.f32.vlgmr.msra.gmra.mxu1 %v23185_v57 }
 0xd09   :  { %29036 = vmatpush3.msra.mxu0 %v34455_v19  ;;  %29037 = vmatprep.mubr.msk.f32.mxu0 %vm29419_vm1, %v34173_v9  ;;  %v34460_v19 = vld [vmem:[#allocation223_spill] sm:$0xff] }
 0xd0a   :  { %v28954_v49 = vpop.f32.mrf.mxu1  ;;  %29045 = vmatprep.subr.mxu0 %v34173_v9  ;;  %29061 = vmatpush3.msra.mxu1 %v34456_v3  ;;  %v34462_v3 = vld [vmem:[#allocation208_spill] sm:$0xff] }
 0xd0b   :  { %29062 = vmatprep.mubr.msk.f32.mxu1 %vm29419_vm1, %v34173_v9  ;;  %29070 = vmatprep.subr.mxu1 %v34173_v9  ;;  %v34461_v49 = vld [vmem:[#allocation224_spill] sm:$0xff] }
 0xd0c   :  { %v21836_v24 = vpop.f32.mrf.mxu0  ;;  %v22206_v61 = vpop.f32.mrf.mxu1  ;;  %29038 = vmatmul.mubr.f32.vlgmr.msra.gmra.mxu0 %v23186_v6 }
 0xd0d   :  { %29046 = vmatpush3.msra.mxu0 %v34457_v53  ;;  %29047 = vmatprep.mubr.msk.f32.mxu0 %vm29419_vm1, %v34173_v9  ;;  %v21913_v51 = vadd.f32 %v21912_v18, %v21836_v24  ;;  %v29402_v6 = vpop.eup %29401  ;;  %v34463_v24 = vld [vmem:[#allocation225_spill] sm:$0xff]  ;;  %v34465_v53 = vld [vmem:[#allocation211_spill] sm:$0xff] }
 0xd0e   :  { %v28939_v25 = vpop.f32.mrf.mxu0  ;;  %v28964_v17 = vpop.f32.mrf.mxu1  ;;  %29055 = vmatprep.subr.mxu0 %v34173_v9 }
 0xd0f   :  { %v34466_v25 = vld [vmem:[#allocation212_spill] sm:$0xff]  ;;  %v34467_v17 = vld [vmem:[#allocation213_spill] sm:$0xff] }
 0xd10   :  { %v21986_v59 = vpop.f32.mrf.mxu0  ;;  %29048 = vmatmul.mubr.f32.vlgmr.msra.gmra.mxu0 %v23185_v57 }
 0xd11   :  { %v21987_v23 = vadd.f32 %v21986_v59, %v21913_v51  ;;  %29056 = vmatpush3.msra.mxu0 %v34458_v21  ;;  %29057 = vmatprep.mubr.msk.f32.mxu0 %vm29419_vm1, %v34173_v9  ;;  %v34468_v51 = vld [vmem:[#allocation214_spill] sm:$0xff] }
 0xd12   :  { %v28949_v32 = vpop.f32.mrf.mxu0  ;;  %29065 = vmatprep.subr.mxu0 %v34173_v9 }
 0xd13   :  { %v22061_v8 = vadd.f32 %v22060_v20, %v21987_v23  ;;  %v34459_v20 = vld [vmem:[#allocation207_spill] sm:$0xff] }
 0xd14   :  { %v22134_v16 = vpop.f32.mrf.mxu0 }
 0xd15   :  { %v22135_v35 = vadd.f32 %v22134_v16, %v22061_v8 }
 0xd16   :  { %v28959_v12 = vpop.f32.mrf.mxu0 }
 0xd17   :  { %v22207_v30 = vadd.f32 %v22206_v61, %v22135_v35  ;;  %v34464_v61 = vld [vmem:[#allocation226_spill] sm:$0xff] }
 0xd19   :  { %v22217_v15 = vmul.f32 %v29402_v6, %v22207_v30 }
 0xd1b   :  { %v23566_v37 = vsel %vm6021_vm2, %v22217_v15, 0 }
 0xd1c   :  { %v23634_v18 = vand.u32 4294901760, %v23566_v37 }
 0xd1e   :  { %v23635_v57 = vsub.f32 %v23566_v37, %v23634_v18  ;;  %29063 = vmatmul.mubr.f32.vlgmr.msra.gmra.mxu1 %v23634_v18 }
 0xd1f   :  { %29071 = vmatpush3.msra.mxu1 %v34458_v21  ;;  %29072 = vmatprep.mubr.msk.f32.mxu1 %vm29419_vm1, %v34173_v9 }
 0xd20   :  { %v23636_v33 = vand.u32 4294901760, %v23635_v57  ;;  %29080 = vmatprep.subr.mxu1 %v34173_v9 }
 0xd22   :  { %v23637_v40 = vsub.f32 %v23635_v57, %v23636_v33  ;;  %29073 = vmatmul.mubr.f32.vlgmr.msra.gmra.mxu1 %v23636_v33 }
 0xd23   :  { %29081 = vmatpush3.msra.mxu1 %v34458_v21  ;;  %29082 = vmatprep.mubr.msk.f32.mxu1 %vm29419_vm1, %v34173_v9 }
 0xd24   :  { %v23638_v63 = vand.u32 4294901760, %v23637_v40  ;;  %29096 = vmatprep.subr.mxu1 %v34173_v9 }
 0xd26   :  { %29058 = vmatmul.mubr.f32.vlgmr.msra.gmra.mxu0 %v23638_v63  ;;  %29083 = vmatmul.mubr.f32.vlgmr.msra.gmra.mxu1 %v23634_v18 }
 0xd27   :  { %29066 = vmatpush3.msra.mxu0 %v34459_v20  ;;  %29067 = vmatprep.mubr.msk.f32.mxu0 %vm29419_vm1, %v34173_v9 }
 0xd28   :  { %29075 = vmatprep.subr.mxu0 %v34173_v9  ;;  %29097 = vmatpush3.msra.mxu1 %v34460_v19 }
 0xd29   :  { %29098 = vmatprep.subr.mxu1 %v34173_v9  ;;  %29104 = vmatprep.mubr.msk.f32.mxu1 %vm29419_vm1, %v34173_v9 }
 0xd2a   :  { %29068 = vmatmul.mubr.f32.vlgmr.msra.gmra.mxu0 %v23635_v57  ;;  %29099 = vmatpush3.msra.mxu1 %v34461_v49 }
 0xd2b   :  { %29076 = vmatpush3.msra.mxu0 %v34462_v3  ;;  %29077 = vmatprep.mubr.msk.f32.mxu0 %vm29419_vm1, %v34173_v9 }
 0xd2c   :  { %29100 = vmatprep.subr.mxu1 %v34173_v9  ;;  %29085 = vmatprep.subr.mxu0 %v34173_v9 }
 0xd2d   :  { %29101 = vmatpush3.msra.mxu1 %v34463_v24 }
 0xd2e   :  { %29078 = vmatmul.mubr.f32.vlgmr.msra.gmra.mxu0 %v23634_v18  ;;  %29102 = vmatprep.subr.mxu1 %v34173_v9 }
 0xd2f   :  { %29103 = vmatpush3.msra.mxu1 %v34464_v61  ;;  %29086 = vmatpush3.msra.mxu0 %v34465_v53 }
 0xd30   :  { %29118 = vmatprep.subr.mxu1 %v34173_v9  ;;  %29087 = vmatprep.subr.mxu0 %v34173_v9 }
 0xd31   :  { %29088 = vmatpush3.msra.mxu0 %v34466_v25  ;;  %29093 = vmatprep.mubr.msk.f32.mxu0 %vm29419_vm1, %v34173_v9 }
 0xd32   :  { %29089 = vmatprep.subr.mxu0 %v34173_v9 }
 0xd33   :  { %29090 = vmatpush3.msra.mxu0 %v34467_v17 }
 0xd34   :  { %29091 = vmatprep.subr.mxu0 %v34173_v9 }
 0xd35   :  { %29092 = vmatpush3.msra.mxu0 %v34468_v51 }
 0xd36   :  { %29107 = vmatprep.subr.mxu0 %v34173_v9 }
 0xd88   :  { %v22369_v59 = vpop.f32.mrf.mxu1 }
 0xd8a   :  { %v28974_v23 = vpop.f32.mrf.mxu1 }
 0xd8c   :  { %v22517_v21 = vpop.f32.mrf.mxu1 }
 0xd8e   :  { %v28984_v32 = vpop.f32.mrf.mxu1 }
 0xd90   :  { %v22293_v8 = vpop.f32.mrf.mxu0  ;;  %v22663_v16 = vpop.f32.mrf.mxu1 }
 0xd91   :  { %v22370_v35 = vadd.f32 %v22369_v59, %v22293_v8 }
 0xd92   :  { %v28969_v12 = vpop.f32.mrf.mxu0  ;;  %v28994_v30 = vpop.f32.mrf.mxu1 }
 0xd94   :  { %v22443_v6 = vpop.f32.mrf.mxu0 }
 0xd95   :  { %v22444_v15 = vadd.f32 %v22443_v6, %v22370_v35 }
 0xd96   :  { %v28979_v37 = vpop.f32.mrf.mxu0 }
 0xd97   :  { %v22518_v18 = vadd.f32 %v22517_v21, %v22444_v15 }
 0xd98   :  { %v22591_v57 = vpop.f32.mrf.mxu0 }
 0xd99   :  { %v22592_v33 = vadd.f32 %v22591_v57, %v22518_v18 }
 0xd9a   :  { %v28989_v40 = vpop.f32.mrf.mxu0 }
 0xd9b   :  { %v22664_v63 = vadd.f32 %v22663_v16, %v22592_v33 }
 0xd9d   :  { %v24014_v37 = vsel %vm169_vm0, %v22664_v63, 0.0 }
 0xda2   :  { %v22818_v20 = vpop.f32.mrf.mxu1 }
 0xda4   :  { %v29004_v19 = vpop.f32.mrf.mxu1 }
 0xda6   :  { %v22966_v49 = vpop.f32.mrf.mxu1 }
 0xda8   :  { %v29014_v3 = vpop.f32.mrf.mxu1 }
 0xdaa   :  { %v22742_v24 = vpop.f32.mrf.mxu0  ;;  %v23112_v61 = vpop.f32.mrf.mxu1 }
 0xdab   :  { %v22819_v4 = vadd.f32 %v22818_v20, %v22742_v24 }
 0xdac   :  { %v28999_v23 = vpop.f32.mrf.mxu0  ;;  %v29024_v32 = vpop.f32.mrf.mxu1 }
 0xdae   :  { %v22892_v59 = vpop.f32.mrf.mxu0 }
 0xdaf   :  { %v22893_v8 = vadd.f32 %v22892_v59, %v22819_v4 }
 0xdb0   :  { %v29009_v12 = vpop.f32.mrf.mxu0 }
 0xdb1   :  { %v22967_v30 = vadd.f32 %v22966_v49, %v22893_v8 }
 0xdb2   :  { %v23040_v35 = vpop.f32.mrf.mxu0 }
 0xdb3   :  { %v23041_v6 = vadd.f32 %v23040_v35, %v22967_v30 }
 0xdb4   :  { %v29019_v21 = vpop.f32.mrf.mxu0 }
 0xdb5   :  { %v23113_v15 = vadd.f32 %v23112_v61, %v23041_v6 }
 0xdb7   :  { %v24015_v16 = vsel %vm169_vm0, %v23113_v15, 0.0 }
 0xdb8   :  { %v24016_v18 = vadd.f32 %v24015_v16, %v24014_v37 }
 0xdc0   :  { %v23267_v57 = vpop.f32.mrf.mxu1 }
 0xdc2   :  { %v29034_v33 = vpop.f32.mrf.mxu1 }
 0xdc4   :  { %v23415_v40 = vpop.f32.mrf.mxu1 }
 0xdc6   :  { %v29044_v19 = vpop.f32.mrf.mxu1 }
 0xdc8   :  { %v23191_v3 = vpop.f32.mrf.mxu0  ;;  %v23561_v23 = vpop.f32.mrf.mxu1 }
 0xdc9   :  { %v23268_v8 = vadd.f32 %v23267_v57, %v23191_v3 }
 0xdca   :  { %v29029_v20 = vpop.f32.mrf.mxu0  ;;  %v29054_v24 = vpop.f32.mrf.mxu1 }
 0xdcc   :  { %v23341_v4 = vpop.f32.mrf.mxu0 }
 0xdcd   :  { %v23342_v61 = vadd.f32 %v23341_v4, %v23268_v8 }
 0xdce   :  { %v29039_v32 = vpop.f32.mrf.mxu0 }
 0xdcf   :  { %v23416_v35 = vadd.f32 %v23415_v40, %v23342_v61 }
 0xdd0   :  { %v23489_v49 = vpop.f32.mrf.mxu0 }
 0xdd1   :  { %v23490_v37 = vadd.f32 %v23489_v49, %v23416_v35  ;;  %v29413_v49 = vld [vmem:[%s33646_s7] ss:$0 sm:$0xff] }
 0xdd2   :  { %v29049_v59 = vpop.f32.mrf.mxu0 }
 0xdd3   :  { %v23562_v20 = vadd.f32 %v23561_v23, %v23490_v37 }
 0xdd5   :  { %v24017_v57 = vsel %vm169_vm0, %v23562_v20, 0.0  ;;  %v29415_v20 = vld [vmem:[%s33649_s10] ss:$0 sm:$0xff] }
 0xdd6   :  { %v24018_v8 = vadd.f32 %v24017_v57, %v24016_v18 }
 0xdde   :  { %v23716_v12 = vpop.f32.mrf.mxu1 }
 0xde0   :  { %v29064_v30 = vpop.f32.mrf.mxu1 }
 0xde1   :  { %v34469_v30 = vld [vmem:[#allocation227_spill] sm:$0xff] }
 0xde2   :  { %v23864_v63 = vpop.f32.mrf.mxu1 }
 0xde4   :  { %v29074_v6 = vpop.f32.mrf.mxu1 }
 0xde6   :  { %v23640_v21 = vpop.f32.mrf.mxu0  ;;  %v24010_v15 = vpop.f32.mrf.mxu1 }
 0xde7   :  { %v23717_v19 = vadd.f32 %v23716_v12, %v23640_v21 }
 0xde8   :  { %v29059_v16 = vpop.f32.mrf.mxu0  ;;  %v29084_v33 = vpop.f32.mrf.mxu1 }
 0xde9   :  { %v29414_v33 = vld [vmem:[%s33648_s9] ss:$0 sm:$0xff] }
 0xdea   :  { %v23790_v47 = vpop.f32.mrf.mxu0 }
 0xdeb   :  { %v23791_v24 = vadd.f32 %v23790_v47, %v23717_v19 }
 0xdec   :  { %v29069_v44 = vpop.f32.mrf.mxu0 }
 0xded   :  { %v23865_v32 = vadd.f32 %v23864_v63, %v23791_v24 }
 0xdee   :  { %v23938_v13 = vpop.f32.mrf.mxu0 }
 0xdef   :  { %v23939_v3 = vadd.f32 %v23938_v13, %v23865_v32 }
 0xdf0   :  { %v29079_v4 = vpop.f32.mrf.mxu0 }
 0xdf1   :  { %v24011_v59 = vadd.f32 %v24010_v15, %v23939_v3 }
 0xdf3   :  { %v24019_v40 = vsel %vm169_vm0, %v24011_v59, 0.0 }
 0xdf4   :  { %v24020_v61 = vadd.f32 %v24019_v40, %v24018_v8  ;;  %v34470_v40 = vld [vmem:[#allocation215_spill] sm:$0xff] }
 0xdf6   :  { %v24021_v12 = vadd.f32 %v29413_v49, %v24020_v61  ;;  %v34471_v61 = vld [vmem:[#allocation216_spill] sm:$0xff]  ;;  %v34472_v49 = vld [vmem:[#allocation217_spill] sm:$0xff] }
 0xdf8   :  { %v33333_v23 = vadd.f32 %v24021_v12, %v34469_v30  ;;  %v34476_v12 = vld [vmem:[#allocation233_spill] sm:$0xff]  ;;  %v34478_v30 = vld [vmem:[#allocation236_spill] sm:$0xff] }
 0xdfa   :  { %v24023_v44 = vsel %vm169_vm0, %v33333_v23, 0.0 }
 0xdfb   :  { %24024 = vadd.xlane.f32.xlu0 %v24023_v44  ;;  %v34479_v44 = vld [vmem:[#allocation222_spill] sm:$0xff] }
 0xe84   :  { %v24025_v47 = vpop.xlane.xlu0 %24024 }
 0xe85   :  { %v24026_v13 = vmul.f32 0.03125, %v24025_v47  ;;  %v34480_v47 = vld [vmem:[#allocation237_spill] sm:$0xff] }
 0xe87   :  { %v24027_v63 = vsub.f32 %v33333_v23, %v24026_v13  ;;  %v34481_v13 = vld [vmem:[#allocation239_spill] sm:$0xff] }
 0xe89   :  { %v24028_v18 = vmul.f32 %v24027_v63, %v24027_v63 }
 0xe8b   :  { %v24029_v35 = vsel %vm169_vm0, %v24028_v18, 0.0  ;;  %v34483_v18 = vld [vmem:[#allocation242_spill] sm:$0xff] }
 0xe8c   :  { %24030 = vadd.xlane.f32.xlu0 %v24029_v35  ;;  %v34484_v35 = vld [vmem:[#allocation244_spill] sm:$0xff] }
 0xf15   :  { %v24031_v6 = vpop.xlane.xlu0 %24030 }
 0xf16   :  { %v24032_v21 = vmul.f32 0.03125, %v24031_v6  ;;  %v34485_v6 = vld [vmem:[#allocation246_spill] sm:$0xff] }
 0xf18   :  { %v24033_v15 = vadd.f32 1e-05, %v24032_v21  ;;  %v34486_v21 = vld [vmem:[#allocation248_spill] sm:$0xff] }
 0xf1a   :  { %29403 = vrsqrt.f32 %v24033_v15  ;;  %v34487_v15 = vld [vmem:[#allocation250_spill] sm:$0xff] }
 0xf27   :  { %v29404_v37 = vpop.eup %29403 }
 0xf28   :  { %v24035_v16 = vmul.f32 %v29404_v37, %v24027_v63  ;;  %v34482_v63 = vld [vmem:[#allocation240_spill] sm:$0xff] }
 0xf29   :  { %v34488_v37 = vld [vmem:[#allocation252_spill] sm:$0xff] }
 0xf2a   :  { %v24036_v19 = vmul.f32 %v29414_v33, %v24035_v16  ;;  %v34489_v16 = vld [vmem:[#allocation254_spill] sm:$0xff]  ;;  %v34490_v33 = vld [vmem:[#allocation256_spill] sm:$0xff] }
 0xf2c   :  { %v24037_v24 = vadd.f32 %v29415_v20, %v24036_v19  ;;  %v34491_v19 = vld [vmem:[#allocation257_spill] sm:$0xff]  ;;  %v34492_v20 = vld [vmem:[#allocation258_spill] sm:$0xff] }
 0xf2e   :  { %v24039_v32 = vsel %vm169_vm0, %v24037_v24, 0  ;;  %v34493_v24 = vld [vmem:[#allocation259_spill] sm:$0xff] }
 0xf2f   :  { %v24110_v57 = vand.u32 4294901760, %v24039_v32 }
 0xf31   :  { %v24111_v3 = vsub.f32 %v24039_v32, %v24110_v57  ;;  %29105 = vmatmul.mubr.f32.vlgmr.msra.gmra.mxu1 %v24110_v57 }
 0xf32   :  { %29119 = vmatpush3.msra.mxu1 %v34465_v53  ;;  %29126 = vmatprep.mubr.msk.f32.mxu1 %vm29419_vm1, %v34173_v9 }
 0xf33   :  { %29120 = vmatprep.subr.mxu1 %v34173_v9  ;;  %v24112_v4 = vand.u32 4294901760, %v24111_v3 }
 0xf34   :  { %29121 = vmatpush3.msra.mxu1 %v34466_v25 }
 0xf35   :  { %29122 = vmatprep.subr.mxu1 %v34173_v9  ;;  %v24113_v59 = vsub.f32 %v24111_v3, %v24112_v4 }
 0xf36   :  { %29123 = vmatpush3.msra.mxu1 %v34467_v17 }
 0xf37   :  { %29124 = vmatprep.subr.mxu1 %v34173_v9  ;;  %v24114_v8 = vand.u32 4294901760, %v24113_v59 }
 0xf38   :  { %29125 = vmatpush3.msra.mxu1 %v34468_v51 }
 0xf39   :  { %29127 = vmatmul.mubr.f32.vlgmr.msra.gmra.mxu1 %v24112_v4  ;;  %29140 = vmatprep.subr.mxu1 %v34173_v9 }
 0xf3a   :  { %29094 = vmatmul.mubr.f32.vlgmr.msra.gmra.mxu0 %v24114_v8  ;;  %29141 = vmatpush3.msra.mxu1 %v34465_v53  ;;  %v34473_v53 = vld [vmem:[#allocation218_spill] sm:$0xff] }
 0xf3b   :  { %29108 = vmatpush3.msra.mxu0 %v34470_v40  ;;  %29142 = vmatprep.subr.mxu1 %v34173_v9  ;;  %v29416_v40 = vld [vmem:[%s33651_s12] ss:$0 sm:$0xff] }
 0xf3c   :  { %29109 = vmatprep.subr.mxu0 %v34173_v9  ;;  %29143 = vmatpush3.msra.mxu1 %v34466_v25  ;;  %v34474_v25 = vld [vmem:[#allocation219_spill] sm:$0xff] }
 0xf3d   :  { %29110 = vmatpush3.msra.mxu0 %v34471_v61  ;;  %29144 = vmatprep.subr.mxu1 %v34173_v9 }
 0xf3e   :  { %29111 = vmatprep.subr.mxu0 %v34173_v9  ;;  %29145 = vmatpush3.msra.mxu1 %v34467_v17  ;;  %v34475_v17 = vld [vmem:[#allocation220_spill] sm:$0xff] }
 0xf3f   :  { %29112 = vmatpush3.msra.mxu0 %v34472_v49  ;;  %29146 = vmatprep.subr.mxu1 %v34173_v9 }
 0xf40   :  { %29113 = vmatprep.subr.mxu0 %v34173_v9  ;;  %29115 = vmatprep.mubr.msk.f32.mxu0 %vm29419_vm1, %v34173_v9 }
 0xf41   :  { %29114 = vmatpush3.msra.mxu0 %v34473_v53  ;;  %29147 = vmatpush3.msra.mxu1 %v34468_v51  ;;  %v34477_v51 = vld [vmem:[#allocation221_spill] sm:$0xff] }
 0xf42   :  { %29148 = vmatprep.mubr.msk.f32.mxu1 %vm29419_vm1, %v34173_v9  ;;  %29116 = vmatmul.mubr.f32.vlgmr.msra.gmra.mxu0 %v24111_v3 }
 0xf43   :  { %29129 = vmatprep.subr.mxu0 %v34173_v9  ;;  %29149 = vmatmul.mubr.f32.vlgmr.msra.gmra.mxu1 %v24110_v57 }
 0xf44   :  { %29130 = vmatpush3.msra.mxu0 %v34474_v25  ;;  %29137 = vmatprep.mubr.msk.f32.mxu0 %vm29419_vm1, %v34173_v9 }
 0xf45   :  { %29131 = vmatprep.subr.mxu0 %v34173_v9  ;;  %29186 = vmatprep.subr.mxu1 %v34173_v9 }
 0xf46   :  { %29132 = vmatpush3.msra.mxu0 %v34475_v17  ;;  %29187 = vmatpush3.msra.mxu1 %v34476_v12 }
 0xf47   :  { %29133 = vmatprep.subr.mxu0 %v34173_v9  ;;  %29188 = vmatprep.subr.mxu1 %v34173_v9 }
 0xf48   :  { %29134 = vmatpush3.msra.mxu0 %v34477_v51  ;;  %29189 = vmatpush3.msra.mxu1 %v34478_v30 }
 0xf49   :  { %29135 = vmatprep.subr.mxu0 %v34173_v9  ;;  %29190 = vmatprep.subr.mxu1 %v34173_v9 }
 0xf4a   :  { %29136 = vmatpush3.msra.mxu0 %v34479_v44  ;;  %29191 = vmatpush3.msra.mxu1 %v34480_v47 }
 0xf4b   :  { %29138 = vmatmul.mubr.f32.vlgmr.msra.gmra.mxu0 %v24110_v57  ;;  %29192 = vmatprep.subr.mxu1 %v34173_v9 }
 0xf4c   :  { %29193 = vmatpush3.msra.mxu1 %v34481_v13  ;;  %29151 = vmatprep.subr.mxu0 %v34173_v9 }
 0xf4d   :  { %29194 = vmatprep.subr.mxu1 %v34173_v9  ;;  %29152 = vmatpush3.msra.mxu0 %v31651_v58 }
 0xf4e   :  { %29195 = vmatpush3.msra.mxu1 %v34482_v63  ;;  %29153 = vmatprep.subr.mxu0 %v34173_v9 }
 0xf4f   :  { %29196 = vmatprep.subr.mxu1 %v34173_v9  ;;  %29154 = vmatpush3.msra.mxu0 %v31659_v42 }
 0xf50   :  { %29197 = vmatpush3.msra.mxu1 %v34483_v18  ;;  %29155 = vmatprep.subr.mxu0 %v34173_v9 }
 0xf51   :  { %29198 = vmatprep.subr.mxu1 %v34173_v9  ;;  %29156 = vmatpush3.msra.mxu0 %v31671_v46 }
 0xf52   :  { %29199 = vmatpush3.msra.mxu1 %v34484_v35  ;;  %29157 = vmatprep.subr.mxu0 %v34173_v9 }
 0xf53   :  { %29200 = vmatprep.subr.mxu1 %v34173_v9  ;;  %29158 = vmatpush3.msra.mxu0 %v31673_v31 }
 0xf54   :  { %29201 = vmatpush3.msra.mxu1 %v34485_v6  ;;  %29159 = vmatprep.subr.mxu0 %v34173_v9 }
 0xf55   :  { %29202 = vmatprep.subr.mxu1 %v34173_v9  ;;  %29160 = vmatpush3.msra.mxu0 %v31675_v52 }
 0xf56   :  { %29203 = vmatpush3.msra.mxu1 %v34486_v21  ;;  %29161 = vmatprep.subr.mxu0 %v34173_v9 }
 0xf57   :  { %29204 = vmatprep.subr.mxu1 %v34173_v9  ;;  %29162 = vmatpush3.msra.mxu0 %v31694_v62 }
 0xf58   :  { %29205 = vmatpush3.msra.mxu1 %v34487_v15  ;;  %29163 = vmatprep.subr.mxu0 %v34173_v9 }
 0xf59   :  { %29206 = vmatprep.subr.mxu1 %v34173_v9  ;;  %29164 = vmatpush3.msra.mxu0 %v31696_v5 }
 0xf5a   :  { %29207 = vmatpush3.msra.mxu1 %v34488_v37  ;;  %29165 = vmatprep.subr.mxu0 %v34173_v9 }
 0xf5b   :  { %29208 = vmatprep.subr.mxu1 %v34173_v9  ;;  %29166 = vmatpush3.msra.mxu0 %v31708_v45 }
 0xf5c   :  { %29209 = vmatpush3.msra.mxu1 %v34489_v16  ;;  %29167 = vmatprep.subr.mxu0 %v34173_v9 }
 0xf5d   :  { %29210 = vmatprep.subr.mxu1 %v34173_v9  ;;  %29168 = vmatpush3.msra.mxu0 %v31763_v39 }
 0xf5e   :  { %29211 = vmatpush3.msra.mxu1 %v34490_v33  ;;  %29169 = vmatprep.subr.mxu0 %v34173_v9 }
 0xf5f   :  { %29212 = vmatprep.subr.mxu1 %v34173_v9  ;;  %29170 = vmatpush3.msra.mxu0 %v31790_v36 }
 0xf60   :  { %29213 = vmatpush3.msra.mxu1 %v34491_v19  ;;  %29171 = vmatprep.subr.mxu0 %v34173_v9 }
 0xf61   :  { %29214 = vmatprep.subr.mxu1 %v34173_v9  ;;  %29172 = vmatpush3.msra.mxu0 %v31796_v2 }
 0xf62   :  { %29215 = vmatpush3.msra.mxu1 %v34492_v20  ;;  %29173 = vmatprep.subr.mxu0 %v34173_v9 }
 0xf63   :  { %29216 = vmatprep.subr.mxu1 %v34173_v9  ;;  %29174 = vmatpush3.msra.mxu0 %v31798_v55 }
 0xf64   :  { %29217 = vmatpush3.msra.mxu1 %v34493_v24  ;;  %29175 = vmatprep.subr.mxu0 %v34173_v9 }
 0xf65   :  { %29218 = vmatprep.mubr.msk.f32.mxu1 %vm29419_vm1, %v34173_v9  ;;  %29256 = vmatprep.subr.mxu1 %v34173_v9 }
 0xf66   :  { %29176 = vmatpush3.msra.mxu0 %v31813_v11  ;;  %29183 = vmatprep.mubr.msk.f32.mxu0 %vm29419_vm1, %v34173_v9 }
 0xf67   :  { %29177 = vmatprep.subr.mxu0 %v34173_v9 }
 0xf68   :  { %29178 = vmatpush3.msra.mxu0 %v31835_v1 }
 0xf69   :  { %29179 = vmatprep.subr.mxu0 %v34173_v9 }
 0xf6a   :  { %29180 = vmatpush3.msra.mxu0 %v31854_v60 }
 0xf6b   :  { %29181 = vmatprep.subr.mxu0 %v34173_v9 }
 0xf6c   :  { %29182 = vmatpush3.msra.mxu0 %v31870_v29 }
 0xf6d   :  { %29221 = vmatprep.subr.mxu0 %v34173_v9 }
 0xff1   :  { %v24207_v32 = vpop.f32.mrf.mxu1 }
 0xff3   :  { %v29106_v57 = vpop.f32.mrf.mxu1 }
 0xff9   :  { %v24364_v3 = vpop.f32.mrf.mxu1 }
 0xffa   :  { %v24116_v4 = vpop.f32.mrf.mxu0 }
 0xffb   :  { %v29128_v59 = vpop.f32.mrf.mxu1  ;;  %v24117_v61 = vadd.f32 %v29416_v40, %v24116_v4 }
 0xffc   :  { %v29095_v8 = vpop.f32.mrf.mxu0 }
 0xffd   :  { %v24208_v25 = vadd.f32 %v24207_v32, %v24117_v61 }
0x1002   :  { %v24287_v49 = vpop.f32.mrf.mxu0 }
0x1003   :  { %v24522_v53 = vpop.f32.mrf.mxu1  ;;  %v24288_v51 = vadd.f32 %v24287_v49, %v24208_v25 }
0x1004   :  { %v29117_v17 = vpop.f32.mrf.mxu0 }
0x1005   :  { %v29150_v12 = vpop.f32.mrf.mxu1  ;;  %v24365_v30 = vadd.f32 %v24364_v3, %v24288_v51 }
0x100b   :  { %v24447_v44 = vpop.f32.mrf.mxu0 }
0x100c   :  { %v24448_v47 = vadd.f32 %v24447_v44, %v24365_v30 }
0x100d   :  { %v29139_v13 = vpop.f32.mrf.mxu0 }
0x100e   :  { %v24523_v63 = vadd.f32 %v24522_v53, %v24448_v47 }
0x1010   :  { %v24527_v18 = vmul.f32 0.044715, %v24523_v63  ;;  %v24526_v16 = vmul.f32 0.5, %v24523_v63 }
0x1012   :  { %v24528_v35 = vmul.f32 %v24527_v18, %v24523_v63 }
0x1014   :  { %v24529_v6 = vmul.f32 %v24528_v35, %v24523_v63 }
0x1016   :  { %v24530_v21 = vadd.f32 %v24529_v6, %v24523_v63 }
0x1018   :  { %v24531_v15 = vmul.f32 0.7978846, %v24530_v21 }
0x101a   :  { %29405 = vtanh.f32 %v24531_v15 }
0x1027   :  { %v29406_v37 = vpop.eup %29405 }
0x1028   :  { %v24533_v33 = vadd.f32 1.0, %v29406_v37 }
0x102a   :  { %v24534_v19 = vmul.f32 %v24533_v33, %v24526_v16 }
0x102c   :  { %v33457_v20 = vand.u32 4294901760, %v24534_v19 }
0x102e   :  { %v33460_v24 = vsub.f32 %v24534_v19, %v33457_v20  ;;  %29219 = vmatmul.mubr.f32.vlgmr.msra.gmra.mxu1 %v33457_v20 }
0x102f   :  { %29257 = vmatpush3.msra.mxu1 %v31651_v58  ;;  %29288 = vmatprep.mubr.msk.f32.mxu1 %vm29419_vm1, %v34173_v9 }
0x1030   :  { %29258 = vmatprep.subr.mxu1 %v34173_v9  ;;  %v24618_v32 = vand.u32 4294901760, %v33460_v24 }
0x1031   :  { %29259 = vmatpush3.msra.mxu1 %v31659_v42 }
0x1032   :  { %29260 = vmatprep.subr.mxu1 %v34173_v9  ;;  %v24619_v57 = vsub.f32 %v33460_v24, %v24618_v32 }
0x1033   :  { %29261 = vmatpush3.msra.mxu1 %v31671_v46 }
0x1034   :  { %29262 = vmatprep.subr.mxu1 %v34173_v9  ;;  %v24620_v3 = vand.u32 4294901760, %v24619_v57 }
0x1035   :  { %29263 = vmatpush3.msra.mxu1 %v31673_v31 }
0x1036   :  { %29264 = vmatprep.subr.mxu1 %v34173_v9  ;;  %29184 = vmatmul.mubr.f32.vlgmr.msra.gmra.mxu0 %v24620_v3 }
0x1037   :  { %29222 = vmatpush3.msra.mxu0 %v31657_v41  ;;  %29265 = vmatpush3.msra.mxu1 %v31675_v52 }
0x1038   :  { %29223 = vmatprep.subr.mxu0 %v34173_v9  ;;  %29266 = vmatprep.subr.mxu1 %v34173_v9 }
0x1039   :  { %29224 = vmatpush3.msra.mxu0 %v31691_v34  ;;  %29267 = vmatpush3.msra.mxu1 %v31694_v62 }
0x103a   :  { %29225 = vmatprep.subr.mxu0 %v34173_v9  ;;  %29268 = vmatprep.subr.mxu1 %v34173_v9 }
0x103b   :  { %29226 = vmatpush3.msra.mxu0 %v31699_v28  ;;  %29269 = vmatpush3.msra.mxu1 %v31696_v5  ;;  %v34507_v28 = vld [vmem:[#allocation251_spill] sm:$0xff] }
0x103c   :  { %29227 = vmatprep.subr.mxu0 %v34173_v9  ;;  %29270 = vmatprep.subr.mxu1 %v34173_v9 }
0x103d   :  { %29228 = vmatpush3.msra.mxu0 %v31702_v7  ;;  %29271 = vmatpush3.msra.mxu1 %v31708_v45  ;;  %v34506_v7 = vld [vmem:[#allocation249_spill] sm:$0xff] }
0x103e   :  { %29229 = vmatprep.subr.mxu0 %v34173_v9  ;;  %29272 = vmatprep.subr.mxu1 %v34173_v9 }
0x103f   :  { %29230 = vmatpush3.msra.mxu0 %v31705_v48  ;;  %29273 = vmatpush3.msra.mxu1 %v31763_v39  ;;  %v34504_v48 = vld [vmem:[#allocation245_spill] sm:$0xff] }
0x1040   :  { %29231 = vmatprep.subr.mxu0 %v34173_v9  ;;  %29274 = vmatprep.subr.mxu1 %v34173_v9 }
0x1041   :  { %29232 = vmatpush3.msra.mxu0 %v31716_v26  ;;  %29275 = vmatpush3.msra.mxu1 %v31790_v36  ;;  %v34500_v26 = vld [vmem:[#allocation235_spill] sm:$0xff] }
0x1042   :  { %29233 = vmatprep.subr.mxu0 %v34173_v9  ;;  %29276 = vmatprep.subr.mxu1 %v34173_v9 }
0x1043   :  { %29234 = vmatpush3.msra.mxu0 %v31720_v43  ;;  %29277 = vmatpush3.msra.mxu1 %v31796_v2 }
0x1044   :  { %29235 = vmatprep.subr.mxu0 %v34173_v9  ;;  %29278 = vmatprep.subr.mxu1 %v34173_v9 }
0x1045   :  { %29236 = vmatpush3.msra.mxu0 %v31733_v38  ;;  %29279 = vmatpush3.msra.mxu1 %v31798_v55 }
0x1046   :  { %29237 = vmatprep.subr.mxu0 %v34173_v9  ;;  %29280 = vmatprep.subr.mxu1 %v34173_v9 }
0x1047   :  { %29238 = vmatpush3.msra.mxu0 %v31787_v56  ;;  %29281 = vmatpush3.msra.mxu1 %v31813_v11  ;;  %v34498_v56 = vld [vmem:[#allocation232_spill] sm:$0xff] }
0x1048   :  { %29239 = vmatprep.subr.mxu0 %v34173_v9  ;;  %29282 = vmatprep.subr.mxu1 %v34173_v9 }
0x1049   :  { %29240 = vmatpush3.msra.mxu0 %v31810_v50  ;;  %29283 = vmatpush3.msra.mxu1 %v31835_v1  ;;  %v34497_v50 = vld [vmem:[#allocation231_spill] sm:$0xff] }
0x104a   :  { %29241 = vmatprep.subr.mxu0 %v34173_v9  ;;  %29284 = vmatprep.subr.mxu1 %v34173_v9 }
0x104b   :  { %29242 = vmatpush3.msra.mxu0 %v31819_v10  ;;  %29285 = vmatpush3.msra.mxu1 %v31854_v60  ;;  %v34499_v10 = vld [vmem:[#allocation234_spill] sm:$0xff] }
0x104c   :  { %29243 = vmatprep.subr.mxu0 %v34173_v9  ;;  %29286 = vmatprep.subr.mxu1 %v34173_v9 }
0x104d   :  { %29244 = vmatpush3.msra.mxu0 %v31833_v27  ;;  %29287 = vmatpush3.msra.mxu1 %v31870_v29  ;;  %v34496_v27 = vld [vmem:[#allocation230_spill] sm:$0xff] }
0x104e   :  { %29245 = vmatprep.subr.mxu0 %v34173_v9  ;;  %29289 = vmatmul.mubr.f32.vlgmr.msra.gmra.mxu1 %v24618_v32 }
0x104f   :  { %29326 = vmatprep.subr.mxu1 %v34173_v9  ;;  %29246 = vmatpush3.msra.mxu0 %v31852_v22  ;;  %v34494_v22 = vld [vmem:[#allocation228_spill] sm:$0xff] }
0x1050   :  { %29327 = vmatpush3.msra.mxu1 %v31651_v58  ;;  %29247 = vmatprep.subr.mxu0 %v34173_v9 }
0x1051   :  { %29328 = vmatprep.subr.mxu1 %v34173_v9  ;;  %29248 = vmatpush3.msra.mxu0 %v31868_v54 }
0x1052   :  { %29329 = vmatpush3.msra.mxu1 %v31659_v42  ;;  %29249 = vmatprep.subr.mxu0 %v34173_v9 }
0x1053   :  { %29330 = vmatprep.subr.mxu1 %v34173_v9  ;;  %29250 = vmatpush3.msra.mxu0 %v31884_v0 }
0x1054   :  { %29331 = vmatpush3.msra.mxu1 %v31671_v46  ;;  %29251 = vmatprep.subr.mxu0 %v34173_v9 }
0x1055   :  { %29332 = vmatprep.subr.mxu1 %v34173_v9  ;;  %29252 = vmatpush3.msra.mxu0 %v31898_v14  ;;  %v34495_v14 = vld [vmem:[#allocation229_spill] sm:$0xff] }
0x1056   :  { %29253 = vmatprep.mubr.msk.f32.mxu0 %vm29419_vm1, %v34173_v9  ;;  %29333 = vmatpush3.msra.mxu1 %v31673_v31 }
0x1057   :  { %29254 = vmatmul.mubr.f32.vlgmr.msra.gmra.mxu0 %v33460_v24  ;;  %29291 = vmatprep.subr.mxu0 %v34173_v9 }
0x1058   :  { %29334 = vmatprep.subr.mxu1 %v34173_v9  ;;  %29292 = vmatpush3.msra.mxu0 %v34494_v22 }
0x1059   :  { %29335 = vmatpush3.msra.mxu1 %v31675_v52  ;;  %29293 = vmatprep.subr.mxu0 %v34173_v9 }
0x105a   :  { %29336 = vmatprep.subr.mxu1 %v34173_v9  ;;  %29294 = vmatpush3.msra.mxu0 %v34495_v14 }
0x105b   :  { %29337 = vmatpush3.msra.mxu1 %v31694_v62  ;;  %29295 = vmatprep.subr.mxu0 %v34173_v9  ;;  %v12675_v62 = vpop.trf.xlu1 }
0x105c   :  { %29338 = vmatprep.subr.mxu1 %v34173_v9  ;;  %29296 = vmatpush3.msra.mxu0 %v34496_v27  ;;  %12691 = vst.msk [vmem:[%s33653_s15] sm:$0xff] %vm6021_vm2, %v12675_v62 }
0x105d   :  { %29339 = vmatpush3.msra.mxu1 %v31696_v5  ;;  %29297 = vmatprep.subr.mxu0 %v34173_v9  ;;  %v34508_v5 = vld [vmem:[#allocation253_spill] sm:$0xff] }
0x105e   :  { %29340 = vmatprep.subr.mxu1 %v34173_v9  ;;  %29298 = vmatpush3.msra.mxu0 %v34497_v50 }
0x105f   :  { %29341 = vmatpush3.msra.mxu1 %v31708_v45  ;;  %29299 = vmatprep.subr.mxu0 %v34173_v9  ;;  %v34502_v45 = vld [vmem:[#allocation241_spill] sm:$0xff]  ;;  %v12676_v40 = vpop.trf.xlu1 }
0x1060   :  { %29342 = vmatprep.subr.mxu1 %v34173_v9  ;;  %29300 = vmatpush3.msra.mxu0 %v34498_v56  ;;  %12692 = vst.msk [vmem:[%s33653_s15 + $0x8] sm:$0xff] %vm6021_vm2, %v12676_v40 }
0x1061   :  { %29343 = vmatpush3.msra.mxu1 %v31763_v39  ;;  %29301 = vmatprep.subr.mxu0 %v34173_v9  ;;  %v34501_v39 = vld [vmem:[#allocation238_spill] sm:$0xff] }
0x1062   :  { %29344 = vmatprep.subr.mxu1 %v34173_v9  ;;  %29302 = vmatpush3.msra.mxu0 %v34499_v10 }
0x1063   :  { %29345 = vmatpush3.msra.mxu1 %v31790_v36  ;;  %29303 = vmatprep.subr.mxu0 %v34173_v9  ;;  %v12677_v49 = vpop.trf.xlu1 }
0x1064   :  { %29346 = vmatprep.subr.mxu1 %v34173_v9  ;;  %29304 = vmatpush3.msra.mxu0 %v34500_v26  ;;  %12693 = vst.msk [vmem:[%s33653_s15 + $0x10] sm:$0xff] %vm6021_vm2, %v12677_v49 }
0x1065   :  { %29347 = vmatpush3.msra.mxu1 %v31796_v2  ;;  %29305 = vmatprep.subr.mxu0 %v34173_v9  ;;  %v34503_v2 = vld [vmem:[#allocation243_spill] sm:$0xff] }
0x1066   :  { %29348 = vmatprep.subr.mxu1 %v34173_v9  ;;  %29306 = vmatpush3.msra.mxu0 %v34501_v39 }
0x1067   :  { %29349 = vmatpush3.msra.mxu1 %v31798_v55  ;;  %29307 = vmatprep.subr.mxu0 %v34173_v9  ;;  %v12678_v53 = vpop.trf.xlu1 }
0x1068   :  { %29350 = vmatprep.subr.mxu1 %v34173_v9  ;;  %29308 = vmatpush3.msra.mxu0 %v34502_v45  ;;  %12694 = vst.msk [vmem:[%s33653_s15 + $0x18] sm:$0xff] %vm6021_vm2, %v12678_v53 }
0x1069   :  { %29351 = vmatpush3.msra.mxu1 %v31813_v11  ;;  %29309 = vmatprep.subr.mxu0 %v34173_v9  ;;  %v34505_v11 = vld [vmem:[#allocation247_spill] sm:$0xff] }
0x106a   :  { %29352 = vmatprep.subr.mxu1 %v34173_v9  ;;  %29310 = vmatpush3.msra.mxu0 %v34503_v2 }
0x106b   :  { %29353 = vmatpush3.msra.mxu1 %v31835_v1  ;;  %29311 = vmatprep.subr.mxu0 %v34173_v9 }
0x106c   :  { %29354 = vmatprep.subr.mxu1 %v34173_v9  ;;  %29312 = vmatpush3.msra.mxu0 %v34504_v48 }
0x106d   :  { %29355 = vmatpush3.msra.mxu1 %v31854_v60  ;;  %29313 = vmatprep.subr.mxu0 %v34173_v9 }
0x106e   :  { %29356 = vmatprep.subr.mxu1 %v34173_v9  ;;  %29314 = vmatpush3.msra.mxu0 %v34505_v11 }
0x106f   :  { %29357 = vmatpush3.msra.mxu1 %v31870_v29  ;;  %29358 = vmatprep.mubr.msk.f32.mxu1 %vm29419_vm1, %v34173_v9  ;;  %v34509_v29 = vld [vmem:[#allocation255_spill] sm:$0xff] }
0x1070   :  { %29315 = vmatprep.subr.mxu0 %v34173_v9  ;;  %29359 = vmatmul.mubr.f32.vlgmr.msra.gmra.mxu1 %v33457_v20 }
0x1071   :  { %29316 = vmatpush3.msra.mxu0 %v34506_v7  ;;  %29323 = vmatprep.mubr.msk.f32.mxu0 %vm29419_vm1, %v34173_v9 }
0x1072   :  { %29317 = vmatprep.subr.mxu0 %v34173_v9 }
0x1073   :  { %29318 = vmatpush3.msra.mxu0 %v34507_v28 }
0x1074   :  { %29319 = vmatprep.subr.mxu0 %v34173_v9 }
0x1075   :  { %29320 = vmatpush3.msra.mxu0 %v34508_v5 }
0x1076   :  { %29321 = vmatprep.subr.mxu0 %v34173_v9  ;;  %v29417_v9 = vld [vmem:[%s33652_s14] ss:$0 sm:$0xff] }
0x1077   :  { %29322 = vmatpush3.msra.mxu0 %v34509_v29 }
0x1078   :  { %29324 = vmatmul.mubr.f32.vlgmr.msra.gmra.mxu0 %v33457_v20 }
0x10ee   :  { %v24773_v34 = vpop.f32.mrf.mxu1 }
0x10f0   :  { %v29220_v38 = vpop.f32.mrf.mxu1 }
0x10f6   :  { %v24622_v58 = vpop.f32.mrf.mxu0 }
0x10f7   :  { %v24623_v43 = vadd.f32 %v29417_v9, %v24622_v58 }
0x10f8   :  { %v29185_v41 = vpop.f32.mrf.mxu0 }
0x10f9   :  { %v24774_v55 = vadd.f32 %v24773_v34, %v24623_v43 }
0x110e   :  { %v24966_v42 = vpop.f32.mrf.mxu1 }
0x1110   :  { %v29290_v46 = vpop.f32.mrf.mxu1 }
0x1117   :  { %v24877_v31 = vpop.f32.mrf.mxu0 }
0x1118   :  { %v24878_v60 = vadd.f32 %v24877_v31, %v24774_v55 }
0x1119   :  { %v29255_v52 = vpop.f32.mrf.mxu0 }
0x111a   :  { %v24967_v54 = vadd.f32 %v24966_v42, %v24878_v60 }
0x1130   :  { %v25172_v36 = vpop.f32.mrf.mxu1 }
0x1132   :  { %v29360_v1 = vpop.f32.mrf.mxu1 }
0x1138   :  { %v25085_v0 = vpop.f32.mrf.mxu0 }
0x1139   :  { %v25086_v4 = vadd.f32 %v25085_v0, %v24967_v54 }
0x113a   :  { %v29325_v59 = vpop.f32.mrf.mxu0 }
0x113b   :  { %v25173_v8 = vadd.f32 %v25172_v36, %v25086_v4 }
0x113d   :  { %v25176_v61 = vadd.f32 %v25173_v8, %v33333_v23 }
0x113f   :  { %25177 = vxpose.xlu0.b32.start.end [1/1] (short) (narrow) %v25176_v61, 32 }
0x11bb   :  { %v25193_v25 = vpop.trf.xlu0 }
0x11bc   :  { %25229 = vst.msk [vmem:[%s33653_s15 + $0x20] sm:$0xff] %vm6021_vm2, %v25193_v25 }
0x11bf   :  { %v25194_v23 = vpop.trf.xlu0 }
0x11c0   :  { %25230 = vst.msk [vmem:[%s33653_s15 + $0x28] sm:$0xff] %vm6021_vm2, %v25194_v23 }
0x11c3   :  { %v25195_v17 = vpop.trf.xlu0 }
0x11c4   :  { %25231 = vst.msk [vmem:[%s33653_s15 + $0x30] sm:$0xff] %vm6021_vm2, %v25195_v17 }
0x11c7   :  { %v25196_v12 = vpop.trf.xlu0 }
0x11c8   :  { %25232 = vst.msk [vmem:[%s33653_s15 + $0x38] sm:$0xff] %vm6021_vm2, %v25196_v12 }

</bundles_post_ra>
